<compile_context>
chip_gen: v7x
topology: tpu7x:2x2x1
jax: 0.10.0
libtpu: 0.0.40
codegen_flags: <defaults>
</compile_context>

<pallas_src>
import functools

import jax
import jax.numpy as jnp
from jax.experimental import pallas as pl
from jax.experimental.pallas import tpu as pltpu


def _round_up(v, m):
    return (v + m - 1) // m * m


# ----------------------------------------------------------------------------
# Fused encoder + decoder kernel (single program; everything VMEM/register resident)
# ----------------------------------------------------------------------------
def _fused_seq2seq_kernel(*refs, hidden_p, num_layers, seq_len, bbp):
    Hp, L, T, BB = hidden_p, num_layers, seq_len, bbp
    Tm1 = T - 1

    x_ref = refs[0]                      # (Tm1*BB, C)   time-major rows: t*BB + b
    enc = refs[1:1 + 4 * L]              # per layer: w_ih, w_hh, b_gi, b_hn (gate-padded)
    dec_w_ref = refs[1 + 4 * L]          # (L, 2*Hp, 4*Hp) fused [W_ih; W_hh], cols [r|z|n_i|n_h]
    dec_b_ref = refs[2 + 4 * L]          # (L, 1, 4*Hp)   fused biases
    out_ref = refs[3 + 4 * L]            # (T, BB, Hp)
    gi_ref = refs[4 + 4 * L]             # (Tm1, BB, 3*Hp) hoisted input projections

    # ---------------- encoder: stacked GRU over the (time-major) sequence --------
    layer_in = x_ref[...]                                        # (Tm1*BB, D0)
    h_states = []
    for l in range(L):
        w_ih = enc[4 * l][...]                                   # (D_l, 3*Hp)
        w_hh = enc[4 * l + 1][...]                               # (Hp, 3*Hp)
        b_gi = enc[4 * l + 2][...]                               # (1, 3*Hp)  b_ih (+ b_hh for r,z)
        b_hn = jnp.broadcast_to(enc[4 * l + 3][...], (BB, Hp))   # hoisted broadcast

        # Input projection for the WHOLE sequence: one big MXU matmul, off the chain.
        gi_all = jnp.dot(layer_in, w_ih, preferred_element_type=jnp.float32) + b_gi
        gi_ref[...] = gi_all.reshape(Tm1, BB, 3 * Hp)            # aligned whole-tile store

        h = jnp.zeros((BB, Hp), jnp.float32)
        hs = []
        for t in range(Tm1):                                     # fully unrolled, static offsets
            gi = gi_ref[t]                                       # (BB, 3*Hp) aligned load
            gh = jnp.dot(h, w_hh, preferred_element_type=jnp.float32)
            r = jax.nn.sigmoid(gi[:, 0:Hp] + gh[:, 0:Hp])
            z = jax.nn.sigmoid(gi[:, Hp:2 * Hp] + gh[:, Hp:2 * Hp])
            n = jnp.tanh(gi[:, 2 * Hp:3 * Hp] + r * (gh[:, 2 * Hp:3 * Hp] + b_hn))
            h = n + z * (h - n)
            if l + 1 < L:
                hs.append(h)                                     # stays in registers
        h_states.append(h)
        if l + 1 < L:
            layer_in = jnp.stack(hs, axis=0).reshape(Tm1 * BB, Hp)

    # ---------------- decoder: T-step autoregressive rollout, register-resident ----
    w_d = [dec_w_ref[l] for l in range(L)]                       # (2*Hp, 4*Hp), loaded once
    b_d = [jnp.broadcast_to(dec_b_ref[l], (BB, 4 * Hp)) for l in range(L)]

    h_dec = list(h_states)                                       # rnn_states (registers)
    inp = h_states[-1]                                           # encoder_out[:, -1, :]
    outs = []
    for t in range(T):                                           # fully unrolled
        x_in = inp
        for l in range(L):
            xh = jnp.concatenate([x_in, h_dec[l]], axis=1)       # (BB, 2*Hp)
            g = jnp.dot(xh, w_d[l], preferred_element_type=jnp.float32) + b_d[l]
            r = jax.nn.sigmoid(g[:, 0:Hp])
            z = jax.nn.sigmoid(g[:, Hp:2 * Hp])
            n = jnp.tanh(g[:, 2 * Hp:3 * Hp] + r * g[:, 3 * Hp:4 * Hp])
            h_dec[l] = n + z * (h_dec[l] - n)
            x_in = h_dec[l]
        outs.append(x_in)
        inp = x_in
    # one lane-dense, unmasked store of the whole decoder output
    out_ref[...] = jnp.stack(outs, axis=0)                       # (T, BB, Hp)


# ----------------------------------------------------------------------------
# Host-side weight padding helpers (each gate gets its own Hp-lane column block)
# ----------------------------------------------------------------------------
def _pad_gate_cols(w, H, Hp, n_gates):
    """(rows, n_gates*H) -> (rows, n_gates*Hp); gate g's H cols at lanes [g*Hp, g*Hp+H)."""
    rows = w.shape[0]
    out = jnp.zeros((rows, n_gates * Hp), jnp.float32)
    for g in range(n_gates):
        out = out.at[:, g * Hp:g * Hp + H].set(w[:, g * H:(g + 1) * H])
    return out


def _pad_rows(w, rows_p):
    pad = rows_p - w.shape[0]
    if pad == 0:
        return w
    return jnp.concatenate([w, jnp.zeros((pad, w.shape[1]), w.dtype)], axis=0)


# ----------------------------------------------------------------------------
# Host-side wrapper
# ----------------------------------------------------------------------------
def seq2seq_gru_forward(x, params, state_size, num_layers):
    """x: (B, T, C) batch-first float32. Returns output_delta_frames (B, T, state_size)."""
    B, T, C = x.shape
    H, L = state_size, num_layers
    assert T >= 2, "Seq2SeqGRU_simple needs T >= 2 (encoder consumes x[:, :-1, :])"
    Hp = _round_up(H, 128)       # lane-align every gate block
    BBp = _round_up(B, 8)        # sublane-align every batch tile
    Tm1 = T - 1

    # encoder input x[:, :-1, :]: batch-pad, time-major, rows (t, b) flattened
    xe = x[:, :Tm1, :].astype(jnp.float32)
    if BBp != B:
        xe = jnp.concatenate([xe, jnp.zeros((BBp - B, Tm1, C), jnp.float32)], axis=0)
    xe = xe.transpose(1, 0, 2).reshape(Tm1 * BBp, C)

    const2 = lambda i: (0, 0)
    const3 = lambda i: (0, 0, 0)

    # --- encoder weights; fold b_hh into the r,z bias columns (n stays separate) ---
    enc_args, enc_specs = [], []
    for l in range(L):
        w_ih, w_hh, b_ih, b_hh = params["enc"][l]
        d_in = w_ih.shape[0]
        d_in_p = d_in if l == 0 else Hp
        w_ih_p = _pad_rows(_pad_gate_cols(w_ih, H, Hp, 3), d_in_p)       # (D_l, 3*Hp)
        w_hh_p = _pad_rows(_pad_gate_cols(w_hh, H, Hp, 3), Hp)           # (Hp, 3*Hp)
        b_gi = jnp.concatenate([b_ih[:2 * H] + b_hh[:2 * H], b_ih[2 * H:]]).reshape(1, 3 * H)
        b_gi_p = _pad_gate_cols(b_gi, H, Hp, 3)                          # (1, 3*Hp)
        b_hn_p = _pad_gate_cols(b_hh[2 * H:].reshape(1, H), H, Hp, 1)    # (1, Hp)
        enc_args += [w_ih_p, w_hh_p, b_gi_p, b_hn_p]
        enc_specs += [pl.BlockSpec((d_in_p, 3 * Hp), const2),
                      pl.BlockSpec((Hp, 3 * Hp), const2),
                      pl.BlockSpec((1, 3 * Hp), const2),
                      pl.BlockSpec((1, Hp), const2)]

    # --- decoder weights fused: rows [W_ih; W_hh], columns [r | z | n_i | n_h] ---
    zeros_blk = jnp.zeros((Hp, Hp), jnp.float32)
    wcat, bcat = [], []
    for l in range(L):
        w_ih, w_hh, b_ih, b_hh = params["dec"][l]
        wi = [_pad_rows(_pad_gate_cols(w_ih[:, g * H:(g + 1) * H], H, Hp, 1), Hp)
              for g in range(3)]
        wh = [_pad_rows(_pad_gate_cols(w_hh[:, g * H:(g + 1) * H], H, Hp, 1), Hp)
              for g in range(3)]
        top = jnp.concatenate([wi[0], wi[1], wi[2], zeros_blk], axis=1)   # (Hp, 4*Hp)
        bot = jnp.concatenate([wh[0], wh[1], zeros_blk, wh[2]], axis=1)   # (Hp, 4*Hp)
        wcat.append(jnp.concatenate([top, bot], axis=0))                  # (2*Hp, 4*Hp)
        b_r = _pad_gate_cols((b_ih[0:H] + b_hh[0:H]).reshape(1, H), H, Hp, 1)
        b_z = _pad_gate_cols((b_ih[H:2 * H] + b_hh[H:2 * H]).reshape(1, H), H, Hp, 1)
        b_ni = _pad_gate_cols(b_ih[2 * H:].reshape(1, H), H, Hp, 1)
        b_nh = _pad_gate_cols(b_hh[2 * H:].reshape(1, H), H, Hp, 1)
        bcat.append(jnp.concatenate([b_r, b_z, b_ni, b_nh], axis=1))      # (1, 4*Hp)
    dec_w = jnp.stack(wcat, axis=0)   # (L, 2*Hp, 4*Hp)
    dec_b = jnp.stack(bcat, axis=0)   # (L, 1, 4*Hp)

    in_specs = ([pl.BlockSpec((Tm1 * BBp, C), const2)]
                + enc_specs
                + [pl.BlockSpec((L, 2 * Hp, 4 * Hp), const3),
                   pl.BlockSpec((L, 1, 4 * Hp), const3)])
    out_spec = pl.BlockSpec((T, BBp, Hp), const3)

    # raise the scoped-VMEM limit only once the whole-sequence-resident design needs it
    in_bytes = int(xe.size + dec_w.size + dec_b.size + sum(a.size for a in enc_args)) * 4
    est_bytes = 2 * in_bytes + 2 * (T * BBp * Hp * 4) + (Tm1 * BBp * 3 * Hp * 4) + (1 << 20)
    vmem_limit = int(est_bytes * 3 // 2) if est_bytes > (32 << 20) else None

    kernel = functools.partial(_fused_seq2seq_kernel, hidden_p=Hp, num_layers=L,
                               seq_len=T, bbp=BBp)

    out = pl.pallas_call(
        kernel,
        out_shape=jax.ShapeDtypeStruct((T, BBp, Hp), jnp.float32),
        grid_spec=pltpu.PrefetchScalarGridSpec(
            num_scalar_prefetch=0,
            grid=(1,),
            in_specs=in_specs,
            out_specs=out_spec,
            scratch_shapes=[pltpu.VMEM((Tm1, BBp, 3 * Hp), jnp.float32)]),
        compiler_params=pltpu.CompilerParams(
            dimension_semantics=("arbitrary",),
            vmem_limit_bytes=vmem_limit),
    )(xe, *enc_args, dec_w, dec_b)

    # (T, BBp, Hp) -> drop batch/lane padding -> (B, T, H)
    return out[:, :B, :H].transpose(1, 0, 2)


# ----------------------------------------------------------------------------
# Deterministic parameter init (PyTorch GRU default: U(-1/sqrt(H), 1/sqrt(H)))
# Weights stored pre-transposed: w_ih (D_in, 3H), w_hh (H, 3H); gate order r, z, n.
# ----------------------------------------------------------------------------
def init_params(key, input_size, state_size, num_layers):
    H = state_size
    k = 1.0 / jnp.sqrt(jnp.float32(H))
    params = {"enc": [], "dec": []}

    def u(key, shape):
        return jax.random.uniform(key, shape, jnp.float32, minval=-k, maxval=k)

    for which, in0 in (("enc", input_size), ("dec", state_size)):
        for l in range(num_layers):
            d_in = in0 if l == 0 else H
            key, k1, k2, k3, k4 = jax.random.split(key, 5)
            params[which].append((u(k1, (d_in, 3 * H)),
                                  u(k2, (H, 3 * H)),
                                  u(k3, (3 * H,)),
                                  u(k4, (3 * H,))))
    return params


# ----------------------------------------------------------------------------
# Pure-JAX reference (step-by-step, mirrors the PyTorch semantics)
# ----------------------------------------------------------------------------
def _gru_cell_ref(x, h, w_ih, w_hh, b_ih, b_hh):
    H = h.shape[-1]
    gi = x @ w_ih + b_ih
    gh = h @ w_hh + b_hh
    r = jax.nn.sigmoid(gi[:, :H] + gh[:, :H])
    z = jax.nn.sigmoid(gi[:, H:2 * H] + gh[:, H:2 * H])
    n = jnp.tanh(gi[:, 2 * H:] + r * gh[:, 2 * H:])
    return (1.0 - z) * n + z * h


def forward_ref(x, params, H, L):
    B, T, _ = x.shape
    h = [jnp.zeros((B, H), jnp.float32) for _ in range(L)]
    inp = None
    for t in range(T - 1):
        inp = x[:, t, :]
        for l in range(L):
            w_ih, w_hh, b_ih, b_hh = params["enc"][l]
            h[l] = _gru_cell_ref(inp, h[l], w_ih, w_hh, b_ih, b_hh)
            inp = h[l]
    dec_in = inp
    outs = []
    for t in range(T):
        inp = dec_in
        for l in range(L):
            w_ih, w_hh, b_ih, b_hh = params["dec"][l]
            h[l] = _gru_cell_ref(inp, h[l], w_ih, w_hh, b_ih, b_hh)
            inp = h[l]
        outs.append(inp)
        dec_in = inp
    return jnp.stack(outs, axis=1)


# ----------------------------------------------------------------------------
if __name__ == "__main__":
    B, T, C = 4, 8, 16           # batch, sequence length, config.motion.dim
    H, L = 32, 2                 # state_size, num_layers

    key = jax.random.PRNGKey(0)
    kx, kp = jax.random.split(key)
    x = jax.random.normal(kx, (B, T, C), jnp.float32)
    params = init_params(kp, C, H, L)

    fwd = jax.jit(functools.partial(seq2seq_gru_forward,
                                    state_size=H, num_layers=L))
    out = jax.block_until_ready(fwd(x, params))
    assert out.shape == (B, T, H), out.shape

    ref = forward_ref(x, params, H, L)
    if not jnp.allclose(out, ref, atol=1e-4, rtol=1e-4):
        raise AssertionError("Pallas output mismatch vs pure-JAX reference")

    print("KERNEL_OK")
</pallas_src>

<mosaic_0001>
module attributes {stable_mosaic.version = 11 : i64} {
  func.func @_fused_seq2seq_kernel(%arg0: i32, %arg1: memref<56x16xf32, #tpu.memory_space<vmem>>, %arg2: memref<16x384xf32, #tpu.memory_space<vmem>>, %arg3: memref<128x384xf32, #tpu.memory_space<vmem>>, %arg4: memref<1x384xf32, #tpu.memory_space<vmem>>, %arg5: memref<1x128xf32, #tpu.memory_space<vmem>>, %arg6: memref<128x384xf32, #tpu.memory_space<vmem>>, %arg7: memref<128x384xf32, #tpu.memory_space<vmem>>, %arg8: memref<1x384xf32, #tpu.memory_space<vmem>>, %arg9: memref<1x128xf32, #tpu.memory_space<vmem>>, %arg10: memref<2x256x512xf32, #tpu.memory_space<vmem>>, %arg11: memref<2x1x512xf32, #tpu.memory_space<vmem>>, %arg12: memref<8x8x128xf32, #tpu.memory_space<vmem>>, %arg13: memref<7x8x384xf32, #tpu.memory_space<vmem>>) attributes {dimension_semantics = [#tpu.dimension_semantics<arbitrary>], iteration_bounds = array<i64: 1>, scalar_prefetch = 0 : i64, scratch_operands = 1 : i64, tpu.core_type = #tpu.core_type<tc>, window_params = [{pipeline_mode = #tpu.pipeline_mode<synchronous>, transform_indices = @transform_0, window_bounds = array<i64: 56, 16>}, {pipeline_mode = #tpu.pipeline_mode<synchronous>, transform_indices = @transform_1, window_bounds = array<i64: 16, 384>}, {pipeline_mode = #tpu.pipeline_mode<synchronous>, transform_indices = @transform_2, window_bounds = array<i64: 128, 384>}, {pipeline_mode = #tpu.pipeline_mode<synchronous>, transform_indices = @transform_3, window_bounds = array<i64: 1, 384>}, {pipeline_mode = #tpu.pipeline_mode<synchronous>, transform_indices = @transform_4, window_bounds = array<i64: 1, 128>}, {pipeline_mode = #tpu.pipeline_mode<synchronous>, transform_indices = @transform_5, window_bounds = array<i64: 128, 384>}, {pipeline_mode = #tpu.pipeline_mode<synchronous>, transform_indices = @transform_6, window_bounds = array<i64: 128, 384>}, {pipeline_mode = #tpu.pipeline_mode<synchronous>, transform_indices = @transform_7, window_bounds = array<i64: 1, 384>}, {pipeline_mode = #tpu.pipeline_mode<synchronous>, transform_indices = @transform_8, window_bounds = array<i64: 1, 128>}, {pipeline_mode = #tpu.pipeline_mode<synchronous>, transform_indices = @transform_9, window_bounds = array<i64: 2, 256, 512>}, {pipeline_mode = #tpu.pipeline_mode<synchronous>, transform_indices = @transform_10, window_bounds = array<i64: 2, 1, 512>}, {pipeline_mode = #tpu.pipeline_mode<synchronous>, transform_indices = @transform_11, window_bounds = array<i64: 8, 8, 128>}]} {
    %c0 = arith.constant 0 : index
    %c0_0 = arith.constant 0 : index
    %0 = vector.load %arg1[%c0, %c0_0] : memref<56x16xf32, #tpu.memory_space<vmem>>, vector<56x16xf32>
    %c0_1 = arith.constant 0 : index
    %c0_2 = arith.constant 0 : index
    %1 = vector.load %arg2[%c0_1, %c0_2] : memref<16x384xf32, #tpu.memory_space<vmem>>, vector<16x384xf32>
    %c0_3 = arith.constant 0 : index
    %c0_4 = arith.constant 0 : index
    %2 = vector.load %arg3[%c0_3, %c0_4] : memref<128x384xf32, #tpu.memory_space<vmem>>, vector<128x384xf32>
    %c0_5 = arith.constant 0 : index
    %c0_6 = arith.constant 0 : index
    %3 = vector.load %arg4[%c0_5, %c0_6] : memref<1x384xf32, #tpu.memory_space<vmem>>, vector<1x384xf32>
    %c0_7 = arith.constant 0 : index
    %c0_8 = arith.constant 0 : index
    %4 = vector.load %arg5[%c0_7, %c0_8] : memref<1x128xf32, #tpu.memory_space<vmem>>, vector<1x128xf32>
    %5 = vector.shape_cast %4 : vector<1x128xf32> to vector<1x128xf32>
    %6 = vector.broadcast %5 : vector<1x128xf32> to vector<8x128xf32>
    %cst = arith.constant dense<0.000000e+00> : vector<56x384xf32>
    %7 = tpu.matmul %0, %1, %cst {dimension_numbers = #tpu.dot_dimension_numbers<[1], [0], [0], [1], [0, 0, 1, 1], [], []>} : vector<56x16xf32>, vector<16x384xf32>, vector<56x384xf32> -> vector<56x384xf32>
    %8 = vector.broadcast %3 : vector<1x384xf32> to vector<56x384xf32>
    %9 = arith.addf %7, %8 : vector<56x384xf32>
    %10 = vector.shape_cast %9 : vector<56x384xf32> to vector<7x8x384xf32>
    %c0_9 = arith.constant 0 : index
    %c0_10 = arith.constant 0 : index
    %c0_11 = arith.constant 0 : index
    %11 = vector.load %arg13[%c0_9, %c0_10, %c0_11] : memref<7x8x384xf32, #tpu.memory_space<vmem>>, vector<7x8x384xf32>
    tpu.vector_store %arg13[%c0_9, %c0_10, %c0_11], %10 {strides = array<i32>} : memref<7x8x384xf32, #tpu.memory_space<vmem>>, vector<7x8x384xf32>,
    %cst_12 = arith.constant 0.000000e+00 : f32
    %12 = vector.broadcast %cst_12 : f32 to vector<8x128xf32>
    %c0_13 = arith.constant 0 : index
    %c0_14 = arith.constant 0 : index
    %c0_15 = arith.constant 0 : index
    %13 = vector.load %arg13[%c0_13, %c0_14, %c0_15] : memref<7x8x384xf32, #tpu.memory_space<vmem>>, vector<1x8x384xf32>
    %14 = vector.shape_cast %13 : vector<1x8x384xf32> to vector<8x384xf32>
    %cst_16 = arith.constant dense<0.000000e+00> : vector<8x384xf32>
    %15 = tpu.matmul %12, %2, %cst_16 {dimension_numbers = #tpu.dot_dimension_numbers<[1], [0], [0], [1], [0, 0, 1, 1], [], []>} : vector<8x128xf32>, vector<128x384xf32>, vector<8x384xf32> -> vector<8x384xf32>
    %16 = vector.extract_strided_slice %14 {offsets = [0, 0], sizes = [8, 128], strides = [1, 1]} : vector<8x384xf32> to vector<8x128xf32>
    %17 = vector.extract_strided_slice %15 {offsets = [0, 0], sizes = [8, 128], strides = [1, 1]} : vector<8x384xf32> to vector<8x128xf32>
    %18 = arith.addf %16, %17 : vector<8x128xf32>
    %19 = arith.negf %18 : vector<8x128xf32>
    %20 = math.exp %19 : vector<8x128xf32>
    %cst_17 = arith.constant 1.000000e+00 : f32
    %21 = vector.broadcast %cst_17 : f32 to vector<8x128xf32>
    %22 = arith.addf %21, %20 : vector<8x128xf32>
    %23 = arith.divf %21, %22 : vector<8x128xf32>
    %24 = vector.extract_strided_slice %14 {offsets = [0, 128], sizes = [8, 128], strides = [1, 1]} : vector<8x384xf32> to vector<8x128xf32>
    %25 = vector.extract_strided_slice %15 {offsets = [0, 128], sizes = [8, 128], strides = [1, 1]} : vector<8x384xf32> to vector<8x128xf32>
    %26 = arith.addf %24, %25 : vector<8x128xf32>
    %27 = arith.negf %26 : vector<8x128xf32>
    %28 = math.exp %27 : vector<8x128xf32>
    %cst_18 = arith.constant 1.000000e+00 : f32
    %29 = vector.broadcast %cst_18 : f32 to vector<8x128xf32>
    %30 = arith.addf %29, %28 : vector<8x128xf32>
    %31 = arith.divf %29, %30 : vector<8x128xf32>
    %32 = vector.extract_strided_slice %14 {offsets = [0, 256], sizes = [8, 128], strides = [1, 1]} : vector<8x384xf32> to vector<8x128xf32>
    %33 = vector.extract_strided_slice %15 {offsets = [0, 256], sizes = [8, 128], strides = [1, 1]} : vector<8x384xf32> to vector<8x128xf32>
    %34 = arith.addf %33, %6 : vector<8x128xf32>
    %35 = arith.mulf %23, %34 : vector<8x128xf32>
    %36 = arith.addf %32, %35 : vector<8x128xf32>
    %37 = math.tanh %36 : vector<8x128xf32>
    %38 = arith.subf %12, %37 : vector<8x128xf32>
    %39 = arith.mulf %31, %38 : vector<8x128xf32>
    %40 = arith.addf %37, %39 : vector<8x128xf32>
    %c1 = arith.constant 1 : index
    %c0_19 = arith.constant 0 : index
    %c0_20 = arith.constant 0 : index
    %41 = vector.load %arg13[%c1, %c0_19, %c0_20] : memref<7x8x384xf32, #tpu.memory_space<vmem>>, vector<1x8x384xf32>
    %42 = vector.shape_cast %41 : vector<1x8x384xf32> to vector<8x384xf32>
    %cst_21 = arith.constant dense<0.000000e+00> : vector<8x384xf32>
    %43 = tpu.matmul %40, %2, %cst_21 {dimension_numbers = #tpu.dot_dimension_numbers<[1], [0], [0], [1], [0, 0, 1, 1], [], []>} : vector<8x128xf32>, vector<128x384xf32>, vector<8x384xf32> -> vector<8x384xf32>
    %44 = vector.extract_strided_slice %42 {offsets = [0, 0], sizes = [8, 128], strides = [1, 1]} : vector<8x384xf32> to vector<8x128xf32>
    %45 = vector.extract_strided_slice %43 {offsets = [0, 0], sizes = [8, 128], strides = [1, 1]} : vector<8x384xf32> to vector<8x128xf32>
    %46 = arith.addf %44, %45 : vector<8x128xf32>
    %47 = arith.negf %46 : vector<8x128xf32>
    %48 = math.exp %47 : vector<8x128xf32>
    %cst_22 = arith.constant 1.000000e+00 : f32
    %49 = vector.broadcast %cst_22 : f32 to vector<8x128xf32>
    %50 = arith.addf %49, %48 : vector<8x128xf32>
    %51 = arith.divf %49, %50 : vector<8x128xf32>
    %52 = vector.extract_strided_slice %42 {offsets = [0, 128], sizes = [8, 128], strides = [1, 1]} : vector<8x384xf32> to vector<8x128xf32>
    %53 = vector.extract_strided_slice %43 {offsets = [0, 128], sizes = [8, 128], strides = [1, 1]} : vector<8x384xf32> to vector<8x128xf32>
    %54 = arith.addf %52, %53 : vector<8x128xf32>
    %55 = arith.negf %54 : vector<8x128xf32>
    %56 = math.exp %55 : vector<8x128xf32>
    %cst_23 = arith.constant 1.000000e+00 : f32
    %57 = vector.broadcast %cst_23 : f32 to vector<8x128xf32>
    %58 = arith.addf %57, %56 : vector<8x128xf32>
    %59 = arith.divf %57, %58 : vector<8x128xf32>
    %60 = vector.extract_strided_slice %42 {offsets = [0, 256], sizes = [8, 128], strides = [1, 1]} : vector<8x384xf32> to vector<8x128xf32>
    %61 = vector.extract_strided_slice %43 {offsets = [0, 256], sizes = [8, 128], strides = [1, 1]} : vector<8x384xf32> to vector<8x128xf32>
    %62 = arith.addf %61, %6 : vector<8x128xf32>
    %63 = arith.mulf %51, %62 : vector<8x128xf32>
    %64 = arith.addf %60, %63 : vector<8x128xf32>
    %65 = math.tanh %64 : vector<8x128xf32>
    %66 = arith.subf %40, %65 : vector<8x128xf32>
    %67 = arith.mulf %59, %66 : vector<8x128xf32>
    %68 = arith.addf %65, %67 : vector<8x128xf32>
    %c2 = arith.constant 2 : index
    %c0_24 = arith.constant 0 : index
    %c0_25 = arith.constant 0 : index
    %69 = vector.load %arg13[%c2, %c0_24, %c0_25] : memref<7x8x384xf32, #tpu.memory_space<vmem>>, vector<1x8x384xf32>
    %70 = vector.shape_cast %69 : vector<1x8x384xf32> to vector<8x384xf32>
    %cst_26 = arith.constant dense<0.000000e+00> : vector<8x384xf32>
    %71 = tpu.matmul %68, %2, %cst_26 {dimension_numbers = #tpu.dot_dimension_numbers<[1], [0], [0], [1], [0, 0, 1, 1], [], []>} : vector<8x128xf32>, vector<128x384xf32>, vector<8x384xf32> -> vector<8x384xf32>
    %72 = vector.extract_strided_slice %70 {offsets = [0, 0], sizes = [8, 128], strides = [1, 1]} : vector<8x384xf32> to vector<8x128xf32>
    %73 = vector.extract_strided_slice %71 {offsets = [0, 0], sizes = [8, 128], strides = [1, 1]} : vector<8x384xf32> to vector<8x128xf32>
    %74 = arith.addf %72, %73 : vector<8x128xf32>
    %75 = arith.negf %74 : vector<8x128xf32>
    %76 = math.exp %75 : vector<8x128xf32>
    %cst_27 = arith.constant 1.000000e+00 : f32
    %77 = vector.broadcast %cst_27 : f32 to vector<8x128xf32>
    %78 = arith.addf %77, %76 : vector<8x128xf32>
    %79 = arith.divf %77, %78 : vector<8x128xf32>
    %80 = vector.extract_strided_slice %70 {offsets = [0, 128], sizes = [8, 128], strides = [1, 1]} : vector<8x384xf32> to vector<8x128xf32>
    %81 = vector.extract_strided_slice %71 {offsets = [0, 128], sizes = [8, 128], strides = [1, 1]} : vector<8x384xf32> to vector<8x128xf32>
    %82 = arith.addf %80, %81 : vector<8x128xf32>
    %83 = arith.negf %82 : vector<8x128xf32>
    %84 = math.exp %83 : vector<8x128xf32>
    %cst_28 = arith.constant 1.000000e+00 : f32
    %85 = vector.broadcast %cst_28 : f32 to vector<8x128xf32>
    %86 = arith.addf %85, %84 : vector<8x128xf32>
    %87 = arith.divf %85, %86 : vector<8x128xf32>
    %88 = vector.extract_strided_slice %70 {offsets = [0, 256], sizes = [8, 128], strides = [1, 1]} : vector<8x384xf32> to vector<8x128xf32>
    %89 = vector.extract_strided_slice %71 {offsets = [0, 256], sizes = [8, 128], strides = [1, 1]} : vector<8x384xf32> to vector<8x128xf32>
    %90 = arith.addf %89, %6 : vector<8x128xf32>
    %91 = arith.mulf %79, %90 : vector<8x128xf32>
    %92 = arith.addf %88, %91 : vector<8x128xf32>
    %93 = math.tanh %92 : vector<8x128xf32>
    %94 = arith.subf %68, %93 : vector<8x128xf32>
    %95 = arith.mulf %87, %94 : vector<8x128xf32>
    %96 = arith.addf %93, %95 : vector<8x128xf32>
    %c3 = arith.constant 3 : index
    %c0_29 = arith.constant 0 : index
    %c0_30 = arith.constant 0 : index
    %97 = vector.load %arg13[%c3, %c0_29, %c0_30] : memref<7x8x384xf32, #tpu.memory_space<vmem>>, vector<1x8x384xf32>
    %98 = vector.shape_cast %97 : vector<1x8x384xf32> to vector<8x384xf32>
    %cst_31 = arith.constant dense<0.000000e+00> : vector<8x384xf32>
    %99 = tpu.matmul %96, %2, %cst_31 {dimension_numbers = #tpu.dot_dimension_numbers<[1], [0], [0], [1], [0, 0, 1, 1], [], []>} : vector<8x128xf32>, vector<128x384xf32>, vector<8x384xf32> -> vector<8x384xf32>
    %100 = vector.extract_strided_slice %98 {offsets = [0, 0], sizes = [8, 128], strides = [1, 1]} : vector<8x384xf32> to vector<8x128xf32>
    %101 = vector.extract_strided_slice %99 {offsets = [0, 0], sizes = [8, 128], strides = [1, 1]} : vector<8x384xf32> to vector<8x128xf32>
    %102 = arith.addf %100, %101 : vector<8x128xf32>
    %103 = arith.negf %102 : vector<8x128xf32>
    %104 = math.exp %103 : vector<8x128xf32>
    %cst_32 = arith.constant 1.000000e+00 : f32
    %105 = vector.broadcast %cst_32 : f32 to vector<8x128xf32>
    %106 = arith.addf %105, %104 : vector<8x128xf32>
    %107 = arith.divf %105, %106 : vector<8x128xf32>
    %108 = vector.extract_strided_slice %98 {offsets = [0, 128], sizes = [8, 128], strides = [1, 1]} : vector<8x384xf32> to vector<8x128xf32>
    %109 = vector.extract_strided_slice %99 {offsets = [0, 128], sizes = [8, 128], strides = [1, 1]} : vector<8x384xf32> to vector<8x128xf32>
    %110 = arith.addf %108, %109 : vector<8x128xf32>
    %111 = arith.negf %110 : vector<8x128xf32>
    %112 = math.exp %111 : vector<8x128xf32>
    %cst_33 = arith.constant 1.000000e+00 : f32
    %113 = vector.broadcast %cst_33 : f32 to vector<8x128xf32>
    %114 = arith.addf %113, %112 : vector<8x128xf32>
    %115 = arith.divf %113, %114 : vector<8x128xf32>
    %116 = vector.extract_strided_slice %98 {offsets = [0, 256], sizes = [8, 128], strides = [1, 1]} : vector<8x384xf32> to vector<8x128xf32>
    %117 = vector.extract_strided_slice %99 {offsets = [0, 256], sizes = [8, 128], strides = [1, 1]} : vector<8x384xf32> to vector<8x128xf32>
    %118 = arith.addf %117, %6 : vector<8x128xf32>
    %119 = arith.mulf %107, %118 : vector<8x128xf32>
    %120 = arith.addf %116, %119 : vector<8x128xf32>
    %121 = math.tanh %120 : vector<8x128xf32>
    %122 = arith.subf %96, %121 : vector<8x128xf32>
    %123 = arith.mulf %115, %122 : vector<8x128xf32>
    %124 = arith.addf %121, %123 : vector<8x128xf32>
    %c4 = arith.constant 4 : index
    %c0_34 = arith.constant 0 : index
    %c0_35 = arith.constant 0 : index
    %125 = vector.load %arg13[%c4, %c0_34, %c0_35] : memref<7x8x384xf32, #tpu.memory_space<vmem>>, vector<1x8x384xf32>
    %126 = vector.shape_cast %125 : vector<1x8x384xf32> to vector<8x384xf32>
    %cst_36 = arith.constant dense<0.000000e+00> : vector<8x384xf32>
    %127 = tpu.matmul %124, %2, %cst_36 {dimension_numbers = #tpu.dot_dimension_numbers<[1], [0], [0], [1], [0, 0, 1, 1], [], []>} : vector<8x128xf32>, vector<128x384xf32>, vector<8x384xf32> -> vector<8x384xf32>
    %128 = vector.extract_strided_slice %126 {offsets = [0, 0], sizes = [8, 128], strides = [1, 1]} : vector<8x384xf32> to vector<8x128xf32>
    %129 = vector.extract_strided_slice %127 {offsets = [0, 0], sizes = [8, 128], strides = [1, 1]} : vector<8x384xf32> to vector<8x128xf32>
    %130 = arith.addf %128, %129 : vector<8x128xf32>
    %131 = arith.negf %130 : vector<8x128xf32>
    %132 = math.exp %131 : vector<8x128xf32>
    %cst_37 = arith.constant 1.000000e+00 : f32
    %133 = vector.broadcast %cst_37 : f32 to vector<8x128xf32>
    %134 = arith.addf %133, %132 : vector<8x128xf32>
    %135 = arith.divf %133, %134 : vector<8x128xf32>
    %136 = vector.extract_strided_slice %126 {offsets = [0, 128], sizes = [8, 128], strides = [1, 1]} : vector<8x384xf32> to vector<8x128xf32>
    %137 = vector.extract_strided_slice %127 {offsets = [0, 128], sizes = [8, 128], strides = [1, 1]} : vector<8x384xf32> to vector<8x128xf32>
    %138 = arith.addf %136, %137 : vector<8x128xf32>
    %139 = arith.negf %138 : vector<8x128xf32>
    %140 = math.exp %139 : vector<8x128xf32>
    %cst_38 = arith.constant 1.000000e+00 : f32
    %141 = vector.broadcast %cst_38 : f32 to vector<8x128xf32>
    %142 = arith.addf %141, %140 : vector<8x128xf32>
    %143 = arith.divf %141, %142 : vector<8x128xf32>
    %144 = vector.extract_strided_slice %126 {offsets = [0, 256], sizes = [8, 128], strides = [1, 1]} : vector<8x384xf32> to vector<8x128xf32>
    %145 = vector.extract_strided_slice %127 {offsets = [0, 256], sizes = [8, 128], strides = [1, 1]} : vector<8x384xf32> to vector<8x128xf32>
    %146 = arith.addf %145, %6 : vector<8x128xf32>
    %147 = arith.mulf %135, %146 : vector<8x128xf32>
    %148 = arith.addf %144, %147 : vector<8x128xf32>
    %149 = math.tanh %148 : vector<8x128xf32>
    %150 = arith.subf %124, %149 : vector<8x128xf32>
    %151 = arith.mulf %143, %150 : vector<8x128xf32>
    %152 = arith.addf %149, %151 : vector<8x128xf32>
    %c5 = arith.constant 5 : index
    %c0_39 = arith.constant 0 : index
    %c0_40 = arith.constant 0 : index
    %153 = vector.load %arg13[%c5, %c0_39, %c0_40] : memref<7x8x384xf32, #tpu.memory_space<vmem>>, vector<1x8x384xf32>
    %154 = vector.shape_cast %153 : vector<1x8x384xf32> to vector<8x384xf32>
    %cst_41 = arith.constant dense<0.000000e+00> : vector<8x384xf32>
    %155 = tpu.matmul %152, %2, %cst_41 {dimension_numbers = #tpu.dot_dimension_numbers<[1], [0], [0], [1], [0, 0, 1, 1], [], []>} : vector<8x128xf32>, vector<128x384xf32>, vector<8x384xf32> -> vector<8x384xf32>
    %156 = vector.extract_strided_slice %154 {offsets = [0, 0], sizes = [8, 128], strides = [1, 1]} : vector<8x384xf32> to vector<8x128xf32>
    %157 = vector.extract_strided_slice %155 {offsets = [0, 0], sizes = [8, 128], strides = [1, 1]} : vector<8x384xf32> to vector<8x128xf32>
    %158 = arith.addf %156, %157 : vector<8x128xf32>
    %159 = arith.negf %158 : vector<8x128xf32>
    %160 = math.exp %159 : vector<8x128xf32>
    %cst_42 = arith.constant 1.000000e+00 : f32
    %161 = vector.broadcast %cst_42 : f32 to vector<8x128xf32>
    %162 = arith.addf %161, %160 : vector<8x128xf32>
    %163 = arith.divf %161, %162 : vector<8x128xf32>
    %164 = vector.extract_strided_slice %154 {offsets = [0, 128], sizes = [8, 128], strides = [1, 1]} : vector<8x384xf32> to vector<8x128xf32>
    %165 = vector.extract_strided_slice %155 {offsets = [0, 128], sizes = [8, 128], strides = [1, 1]} : vector<8x384xf32> to vector<8x128xf32>
    %166 = arith.addf %164, %165 : vector<8x128xf32>
    %167 = arith.negf %166 : vector<8x128xf32>
    %168 = math.exp %167 : vector<8x128xf32>
    %cst_43 = arith.constant 1.000000e+00 : f32
    %169 = vector.broadcast %cst_43 : f32 to vector<8x128xf32>
    %170 = arith.addf %169, %168 : vector<8x128xf32>
    %171 = arith.divf %169, %170 : vector<8x128xf32>
    %172 = vector.extract_strided_slice %154 {offsets = [0, 256], sizes = [8, 128], strides = [1, 1]} : vector<8x384xf32> to vector<8x128xf32>
    %173 = vector.extract_strided_slice %155 {offsets = [0, 256], sizes = [8, 128], strides = [1, 1]} : vector<8x384xf32> to vector<8x128xf32>
    %174 = arith.addf %173, %6 : vector<8x128xf32>
    %175 = arith.mulf %163, %174 : vector<8x128xf32>
    %176 = arith.addf %172, %175 : vector<8x128xf32>
    %177 = math.tanh %176 : vector<8x128xf32>
    %178 = arith.subf %152, %177 : vector<8x128xf32>
    %179 = arith.mulf %171, %178 : vector<8x128xf32>
    %180 = arith.addf %177, %179 : vector<8x128xf32>
    %c6 = arith.constant 6 : index
    %c0_44 = arith.constant 0 : index
    %c0_45 = arith.constant 0 : index
    %181 = vector.load %arg13[%c6, %c0_44, %c0_45] : memref<7x8x384xf32, #tpu.memory_space<vmem>>, vector<1x8x384xf32>
    %182 = vector.shape_cast %181 : vector<1x8x384xf32> to vector<8x384xf32>
    %cst_46 = arith.constant dense<0.000000e+00> : vector<8x384xf32>
    %183 = tpu.matmul %180, %2, %cst_46 {dimension_numbers = #tpu.dot_dimension_numbers<[1], [0], [0], [1], [0, 0, 1, 1], [], []>} : vector<8x128xf32>, vector<128x384xf32>, vector<8x384xf32> -> vector<8x384xf32>
    %184 = vector.extract_strided_slice %182 {offsets = [0, 0], sizes = [8, 128], strides = [1, 1]} : vector<8x384xf32> to vector<8x128xf32>
    %185 = vector.extract_strided_slice %183 {offsets = [0, 0], sizes = [8, 128], strides = [1, 1]} : vector<8x384xf32> to vector<8x128xf32>
    %186 = arith.addf %184, %185 : vector<8x128xf32>
    %187 = arith.negf %186 : vector<8x128xf32>
    %188 = math.exp %187 : vector<8x128xf32>
    %cst_47 = arith.constant 1.000000e+00 : f32
    %189 = vector.broadcast %cst_47 : f32 to vector<8x128xf32>
    %190 = arith.addf %189, %188 : vector<8x128xf32>
    %191 = arith.divf %189, %190 : vector<8x128xf32>
    %192 = vector.extract_strided_slice %182 {offsets = [0, 128], sizes = [8, 128], strides = [1, 1]} : vector<8x384xf32> to vector<8x128xf32>
    %193 = vector.extract_strided_slice %183 {offsets = [0, 128], sizes = [8, 128], strides = [1, 1]} : vector<8x384xf32> to vector<8x128xf32>
    %194 = arith.addf %192, %193 : vector<8x128xf32>
    %195 = arith.negf %194 : vector<8x128xf32>
    %196 = math.exp %195 : vector<8x128xf32>
    %cst_48 = arith.constant 1.000000e+00 : f32
    %197 = vector.broadcast %cst_48 : f32 to vector<8x128xf32>
    %198 = arith.addf %197, %196 : vector<8x128xf32>
    %199 = arith.divf %197, %198 : vector<8x128xf32>
    %200 = vector.extract_strided_slice %182 {offsets = [0, 256], sizes = [8, 128], strides = [1, 1]} : vector<8x384xf32> to vector<8x128xf32>
    %201 = vector.extract_strided_slice %183 {offsets = [0, 256], sizes = [8, 128], strides = [1, 1]} : vector<8x384xf32> to vector<8x128xf32>
    %202 = arith.addf %201, %6 : vector<8x128xf32>
    %203 = arith.mulf %191, %202 : vector<8x128xf32>
    %204 = arith.addf %200, %203 : vector<8x128xf32>
    %205 = math.tanh %204 : vector<8x128xf32>
    %206 = arith.subf %180, %205 : vector<8x128xf32>
    %207 = arith.mulf %199, %206 : vector<8x128xf32>
    %208 = arith.addf %205, %207 : vector<8x128xf32>
    %209 = vector.shape_cast %40 : vector<8x128xf32> to vector<1x8x128xf32>
    %210 = vector.shape_cast %68 : vector<8x128xf32> to vector<1x8x128xf32>
    %211 = vector.shape_cast %96 : vector<8x128xf32> to vector<1x8x128xf32>
    %212 = vector.shape_cast %124 : vector<8x128xf32> to vector<1x8x128xf32>
    %213 = vector.shape_cast %152 : vector<8x128xf32> to vector<1x8x128xf32>
    %214 = vector.shape_cast %180 : vector<8x128xf32> to vector<1x8x128xf32>
    %215 = vector.shape_cast %208 : vector<8x128xf32> to vector<1x8x128xf32>
    %216 = tpu.concatenate %209, %210, %211, %212, %213, %214, %215 in 0 : vector<1x8x128xf32>, vector<1x8x128xf32>, vector<1x8x128xf32>, vector<1x8x128xf32>, vector<1x8x128xf32>, vector<1x8x128xf32>, vector<1x8x128xf32> -> vector<7x8x128xf32>
    %217 = vector.shape_cast %216 : vector<7x8x128xf32> to vector<56x128xf32>
    %c0_49 = arith.constant 0 : index
    %c0_50 = arith.constant 0 : index
    %218 = vector.load %arg6[%c0_49, %c0_50] : memref<128x384xf32, #tpu.memory_space<vmem>>, vector<128x384xf32>
    %c0_51 = arith.constant 0 : index
    %c0_52 = arith.constant 0 : index
    %219 = vector.load %arg7[%c0_51, %c0_52] : memref<128x384xf32, #tpu.memory_space<vmem>>, vector<128x384xf32>
    %c0_53 = arith.constant 0 : index
    %c0_54 = arith.constant 0 : index
    %220 = vector.load %arg8[%c0_53, %c0_54] : memref<1x384xf32, #tpu.memory_space<vmem>>, vector<1x384xf32>
    %c0_55 = arith.constant 0 : index
    %c0_56 = arith.constant 0 : index
    %221 = vector.load %arg9[%c0_55, %c0_56] : memref<1x128xf32, #tpu.memory_space<vmem>>, vector<1x128xf32>
    %222 = vector.shape_cast %221 : vector<1x128xf32> to vector<1x128xf32>
    %223 = vector.broadcast %222 : vector<1x128xf32> to vector<8x128xf32>
    %cst_57 = arith.constant dense<0.000000e+00> : vector<56x384xf32>
    %224 = tpu.matmul %217, %218, %cst_57 {dimension_numbers = #tpu.dot_dimension_numbers<[1], [0], [0], [1], [0, 0, 1, 1], [], []>} : vector<56x128xf32>, vector<128x384xf32>, vector<56x384xf32> -> vector<56x384xf32>
    %225 = vector.broadcast %220 : vector<1x384xf32> to vector<56x384xf32>
    %226 = arith.addf %224, %225 : vector<56x384xf32>
    %227 = vector.shape_cast %226 : vector<56x384xf32> to vector<7x8x384xf32>
    %c0_58 = arith.constant 0 : index
    %c0_59 = arith.constant 0 : index
    %c0_60 = arith.constant 0 : index
    %228 = vector.load %arg13[%c0_58, %c0_59, %c0_60] : memref<7x8x384xf32, #tpu.memory_space<vmem>>, vector<7x8x384xf32>
    tpu.vector_store %arg13[%c0_58, %c0_59, %c0_60], %227 {strides = array<i32>} : memref<7x8x384xf32, #tpu.memory_space<vmem>>, vector<7x8x384xf32>,
    %cst_61 = arith.constant 0.000000e+00 : f32
    %229 = vector.broadcast %cst_61 : f32 to vector<8x128xf32>
    %c0_62 = arith.constant 0 : index
    %c0_63 = arith.constant 0 : index
    %c0_64 = arith.constant 0 : index
    %230 = vector.load %arg13[%c0_62, %c0_63, %c0_64] : memref<7x8x384xf32, #tpu.memory_space<vmem>>, vector<1x8x384xf32>
    %231 = vector.shape_cast %230 : vector<1x8x384xf32> to vector<8x384xf32>
    %cst_65 = arith.constant dense<0.000000e+00> : vector<8x384xf32>
    %232 = tpu.matmul %229, %219, %cst_65 {dimension_numbers = #tpu.dot_dimension_numbers<[1], [0], [0], [1], [0, 0, 1, 1], [], []>} : vector<8x128xf32>, vector<128x384xf32>, vector<8x384xf32> -> vector<8x384xf32>
    %233 = vector.extract_strided_slice %231 {offsets = [0, 0], sizes = [8, 128], strides = [1, 1]} : vector<8x384xf32> to vector<8x128xf32>
    %234 = vector.extract_strided_slice %232 {offsets = [0, 0], sizes = [8, 128], strides = [1, 1]} : vector<8x384xf32> to vector<8x128xf32>
    %235 = arith.addf %233, %234 : vector<8x128xf32>
    %236 = arith.negf %235 : vector<8x128xf32>
    %237 = math.exp %236 : vector<8x128xf32>
    %cst_66 = arith.constant 1.000000e+00 : f32
    %238 = vector.broadcast %cst_66 : f32 to vector<8x128xf32>
    %239 = arith.addf %238, %237 : vector<8x128xf32>
    %240 = arith.divf %238, %239 : vector<8x128xf32>
    %241 = vector.extract_strided_slice %231 {offsets = [0, 128], sizes = [8, 128], strides = [1, 1]} : vector<8x384xf32> to vector<8x128xf32>
    %242 = vector.extract_strided_slice %232 {offsets = [0, 128], sizes = [8, 128], strides = [1, 1]} : vector<8x384xf32> to vector<8x128xf32>
    %243 = arith.addf %241, %242 : vector<8x128xf32>
    %244 = arith.negf %243 : vector<8x128xf32>
    %245 = math.exp %244 : vector<8x128xf32>
    %cst_67 = arith.constant 1.000000e+00 : f32
    %246 = vector.broadcast %cst_67 : f32 to vector<8x128xf32>
    %247 = arith.addf %246, %245 : vector<8x128xf32>
    %248 = arith.divf %246, %247 : vector<8x128xf32>
    %249 = vector.extract_strided_slice %231 {offsets = [0, 256], sizes = [8, 128], strides = [1, 1]} : vector<8x384xf32> to vector<8x128xf32>
    %250 = vector.extract_strided_slice %232 {offsets = [0, 256], sizes = [8, 128], strides = [1, 1]} : vector<8x384xf32> to vector<8x128xf32>
    %251 = arith.addf %250, %223 : vector<8x128xf32>
    %252 = arith.mulf %240, %251 : vector<8x128xf32>
    %253 = arith.addf %249, %252 : vector<8x128xf32>
    %254 = math.tanh %253 : vector<8x128xf32>
    %255 = arith.subf %229, %254 : vector<8x128xf32>
    %256 = arith.mulf %248, %255 : vector<8x128xf32>
    %257 = arith.addf %254, %256 : vector<8x128xf32>
    %c1_68 = arith.constant 1 : index
    %c0_69 = arith.constant 0 : index
    %c0_70 = arith.constant 0 : index
    %258 = vector.load %arg13[%c1_68, %c0_69, %c0_70] : memref<7x8x384xf32, #tpu.memory_space<vmem>>, vector<1x8x384xf32>
    %259 = vector.shape_cast %258 : vector<1x8x384xf32> to vector<8x384xf32>
    %cst_71 = arith.constant dense<0.000000e+00> : vector<8x384xf32>
    %260 = tpu.matmul %257, %219, %cst_71 {dimension_numbers = #tpu.dot_dimension_numbers<[1], [0], [0], [1], [0, 0, 1, 1], [], []>} : vector<8x128xf32>, vector<128x384xf32>, vector<8x384xf32> -> vector<8x384xf32>
    %261 = vector.extract_strided_slice %259 {offsets = [0, 0], sizes = [8, 128], strides = [1, 1]} : vector<8x384xf32> to vector<8x128xf32>
    %262 = vector.extract_strided_slice %260 {offsets = [0, 0], sizes = [8, 128], strides = [1, 1]} : vector<8x384xf32> to vector<8x128xf32>
    %263 = arith.addf %261, %262 : vector<8x128xf32>
    %264 = arith.negf %263 : vector<8x128xf32>
    %265 = math.exp %264 : vector<8x128xf32>
    %cst_72 = arith.constant 1.000000e+00 : f32
    %266 = vector.broadcast %cst_72 : f32 to vector<8x128xf32>
    %267 = arith.addf %266, %265 : vector<8x128xf32>
    %268 = arith.divf %266, %267 : vector<8x128xf32>
    %269 = vector.extract_strided_slice %259 {offsets = [0, 128], sizes = [8, 128], strides = [1, 1]} : vector<8x384xf32> to vector<8x128xf32>
    %270 = vector.extract_strided_slice %260 {offsets = [0, 128], sizes = [8, 128], strides = [1, 1]} : vector<8x384xf32> to vector<8x128xf32>
    %271 = arith.addf %269, %270 : vector<8x128xf32>
    %272 = arith.negf %271 : vector<8x128xf32>
    %273 = math.exp %272 : vector<8x128xf32>
    %cst_73 = arith.constant 1.000000e+00 : f32
    %274 = vector.broadcast %cst_73 : f32 to vector<8x128xf32>
    %275 = arith.addf %274, %273 : vector<8x128xf32>
    %276 = arith.divf %274, %275 : vector<8x128xf32>
    %277 = vector.extract_strided_slice %259 {offsets = [0, 256], sizes = [8, 128], strides = [1, 1]} : vector<8x384xf32> to vector<8x128xf32>
    %278 = vector.extract_strided_slice %260 {offsets = [0, 256], sizes = [8, 128], strides = [1, 1]} : vector<8x384xf32> to vector<8x128xf32>
    %279 = arith.addf %278, %223 : vector<8x128xf32>
    %280 = arith.mulf %268, %279 : vector<8x128xf32>
    %281 = arith.addf %277, %280 : vector<8x128xf32>
    %282 = math.tanh %281 : vector<8x128xf32>
    %283 = arith.subf %257, %282 : vector<8x128xf32>
    %284 = arith.mulf %276, %283 : vector<8x128xf32>
    %285 = arith.addf %282, %284 : vector<8x128xf32>
    %c2_74 = arith.constant 2 : index
    %c0_75 = arith.constant 0 : index
    %c0_76 = arith.constant 0 : index
    %286 = vector.load %arg13[%c2_74, %c0_75, %c0_76] : memref<7x8x384xf32, #tpu.memory_space<vmem>>, vector<1x8x384xf32>
    %287 = vector.shape_cast %286 : vector<1x8x384xf32> to vector<8x384xf32>
    %cst_77 = arith.constant dense<0.000000e+00> : vector<8x384xf32>
    %288 = tpu.matmul %285, %219, %cst_77 {dimension_numbers = #tpu.dot_dimension_numbers<[1], [0], [0], [1], [0, 0, 1, 1], [], []>} : vector<8x128xf32>, vector<128x384xf32>, vector<8x384xf32> -> vector<8x384xf32>
    %289 = vector.extract_strided_slice %287 {offsets = [0, 0], sizes = [8, 128], strides = [1, 1]} : vector<8x384xf32> to vector<8x128xf32>
    %290 = vector.extract_strided_slice %288 {offsets = [0, 0], sizes = [8, 128], strides = [1, 1]} : vector<8x384xf32> to vector<8x128xf32>
    %291 = arith.addf %289, %290 : vector<8x128xf32>
    %292 = arith.negf %291 : vector<8x128xf32>
    %293 = math.exp %292 : vector<8x128xf32>
    %cst_78 = arith.constant 1.000000e+00 : f32
    %294 = vector.broadcast %cst_78 : f32 to vector<8x128xf32>
    %295 = arith.addf %294, %293 : vector<8x128xf32>
    %296 = arith.divf %294, %295 : vector<8x128xf32>
    %297 = vector.extract_strided_slice %287 {offsets = [0, 128], sizes = [8, 128], strides = [1, 1]} : vector<8x384xf32> to vector<8x128xf32>
    %298 = vector.extract_strided_slice %288 {offsets = [0, 128], sizes = [8, 128], strides = [1, 1]} : vector<8x384xf32> to vector<8x128xf32>
    %299 = arith.addf %297, %298 : vector<8x128xf32>
    %300 = arith.negf %299 : vector<8x128xf32>
    %301 = math.exp %300 : vector<8x128xf32>
    %cst_79 = arith.constant 1.000000e+00 : f32
    %302 = vector.broadcast %cst_79 : f32 to vector<8x128xf32>
    %303 = arith.addf %302, %301 : vector<8x128xf32>
    %304 = arith.divf %302, %303 : vector<8x128xf32>
    %305 = vector.extract_strided_slice %287 {offsets = [0, 256], sizes = [8, 128], strides = [1, 1]} : vector<8x384xf32> to vector<8x128xf32>
    %306 = vector.extract_strided_slice %288 {offsets = [0, 256], sizes = [8, 128], strides = [1, 1]} : vector<8x384xf32> to vector<8x128xf32>
    %307 = arith.addf %306, %223 : vector<8x128xf32>
    %308 = arith.mulf %296, %307 : vector<8x128xf32>
    %309 = arith.addf %305, %308 : vector<8x128xf32>
    %310 = math.tanh %309 : vector<8x128xf32>
    %311 = arith.subf %285, %310 : vector<8x128xf32>
    %312 = arith.mulf %304, %311 : vector<8x128xf32>
    %313 = arith.addf %310, %312 : vector<8x128xf32>
    %c3_80 = arith.constant 3 : index
    %c0_81 = arith.constant 0 : index
    %c0_82 = arith.constant 0 : index
    %314 = vector.load %arg13[%c3_80, %c0_81, %c0_82] : memref<7x8x384xf32, #tpu.memory_space<vmem>>, vector<1x8x384xf32>
    %315 = vector.shape_cast %314 : vector<1x8x384xf32> to vector<8x384xf32>
    %cst_83 = arith.constant dense<0.000000e+00> : vector<8x384xf32>
    %316 = tpu.matmul %313, %219, %cst_83 {dimension_numbers = #tpu.dot_dimension_numbers<[1], [0], [0], [1], [0, 0, 1, 1], [], []>} : vector<8x128xf32>, vector<128x384xf32>, vector<8x384xf32> -> vector<8x384xf32>
    %317 = vector.extract_strided_slice %315 {offsets = [0, 0], sizes = [8, 128], strides = [1, 1]} : vector<8x384xf32> to vector<8x128xf32>
    %318 = vector.extract_strided_slice %316 {offsets = [0, 0], sizes = [8, 128], strides = [1, 1]} : vector<8x384xf32> to vector<8x128xf32>
    %319 = arith.addf %317, %318 : vector<8x128xf32>
    %320 = arith.negf %319 : vector<8x128xf32>
    %321 = math.exp %320 : vector<8x128xf32>
    %cst_84 = arith.constant 1.000000e+00 : f32
    %322 = vector.broadcast %cst_84 : f32 to vector<8x128xf32>
    %323 = arith.addf %322, %321 : vector<8x128xf32>
    %324 = arith.divf %322, %323 : vector<8x128xf32>
    %325 = vector.extract_strided_slice %315 {offsets = [0, 128], sizes = [8, 128], strides = [1, 1]} : vector<8x384xf32> to vector<8x128xf32>
    %326 = vector.extract_strided_slice %316 {offsets = [0, 128], sizes = [8, 128], strides = [1, 1]} : vector<8x384xf32> to vector<8x128xf32>
    %327 = arith.addf %325, %326 : vector<8x128xf32>
    %328 = arith.negf %327 : vector<8x128xf32>
    %329 = math.exp %328 : vector<8x128xf32>
    %cst_85 = arith.constant 1.000000e+00 : f32
    %330 = vector.broadcast %cst_85 : f32 to vector<8x128xf32>
    %331 = arith.addf %330, %329 : vector<8x128xf32>
    %332 = arith.divf %330, %331 : vector<8x128xf32>
    %333 = vector.extract_strided_slice %315 {offsets = [0, 256], sizes = [8, 128], strides = [1, 1]} : vector<8x384xf32> to vector<8x128xf32>
    %334 = vector.extract_strided_slice %316 {offsets = [0, 256], sizes = [8, 128], strides = [1, 1]} : vector<8x384xf32> to vector<8x128xf32>
    %335 = arith.addf %334, %223 : vector<8x128xf32>
    %336 = arith.mulf %324, %335 : vector<8x128xf32>
    %337 = arith.addf %333, %336 : vector<8x128xf32>
    %338 = math.tanh %337 : vector<8x128xf32>
    %339 = arith.subf %313, %338 : vector<8x128xf32>
    %340 = arith.mulf %332, %339 : vector<8x128xf32>
    %341 = arith.addf %338, %340 : vector<8x128xf32>
    %c4_86 = arith.constant 4 : index
    %c0_87 = arith.constant 0 : index
    %c0_88 = arith.constant 0 : index
    %342 = vector.load %arg13[%c4_86, %c0_87, %c0_88] : memref<7x8x384xf32, #tpu.memory_space<vmem>>, vector<1x8x384xf32>
    %343 = vector.shape_cast %342 : vector<1x8x384xf32> to vector<8x384xf32>
    %cst_89 = arith.constant dense<0.000000e+00> : vector<8x384xf32>
    %344 = tpu.matmul %341, %219, %cst_89 {dimension_numbers = #tpu.dot_dimension_numbers<[1], [0], [0], [1], [0, 0, 1, 1], [], []>} : vector<8x128xf32>, vector<128x384xf32>, vector<8x384xf32> -> vector<8x384xf32>
    %345 = vector.extract_strided_slice %343 {offsets = [0, 0], sizes = [8, 128], strides = [1, 1]} : vector<8x384xf32> to vector<8x128xf32>
    %346 = vector.extract_strided_slice %344 {offsets = [0, 0], sizes = [8, 128], strides = [1, 1]} : vector<8x384xf32> to vector<8x128xf32>
    %347 = arith.addf %345, %346 : vector<8x128xf32>
    %348 = arith.negf %347 : vector<8x128xf32>
    %349 = math.exp %348 : vector<8x128xf32>
    %cst_90 = arith.constant 1.000000e+00 : f32
    %350 = vector.broadcast %cst_90 : f32 to vector<8x128xf32>
    %351 = arith.addf %350, %349 : vector<8x128xf32>
    %352 = arith.divf %350, %351 : vector<8x128xf32>
    %353 = vector.extract_strided_slice %343 {offsets = [0, 128], sizes = [8, 128], strides = [1, 1]} : vector<8x384xf32> to vector<8x128xf32>
    %354 = vector.extract_strided_slice %344 {offsets = [0, 128], sizes = [8, 128], strides = [1, 1]} : vector<8x384xf32> to vector<8x128xf32>
    %355 = arith.addf %353, %354 : vector<8x128xf32>
    %356 = arith.negf %355 : vector<8x128xf32>
    %357 = math.exp %356 : vector<8x128xf32>
    %cst_91 = arith.constant 1.000000e+00 : f32
    %358 = vector.broadcast %cst_91 : f32 to vector<8x128xf32>
    %359 = arith.addf %358, %357 : vector<8x128xf32>
    %360 = arith.divf %358, %359 : vector<8x128xf32>
    %361 = vector.extract_strided_slice %343 {offsets = [0, 256], sizes = [8, 128], strides = [1, 1]} : vector<8x384xf32> to vector<8x128xf32>
    %362 = vector.extract_strided_slice %344 {offsets = [0, 256], sizes = [8, 128], strides = [1, 1]} : vector<8x384xf32> to vector<8x128xf32>
    %363 = arith.addf %362, %223 : vector<8x128xf32>
    %364 = arith.mulf %352, %363 : vector<8x128xf32>
    %365 = arith.addf %361, %364 : vector<8x128xf32>
    %366 = math.tanh %365 : vector<8x128xf32>
    %367 = arith.subf %341, %366 : vector<8x128xf32>
    %368 = arith.mulf %360, %367 : vector<8x128xf32>
    %369 = arith.addf %366, %368 : vector<8x128xf32>
    %c5_92 = arith.constant 5 : index
    %c0_93 = arith.constant 0 : index
    %c0_94 = arith.constant 0 : index
    %370 = vector.load %arg13[%c5_92, %c0_93, %c0_94] : memref<7x8x384xf32, #tpu.memory_space<vmem>>, vector<1x8x384xf32>
    %371 = vector.shape_cast %370 : vector<1x8x384xf32> to vector<8x384xf32>
    %cst_95 = arith.constant dense<0.000000e+00> : vector<8x384xf32>
    %372 = tpu.matmul %369, %219, %cst_95 {dimension_numbers = #tpu.dot_dimension_numbers<[1], [0], [0], [1], [0, 0, 1, 1], [], []>} : vector<8x128xf32>, vector<128x384xf32>, vector<8x384xf32> -> vector<8x384xf32>
    %373 = vector.extract_strided_slice %371 {offsets = [0, 0], sizes = [8, 128], strides = [1, 1]} : vector<8x384xf32> to vector<8x128xf32>
    %374 = vector.extract_strided_slice %372 {offsets = [0, 0], sizes = [8, 128], strides = [1, 1]} : vector<8x384xf32> to vector<8x128xf32>
    %375 = arith.addf %373, %374 : vector<8x128xf32>
    %376 = arith.negf %375 : vector<8x128xf32>
    %377 = math.exp %376 : vector<8x128xf32>
    %cst_96 = arith.constant 1.000000e+00 : f32
    %378 = vector.broadcast %cst_96 : f32 to vector<8x128xf32>
    %379 = arith.addf %378, %377 : vector<8x128xf32>
    %380 = arith.divf %378, %379 : vector<8x128xf32>
    %381 = vector.extract_strided_slice %371 {offsets = [0, 128], sizes = [8, 128], strides = [1, 1]} : vector<8x384xf32> to vector<8x128xf32>
    %382 = vector.extract_strided_slice %372 {offsets = [0, 128], sizes = [8, 128], strides = [1, 1]} : vector<8x384xf32> to vector<8x128xf32>
    %383 = arith.addf %381, %382 : vector<8x128xf32>
    %384 = arith.negf %383 : vector<8x128xf32>
    %385 = math.exp %384 : vector<8x128xf32>
    %cst_97 = arith.constant 1.000000e+00 : f32
    %386 = vector.broadcast %cst_97 : f32 to vector<8x128xf32>
    %387 = arith.addf %386, %385 : vector<8x128xf32>
    %388 = arith.divf %386, %387 : vector<8x128xf32>
    %389 = vector.extract_strided_slice %371 {offsets = [0, 256], sizes = [8, 128], strides = [1, 1]} : vector<8x384xf32> to vector<8x128xf32>
    %390 = vector.extract_strided_slice %372 {offsets = [0, 256], sizes = [8, 128], strides = [1, 1]} : vector<8x384xf32> to vector<8x128xf32>
    %391 = arith.addf %390, %223 : vector<8x128xf32>
    %392 = arith.mulf %380, %391 : vector<8x128xf32>
    %393 = arith.addf %389, %392 : vector<8x128xf32>
    %394 = math.tanh %393 : vector<8x128xf32>
    %395 = arith.subf %369, %394 : vector<8x128xf32>
    %396 = arith.mulf %388, %395 : vector<8x128xf32>
    %397 = arith.addf %394, %396 : vector<8x128xf32>
    %c6_98 = arith.constant 6 : index
    %c0_99 = arith.constant 0 : index
    %c0_100 = arith.constant 0 : index
    %398 = vector.load %arg13[%c6_98, %c0_99, %c0_100] : memref<7x8x384xf32, #tpu.memory_space<vmem>>, vector<1x8x384xf32>
    %399 = vector.shape_cast %398 : vector<1x8x384xf32> to vector<8x384xf32>
    %cst_101 = arith.constant dense<0.000000e+00> : vector<8x384xf32>
    %400 = tpu.matmul %397, %219, %cst_101 {dimension_numbers = #tpu.dot_dimension_numbers<[1], [0], [0], [1], [0, 0, 1, 1], [], []>} : vector<8x128xf32>, vector<128x384xf32>, vector<8x384xf32> -> vector<8x384xf32>
    %401 = vector.extract_strided_slice %399 {offsets = [0, 0], sizes = [8, 128], strides = [1, 1]} : vector<8x384xf32> to vector<8x128xf32>
    %402 = vector.extract_strided_slice %400 {offsets = [0, 0], sizes = [8, 128], strides = [1, 1]} : vector<8x384xf32> to vector<8x128xf32>
    %403 = arith.addf %401, %402 : vector<8x128xf32>
    %404 = arith.negf %403 : vector<8x128xf32>
    %405 = math.exp %404 : vector<8x128xf32>
    %cst_102 = arith.constant 1.000000e+00 : f32
    %406 = vector.broadcast %cst_102 : f32 to vector<8x128xf32>
    %407 = arith.addf %406, %405 : vector<8x128xf32>
    %408 = arith.divf %406, %407 : vector<8x128xf32>
    %409 = vector.extract_strided_slice %399 {offsets = [0, 128], sizes = [8, 128], strides = [1, 1]} : vector<8x384xf32> to vector<8x128xf32>
    %410 = vector.extract_strided_slice %400 {offsets = [0, 128], sizes = [8, 128], strides = [1, 1]} : vector<8x384xf32> to vector<8x128xf32>
    %411 = arith.addf %409, %410 : vector<8x128xf32>
    %412 = arith.negf %411 : vector<8x128xf32>
    %413 = math.exp %412 : vector<8x128xf32>
    %cst_103 = arith.constant 1.000000e+00 : f32
    %414 = vector.broadcast %cst_103 : f32 to vector<8x128xf32>
    %415 = arith.addf %414, %413 : vector<8x128xf32>
    %416 = arith.divf %414, %415 : vector<8x128xf32>
    %417 = vector.extract_strided_slice %399 {offsets = [0, 256], sizes = [8, 128], strides = [1, 1]} : vector<8x384xf32> to vector<8x128xf32>
    %418 = vector.extract_strided_slice %400 {offsets = [0, 256], sizes = [8, 128], strides = [1, 1]} : vector<8x384xf32> to vector<8x128xf32>
    %419 = arith.addf %418, %223 : vector<8x128xf32>
    %420 = arith.mulf %408, %419 : vector<8x128xf32>
    %421 = arith.addf %417, %420 : vector<8x128xf32>
    %422 = math.tanh %421 : vector<8x128xf32>
    %423 = arith.subf %397, %422 : vector<8x128xf32>
    %424 = arith.mulf %416, %423 : vector<8x128xf32>
    %425 = arith.addf %422, %424 : vector<8x128xf32>
    %c0_104 = arith.constant 0 : index
    %c0_105 = arith.constant 0 : index
    %c0_106 = arith.constant 0 : index
    %426 = vector.load %arg10[%c0_104, %c0_105, %c0_106] : memref<2x256x512xf32, #tpu.memory_space<vmem>>, vector<1x256x512xf32>
    %427 = vector.shape_cast %426 : vector<1x256x512xf32> to vector<256x512xf32>
    %c1_107 = arith.constant 1 : index
    %c0_108 = arith.constant 0 : index
    %c0_109 = arith.constant 0 : index
    %428 = vector.load %arg10[%c1_107, %c0_108, %c0_109] : memref<2x256x512xf32, #tpu.memory_space<vmem>>, vector<1x256x512xf32>
    %429 = vector.shape_cast %428 : vector<1x256x512xf32> to vector<256x512xf32>
    %c0_110 = arith.constant 0 : index
    %c0_111 = arith.constant 0 : index
    %c0_112 = arith.constant 0 : index
    %430 = vector.load %arg11[%c0_110, %c0_111, %c0_112] : memref<2x1x512xf32, #tpu.memory_space<vmem>>, vector<1x1x512xf32>
    %431 = vector.shape_cast %430 : vector<1x1x512xf32> to vector<1x512xf32>
    %432 = vector.shape_cast %431 : vector<1x512xf32> to vector<1x512xf32>
    %433 = vector.broadcast %432 : vector<1x512xf32> to vector<8x512xf32>
    %c1_113 = arith.constant 1 : index
    %c0_114 = arith.constant 0 : index
    %c0_115 = arith.constant 0 : index
    %434 = vector.load %arg11[%c1_113, %c0_114, %c0_115] : memref<2x1x512xf32, #tpu.memory_space<vmem>>, vector<1x1x512xf32>
    %435 = vector.shape_cast %434 : vector<1x1x512xf32> to vector<1x512xf32>
    %436 = vector.shape_cast %435 : vector<1x512xf32> to vector<1x512xf32>
    %437 = vector.broadcast %436 : vector<1x512xf32> to vector<8x512xf32>
    %438 = tpu.concatenate %425, %208 in 1 : vector<8x128xf32>, vector<8x128xf32> -> vector<8x256xf32>
    %cst_116 = arith.constant dense<0.000000e+00> : vector<8x512xf32>
    %439 = tpu.matmul %438, %427, %cst_116 {dimension_numbers = #tpu.dot_dimension_numbers<[1], [0], [0], [1], [0, 0, 1, 1], [], []>} : vector<8x256xf32>, vector<256x512xf32>, vector<8x512xf32> -> vector<8x512xf32>
    %440 = arith.addf %439, %433 : vector<8x512xf32>
    %441 = vector.extract_strided_slice %440 {offsets = [0, 0], sizes = [8, 128], strides = [1, 1]} : vector<8x512xf32> to vector<8x128xf32>
    %442 = arith.negf %441 : vector<8x128xf32>
    %443 = math.exp %442 : vector<8x128xf32>
    %cst_117 = arith.constant 1.000000e+00 : f32
    %444 = vector.broadcast %cst_117 : f32 to vector<8x128xf32>
    %445 = arith.addf %444, %443 : vector<8x128xf32>
    %446 = arith.divf %444, %445 : vector<8x128xf32>
    %447 = vector.extract_strided_slice %440 {offsets = [0, 128], sizes = [8, 128], strides = [1, 1]} : vector<8x512xf32> to vector<8x128xf32>
    %448 = arith.negf %447 : vector<8x128xf32>
    %449 = math.exp %448 : vector<8x128xf32>
    %cst_118 = arith.constant 1.000000e+00 : f32
    %450 = vector.broadcast %cst_118 : f32 to vector<8x128xf32>
    %451 = arith.addf %450, %449 : vector<8x128xf32>
    %452 = arith.divf %450, %451 : vector<8x128xf32>
    %453 = vector.extract_strided_slice %440 {offsets = [0, 256], sizes = [8, 128], strides = [1, 1]} : vector<8x512xf32> to vector<8x128xf32>
    %454 = vector.extract_strided_slice %440 {offsets = [0, 384], sizes = [8, 128], strides = [1, 1]} : vector<8x512xf32> to vector<8x128xf32>
    %455 = arith.mulf %446, %454 : vector<8x128xf32>
    %456 = arith.addf %453, %455 : vector<8x128xf32>
    %457 = math.tanh %456 : vector<8x128xf32>
    %458 = arith.subf %208, %457 : vector<8x128xf32>
    %459 = arith.mulf %452, %458 : vector<8x128xf32>
    %460 = arith.addf %457, %459 : vector<8x128xf32>
    %461 = tpu.concatenate %460, %425 in 1 : vector<8x128xf32>, vector<8x128xf32> -> vector<8x256xf32>
    %cst_119 = arith.constant dense<0.000000e+00> : vector<8x512xf32>
    %462 = tpu.matmul %461, %429, %cst_119 {dimension_numbers = #tpu.dot_dimension_numbers<[1], [0], [0], [1], [0, 0, 1, 1], [], []>} : vector<8x256xf32>, vector<256x512xf32>, vector<8x512xf32> -> vector<8x512xf32>
    %463 = arith.addf %462, %437 : vector<8x512xf32>
    %464 = vector.extract_strided_slice %463 {offsets = [0, 0], sizes = [8, 128], strides = [1, 1]} : vector<8x512xf32> to vector<8x128xf32>
    %465 = arith.negf %464 : vector<8x128xf32>
    %466 = math.exp %465 : vector<8x128xf32>
    %cst_120 = arith.constant 1.000000e+00 : f32
    %467 = vector.broadcast %cst_120 : f32 to vector<8x128xf32>
    %468 = arith.addf %467, %466 : vector<8x128xf32>
    %469 = arith.divf %467, %468 : vector<8x128xf32>
    %470 = vector.extract_strided_slice %463 {offsets = [0, 128], sizes = [8, 128], strides = [1, 1]} : vector<8x512xf32> to vector<8x128xf32>
    %471 = arith.negf %470 : vector<8x128xf32>
    %472 = math.exp %471 : vector<8x128xf32>
    %cst_121 = arith.constant 1.000000e+00 : f32
    %473 = vector.broadcast %cst_121 : f32 to vector<8x128xf32>
    %474 = arith.addf %473, %472 : vector<8x128xf32>
    %475 = arith.divf %473, %474 : vector<8x128xf32>
    %476 = vector.extract_strided_slice %463 {offsets = [0, 256], sizes = [8, 128], strides = [1, 1]} : vector<8x512xf32> to vector<8x128xf32>
    %477 = vector.extract_strided_slice %463 {offsets = [0, 384], sizes = [8, 128], strides = [1, 1]} : vector<8x512xf32> to vector<8x128xf32>
    %478 = arith.mulf %469, %477 : vector<8x128xf32>
    %479 = arith.addf %476, %478 : vector<8x128xf32>
    %480 = math.tanh %479 : vector<8x128xf32>
    %481 = arith.subf %425, %480 : vector<8x128xf32>
    %482 = arith.mulf %475, %481 : vector<8x128xf32>
    %483 = arith.addf %480, %482 : vector<8x128xf32>
    %484 = tpu.concatenate %483, %460 in 1 : vector<8x128xf32>, vector<8x128xf32> -> vector<8x256xf32>
    %cst_122 = arith.constant dense<0.000000e+00> : vector<8x512xf32>
    %485 = tpu.matmul %484, %427, %cst_122 {dimension_numbers = #tpu.dot_dimension_numbers<[1], [0], [0], [1], [0, 0, 1, 1], [], []>} : vector<8x256xf32>, vector<256x512xf32>, vector<8x512xf32> -> vector<8x512xf32>
    %486 = arith.addf %485, %433 : vector<8x512xf32>
    %487 = vector.extract_strided_slice %486 {offsets = [0, 0], sizes = [8, 128], strides = [1, 1]} : vector<8x512xf32> to vector<8x128xf32>
    %488 = arith.negf %487 : vector<8x128xf32>
    %489 = math.exp %488 : vector<8x128xf32>
    %cst_123 = arith.constant 1.000000e+00 : f32
    %490 = vector.broadcast %cst_123 : f32 to vector<8x128xf32>
    %491 = arith.addf %490, %489 : vector<8x128xf32>
    %492 = arith.divf %490, %491 : vector<8x128xf32>
    %493 = vector.extract_strided_slice %486 {offsets = [0, 128], sizes = [8, 128], strides = [1, 1]} : vector<8x512xf32> to vector<8x128xf32>
    %494 = arith.negf %493 : vector<8x128xf32>
    %495 = math.exp %494 : vector<8x128xf32>
    %cst_124 = arith.constant 1.000000e+00 : f32
    %496 = vector.broadcast %cst_124 : f32 to vector<8x128xf32>
    %497 = arith.addf %496, %495 : vector<8x128xf32>
    %498 = arith.divf %496, %497 : vector<8x128xf32>
    %499 = vector.extract_strided_slice %486 {offsets = [0, 256], sizes = [8, 128], strides = [1, 1]} : vector<8x512xf32> to vector<8x128xf32>
    %500 = vector.extract_strided_slice %486 {offsets = [0, 384], sizes = [8, 128], strides = [1, 1]} : vector<8x512xf32> to vector<8x128xf32>
    %501 = arith.mulf %492, %500 : vector<8x128xf32>
    %502 = arith.addf %499, %501 : vector<8x128xf32>
    %503 = math.tanh %502 : vector<8x128xf32>
    %504 = arith.subf %460, %503 : vector<8x128xf32>
    %505 = arith.mulf %498, %504 : vector<8x128xf32>
    %506 = arith.addf %503, %505 : vector<8x128xf32>
    %507 = tpu.concatenate %506, %483 in 1 : vector<8x128xf32>, vector<8x128xf32> -> vector<8x256xf32>
    %cst_125 = arith.constant dense<0.000000e+00> : vector<8x512xf32>
    %508 = tpu.matmul %507, %429, %cst_125 {dimension_numbers = #tpu.dot_dimension_numbers<[1], [0], [0], [1], [0, 0, 1, 1], [], []>} : vector<8x256xf32>, vector<256x512xf32>, vector<8x512xf32> -> vector<8x512xf32>
    %509 = arith.addf %508, %437 : vector<8x512xf32>
    %510 = vector.extract_strided_slice %509 {offsets = [0, 0], sizes = [8, 128], strides = [1, 1]} : vector<8x512xf32> to vector<8x128xf32>
    %511 = arith.negf %510 : vector<8x128xf32>
    %512 = math.exp %511 : vector<8x128xf32>
    %cst_126 = arith.constant 1.000000e+00 : f32
    %513 = vector.broadcast %cst_126 : f32 to vector<8x128xf32>
    %514 = arith.addf %513, %512 : vector<8x128xf32>
    %515 = arith.divf %513, %514 : vector<8x128xf32>
    %516 = vector.extract_strided_slice %509 {offsets = [0, 128], sizes = [8, 128], strides = [1, 1]} : vector<8x512xf32> to vector<8x128xf32>
    %517 = arith.negf %516 : vector<8x128xf32>
    %518 = math.exp %517 : vector<8x128xf32>
    %cst_127 = arith.constant 1.000000e+00 : f32
    %519 = vector.broadcast %cst_127 : f32 to vector<8x128xf32>
    %520 = arith.addf %519, %518 : vector<8x128xf32>
    %521 = arith.divf %519, %520 : vector<8x128xf32>
    %522 = vector.extract_strided_slice %509 {offsets = [0, 256], sizes = [8, 128], strides = [1, 1]} : vector<8x512xf32> to vector<8x128xf32>
    %523 = vector.extract_strided_slice %509 {offsets = [0, 384], sizes = [8, 128], strides = [1, 1]} : vector<8x512xf32> to vector<8x128xf32>
    %524 = arith.mulf %515, %523 : vector<8x128xf32>
    %525 = arith.addf %522, %524 : vector<8x128xf32>
    %526 = math.tanh %525 : vector<8x128xf32>
    %527 = arith.subf %483, %526 : vector<8x128xf32>
    %528 = arith.mulf %521, %527 : vector<8x128xf32>
    %529 = arith.addf %526, %528 : vector<8x128xf32>
    %530 = tpu.concatenate %529, %506 in 1 : vector<8x128xf32>, vector<8x128xf32> -> vector<8x256xf32>
    %cst_128 = arith.constant dense<0.000000e+00> : vector<8x512xf32>
    %531 = tpu.matmul %530, %427, %cst_128 {dimension_numbers = #tpu.dot_dimension_numbers<[1], [0], [0], [1], [0, 0, 1, 1], [], []>} : vector<8x256xf32>, vector<256x512xf32>, vector<8x512xf32> -> vector<8x512xf32>
    %532 = arith.addf %531, %433 : vector<8x512xf32>
    %533 = vector.extract_strided_slice %532 {offsets = [0, 0], sizes = [8, 128], strides = [1, 1]} : vector<8x512xf32> to vector<8x128xf32>
    %534 = arith.negf %533 : vector<8x128xf32>
    %535 = math.exp %534 : vector<8x128xf32>
    %cst_129 = arith.constant 1.000000e+00 : f32
    %536 = vector.broadcast %cst_129 : f32 to vector<8x128xf32>
    %537 = arith.addf %536, %535 : vector<8x128xf32>
    %538 = arith.divf %536, %537 : vector<8x128xf32>
    %539 = vector.extract_strided_slice %532 {offsets = [0, 128], sizes = [8, 128], strides = [1, 1]} : vector<8x512xf32> to vector<8x128xf32>
    %540 = arith.negf %539 : vector<8x128xf32>
    %541 = math.exp %540 : vector<8x128xf32>
    %cst_130 = arith.constant 1.000000e+00 : f32
    %542 = vector.broadcast %cst_130 : f32 to vector<8x128xf32>
    %543 = arith.addf %542, %541 : vector<8x128xf32>
    %544 = arith.divf %542, %543 : vector<8x128xf32>
    %545 = vector.extract_strided_slice %532 {offsets = [0, 256], sizes = [8, 128], strides = [1, 1]} : vector<8x512xf32> to vector<8x128xf32>
    %546 = vector.extract_strided_slice %532 {offsets = [0, 384], sizes = [8, 128], strides = [1, 1]} : vector<8x512xf32> to vector<8x128xf32>
    %547 = arith.mulf %538, %546 : vector<8x128xf32>
    %548 = arith.addf %545, %547 : vector<8x128xf32>
    %549 = math.tanh %548 : vector<8x128xf32>
    %550 = arith.subf %506, %549 : vector<8x128xf32>
    %551 = arith.mulf %544, %550 : vector<8x128xf32>
    %552 = arith.addf %549, %551 : vector<8x128xf32>
    %553 = tpu.concatenate %552, %529 in 1 : vector<8x128xf32>, vector<8x128xf32> -> vector<8x256xf32>
    %cst_131 = arith.constant dense<0.000000e+00> : vector<8x512xf32>
    %554 = tpu.matmul %553, %429, %cst_131 {dimension_numbers = #tpu.dot_dimension_numbers<[1], [0], [0], [1], [0, 0, 1, 1], [], []>} : vector<8x256xf32>, vector<256x512xf32>, vector<8x512xf32> -> vector<8x512xf32>
    %555 = arith.addf %554, %437 : vector<8x512xf32>
    %556 = vector.extract_strided_slice %555 {offsets = [0, 0], sizes = [8, 128], strides = [1, 1]} : vector<8x512xf32> to vector<8x128xf32>
    %557 = arith.negf %556 : vector<8x128xf32>
    %558 = math.exp %557 : vector<8x128xf32>
    %cst_132 = arith.constant 1.000000e+00 : f32
    %559 = vector.broadcast %cst_132 : f32 to vector<8x128xf32>
    %560 = arith.addf %559, %558 : vector<8x128xf32>
    %561 = arith.divf %559, %560 : vector<8x128xf32>
    %562 = vector.extract_strided_slice %555 {offsets = [0, 128], sizes = [8, 128], strides = [1, 1]} : vector<8x512xf32> to vector<8x128xf32>
    %563 = arith.negf %562 : vector<8x128xf32>
    %564 = math.exp %563 : vector<8x128xf32>
    %cst_133 = arith.constant 1.000000e+00 : f32
    %565 = vector.broadcast %cst_133 : f32 to vector<8x128xf32>
    %566 = arith.addf %565, %564 : vector<8x128xf32>
    %567 = arith.divf %565, %566 : vector<8x128xf32>
    %568 = vector.extract_strided_slice %555 {offsets = [0, 256], sizes = [8, 128], strides = [1, 1]} : vector<8x512xf32> to vector<8x128xf32>
    %569 = vector.extract_strided_slice %555 {offsets = [0, 384], sizes = [8, 128], strides = [1, 1]} : vector<8x512xf32> to vector<8x128xf32>
    %570 = arith.mulf %561, %569 : vector<8x128xf32>
    %571 = arith.addf %568, %570 : vector<8x128xf32>
    %572 = math.tanh %571 : vector<8x128xf32>
    %573 = arith.subf %529, %572 : vector<8x128xf32>
    %574 = arith.mulf %567, %573 : vector<8x128xf32>
    %575 = arith.addf %572, %574 : vector<8x128xf32>
    %576 = tpu.concatenate %575, %552 in 1 : vector<8x128xf32>, vector<8x128xf32> -> vector<8x256xf32>
    %cst_134 = arith.constant dense<0.000000e+00> : vector<8x512xf32>
    %577 = tpu.matmul %576, %427, %cst_134 {dimension_numbers = #tpu.dot_dimension_numbers<[1], [0], [0], [1], [0, 0, 1, 1], [], []>} : vector<8x256xf32>, vector<256x512xf32>, vector<8x512xf32> -> vector<8x512xf32>
    %578 = arith.addf %577, %433 : vector<8x512xf32>
    %579 = vector.extract_strided_slice %578 {offsets = [0, 0], sizes = [8, 128], strides = [1, 1]} : vector<8x512xf32> to vector<8x128xf32>
    %580 = arith.negf %579 : vector<8x128xf32>
    %581 = math.exp %580 : vector<8x128xf32>
    %cst_135 = arith.constant 1.000000e+00 : f32
    %582 = vector.broadcast %cst_135 : f32 to vector<8x128xf32>
    %583 = arith.addf %582, %581 : vector<8x128xf32>
    %584 = arith.divf %582, %583 : vector<8x128xf32>
    %585 = vector.extract_strided_slice %578 {offsets = [0, 128], sizes = [8, 128], strides = [1, 1]} : vector<8x512xf32> to vector<8x128xf32>
    %586 = arith.negf %585 : vector<8x128xf32>
    %587 = math.exp %586 : vector<8x128xf32>
    %cst_136 = arith.constant 1.000000e+00 : f32
    %588 = vector.broadcast %cst_136 : f32 to vector<8x128xf32>
    %589 = arith.addf %588, %587 : vector<8x128xf32>
    %590 = arith.divf %588, %589 : vector<8x128xf32>
    %591 = vector.extract_strided_slice %578 {offsets = [0, 256], sizes = [8, 128], strides = [1, 1]} : vector<8x512xf32> to vector<8x128xf32>
    %592 = vector.extract_strided_slice %578 {offsets = [0, 384], sizes = [8, 128], strides = [1, 1]} : vector<8x512xf32> to vector<8x128xf32>
    %593 = arith.mulf %584, %592 : vector<8x128xf32>
    %594 = arith.addf %591, %593 : vector<8x128xf32>
    %595 = math.tanh %594 : vector<8x128xf32>
    %596 = arith.subf %552, %595 : vector<8x128xf32>
    %597 = arith.mulf %590, %596 : vector<8x128xf32>
    %598 = arith.addf %595, %597 : vector<8x128xf32>
    %599 = tpu.concatenate %598, %575 in 1 : vector<8x128xf32>, vector<8x128xf32> -> vector<8x256xf32>
    %cst_137 = arith.constant dense<0.000000e+00> : vector<8x512xf32>
    %600 = tpu.matmul %599, %429, %cst_137 {dimension_numbers = #tpu.dot_dimension_numbers<[1], [0], [0], [1], [0, 0, 1, 1], [], []>} : vector<8x256xf32>, vector<256x512xf32>, vector<8x512xf32> -> vector<8x512xf32>
    %601 = arith.addf %600, %437 : vector<8x512xf32>
    %602 = vector.extract_strided_slice %601 {offsets = [0, 0], sizes = [8, 128], strides = [1, 1]} : vector<8x512xf32> to vector<8x128xf32>
    %603 = arith.negf %602 : vector<8x128xf32>
    %604 = math.exp %603 : vector<8x128xf32>
    %cst_138 = arith.constant 1.000000e+00 : f32
    %605 = vector.broadcast %cst_138 : f32 to vector<8x128xf32>
    %606 = arith.addf %605, %604 : vector<8x128xf32>
    %607 = arith.divf %605, %606 : vector<8x128xf32>
    %608 = vector.extract_strided_slice %601 {offsets = [0, 128], sizes = [8, 128], strides = [1, 1]} : vector<8x512xf32> to vector<8x128xf32>
    %609 = arith.negf %608 : vector<8x128xf32>
    %610 = math.exp %609 : vector<8x128xf32>
    %cst_139 = arith.constant 1.000000e+00 : f32
    %611 = vector.broadcast %cst_139 : f32 to vector<8x128xf32>
    %612 = arith.addf %611, %610 : vector<8x128xf32>
    %613 = arith.divf %611, %612 : vector<8x128xf32>
    %614 = vector.extract_strided_slice %601 {offsets = [0, 256], sizes = [8, 128], strides = [1, 1]} : vector<8x512xf32> to vector<8x128xf32>
    %615 = vector.extract_strided_slice %601 {offsets = [0, 384], sizes = [8, 128], strides = [1, 1]} : vector<8x512xf32> to vector<8x128xf32>
    %616 = arith.mulf %607, %615 : vector<8x128xf32>
    %617 = arith.addf %614, %616 : vector<8x128xf32>
    %618 = math.tanh %617 : vector<8x128xf32>
    %619 = arith.subf %575, %618 : vector<8x128xf32>
    %620 = arith.mulf %613, %619 : vector<8x128xf32>
    %621 = arith.addf %618, %620 : vector<8x128xf32>
    %622 = tpu.concatenate %621, %598 in 1 : vector<8x128xf32>, vector<8x128xf32> -> vector<8x256xf32>
    %cst_140 = arith.constant dense<0.000000e+00> : vector<8x512xf32>
    %623 = tpu.matmul %622, %427, %cst_140 {dimension_numbers = #tpu.dot_dimension_numbers<[1], [0], [0], [1], [0, 0, 1, 1], [], []>} : vector<8x256xf32>, vector<256x512xf32>, vector<8x512xf32> -> vector<8x512xf32>
    %624 = arith.addf %623, %433 : vector<8x512xf32>
    %625 = vector.extract_strided_slice %624 {offsets = [0, 0], sizes = [8, 128], strides = [1, 1]} : vector<8x512xf32> to vector<8x128xf32>
    %626 = arith.negf %625 : vector<8x128xf32>
    %627 = math.exp %626 : vector<8x128xf32>
    %cst_141 = arith.constant 1.000000e+00 : f32
    %628 = vector.broadcast %cst_141 : f32 to vector<8x128xf32>
    %629 = arith.addf %628, %627 : vector<8x128xf32>
    %630 = arith.divf %628, %629 : vector<8x128xf32>
    %631 = vector.extract_strided_slice %624 {offsets = [0, 128], sizes = [8, 128], strides = [1, 1]} : vector<8x512xf32> to vector<8x128xf32>
    %632 = arith.negf %631 : vector<8x128xf32>
    %633 = math.exp %632 : vector<8x128xf32>
    %cst_142 = arith.constant 1.000000e+00 : f32
    %634 = vector.broadcast %cst_142 : f32 to vector<8x128xf32>
    %635 = arith.addf %634, %633 : vector<8x128xf32>
    %636 = arith.divf %634, %635 : vector<8x128xf32>
    %637 = vector.extract_strided_slice %624 {offsets = [0, 256], sizes = [8, 128], strides = [1, 1]} : vector<8x512xf32> to vector<8x128xf32>
    %638 = vector.extract_strided_slice %624 {offsets = [0, 384], sizes = [8, 128], strides = [1, 1]} : vector<8x512xf32> to vector<8x128xf32>
    %639 = arith.mulf %630, %638 : vector<8x128xf32>
    %640 = arith.addf %637, %639 : vector<8x128xf32>
    %641 = math.tanh %640 : vector<8x128xf32>
    %642 = arith.subf %598, %641 : vector<8x128xf32>
    %643 = arith.mulf %636, %642 : vector<8x128xf32>
    %644 = arith.addf %641, %643 : vector<8x128xf32>
    %645 = tpu.concatenate %644, %621 in 1 : vector<8x128xf32>, vector<8x128xf32> -> vector<8x256xf32>
    %cst_143 = arith.constant dense<0.000000e+00> : vector<8x512xf32>
    %646 = tpu.matmul %645, %429, %cst_143 {dimension_numbers = #tpu.dot_dimension_numbers<[1], [0], [0], [1], [0, 0, 1, 1], [], []>} : vector<8x256xf32>, vector<256x512xf32>, vector<8x512xf32> -> vector<8x512xf32>
    %647 = arith.addf %646, %437 : vector<8x512xf32>
    %648 = vector.extract_strided_slice %647 {offsets = [0, 0], sizes = [8, 128], strides = [1, 1]} : vector<8x512xf32> to vector<8x128xf32>
    %649 = arith.negf %648 : vector<8x128xf32>
    %650 = math.exp %649 : vector<8x128xf32>
    %cst_144 = arith.constant 1.000000e+00 : f32
    %651 = vector.broadcast %cst_144 : f32 to vector<8x128xf32>
    %652 = arith.addf %651, %650 : vector<8x128xf32>
    %653 = arith.divf %651, %652 : vector<8x128xf32>
    %654 = vector.extract_strided_slice %647 {offsets = [0, 128], sizes = [8, 128], strides = [1, 1]} : vector<8x512xf32> to vector<8x128xf32>
    %655 = arith.negf %654 : vector<8x128xf32>
    %656 = math.exp %655 : vector<8x128xf32>
    %cst_145 = arith.constant 1.000000e+00 : f32
    %657 = vector.broadcast %cst_145 : f32 to vector<8x128xf32>
    %658 = arith.addf %657, %656 : vector<8x128xf32>
    %659 = arith.divf %657, %658 : vector<8x128xf32>
    %660 = vector.extract_strided_slice %647 {offsets = [0, 256], sizes = [8, 128], strides = [1, 1]} : vector<8x512xf32> to vector<8x128xf32>
    %661 = vector.extract_strided_slice %647 {offsets = [0, 384], sizes = [8, 128], strides = [1, 1]} : vector<8x512xf32> to vector<8x128xf32>
    %662 = arith.mulf %653, %661 : vector<8x128xf32>
    %663 = arith.addf %660, %662 : vector<8x128xf32>
    %664 = math.tanh %663 : vector<8x128xf32>
    %665 = arith.subf %621, %664 : vector<8x128xf32>
    %666 = arith.mulf %659, %665 : vector<8x128xf32>
    %667 = arith.addf %664, %666 : vector<8x128xf32>
    %668 = tpu.concatenate %667, %644 in 1 : vector<8x128xf32>, vector<8x128xf32> -> vector<8x256xf32>
    %cst_146 = arith.constant dense<0.000000e+00> : vector<8x512xf32>
    %669 = tpu.matmul %668, %427, %cst_146 {dimension_numbers = #tpu.dot_dimension_numbers<[1], [0], [0], [1], [0, 0, 1, 1], [], []>} : vector<8x256xf32>, vector<256x512xf32>, vector<8x512xf32> -> vector<8x512xf32>
    %670 = arith.addf %669, %433 : vector<8x512xf32>
    %671 = vector.extract_strided_slice %670 {offsets = [0, 0], sizes = [8, 128], strides = [1, 1]} : vector<8x512xf32> to vector<8x128xf32>
    %672 = arith.negf %671 : vector<8x128xf32>
    %673 = math.exp %672 : vector<8x128xf32>
    %cst_147 = arith.constant 1.000000e+00 : f32
    %674 = vector.broadcast %cst_147 : f32 to vector<8x128xf32>
    %675 = arith.addf %674, %673 : vector<8x128xf32>
    %676 = arith.divf %674, %675 : vector<8x128xf32>
    %677 = vector.extract_strided_slice %670 {offsets = [0, 128], sizes = [8, 128], strides = [1, 1]} : vector<8x512xf32> to vector<8x128xf32>
    %678 = arith.negf %677 : vector<8x128xf32>
    %679 = math.exp %678 : vector<8x128xf32>
    %cst_148 = arith.constant 1.000000e+00 : f32
    %680 = vector.broadcast %cst_148 : f32 to vector<8x128xf32>
    %681 = arith.addf %680, %679 : vector<8x128xf32>
    %682 = arith.divf %680, %681 : vector<8x128xf32>
    %683 = vector.extract_strided_slice %670 {offsets = [0, 256], sizes = [8, 128], strides = [1, 1]} : vector<8x512xf32> to vector<8x128xf32>
    %684 = vector.extract_strided_slice %670 {offsets = [0, 384], sizes = [8, 128], strides = [1, 1]} : vector<8x512xf32> to vector<8x128xf32>
    %685 = arith.mulf %676, %684 : vector<8x128xf32>
    %686 = arith.addf %683, %685 : vector<8x128xf32>
    %687 = math.tanh %686 : vector<8x128xf32>
    %688 = arith.subf %644, %687 : vector<8x128xf32>
    %689 = arith.mulf %682, %688 : vector<8x128xf32>
    %690 = arith.addf %687, %689 : vector<8x128xf32>
    %691 = tpu.concatenate %690, %667 in 1 : vector<8x128xf32>, vector<8x128xf32> -> vector<8x256xf32>
    %cst_149 = arith.constant dense<0.000000e+00> : vector<8x512xf32>
    %692 = tpu.matmul %691, %429, %cst_149 {dimension_numbers = #tpu.dot_dimension_numbers<[1], [0], [0], [1], [0, 0, 1, 1], [], []>} : vector<8x256xf32>, vector<256x512xf32>, vector<8x512xf32> -> vector<8x512xf32>
    %693 = arith.addf %692, %437 : vector<8x512xf32>
    %694 = vector.extract_strided_slice %693 {offsets = [0, 0], sizes = [8, 128], strides = [1, 1]} : vector<8x512xf32> to vector<8x128xf32>
    %695 = arith.negf %694 : vector<8x128xf32>
    %696 = math.exp %695 : vector<8x128xf32>
    %cst_150 = arith.constant 1.000000e+00 : f32
    %697 = vector.broadcast %cst_150 : f32 to vector<8x128xf32>
    %698 = arith.addf %697, %696 : vector<8x128xf32>
    %699 = arith.divf %697, %698 : vector<8x128xf32>
    %700 = vector.extract_strided_slice %693 {offsets = [0, 128], sizes = [8, 128], strides = [1, 1]} : vector<8x512xf32> to vector<8x128xf32>
    %701 = arith.negf %700 : vector<8x128xf32>
    %702 = math.exp %701 : vector<8x128xf32>
    %cst_151 = arith.constant 1.000000e+00 : f32
    %703 = vector.broadcast %cst_151 : f32 to vector<8x128xf32>
    %704 = arith.addf %703, %702 : vector<8x128xf32>
    %705 = arith.divf %703, %704 : vector<8x128xf32>
    %706 = vector.extract_strided_slice %693 {offsets = [0, 256], sizes = [8, 128], strides = [1, 1]} : vector<8x512xf32> to vector<8x128xf32>
    %707 = vector.extract_strided_slice %693 {offsets = [0, 384], sizes = [8, 128], strides = [1, 1]} : vector<8x512xf32> to vector<8x128xf32>
    %708 = arith.mulf %699, %707 : vector<8x128xf32>
    %709 = arith.addf %706, %708 : vector<8x128xf32>
    %710 = math.tanh %709 : vector<8x128xf32>
    %711 = arith.subf %667, %710 : vector<8x128xf32>
    %712 = arith.mulf %705, %711 : vector<8x128xf32>
    %713 = arith.addf %710, %712 : vector<8x128xf32>
    %714 = tpu.concatenate %713, %690 in 1 : vector<8x128xf32>, vector<8x128xf32> -> vector<8x256xf32>
    %cst_152 = arith.constant dense<0.000000e+00> : vector<8x512xf32>
    %715 = tpu.matmul %714, %427, %cst_152 {dimension_numbers = #tpu.dot_dimension_numbers<[1], [0], [0], [1], [0, 0, 1, 1], [], []>} : vector<8x256xf32>, vector<256x512xf32>, vector<8x512xf32> -> vector<8x512xf32>
    %716 = arith.addf %715, %433 : vector<8x512xf32>
    %717 = vector.extract_strided_slice %716 {offsets = [0, 0], sizes = [8, 128], strides = [1, 1]} : vector<8x512xf32> to vector<8x128xf32>
    %718 = arith.negf %717 : vector<8x128xf32>
    %719 = math.exp %718 : vector<8x128xf32>
    %cst_153 = arith.constant 1.000000e+00 : f32
    %720 = vector.broadcast %cst_153 : f32 to vector<8x128xf32>
    %721 = arith.addf %720, %719 : vector<8x128xf32>
    %722 = arith.divf %720, %721 : vector<8x128xf32>
    %723 = vector.extract_strided_slice %716 {offsets = [0, 128], sizes = [8, 128], strides = [1, 1]} : vector<8x512xf32> to vector<8x128xf32>
    %724 = arith.negf %723 : vector<8x128xf32>
    %725 = math.exp %724 : vector<8x128xf32>
    %cst_154 = arith.constant 1.000000e+00 : f32
    %726 = vector.broadcast %cst_154 : f32 to vector<8x128xf32>
    %727 = arith.addf %726, %725 : vector<8x128xf32>
    %728 = arith.divf %726, %727 : vector<8x128xf32>
    %729 = vector.extract_strided_slice %716 {offsets = [0, 256], sizes = [8, 128], strides = [1, 1]} : vector<8x512xf32> to vector<8x128xf32>
    %730 = vector.extract_strided_slice %716 {offsets = [0, 384], sizes = [8, 128], strides = [1, 1]} : vector<8x512xf32> to vector<8x128xf32>
    %731 = arith.mulf %722, %730 : vector<8x128xf32>
    %732 = arith.addf %729, %731 : vector<8x128xf32>
    %733 = math.tanh %732 : vector<8x128xf32>
    %734 = arith.subf %690, %733 : vector<8x128xf32>
    %735 = arith.mulf %728, %734 : vector<8x128xf32>
    %736 = arith.addf %733, %735 : vector<8x128xf32>
    %737 = tpu.concatenate %736, %713 in 1 : vector<8x128xf32>, vector<8x128xf32> -> vector<8x256xf32>
    %cst_155 = arith.constant dense<0.000000e+00> : vector<8x512xf32>
    %738 = tpu.matmul %737, %429, %cst_155 {dimension_numbers = #tpu.dot_dimension_numbers<[1], [0], [0], [1], [0, 0, 1, 1], [], []>} : vector<8x256xf32>, vector<256x512xf32>, vector<8x512xf32> -> vector<8x512xf32>
    %739 = arith.addf %738, %437 : vector<8x512xf32>
    %740 = vector.extract_strided_slice %739 {offsets = [0, 0], sizes = [8, 128], strides = [1, 1]} : vector<8x512xf32> to vector<8x128xf32>
    %741 = arith.negf %740 : vector<8x128xf32>
    %742 = math.exp %741 : vector<8x128xf32>
    %cst_156 = arith.constant 1.000000e+00 : f32
    %743 = vector.broadcast %cst_156 : f32 to vector<8x128xf32>
    %744 = arith.addf %743, %742 : vector<8x128xf32>
    %745 = arith.divf %743, %744 : vector<8x128xf32>
    %746 = vector.extract_strided_slice %739 {offsets = [0, 128], sizes = [8, 128], strides = [1, 1]} : vector<8x512xf32> to vector<8x128xf32>
    %747 = arith.negf %746 : vector<8x128xf32>
    %748 = math.exp %747 : vector<8x128xf32>
    %cst_157 = arith.constant 1.000000e+00 : f32
    %749 = vector.broadcast %cst_157 : f32 to vector<8x128xf32>
    %750 = arith.addf %749, %748 : vector<8x128xf32>
    %751 = arith.divf %749, %750 : vector<8x128xf32>
    %752 = vector.extract_strided_slice %739 {offsets = [0, 256], sizes = [8, 128], strides = [1, 1]} : vector<8x512xf32> to vector<8x128xf32>
    %753 = vector.extract_strided_slice %739 {offsets = [0, 384], sizes = [8, 128], strides = [1, 1]} : vector<8x512xf32> to vector<8x128xf32>
    %754 = arith.mulf %745, %753 : vector<8x128xf32>
    %755 = arith.addf %752, %754 : vector<8x128xf32>
    %756 = math.tanh %755 : vector<8x128xf32>
    %757 = arith.subf %713, %756 : vector<8x128xf32>
    %758 = arith.mulf %751, %757 : vector<8x128xf32>
    %759 = arith.addf %756, %758 : vector<8x128xf32>
    %760 = tpu.concatenate %759, %736 in 1 : vector<8x128xf32>, vector<8x128xf32> -> vector<8x256xf32>
    %cst_158 = arith.constant dense<0.000000e+00> : vector<8x512xf32>
    %761 = tpu.matmul %760, %427, %cst_158 {dimension_numbers = #tpu.dot_dimension_numbers<[1], [0], [0], [1], [0, 0, 1, 1], [], []>} : vector<8x256xf32>, vector<256x512xf32>, vector<8x512xf32> -> vector<8x512xf32>
    %762 = arith.addf %761, %433 : vector<8x512xf32>
    %763 = vector.extract_strided_slice %762 {offsets = [0, 0], sizes = [8, 128], strides = [1, 1]} : vector<8x512xf32> to vector<8x128xf32>
    %764 = arith.negf %763 : vector<8x128xf32>
    %765 = math.exp %764 : vector<8x128xf32>
    %cst_159 = arith.constant 1.000000e+00 : f32
    %766 = vector.broadcast %cst_159 : f32 to vector<8x128xf32>
    %767 = arith.addf %766, %765 : vector<8x128xf32>
    %768 = arith.divf %766, %767 : vector<8x128xf32>
    %769 = vector.extract_strided_slice %762 {offsets = [0, 128], sizes = [8, 128], strides = [1, 1]} : vector<8x512xf32> to vector<8x128xf32>
    %770 = arith.negf %769 : vector<8x128xf32>
    %771 = math.exp %770 : vector<8x128xf32>
    %cst_160 = arith.constant 1.000000e+00 : f32
    %772 = vector.broadcast %cst_160 : f32 to vector<8x128xf32>
    %773 = arith.addf %772, %771 : vector<8x128xf32>
    %774 = arith.divf %772, %773 : vector<8x128xf32>
    %775 = vector.extract_strided_slice %762 {offsets = [0, 256], sizes = [8, 128], strides = [1, 1]} : vector<8x512xf32> to vector<8x128xf32>
    %776 = vector.extract_strided_slice %762 {offsets = [0, 384], sizes = [8, 128], strides = [1, 1]} : vector<8x512xf32> to vector<8x128xf32>
    %777 = arith.mulf %768, %776 : vector<8x128xf32>
    %778 = arith.addf %775, %777 : vector<8x128xf32>
    %779 = math.tanh %778 : vector<8x128xf32>
    %780 = arith.subf %736, %779 : vector<8x128xf32>
    %781 = arith.mulf %774, %780 : vector<8x128xf32>
    %782 = arith.addf %779, %781 : vector<8x128xf32>
    %783 = tpu.concatenate %782, %759 in 1 : vector<8x128xf32>, vector<8x128xf32> -> vector<8x256xf32>
    %cst_161 = arith.constant dense<0.000000e+00> : vector<8x512xf32>
    %784 = tpu.matmul %783, %429, %cst_161 {dimension_numbers = #tpu.dot_dimension_numbers<[1], [0], [0], [1], [0, 0, 1, 1], [], []>} : vector<8x256xf32>, vector<256x512xf32>, vector<8x512xf32> -> vector<8x512xf32>
    %785 = arith.addf %784, %437 : vector<8x512xf32>
    %786 = vector.extract_strided_slice %785 {offsets = [0, 0], sizes = [8, 128], strides = [1, 1]} : vector<8x512xf32> to vector<8x128xf32>
    %787 = arith.negf %786 : vector<8x128xf32>
    %788 = math.exp %787 : vector<8x128xf32>
    %cst_162 = arith.constant 1.000000e+00 : f32
    %789 = vector.broadcast %cst_162 : f32 to vector<8x128xf32>
    %790 = arith.addf %789, %788 : vector<8x128xf32>
    %791 = arith.divf %789, %790 : vector<8x128xf32>
    %792 = vector.extract_strided_slice %785 {offsets = [0, 128], sizes = [8, 128], strides = [1, 1]} : vector<8x512xf32> to vector<8x128xf32>
    %793 = arith.negf %792 : vector<8x128xf32>
    %794 = math.exp %793 : vector<8x128xf32>
    %cst_163 = arith.constant 1.000000e+00 : f32
    %795 = vector.broadcast %cst_163 : f32 to vector<8x128xf32>
    %796 = arith.addf %795, %794 : vector<8x128xf32>
    %797 = arith.divf %795, %796 : vector<8x128xf32>
    %798 = vector.extract_strided_slice %785 {offsets = [0, 256], sizes = [8, 128], strides = [1, 1]} : vector<8x512xf32> to vector<8x128xf32>
    %799 = vector.extract_strided_slice %785 {offsets = [0, 384], sizes = [8, 128], strides = [1, 1]} : vector<8x512xf32> to vector<8x128xf32>
    %800 = arith.mulf %791, %799 : vector<8x128xf32>
    %801 = arith.addf %798, %800 : vector<8x128xf32>
    %802 = math.tanh %801 : vector<8x128xf32>
    %803 = arith.subf %759, %802 : vector<8x128xf32>
    %804 = arith.mulf %797, %803 : vector<8x128xf32>
    %805 = arith.addf %802, %804 : vector<8x128xf32>
    %806 = vector.shape_cast %483 : vector<8x128xf32> to vector<1x8x128xf32>
    %807 = vector.shape_cast %529 : vector<8x128xf32> to vector<1x8x128xf32>
    %808 = vector.shape_cast %575 : vector<8x128xf32> to vector<1x8x128xf32>
    %809 = vector.shape_cast %621 : vector<8x128xf32> to vector<1x8x128xf32>
    %810 = vector.shape_cast %667 : vector<8x128xf32> to vector<1x8x128xf32>
    %811 = vector.shape_cast %713 : vector<8x128xf32> to vector<1x8x128xf32>
    %812 = vector.shape_cast %759 : vector<8x128xf32> to vector<1x8x128xf32>
    %813 = vector.shape_cast %805 : vector<8x128xf32> to vector<1x8x128xf32>
    %814 = tpu.concatenate %806, %807, %808, %809, %810, %811, %812, %813 in 0 : vector<1x8x128xf32>, vector<1x8x128xf32>, vector<1x8x128xf32>, vector<1x8x128xf32>, vector<1x8x128xf32>, vector<1x8x128xf32>, vector<1x8x128xf32>, vector<1x8x128xf32> -> vector<8x8x128xf32>
    %c0_164 = arith.constant 0 : index
    %c0_165 = arith.constant 0 : index
    %c0_166 = arith.constant 0 : index
    %815 = vector.load %arg12[%c0_164, %c0_165, %c0_166] : memref<8x8x128xf32, #tpu.memory_space<vmem>>, vector<8x8x128xf32>
    tpu.vector_store %arg12[%c0_164, %c0_165, %c0_166], %814 {strides = array<i32>} : memref<8x8x128xf32, #tpu.memory_space<vmem>>, vector<8x8x128xf32>,
    return
  }
  func.func @transform_0(%arg0: i32) -> (i32, i32) {
    %c0_i32 = arith.constant 0 : i32
    %c0_i32_0 = arith.constant 0 : i32
    %c0_i32_1 = arith.constant 0 : i32
    return %c0_i32, %c0_i32_0 : i32, i32
  }
  func.func @transform_1(%arg0: i32) -> (i32, i32) {
    %c0_i32 = arith.constant 0 : i32
    %c0_i32_0 = arith.constant 0 : i32
    %c0_i32_1 = arith.constant 0 : i32
    return %c0_i32, %c0_i32_0 : i32, i32
  }
  func.func @transform_2(%arg0: i32) -> (i32, i32) {
    %c0_i32 = arith.constant 0 : i32
    %c0_i32_0 = arith.constant 0 : i32
    %c0_i32_1 = arith.constant 0 : i32
    return %c0_i32, %c0_i32_0 : i32, i32
  }
  func.func @transform_3(%arg0: i32) -> (i32, i32) {
    %c0_i32 = arith.constant 0 : i32
    %c0_i32_0 = arith.constant 0 : i32
    %c0_i32_1 = arith.constant 0 : i32
    return %c0_i32, %c0_i32_0 : i32, i32
  }
  func.func @transform_4(%arg0: i32) -> (i32, i32) {
    %c0_i32 = arith.constant 0 : i32
    %c0_i32_0 = arith.constant 0 : i32
    %c0_i32_1 = arith.constant 0 : i32
    return %c0_i32, %c0_i32_0 : i32, i32
  }
  func.func @transform_5(%arg0: i32) -> (i32, i32) {
    %c0_i32 = arith.constant 0 : i32
    %c0_i32_0 = arith.constant 0 : i32
    %c0_i32_1 = arith.constant 0 : i32
    return %c0_i32, %c0_i32_0 : i32, i32
  }
  func.func @transform_6(%arg0: i32) -> (i32, i32) {
    %c0_i32 = arith.constant 0 : i32
    %c0_i32_0 = arith.constant 0 : i32
    %c0_i32_1 = arith.constant 0 : i32
    return %c0_i32, %c0_i32_0 : i32, i32
  }
  func.func @transform_7(%arg0: i32) -> (i32, i32) {
    %c0_i32 = arith.constant 0 : i32
    %c0_i32_0 = arith.constant 0 : i32
    %c0_i32_1 = arith.constant 0 : i32
    return %c0_i32, %c0_i32_0 : i32, i32
  }
  func.func @transform_8(%arg0: i32) -> (i32, i32) {
    %c0_i32 = arith.constant 0 : i32
    %c0_i32_0 = arith.constant 0 : i32
    %c0_i32_1 = arith.constant 0 : i32
    return %c0_i32, %c0_i32_0 : i32, i32
  }
  func.func @transform_9(%arg0: i32) -> (i32, i32, i32) {
    %c0_i32 = arith.constant 0 : i32
    %c0_i32_0 = arith.constant 0 : i32
    %c0_i32_1 = arith.constant 0 : i32
    %c0_i32_2 = arith.constant 0 : i32
    return %c0_i32, %c0_i32_0, %c0_i32_1 : i32, i32, i32
  }
  func.func @transform_10(%arg0: i32) -> (i32, i32, i32) {
    %c0_i32 = arith.constant 0 : i32
    %c0_i32_0 = arith.constant 0 : i32
    %c0_i32_1 = arith.constant 0 : i32
    %c0_i32_2 = arith.constant 0 : i32
    return %c0_i32, %c0_i32_0, %c0_i32_1 : i32, i32, i32
  }
  func.func @transform_11(%arg0: i32) -> (i32, i32, i32) {
    %c0_i32 = arith.constant 0 : i32
    %c0_i32_0 = arith.constant 0 : i32
    %c0_i32_1 = arith.constant 0 : i32
    %c0_i32_2 = arith.constant 0 : i32
    return %c0_i32, %c0_i32_0, %c0_i32_1 : i32, i32, i32
  }
}

</mosaic_0001>

<bundles_post_ra>
// kernel: seq2seq_gru_forward.1
= control target key start
LH: loop header
LB: loop body
LE: loop exit
PB: predicated region body
PF: predicated region fallthrough
CT: control target
= control target key end

     0   :  { %v10210_v3 = vmov 0.0   ;;  %v10211_v4 = vmov 0.0|0.0   ;;  %vm10212_vm0 = vmmov 0   ;;  %vm123_vm1 = vcmask 130048   ;;  %s13894_s1 = inlined_call_operand.vmem [shape: f32[16,384], index: 1, kind: input, shape index: {}]   ;;  %s13895_s2 = inlined_call_operand.vmem [shape: f32[128,384], index: 2, kind: input, shape index: {}]   ;;  %s13896_s0 = inlined_call_operand.vmem [shape: f32[56,16], index: 0, kind: input, shape index: {}]   ;;  %s13897_s3 = inlined_call_operand.vmem [shape: f32[1,384], index: 3, kind: input, shape index: {}]   ;;  %s13898_s4 = inlined_call_operand.vmem [shape: f32[1,128], index: 4, kind: input, shape index: {}]   ;;  %s13899_s5 = inlined_call_operand.vmem [shape: f32[128,384], index: 5, kind: input, shape index: {}]   ;;  %s13900_s6 = inlined_call_operand.vmem [shape: f32[128,384], index: 6, kind: input, shape index: {}]   ;;  %s13901_s7 = inlined_call_operand.vmem [shape: f32[1,384], index: 7, kind: input, shape index: {}]   ;;  %s13902_s8 = inlined_call_operand.vmem [shape: f32[1,128], index: 8, kind: input, shape index: {}]   ;;  %s13903_s9 = inlined_call_operand.vmem [shape: f32[2,256,512], index: 9, kind: input, shape index: {}]   ;;  %s13904_s10 = inlined_call_operand.vmem [shape: f32[2,1,512], index: 10, kind: input, shape index: {}]   ;;  %s13905_s11 = inlined_call_operand.vmem [shape: f32[8,8,128], index: 11, kind: output, shape index: {}]  }
   0x1   :  { %v46_v0 = vld [vmem:[%s13894_s1 + $0x8] sm:$0xff]  ;;  %v49_v1 = vld [vmem:[%s13894_s1 + $0x20] sm:$0xff]  ;;  %209 = vmatprep.mubr.f32.mxu0 %v10210_v3  ;;  %6958 = vmatprep.subr.bf16.mxu1 %v10211_v4  ;;  %v48_v6 = vld [vmem:[%s13894_s1 + $0x18] sm:$0xff] }
   0x2   :  { %v45_v2 = vld [vmem:[%s13894_s1] sm:$0xff]  ;;  %v6954_v5 = vpack.c.bf16 %v49_v1, %v46_v0  ;;  %v52_v7 = vld [vmem:[%s13895_s2 + $0x8] sm:$0xff]  ;;  %6390 = vmatprep.mubr.msk.f32.mxu1 %vm10212_vm0, %v10210_v3  ;;  %v54_v12 = vld [vmem:[%s13895_s2 + $0x18] sm:$0xff] }
   0x3   :  { %v55_v8 = vld [vmem:[%s13895_s2 + $0x20] sm:$0xff]  ;;  %v6956_v9 = vpack.c.bf16 %v48_v6, %v45_v2  ;;  %v58_v13 = vld [vmem:[%s13895_s2 + $0x38] sm:$0xff]  ;;  %v61_v14 = vld [vmem:[%s13895_s2 + $0x50] sm:$0xff] }
   0x4   :  { %v10295_v10 = vpack.c.bf16 %v55_v8, %v52_v7  ;;  %v51_v11 = vld [vmem:[%s13895_s2] sm:$0xff]  ;;  %6955 = vmatprep.subr.bf16.mxu0 %v6954_v5  ;;  %v10315_v17 = vpack.c.bf16 %v61_v14, %v58_v13  ;;  %v57_v18 = vld [vmem:[%s13895_s2 + $0x30] sm:$0xff]  ;;  %v60_v19 = vld [vmem:[%s13895_s2 + $0x48] sm:$0xff] }
   0x5   :  { %6957 = vmatpush1.bf16.msra.mxu0 %v6956_v9  ;;  %v38_v15 = vld [vmem:[%s13896_s0] sm:$0xff]  ;;  %v10312_v16 = vpack.c.bf16 %v54_v12, %v51_v11  ;;  %v64_v20 = vld [vmem:[%s13895_s2 + $0x68] sm:$0xff]  ;;  %v10331_v22 = vpack.c.bf16 %v60_v19, %v57_v18  ;;  %v66_v26 = vld [vmem:[%s13895_s2 + $0x78] sm:$0xff] }
   0x6   :  { %6962 = vmatprep.subr.bf16.mxu0 %v10295_v10  ;;  %v67_v21 = vld [vmem:[%s13895_s2 + $0x80] sm:$0xff]  ;;  %v39_v23 = vld [vmem:[%s13896_s0 + $0x8] sm:$0xff]  ;;  %v70_v27 = vld [vmem:[%s13895_s2 + $0x98] sm:$0xff] }
   0x7   :  { %v10338_v24 = vpack.c.bf16 %v67_v21, %v64_v20  ;;  %v63_v25 = vld [vmem:[%s13895_s2 + $0x60] sm:$0xff]  ;;  %v73_v28 = vld [vmem:[%s13895_s2 + $0xb0] sm:$0xff]  ;;  %v50_v30 = vld [vmem:[%s13894_s1 + $0x28] sm:$0xff] }
   0x8   :  { %5912 = vmatmul.mubr.msk.f32.vlgmr.msra.gmra.mrb[0].mxu0 %vm123_vm1, %v38_v15  ;;  %v47_v29 = vld [vmem:[%s13894_s1 + $0x10] sm:$0xff]  ;;  %v10360_v31 = vpack.c.bf16 %v66_v26, %v63_v25  ;;  %v10370_v35 = vpack.c.bf16 %v73_v28, %v70_v27  ;;  %v72_v36 = vld [vmem:[%s13895_s2 + $0xa8] sm:$0xff]  ;;  %v79_v40 = vld [vmem:[%s13895_s2 + $0xe0] sm:$0xff] }
   0x9   :  { %6964 = vmatpush1.bf16.msra.mxu0 %v10312_v16  ;;  %215 = vmatprep.mubr.f32.mxu0 %v10210_v3  ;;  %v40_v32 = vld [vmem:[%s13896_s0 + $0x10] sm:$0xff]  ;;  %v6959_v34 = vpack.c.bf16 %v50_v30, %v47_v29  ;;  %v56_v38 = vld [vmem:[%s13895_s2 + $0x28] sm:$0xff]  ;;  %v59_v42 = vld [vmem:[%s13895_s2 + $0x40] sm:$0xff] }
   0xa   :  { %6966 = vmatprep.subr.bf16.mxu0 %v10315_v17  ;;  %v69_v33 = vld [vmem:[%s13895_s2 + $0x90] sm:$0xff]  ;;  %v76_v39 = vld [vmem:[%s13895_s2 + $0xc8] sm:$0xff]  ;;  %v41_v44 = vld [vmem:[%s13896_s0 + $0x18] sm:$0xff] }
   0xb   :  { %v53_v37 = vld [vmem:[%s13895_s2 + $0x10] sm:$0xff]  ;;  %6960 = vmatpush3.bf16.msra.mxu1 %v6959_v34  ;;  %v10395_v43 = vpack.c.bf16 %v72_v36, %v69_v33  ;;  %v62_v45 = vld [vmem:[%s13895_s2 + $0x58] sm:$0xff]  ;;  %v10405_v46 = vpack.c.bf16 %v79_v40, %v76_v39  ;;  %v75_v47 = vld [vmem:[%s13895_s2 + $0xc0] sm:$0xff]  ;;  %v108_v34 = vlaneseq }
   0xc   :  { %5913 = vmatmul.mubr.msk.f32.gmra.mrb[2].mxu0 %vm123_vm1, %v39_v23  ;;  %v10387_v41 = vpack.c.bf16 %v56_v38, %v53_v37  ;;  %6993 = vmatprep.subr.bf16.mxu1 %v10211_v4  ;;  %v78_v48 = vld [vmem:[%s13895_s2 + $0xd8] sm:$0xff]  ;;  %v85_v50 = vld [vmem:[%s13895_s2 + $0x110] sm:$0xff]  ;;  %v10421_v51 = vpack.c.bf16 %v62_v45, %v59_v42  ;;  %v68_v53 = vld [vmem:[%s13895_s2 + $0x88] sm:$0xff] }
   0xd   :  { %6968 = vmatpush1.bf16.msra.mxu0 %v10331_v22  ;;  %221 = vmatprep.mubr.f32.mxu0 %v10210_v3  ;;  %v82_v49 = vld [vmem:[%s13895_s2 + $0xf8] sm:$0xff]  ;;  %v65_v52 = vld [vmem:[%s13895_s2 + $0x70] sm:$0xff]  ;;  %v10434_v54 = vpack.c.bf16 %v78_v48, %v75_v47  ;;  %v42_v55 = vld [vmem:[%s13896_s0 + $0x20] sm:$0xff]  ;;  %v10614_v36 = vshrl.u32 %v108_v34, 7 }
   0xe   :  { %6970 = vmatprep.subr.bf16.mxu0 %v10338_v24  ;;  %6391 = vmatmul.mubr.msk.f32.vlgmr.msra.gmra.mrb[0].mxu1 %vm123_vm1, %v38_v15  ;;  %v10441_v56 = vpack.c.bf16 %v85_v50, %v82_v49  ;;  %v81_v57 = vld [vmem:[%s13895_s2 + $0xf0] sm:$0xff]  ;;  %v84_v58 = vld [vmem:[%s13895_s2 + $0x108] sm:$0xff]  ;;  %v91_v60 = vld [vmem:[%s13895_s2 + $0x140] sm:$0xff]  ;;  %v10457_v61 = vpack.c.bf16 %v68_v53, %v65_v52 }
   0xf   :  { %6995 = vmatpush3.bf16.msra.mxu1 %v10387_v41  ;;  %6393 = vmatprep.mubr.msk.f32.mxu1 %vm10212_vm0, %v10210_v3  ;;  %v88_v59 = vld [vmem:[%s13895_s2 + $0x128] sm:$0xff]  ;;  %v71_v62 = vld [vmem:[%s13895_s2 + $0xa0] sm:$0xff]  ;;  %v74_v63 = vld [vmem:[%s13895_s2 + $0xb8] sm:$0xff]  ;;  %v10470_v0 = vpack.c.bf16 %v84_v58, %v81_v57  ;;  %v10617_v37 = vsub.s32 2, %v10614_v36  ;;  %v10630_v57 = vsub.s32 0, %v10614_v36 }
  0x10   :  { %5914 = vmatmul.mubr.msk.f32.gmra.mrb[4].mxu0 %vm123_vm1, %v40_v32  ;;  %6996 = vmatprep.subr.bf16.mxu1 %v10211_v4  ;;  %v43_v1 = vld [vmem:[%s13896_s0 + $0x28] sm:$0xff]  ;;  %v10477_v2 = vpack.c.bf16 %v91_v60, %v88_v59  ;;  %v87_v5 = vld [vmem:[%s13895_s2 + $0x120] sm:$0xff]  ;;  %v90_v6 = vld [vmem:[%s13895_s2 + $0x138] sm:$0xff]  ;;  %v10493_v9 = vpack.c.bf16 %v74_v63, %v71_v62 }
  0x11   :  { %6972 = vmatpush1.bf16.msra.mxu0 %v10360_v31  ;;  %227 = vmatprep.mubr.f32.mxu0 %v10210_v3  ;;  %v94_v7 = vld [vmem:[%s13895_s2 + $0x158] sm:$0xff]  ;;  %v97_v8 = vld [vmem:[%s13895_s2 + $0x170] sm:$0xff]  ;;  %v80_v12 = vld [vmem:[%s13895_s2 + $0xe8] sm:$0xff]  ;;  %v10506_v13 = vpack.c.bf16 %v90_v6, %v87_v5 }
  0x12   :  { %6974 = vmatprep.subr.bf16.mxu0 %v10370_v35  ;;  %6394 = vmatmul.mubr.msk.f32.gmra.mrb[2].mxu1 %vm123_vm1, %v39_v23  ;;  %v77_v11 = vld [vmem:[%s13895_s2 + $0xd0] sm:$0xff]  ;;  %v10513_v15 = vpack.c.bf16 %v97_v8, %v94_v7  ;;  %v96_v19 = vld [vmem:[%s13895_s2 + $0x168] sm:$0xff]  ;;  %v83_v21 = vld [vmem:[%s13895_s2 + $0x100] sm:$0xff]  ;;  %v10641_v8 = vsub.s32 1, %v10614_v36 }
  0x13   :  { %6998 = vmatpush3.bf16.msra.mxu1 %v10421_v51  ;;  %6396 = vmatprep.mubr.msk.f32.mxu1 %vm10212_vm0, %v10210_v3  ;;  %v44_v14 = vld [vmem:[%s13896_s0 + $0x30] sm:$0xff]  ;;  %v10523_v20 = vpack.c.bf16 %v80_v12, %v77_v11  ;;  %v86_v23 = vld [vmem:[%s13895_s2 + $0x118] sm:$0xff]  ;;  %v92_v28 = vld [vmem:[%s13895_s2 + $0x148] sm:$0xff] }
  0x14   :  { %5915 = vmatmul.mubr.msk.f32.gmra.mrb[6].mxu0 %vm123_vm1, %v41_v44  ;;  %6999 = vmatprep.subr.bf16.mxu1 %v10211_v4  ;;  %v93_v18 = vld [vmem:[%s13895_s2 + $0x150] sm:$0xff]  ;;  %v10542_v26 = vpack.c.bf16 %v86_v23, %v83_v21  ;;  %v95_v30 = vld [vmem:[%s13895_s2 + $0x160] sm:$0xff] }
  0x15   :  { %6976 = vmatpush1.bf16.msra.mxu0 %v10395_v43  ;;  %233 = vmatprep.mubr.f32.mxu0 %v10210_v3  ;;  %v10536_v25 = vpack.c.bf16 %v96_v19, %v93_v18  ;;  %v89_v27 = vld [vmem:[%s13895_s2 + $0x130] sm:$0xff]  ;;  %v99_v38 = vld [vmem:[%s13897_s3] sm:$0x7] }
  0x16   :  { %6978 = vmatprep.subr.bf16.mxu0 %v10405_v46  ;;  %6397 = vmatmul.mubr.msk.f32.gmra.mrb[4].mxu1 %vm123_vm1, %v40_v32  ;;  %v10557_v29 = vpack.c.bf16 %v92_v28, %v89_v27  ;;  %v98_v32 = vld [vmem:[%s13895_s2 + $0x178] sm:$0xff]  ;;  %v119_v42 = vrot.slane %v99_v38, %v10617_v37  ;;  %v10635_v62 = vrot.slane %v99_v38, %v10630_v57 }
  0x17   :  { %7001 = vmatpush3.bf16.msra.mxu1 %v10457_v61  ;;  %6399 = vmatprep.mubr.msk.f32.mxu1 %vm10212_vm0, %v10210_v3  ;;  %v10574_v33 = vpack.c.bf16 %v98_v32, %v95_v30  ;;  %v10646_v21 = vrot.slane %v99_v38, %v10641_v8 }
  0x18   :  { %5916 = vmatmul.mubr.msk.f32.gmra.mrb[8].mxu0 %vm123_vm1, %v42_v55  ;;  %7002 = vmatprep.subr.bf16.mxu1 %v10211_v4 }
  0x19   :  { %6980 = vmatpush1.bf16.msra.mxu0 %v10434_v54  ;;  %239 = vmatprep.mubr.f32.mxu0 %v10210_v3 }
  0x1a   :  { %6982 = vmatprep.subr.bf16.mxu0 %v10441_v56  ;;  %6400 = vmatmul.mubr.msk.f32.gmra.mrb[6].mxu1 %vm123_vm1, %v41_v44 }
  0x1b   :  { %7004 = vmatpush3.bf16.msra.mxu1 %v10493_v9  ;;  %6402 = vmatprep.mubr.msk.f32.mxu1 %vm10212_vm0, %v10210_v3 }
  0x1c   :  { %5917 = vmatmul.mubr.msk.f32.gmra.mrb[10].mxu0 %vm123_vm1, %v43_v1  ;;  %7005 = vmatprep.subr.bf16.mxu1 %v10211_v4 }
  0x1d   :  { %6984 = vmatpush1.bf16.msra.mxu0 %v10470_v0  ;;  %245 = vmatprep.mubr.f32.mxu0 %v10210_v3 }
  0x1e   :  { %6986 = vmatprep.subr.bf16.mxu0 %v10477_v2  ;;  %6403 = vmatmul.mubr.msk.f32.gmra.mrb[8].mxu1 %vm123_vm1, %v42_v55 }
  0x1f   :  { %7007 = vmatpush3.bf16.msra.mxu1 %v10523_v20  ;;  %6405 = vmatprep.mubr.msk.f32.mxu1 %vm10212_vm0, %v10210_v3 }
  0x20   :  { %5918 = vmatmul.mubr.msk.f32.gmra.mrb[12].mxu0 %vm123_vm1, %v44_v14  ;;  %7008 = vmatprep.subr.bf16.mxu1 %v10211_v4 }
  0x21   :  { %6988 = vmatpush1.bf16.msra.mxu0 %v10506_v13  ;;  %440 = vmatprep.mubr.f32.mxu0 %v10210_v3 }
  0x22   :  { %6990 = vmatprep.subr.bf16.mxu0 %v10513_v15  ;;  %6406 = vmatmul.mubr.msk.f32.gmra.mrb[10].mxu1 %vm123_vm1, %v43_v1 }
  0x23   :  { %7010 = vmatpush3.bf16.msra.mxu1 %v10542_v26  ;;  %6408 = vmatprep.mubr.msk.f32.mxu1 %vm10212_vm0, %v10210_v3 }
  0x24   :  { %7011 = vmatprep.subr.bf16.mxu1 %v10211_v4 }
  0x25   :  { %6992 = vmatpush1.bf16.msra.mxu0 %v10536_v25 }
  0x26   :  { %7018 = vmatprep.subr.bf16.mxu0 %v10295_v10  ;;  %6409 = vmatmul.mubr.msk.f32.gmra.mrb[12].mxu1 %vm123_vm1, %v44_v14 }
  0x27   :  { %7013 = vmatpush3.bf16.msra.mxu1 %v10557_v29  ;;  %6443 = vmatprep.mubr.msk.f32.mxu1 %vm10212_vm0, %v10210_v3 }
  0x28   :  { %441 = vmatmul.mubr.f32.vlgmr.msra.gmra.mrb[0].mxu0 %v10210_v3  ;;  %7014 = vmatprep.subr.bf16.mxu1 %v10211_v4 }
  0x29   :  { %7020 = vmatpush1.bf16.msra.mxu0 %v10312_v16  ;;  %606 = vmatprep.mubr.f32.mxu0 %v10210_v3 }
  0x2a   :  { %7022 = vmatprep.subr.bf16.mxu0 %v10315_v17 }
  0x2b   :  { %7016 = vmatpush3.bf16.msra.mxu1 %v10574_v33 }
  0x2c   :  { %7049 = vmatprep.subr.bf16.mxu1 %v10211_v4 }
  0x2d   :  { %7024 = vmatpush1.bf16.msra.mxu0 %v10331_v22 }
  0x2e   :  { %7026 = vmatprep.subr.bf16.mxu0 %v10338_v24  ;;  %6444 = vmatmul.mubr.f32.vlgmr.msra.gmra.mrb[14].mxu1 %v10210_v3 }
  0x2f   :  { %7051 = vmatpush3.bf16.msra.mxu1 %v10387_v41  ;;  %6478 = vmatprep.mubr.msk.f32.mxu1 %vm10212_vm0, %v10210_v3 }
  0x30   :  { %7052 = vmatprep.subr.bf16.mxu1 %v10211_v4 }
  0x31   :  { %7028 = vmatpush1.bf16.msra.mxu0 %v10360_v31 }
  0x32   :  { %7030 = vmatprep.subr.bf16.mxu0 %v10370_v35 }
  0x33   :  { %7054 = vmatpush3.bf16.msra.mxu1 %v10421_v51 }
  0x34   :  { %7055 = vmatprep.subr.bf16.mxu1 %v10211_v4 }
  0x35   :  { %7032 = vmatpush1.bf16.msra.mxu0 %v10395_v43 }
  0x36   :  { %7034 = vmatprep.subr.bf16.mxu0 %v10405_v46 }
  0x37   :  { %7057 = vmatpush3.bf16.msra.mxu1 %v10457_v61 }
  0x38   :  { %7058 = vmatprep.subr.bf16.mxu1 %v10211_v4 }
  0x39   :  { %7036 = vmatpush1.bf16.msra.mxu0 %v10434_v54 }
  0x3a   :  { %7038 = vmatprep.subr.bf16.mxu0 %v10441_v56 }
  0x3b   :  { %7060 = vmatpush3.bf16.msra.mxu1 %v10493_v9 }
  0x3c   :  { %7061 = vmatprep.subr.bf16.mxu1 %v10211_v4 }
  0x3d   :  { %7040 = vmatpush1.bf16.msra.mxu0 %v10470_v0 }
  0x3e   :  { %7042 = vmatprep.subr.bf16.mxu0 %v10477_v2 }
  0x3f   :  { %7063 = vmatpush3.bf16.msra.mxu1 %v10523_v20 }
  0x40   :  { %7064 = vmatprep.subr.bf16.mxu1 %v10211_v4 }
  0x41   :  { %7044 = vmatpush1.bf16.msra.mxu0 %v10506_v13 }
  0x42   :  { %7046 = vmatprep.subr.bf16.mxu0 %v10513_v15 }
  0x43   :  { %7066 = vmatpush3.bf16.msra.mxu1 %v10542_v26 }
  0x44   :  { %7067 = vmatprep.subr.bf16.mxu1 %v10211_v4 }
  0x45   :  { %7048 = vmatpush1.bf16.msra.mxu0 %v10536_v25 }
  0x46   :  { %7074 = vmatprep.subr.bf16.mxu0 %v10295_v10 }
  0x47   :  { %7069 = vmatpush3.bf16.msra.mxu1 %v10557_v29 }
  0x48   :  { %7070 = vmatprep.subr.bf16.mxu1 %v10211_v4 }
  0x4b   :  { %7072 = vmatpush3.bf16.msra.mxu1 %v10574_v33 }
  0x4c   :  { %7105 = vmatprep.subr.bf16.mxu1 %v10211_v4 }
  0xe1   :  { %v318_v39 = vpop.f32.mrb[0].mxu1 }
  0xe2   :  { %v6392_v40 = vpop.f32.mrb[1].mxu1  ;;  %v319_v38 = vadd.f32 %v318_v39, %v119_v42 }
  0xe3   :  { %v10652_v40 = vld [vmem:[%s13898_s4] ss:$0 sm:$0xff] }
  0xe5   :  { %v323_v44 = vpop.f32.mrb[2].mxu1 }
  0xe6   :  { %v10623_v45 = vadd.f32 %v323_v44, %v119_v42  ;;  %v6395_v47 = vpop.f32.mrb[3].mxu1 }
  0xe9   :  { %v328_v48 = vpop.f32.mrb[4].mxu1 }
  0xea   :  { %v10625_v49 = vadd.f32 %v328_v48, %v119_v42  ;;  %v6398_v50 = vpop.f32.mrb[5].mxu1 }
  0xed   :  { %v333_v52 = vpop.f32.mrb[6].mxu1 }
  0xee   :  { %v10627_v53 = vadd.f32 %v333_v52, %v119_v42  ;;  %v6401_v55 = vpop.f32.mrb[7].mxu1 }
  0xf1   :  { %v338_v58 = vpop.f32.mrb[8].mxu1 }
  0xf2   :  { %v10632_v59 = vadd.f32 %v338_v58, %v119_v42  ;;  %v6404_v60 = vpop.f32.mrb[9].mxu1 }
  0xf5   :  { %v343_v63 = vpop.f32.mrb[10].mxu1 }
  0xf6   :  { %v10637_v1 = vadd.f32 %v343_v63, %v119_v42  ;;  %v6407_v5 = vpop.f32.mrb[11].mxu1 }
  0xf9   :  { %v348_v12 = vpop.f32.mrb[12].mxu1 }
  0xfa   :  { %v10643_v18 = vadd.f32 %v348_v12, %v119_v42  ;;  %v6410_v19 = vpop.f32.mrb[13].mxu1 }
  0xfb   :  { %v442_v6 = vpop.f32.mrb[0].mxu0 }
  0xfc   :  { %v9849_v7 = vadd.f32 %v442_v6, %v10635_v62  ;;  %v444_v11 = vpop.f32.mrb[1].mxu0 }
  0xfd   :  { %v9850_v23 = vadd.f32 %v444_v11, %v10646_v21 }
  0xfe   :  { %v5926_v14 = vmul.f32 -1.442695, %v9849_v7 }
  0xff   :  { %v5927_v30 = vmul.f32 -1.442695, %v9850_v23 }
 0x100   :  { %9908 = vpow2.f32 %v5926_v14 }
 0x101   :  { %v513_v27 = vpop.f32.mrb[14].mxu1  ;;  %9910 = vpow2.f32 %v5927_v30 }
 0x102   :  { %v6445_v28 = vpop.f32.mrb[15].mxu1  ;;  %v531_v44 = vadd.f32 %v10652_v40, %v513_v27 }
 0x10a   :  { %v9909_v32 = vpop.eup %9908 }
 0x10b   :  { %v521_v34 = vadd.f32 1.0, %v9909_v32  ;;  %v9911_v47 = vpop.eup %9910 }
 0x10c   :  { %v528_v52 = vadd.f32 1.0, %v9911_v47 }
 0x10d   :  { %9912 = vrcp.f32 %v521_v34 }
 0x117   :  { %v9913_v48 = vpop.eup %9912 }
 0x118   :  { %v532_v50 = vmul.f32 %v9913_v48, %v531_v44 }
 0x11a   :  { %v533_v55 = vadd.f32 %v532_v50, %v319_v38 }
 0x11c   :  { %9914 = vtanh.f32 %v533_v55 }
 0x11d   :  { %9916 = vrcp.f32 %v528_v52 }
 0x126   :  { %v9915_v58 = vpop.eup %9914 }
 0x127   :  { %v535_v60 = vsub.f32 0.0, %v9915_v58  ;;  %v9917_v63 = vpop.eup %9916 }
 0x129   :  { %v536_v5 = vmul.f32 %v9917_v63, %v535_v60 }
 0x12b   :  { %v10655_v6 = vadd.f32 %v9915_v58, %v536_v5 }
 0x12d   :  { %607 = vmatmul.mubr.f32.vlgmr.msra.gmra.mrb[2].mxu0 %v10655_v6  ;;  %6479 = vmatmul.mubr.f32.vlgmr.msra.gmra.mrb[16].mxu1 %v10655_v6 }
 0x12e   :  { %7076 = vmatpush1.bf16.msra.mxu0 %v10312_v16  ;;  %7107 = vmatpush3.bf16.msra.mxu1 %v10387_v41 }
 0x12f   :  { %7078 = vmatprep.subr.bf16.mxu0 %v10315_v17  ;;  %7108 = vmatprep.subr.bf16.mxu1 %v10211_v4 }
 0x130   :  { %772 = vmatprep.mubr.f32.mxu0 %v10210_v3  ;;  %6513 = vmatprep.mubr.msk.f32.mxu1 %vm10212_vm0, %v10210_v3 }
 0x132   :  { %7080 = vmatpush1.bf16.msra.mxu0 %v10331_v22  ;;  %7110 = vmatpush3.bf16.msra.mxu1 %v10421_v51 }
 0x133   :  { %7082 = vmatprep.subr.bf16.mxu0 %v10338_v24  ;;  %7111 = vmatprep.subr.bf16.mxu1 %v10211_v4 }
 0x136   :  { %7084 = vmatpush1.bf16.msra.mxu0 %v10360_v31  ;;  %7113 = vmatpush3.bf16.msra.mxu1 %v10457_v61 }
 0x137   :  { %7086 = vmatprep.subr.bf16.mxu0 %v10370_v35  ;;  %7114 = vmatprep.subr.bf16.mxu1 %v10211_v4 }
 0x13a   :  { %7088 = vmatpush1.bf16.msra.mxu0 %v10395_v43  ;;  %7116 = vmatpush3.bf16.msra.mxu1 %v10493_v9 }
 0x13b   :  { %7090 = vmatprep.subr.bf16.mxu0 %v10405_v46  ;;  %7117 = vmatprep.subr.bf16.mxu1 %v10211_v4 }
 0x13e   :  { %7092 = vmatpush1.bf16.msra.mxu0 %v10434_v54  ;;  %7119 = vmatpush3.bf16.msra.mxu1 %v10523_v20 }
 0x13f   :  { %7094 = vmatprep.subr.bf16.mxu0 %v10441_v56  ;;  %7120 = vmatprep.subr.bf16.mxu1 %v10211_v4 }
 0x142   :  { %7096 = vmatpush1.bf16.msra.mxu0 %v10470_v0  ;;  %7122 = vmatpush3.bf16.msra.mxu1 %v10542_v26 }
 0x143   :  { %7098 = vmatprep.subr.bf16.mxu0 %v10477_v2  ;;  %7123 = vmatprep.subr.bf16.mxu1 %v10211_v4 }
 0x146   :  { %7100 = vmatpush1.bf16.msra.mxu0 %v10506_v13  ;;  %7125 = vmatpush3.bf16.msra.mxu1 %v10557_v29 }
 0x147   :  { %7102 = vmatprep.subr.bf16.mxu0 %v10513_v15  ;;  %7126 = vmatprep.subr.bf16.mxu1 %v10211_v4 }
 0x14a   :  { %7104 = vmatpush1.bf16.msra.mxu0 %v10536_v25  ;;  %7128 = vmatpush3.bf16.msra.mxu1 %v10574_v33 }
 0x14b   :  { %7130 = vmatprep.subr.bf16.mxu0 %v10295_v10  ;;  %7161 = vmatprep.subr.bf16.mxu1 %v10211_v4 }
 0x200   :  { %v608_v39 = vpop.f32.mrb[2].mxu0  ;;  %v679_v42 = vpop.f32.mrb[16].mxu1 }
 0x201   :  { %v9851_v7 = vadd.f32 %v608_v39, %v10635_v62  ;;  %v610_v11 = vpop.f32.mrb[3].mxu0  ;;  %v6480_v12 = vpop.f32.mrb[17].mxu1  ;;  %v697_v32 = vadd.f32 %v10652_v40, %v679_v42 }
 0x202   :  { %v9852_v19 = vadd.f32 %v610_v11, %v10646_v21 }
 0x203   :  { %v5928_v14 = vmul.f32 -1.442695, %v9851_v7 }
 0x204   :  { %v5929_v23 = vmul.f32 -1.442695, %v9852_v19 }
 0x205   :  { %9918 = vpow2.f32 %v5928_v14 }
 0x206   :  { %9920 = vpow2.f32 %v5929_v23 }
 0x20f   :  { %v9919_v27 = vpop.eup %9918 }
 0x210   :  { %v687_v28 = vadd.f32 1.0, %v9919_v27  ;;  %v9921_v30 = vpop.eup %9920 }
 0x211   :  { %v694_v48 = vadd.f32 1.0, %v9921_v30 }
 0x212   :  { %9922 = vrcp.f32 %v687_v28 }
 0x21c   :  { %v9923_v34 = vpop.eup %9922 }
 0x21d   :  { %v698_v44 = vmul.f32 %v9923_v34, %v697_v32 }
 0x21f   :  { %v699_v47 = vadd.f32 %v698_v44, %v10623_v45 }
 0x221   :  { %9924 = vtanh.f32 %v699_v47 }
 0x222   :  { %9926 = vrcp.f32 %v694_v48 }
 0x22b   :  { %v9925_v38 = vpop.eup %9924 }
 0x22c   :  { %v701_v50 = vsub.f32 %v10655_v6, %v9925_v38  ;;  %v9927_v52 = vpop.eup %9926 }
 0x22e   :  { %v702_v55 = vmul.f32 %v9927_v52, %v701_v50 }
 0x230   :  { %v10699_v58 = vadd.f32 %v9925_v38, %v702_v55 }
 0x232   :  { %773 = vmatmul.mubr.f32.vlgmr.msra.gmra.mrb[4].mxu0 %v10699_v58  ;;  %6514 = vmatmul.mubr.f32.vlgmr.msra.gmra.mrb[18].mxu1 %v10699_v58 }
 0x233   :  { %7132 = vmatpush1.bf16.msra.mxu0 %v10312_v16  ;;  %7163 = vmatpush3.bf16.msra.mxu1 %v10387_v41 }
 0x234   :  { %7134 = vmatprep.subr.bf16.mxu0 %v10315_v17  ;;  %7164 = vmatprep.subr.bf16.mxu1 %v10211_v4 }
 0x235   :  { %938 = vmatprep.mubr.f32.mxu0 %v10210_v3  ;;  %6548 = vmatprep.mubr.msk.f32.mxu1 %vm10212_vm0, %v10210_v3 }
 0x237   :  { %7136 = vmatpush1.bf16.msra.mxu0 %v10331_v22  ;;  %7166 = vmatpush3.bf16.msra.mxu1 %v10421_v51 }
 0x238   :  { %7138 = vmatprep.subr.bf16.mxu0 %v10338_v24  ;;  %7167 = vmatprep.subr.bf16.mxu1 %v10211_v4 }
 0x23b   :  { %7140 = vmatpush1.bf16.msra.mxu0 %v10360_v31  ;;  %7169 = vmatpush3.bf16.msra.mxu1 %v10457_v61 }
 0x23c   :  { %7142 = vmatprep.subr.bf16.mxu0 %v10370_v35  ;;  %7170 = vmatprep.subr.bf16.mxu1 %v10211_v4 }
 0x23f   :  { %7144 = vmatpush1.bf16.msra.mxu0 %v10395_v43  ;;  %7172 = vmatpush3.bf16.msra.mxu1 %v10493_v9 }
 0x240   :  { %7146 = vmatprep.subr.bf16.mxu0 %v10405_v46  ;;  %7173 = vmatprep.subr.bf16.mxu1 %v10211_v4 }
 0x243   :  { %7148 = vmatpush1.bf16.msra.mxu0 %v10434_v54  ;;  %7175 = vmatpush3.bf16.msra.mxu1 %v10523_v20 }
 0x244   :  { %7150 = vmatprep.subr.bf16.mxu0 %v10441_v56  ;;  %7176 = vmatprep.subr.bf16.mxu1 %v10211_v4 }
 0x247   :  { %7152 = vmatpush1.bf16.msra.mxu0 %v10470_v0  ;;  %7178 = vmatpush3.bf16.msra.mxu1 %v10542_v26 }
 0x248   :  { %7154 = vmatprep.subr.bf16.mxu0 %v10477_v2  ;;  %7179 = vmatprep.subr.bf16.mxu1 %v10211_v4 }
 0x24b   :  { %7156 = vmatpush1.bf16.msra.mxu0 %v10506_v13  ;;  %7181 = vmatpush3.bf16.msra.mxu1 %v10557_v29 }
 0x24c   :  { %7158 = vmatprep.subr.bf16.mxu0 %v10513_v15  ;;  %7182 = vmatprep.subr.bf16.mxu1 %v10211_v4 }
 0x24f   :  { %7160 = vmatpush1.bf16.msra.mxu0 %v10536_v25  ;;  %7184 = vmatpush3.bf16.msra.mxu1 %v10574_v33 }
 0x250   :  { %7186 = vmatprep.subr.bf16.mxu0 %v10295_v10  ;;  %7217 = vmatprep.subr.bf16.mxu1 %v10211_v4 }
 0x305   :  { %v774_v45 = vpop.f32.mrb[4].mxu0  ;;  %v845_v60 = vpop.f32.mrb[18].mxu1 }
 0x306   :  { %v9853_v63 = vadd.f32 %v774_v45, %v10635_v62  ;;  %v776_v5 = vpop.f32.mrb[5].mxu0  ;;  %v6515_v39 = vpop.f32.mrb[19].mxu1  ;;  %v863_v23 = vadd.f32 %v10652_v40, %v845_v60 }
 0x307   :  { %v9854_v7 = vadd.f32 %v776_v5, %v10646_v21 }
 0x308   :  { %v5930_v42 = vmul.f32 -1.442695, %v9853_v63 }
 0x309   :  { %v5931_v11 = vmul.f32 -1.442695, %v9854_v7 }
 0x30a   :  { %9928 = vpow2.f32 %v5930_v42 }
 0x30b   :  { %9930 = vpow2.f32 %v5931_v11 }
 0x314   :  { %v9929_v12 = vpop.eup %9928 }
 0x315   :  { %v853_v14 = vadd.f32 1.0, %v9929_v12  ;;  %v9931_v19 = vpop.eup %9930 }
 0x316   :  { %v860_v32 = vadd.f32 1.0, %v9931_v19 }
 0x317   :  { %9932 = vrcp.f32 %v853_v14 }
 0x321   :  { %v9933_v27 = vpop.eup %9932 }
 0x322   :  { %v864_v28 = vmul.f32 %v9933_v27, %v863_v23 }
 0x324   :  { %v865_v30 = vadd.f32 %v864_v28, %v10625_v49 }
 0x326   :  { %9934 = vtanh.f32 %v865_v30 }
 0x327   :  { %9936 = vrcp.f32 %v860_v32 }
 0x330   :  { %v9935_v34 = vpop.eup %9934 }
 0x331   :  { %v867_v44 = vsub.f32 %v10699_v58, %v9935_v34  ;;  %v9937_v47 = vpop.eup %9936 }
 0x333   :  { %v868_v48 = vmul.f32 %v9937_v47, %v867_v44 }
 0x335   :  { %v10743_v38 = vadd.f32 %v9935_v34, %v868_v48 }
 0x337   :  { %939 = vmatmul.mubr.f32.vlgmr.msra.gmra.mrb[6].mxu0 %v10743_v38  ;;  %6549 = vmatmul.mubr.f32.vlgmr.msra.gmra.mrb[20].mxu1 %v10743_v38 }
 0x338   :  { %7188 = vmatpush1.bf16.msra.mxu0 %v10312_v16  ;;  %7219 = vmatpush3.bf16.msra.mxu1 %v10387_v41 }
 0x339   :  { %7190 = vmatprep.subr.bf16.mxu0 %v10315_v17  ;;  %7220 = vmatprep.subr.bf16.mxu1 %v10211_v4 }
 0x33a   :  { %1104 = vmatprep.mubr.f32.mxu0 %v10210_v3  ;;  %6583 = vmatprep.mubr.msk.f32.mxu1 %vm10212_vm0, %v10210_v3 }
 0x33c   :  { %7192 = vmatpush1.bf16.msra.mxu0 %v10331_v22  ;;  %7222 = vmatpush3.bf16.msra.mxu1 %v10421_v51 }
 0x33d   :  { %7194 = vmatprep.subr.bf16.mxu0 %v10338_v24  ;;  %7223 = vmatprep.subr.bf16.mxu1 %v10211_v4 }
 0x340   :  { %7196 = vmatpush1.bf16.msra.mxu0 %v10360_v31  ;;  %7225 = vmatpush3.bf16.msra.mxu1 %v10457_v61 }
 0x341   :  { %7198 = vmatprep.subr.bf16.mxu0 %v10370_v35  ;;  %7226 = vmatprep.subr.bf16.mxu1 %v10211_v4 }
 0x344   :  { %7200 = vmatpush1.bf16.msra.mxu0 %v10395_v43  ;;  %7228 = vmatpush3.bf16.msra.mxu1 %v10493_v9 }
 0x345   :  { %7202 = vmatprep.subr.bf16.mxu0 %v10405_v46  ;;  %7229 = vmatprep.subr.bf16.mxu1 %v10211_v4 }
 0x348   :  { %7204 = vmatpush1.bf16.msra.mxu0 %v10434_v54  ;;  %7231 = vmatpush3.bf16.msra.mxu1 %v10523_v20 }
 0x349   :  { %7206 = vmatprep.subr.bf16.mxu0 %v10441_v56  ;;  %7232 = vmatprep.subr.bf16.mxu1 %v10211_v4 }
 0x34c   :  { %7208 = vmatpush1.bf16.msra.mxu0 %v10470_v0  ;;  %7234 = vmatpush3.bf16.msra.mxu1 %v10542_v26 }
 0x34d   :  { %7210 = vmatprep.subr.bf16.mxu0 %v10477_v2  ;;  %7235 = vmatprep.subr.bf16.mxu1 %v10211_v4 }
 0x350   :  { %7212 = vmatpush1.bf16.msra.mxu0 %v10506_v13  ;;  %7237 = vmatpush3.bf16.msra.mxu1 %v10557_v29 }
 0x351   :  { %7214 = vmatprep.subr.bf16.mxu0 %v10513_v15  ;;  %7238 = vmatprep.subr.bf16.mxu1 %v10211_v4 }
 0x354   :  { %7216 = vmatpush1.bf16.msra.mxu0 %v10536_v25  ;;  %7240 = vmatpush3.bf16.msra.mxu1 %v10574_v33 }
 0x355   :  { %7242 = vmatprep.subr.bf16.mxu0 %v10295_v10  ;;  %7273 = vmatprep.subr.bf16.mxu1 %v10211_v4 }
 0x40a   :  { %v940_v49 = vpop.f32.mrb[6].mxu0  ;;  %v1011_v50 = vpop.f32.mrb[20].mxu1 }
 0x40b   :  { %v9855_v52 = vadd.f32 %v940_v49, %v10635_v62  ;;  %v942_v55 = vpop.f32.mrb[7].mxu0  ;;  %v6550_v45 = vpop.f32.mrb[21].mxu1  ;;  %v1029_v11 = vadd.f32 %v10652_v40, %v1011_v50 }
 0x40c   :  { %v9856_v63 = vadd.f32 %v942_v55, %v10646_v21 }
 0x40d   :  { %v5932_v60 = vmul.f32 -1.442695, %v9855_v52 }
 0x40e   :  { %v5933_v5 = vmul.f32 -1.442695, %v9856_v63 }
 0x40f   :  { %9938 = vpow2.f32 %v5932_v60 }
 0x410   :  { %9940 = vpow2.f32 %v5933_v5 }
 0x419   :  { %v9939_v39 = vpop.eup %9938 }
 0x41a   :  { %v1019_v42 = vadd.f32 1.0, %v9939_v39  ;;  %v9941_v7 = vpop.eup %9940 }
 0x41b   :  { %v1026_v23 = vadd.f32 1.0, %v9941_v7 }
 0x41c   :  { %9942 = vrcp.f32 %v1019_v42 }
 0x426   :  { %v9943_v12 = vpop.eup %9942 }
 0x427   :  { %v1030_v14 = vmul.f32 %v9943_v12, %v1029_v11 }
 0x429   :  { %v1031_v19 = vadd.f32 %v1030_v14, %v10627_v53 }
 0x42b   :  { %9944 = vtanh.f32 %v1031_v19 }
 0x42c   :  { %9946 = vrcp.f32 %v1026_v23 }
 0x435   :  { %v9945_v27 = vpop.eup %9944 }
 0x436   :  { %v1033_v28 = vsub.f32 %v10743_v38, %v9945_v27  ;;  %v9947_v30 = vpop.eup %9946 }
 0x438   :  { %v1034_v32 = vmul.f32 %v9947_v30, %v1033_v28  ;;  %v1544_v28 = vld [vmem:[%s13899_s5 + $0x50] sm:$0xff] }
 0x43a   :  { %v10787_v34 = vadd.f32 %v9945_v27, %v1034_v32  ;;  %v1541_v27 = vld [vmem:[%s13899_s5 + $0x38] sm:$0xff] }
 0x43c   :  { %1105 = vmatmul.mubr.f32.vlgmr.msra.gmra.mrb[8].mxu0 %v10787_v34  ;;  %6584 = vmatmul.mubr.f32.vlgmr.msra.gmra.mrb[22].mxu1 %v10787_v34 }
 0x43d   :  { %7244 = vmatpush1.bf16.msra.mxu0 %v10312_v16  ;;  %7275 = vmatpush3.bf16.msra.mxu1 %v10387_v41 }
 0x43e   :  { %7246 = vmatprep.subr.bf16.mxu0 %v10315_v17  ;;  %7276 = vmatprep.subr.bf16.mxu1 %v10211_v4 }
 0x43f   :  { %1270 = vmatprep.mubr.f32.mxu0 %v10210_v3  ;;  %6618 = vmatprep.mubr.msk.f32.mxu1 %vm10212_vm0, %v10210_v3 }
 0x441   :  { %7248 = vmatpush1.bf16.msra.mxu0 %v10331_v22  ;;  %7278 = vmatpush3.bf16.msra.mxu1 %v10421_v51 }
 0x442   :  { %7250 = vmatprep.subr.bf16.mxu0 %v10338_v24  ;;  %7279 = vmatprep.subr.bf16.mxu1 %v10211_v4 }
 0x445   :  { %7252 = vmatpush1.bf16.msra.mxu0 %v10360_v31  ;;  %7281 = vmatpush3.bf16.msra.mxu1 %v10457_v61 }
 0x446   :  { %7254 = vmatprep.subr.bf16.mxu0 %v10370_v35  ;;  %7282 = vmatprep.subr.bf16.mxu1 %v10211_v4 }
 0x449   :  { %7256 = vmatpush1.bf16.msra.mxu0 %v10395_v43  ;;  %7284 = vmatpush3.bf16.msra.mxu1 %v10493_v9 }
 0x44a   :  { %7258 = vmatprep.subr.bf16.mxu0 %v10405_v46  ;;  %7285 = vmatprep.subr.bf16.mxu1 %v10211_v4 }
 0x44d   :  { %7260 = vmatpush1.bf16.msra.mxu0 %v10434_v54  ;;  %7287 = vmatpush3.bf16.msra.mxu1 %v10523_v20 }
 0x44e   :  { %7262 = vmatprep.subr.bf16.mxu0 %v10441_v56  ;;  %7288 = vmatprep.subr.bf16.mxu1 %v10211_v4 }
 0x451   :  { %7264 = vmatpush1.bf16.msra.mxu0 %v10470_v0  ;;  %7290 = vmatpush3.bf16.msra.mxu1 %v10542_v26 }
 0x452   :  { %7266 = vmatprep.subr.bf16.mxu0 %v10477_v2  ;;  %7291 = vmatprep.subr.bf16.mxu1 %v10211_v4 }
 0x455   :  { %7268 = vmatpush1.bf16.msra.mxu0 %v10506_v13  ;;  %7293 = vmatpush3.bf16.msra.mxu1 %v10557_v29 }
 0x456   :  { %7270 = vmatprep.subr.bf16.mxu0 %v10513_v15  ;;  %7294 = vmatprep.subr.bf16.mxu1 %v10211_v4 }
 0x459   :  { %7272 = vmatpush1.bf16.msra.mxu0 %v10536_v25  ;;  %7296 = vmatpush3.bf16.msra.mxu1 %v10574_v33 }
 0x45a   :  { %7298 = vmatprep.subr.bf16.mxu0 %v10295_v10  ;;  %7329 = vmatprep.subr.bf16.mxu1 %v10211_v4 }
 0x50f   :  { %v1106_v53 = vpop.f32.mrb[8].mxu0  ;;  %v1177_v44 = vpop.f32.mrb[22].mxu1 }
 0x510   :  { %v9857_v47 = vadd.f32 %v1106_v53, %v10635_v62  ;;  %v1108_v48 = vpop.f32.mrb[9].mxu0  ;;  %v6585_v49 = vpop.f32.mrb[23].mxu1  ;;  %v1195_v10 = vadd.f32 %v10652_v40, %v1177_v44  ;;  %v1540_v44 = vld [vmem:[%s13899_s5 + $0x30] sm:$0xff] }
 0x511   :  { %v9858_v52 = vadd.f32 %v1108_v48, %v10646_v21  ;;  %v7357_v48 = vpack.c.bf16 %v1544_v28, %v1541_v27  ;;  %v1543_v49 = vld [vmem:[%s13899_s5 + $0x48] sm:$0xff]  ;;  %v1570_v28 = vld [vmem:[%s13899_s5 + $0x120] sm:$0xff] }
 0x512   :  { %v5934_v50 = vmul.f32 -1.442695, %v9857_v47 }
 0x513   :  { %v5935_v55 = vmul.f32 -1.442695, %v9858_v52  ;;  %v1545_v52 = vld [vmem:[%s13899_s5 + $0x58] sm:$0xff] }
 0x514   :  { %9948 = vpow2.f32 %v5934_v50  ;;  %v1542_v50 = vld [vmem:[%s13899_s5 + $0x40] sm:$0xff] }
 0x515   :  { %9950 = vpow2.f32 %v5935_v55  ;;  %v1547_v55 = vld [vmem:[%s13899_s5 + $0x68] sm:$0xff] }
 0x51e   :  { %v9949_v45 = vpop.eup %9948 }
 0x51f   :  { %v1185_v60 = vadd.f32 1.0, %v9949_v45  ;;  %v9951_v63 = vpop.eup %9950  ;;  %v1550_v45 = vld [vmem:[%s13899_s5 + $0x80] sm:$0xff] }
 0x520   :  { %v1192_v7 = vadd.f32 1.0, %v9951_v63  ;;  %v7389_v63 = vpack.c.bf16 %v1545_v52, %v1542_v50 }
 0x521   :  { %9952 = vrcp.f32 %v1185_v60  ;;  %v7359_v60 = vpack.c.bf16 %v1543_v49, %v1540_v44  ;;  %v1575_v44 = vld [vmem:[%s13899_s5 + $0x148] sm:$0xff]  ;;  %v1580_v49 = vld [vmem:[%s13899_s5 + $0x170] sm:$0xff] }
 0x52b   :  { %v9953_v5 = vpop.eup %9952 }
 0x52c   :  { %v1196_v39 = vmul.f32 %v9953_v5, %v1195_v10  ;;  %v1546_v10 = vld [vmem:[%s13899_s5 + $0x60] sm:$0xff]  ;;  %v7361_v5 = vpack.c.bf16 %v1550_v45, %v1547_v55  ;;  %v1576_v55 = vld [vmem:[%s13899_s5 + $0x150] sm:$0xff] }
 0x52e   :  { %v1197_v42 = vadd.f32 %v1196_v39, %v10632_v59  ;;  %v1536_v59 = vld [vmem:[%s13899_s5 + $0x10] sm:$0xff]  ;;  %v1549_v39 = vld [vmem:[%s13899_s5 + $0x78] sm:$0xff] }
 0x530   :  { %9954 = vtanh.f32 %v1197_v42  ;;  %v1548_v42 = vld [vmem:[%s13899_s5 + $0x70] sm:$0xff] }
 0x531   :  { %9956 = vrcp.f32 %v1192_v7  ;;  %v1551_v7 = vld [vmem:[%s13899_s5 + $0x88] sm:$0xff] }
 0x53a   :  { %v9955_v11 = vpop.eup %9954 }
 0x53b   :  { %v1199_v12 = vsub.f32 %v10787_v34, %v9955_v11  ;;  %v9957_v14 = vpop.eup %9956 }
 0x53d   :  { %v1200_v19 = vmul.f32 %v9957_v14, %v1199_v12  ;;  %v1556_v12 = vld [vmem:[%s13899_s5 + $0xb0] sm:$0xff]  ;;  %v7363_v14 = vpack.c.bf16 %v1549_v39, %v1546_v10  ;;  %v1581_v10 = vld [vmem:[%s13899_s5 + $0x178] sm:$0xff] }
 0x53f   :  { %v10831_v23 = vadd.f32 %v9955_v11, %v1200_v19  ;;  %v1553_v11 = vld [vmem:[%s13899_s5 + $0x98] sm:$0xff]  ;;  %v7392_v19 = vpack.c.bf16 %v1551_v7, %v1548_v42 }
 0x540   :  { %v1589_v7 = vld [vmem:[%s13900_s6 + $0x38] sm:$0xff] }
 0x541   :  { %1271 = vmatmul.mubr.f32.vlgmr.msra.gmra.mrb[10].mxu0 %v10831_v23  ;;  %6619 = vmatmul.mubr.f32.vlgmr.msra.gmra.mrb[24].mxu1 %v10831_v23 }
 0x542   :  { %7300 = vmatpush1.bf16.msra.mxu0 %v10312_v16  ;;  %7331 = vmatpush3.bf16.msra.mxu1 %v10387_v41  ;;  %v1535_v16 = vld [vmem:[%s13899_s5 + $0x8] sm:$0xff] }
 0x543   :  { %7302 = vmatprep.subr.bf16.mxu0 %v10315_v17  ;;  %7332 = vmatprep.subr.bf16.mxu1 %v10211_v4  ;;  %v1538_v17 = vld [vmem:[%s13899_s5 + $0x20] sm:$0xff] }
 0x544   :  { %1436 = vmatprep.mubr.f32.mxu0 %v10210_v3  ;;  %6653 = vmatprep.mubr.msk.f32.mxu1 %vm10212_vm0, %v10210_v3 }
 0x546   :  { %7304 = vmatpush1.bf16.msra.mxu0 %v10331_v22  ;;  %7334 = vmatpush3.bf16.msra.mxu1 %v10421_v51  ;;  %v7353_v22 = vpack.c.bf16 %v1538_v17, %v1535_v16  ;;  %v1552_v16 = vld [vmem:[%s13899_s5 + $0x90] sm:$0xff]  ;;  %v7365_v17 = vpack.c.bf16 %v1556_v12, %v1553_v11 }
 0x547   :  { %7306 = vmatprep.subr.bf16.mxu0 %v10338_v24  ;;  %7335 = vmatprep.subr.bf16.mxu1 %v10211_v4  ;;  %v1592_v11 = vld [vmem:[%s13900_s6 + $0x50] sm:$0xff] }
 0x548   :  { %v11087_v12 = vpack.c.bf16 %v1592_v11, %v1589_v7  ;;  %v1605_v7 = vld [vmem:[%s13900_s6 + $0xb8] sm:$0xff] }
 0x54a   :  { %7308 = vmatpush1.bf16.msra.mxu0 %v10360_v31  ;;  %7337 = vmatpush3.bf16.msra.mxu1 %v10457_v61 }
 0x54b   :  { %7310 = vmatprep.subr.bf16.mxu0 %v10370_v35  ;;  %7338 = vmatprep.subr.bf16.mxu1 %v10211_v4 }
 0x54e   :  { %7312 = vmatpush1.bf16.msra.mxu0 %v10395_v43  ;;  %7340 = vmatpush3.bf16.msra.mxu1 %v10493_v9 }
 0x54f   :  { %7314 = vmatprep.subr.bf16.mxu0 %v10405_v46  ;;  %7341 = vmatprep.subr.bf16.mxu1 %v10211_v4 }
 0x552   :  { %7316 = vmatpush1.bf16.msra.mxu0 %v10434_v54  ;;  %7343 = vmatpush3.bf16.msra.mxu1 %v10523_v20 }
 0x553   :  { %7318 = vmatprep.subr.bf16.mxu0 %v10441_v56  ;;  %7344 = vmatprep.subr.bf16.mxu1 %v10211_v4 }
 0x556   :  { %7320 = vmatpush1.bf16.msra.mxu0 %v10470_v0  ;;  %7346 = vmatpush3.bf16.msra.mxu1 %v10542_v26  ;;  %v1534_v26 = vld [vmem:[%s13899_s5] sm:$0xff] }
 0x557   :  { %7322 = vmatprep.subr.bf16.mxu0 %v10477_v2  ;;  %7347 = vmatprep.subr.bf16.mxu1 %v10211_v4 }
 0x55a   :  { %7324 = vmatpush1.bf16.msra.mxu0 %v10506_v13  ;;  %7349 = vmatpush3.bf16.msra.mxu1 %v10557_v29 }
 0x55b   :  { %7326 = vmatprep.subr.bf16.mxu0 %v10513_v15  ;;  %7350 = vmatprep.subr.bf16.mxu1 %v10211_v4 }
 0x55e   :  { %7328 = vmatpush1.bf16.msra.mxu0 %v10536_v25  ;;  %7352 = vmatpush3.bf16.msra.mxu1 %v10574_v33  ;;  %v1537_v33 = vld [vmem:[%s13899_s5 + $0x18] sm:$0xff] }
 0x55f   :  { %7385 = vmatprep.subr.bf16.mxu1 %v10211_v4  ;;  %7354 = vmatprep.subr.bf16.mxu0 %v7353_v22  ;;  %v7355_v32 = vpack.c.bf16 %v1537_v33, %v1534_v26  ;;  %v1555_v22 = vld [vmem:[%s13899_s5 + $0xa8] sm:$0xff]  ;;  %v1569_v33 = vld [vmem:[%s13899_s5 + $0x118] sm:$0xff] }
 0x560   :  { %v1567_v26 = vld [vmem:[%s13899_s5 + $0x108] sm:$0xff] }
 0x614   :  { %v1272_v24 = vpop.f32.mrb[10].mxu0  ;;  %v1343_v31 = vpop.f32.mrb[24].mxu1 }
 0x615   :  { %v9859_v35 = vadd.f32 %v1272_v24, %v10635_v62  ;;  %v1274_v41 = vpop.f32.mrb[11].mxu0  ;;  %v6620_v43 = vpop.f32.mrb[25].mxu1  ;;  %v1361_v2 = vadd.f32 %v10652_v40, %v1343_v31  ;;  %v1554_v24 = vld [vmem:[%s13899_s5 + $0xa0] sm:$0xff]  ;;  %v1557_v31 = vld [vmem:[%s13899_s5 + $0xb8] sm:$0xff] }
 0x616   :  { %v9860_v51 = vadd.f32 %v1274_v41, %v10646_v21  ;;  %v1562_v41 = vld [vmem:[%s13899_s5 + $0xe0] sm:$0xff]  ;;  %v7367_v43 = vpack.c.bf16 %v1555_v22, %v1552_v16 }
 0x617   :  { %v5936_v46 = vmul.f32 -1.442695, %v9859_v35  ;;  %v1559_v35 = vld [vmem:[%s13899_s5 + $0xc8] sm:$0xff]  ;;  %v1598_v22 = vld [vmem:[%s13900_s6 + $0x80] sm:$0xff] }
 0x618   :  { %v5937_v54 = vmul.f32 -1.442695, %v9860_v51  ;;  %v1558_v51 = vld [vmem:[%s13899_s5 + $0xc0] sm:$0xff] }
 0x619   :  { %9958 = vpow2.f32 %v5936_v46  ;;  %v7395_v46 = vpack.c.bf16 %v1557_v31, %v1554_v24  ;;  %v1594_v31 = vld [vmem:[%s13900_s6 + $0x60] sm:$0xff] }
 0x61a   :  { %9960 = vpow2.f32 %v5937_v54  ;;  %v7369_v54 = vpack.c.bf16 %v1562_v41, %v1559_v35  ;;  %v1597_v35 = vld [vmem:[%s13900_s6 + $0x78] sm:$0xff] }
 0x61b   :  { %v11113_v41 = vpack.c.bf16 %v1597_v35, %v1594_v31  ;;  %v1617_v31 = vld [vmem:[%s13900_s6 + $0x118] sm:$0xff] }
 0x623   :  { %v9959_v56 = vpop.eup %9958 }
 0x624   :  { %v1351_v61 = vadd.f32 1.0, %v9959_v56  ;;  %v9961_v0 = vpop.eup %9960  ;;  %v1561_v56 = vld [vmem:[%s13899_s5 + $0xd8] sm:$0xff] }
 0x625   :  { %v1358_v20 = vadd.f32 1.0, %v9961_v0  ;;  %v1563_v0 = vld [vmem:[%s13899_s5 + $0xe8] sm:$0xff] }
 0x626   :  { %9962 = vrcp.f32 %v1351_v61  ;;  %v1560_v61 = vld [vmem:[%s13899_s5 + $0xd0] sm:$0xff] }
 0x630   :  { %v9963_v9 = vpop.eup %9962 }
 0x631   :  { %v1362_v13 = vmul.f32 %v9963_v9, %v1361_v2  ;;  %v1565_v2 = vld [vmem:[%s13899_s5 + $0xf8] sm:$0xff]  ;;  %v1568_v9 = vld [vmem:[%s13899_s5 + $0x110] sm:$0xff] }
 0x633   :  { %v1363_v15 = vadd.f32 %v1362_v13, %v10637_v1  ;;  %v1539_v1 = vld [vmem:[%s13899_s5 + $0x28] sm:$0xff]  ;;  %v7371_v13 = vpack.c.bf16 %v1561_v56, %v1558_v51 }
 0x634   :  { %v7386_v53 = vpack.c.bf16 %v1539_v1, %v1536_v59  ;;  %v1571_v59 = vld [vmem:[%s13899_s5 + $0x128] sm:$0xff]  ;;  %v1574_v1 = vld [vmem:[%s13899_s5 + $0x140] sm:$0xff] }
 0x635   :  { %9964 = vtanh.f32 %v1363_v15  ;;  %v7398_v15 = vpack.c.bf16 %v1563_v0, %v1560_v61  ;;  %v1603_v56 = vld [vmem:[%s13900_s6 + $0xa8] sm:$0xff] }
 0x636   :  { %9966 = vrcp.f32 %v1358_v20  ;;  %v1564_v20 = vld [vmem:[%s13899_s5 + $0xf0] sm:$0xff]  ;;  %v1607_v0 = vld [vmem:[%s13900_s6 + $0xc8] sm:$0xff] }
 0x63f   :  { %v9965_v25 = vpop.eup %9964 }
 0x640   :  { %v1365_v29 = vsub.f32 %v10831_v23, %v9965_v25  ;;  %v9967_v40 = vpop.eup %9966 }
 0x642   :  { %v1366_v30 = vmul.f32 %v9967_v40, %v1365_v29  ;;  %v1566_v29 = vld [vmem:[%s13899_s5 + $0x100] sm:$0xff]  ;;  %v7375_v40 = vpack.c.bf16 %v1567_v26, %v1564_v20  ;;  %v1616_v26 = vld [vmem:[%s13900_s6 + $0x110] sm:$0xff] }
 0x643   :  { %v7401_v27 = vpack.c.bf16 %v1569_v33, %v1566_v29  ;;  %v1612_v33 = vld [vmem:[%s13900_s6 + $0xf0] sm:$0xff] }
 0x644   :  { %v10901_v47 = vadd.f32 %v9965_v25, %v1366_v30  ;;  %v7373_v25 = vpack.c.bf16 %v1568_v9, %v1565_v2  ;;  %v7377_v30 = vpack.c.bf16 %v1574_v1, %v1571_v59  ;;  %v1610_v2 = vld [vmem:[%s13900_s6 + $0xe0] sm:$0xff]  ;;  %v1615_v59 = vld [vmem:[%s13900_s6 + $0x108] sm:$0xff] }
 0x645   :  { %v11141_v9 = vpack.c.bf16 %v1610_v2, %v1607_v0  ;;  %v11167_v1 = vpack.c.bf16 %v1615_v59, %v1612_v33  ;;  %v1629_v0 = vld [vmem:[%s13900_s6 + $0x178] sm:$0xff] }
 0x646   :  { %1437 = vmatmul.mubr.f32.vlgmr.msra.gmra.mrb[12].mxu0 %v10901_v47  ;;  %6654 = vmatmul.mubr.f32.vlgmr.msra.gmra.mrb[26].mxu1 %v10901_v47 }
 0x647   :  { %7356 = vmatpush1.bf16.msra.mxu0 %v7355_v32  ;;  %7387 = vmatpush3.bf16.msra.mxu1 %v7386_v53  ;;  %v1573_v32 = vld [vmem:[%s13899_s5 + $0x138] sm:$0xff]  ;;  %v1572_v53 = vld [vmem:[%s13899_s5 + $0x130] sm:$0xff] }
 0x648   :  { %7358 = vmatprep.subr.bf16.mxu0 %v7357_v48  ;;  %7388 = vmatprep.subr.bf16.mxu1 %v10211_v4  ;;  %v1577_v48 = vld [vmem:[%s13899_s5 + $0x158] sm:$0xff]  ;;  %v7379_v50 = vpack.c.bf16 %v1573_v32, %v1570_v28  ;;  %v7404_v52 = vpack.c.bf16 %v1575_v44, %v1572_v53  ;;  %v1584_v44 = vld [vmem:[%s13900_s6 + $0x10] sm:$0xff] }
 0x649   :  { %1718 = vmatprep.mubr.f32.mxu0 %v10210_v3  ;;  %6688 = vmatprep.mubr.msk.f32.mxu1 %vm10212_vm0, %v10210_v3  ;;  %v7381_v45 = vpack.c.bf16 %v1580_v49, %v1577_v48  ;;  %v1621_v32 = vld [vmem:[%s13900_s6 + $0x138] sm:$0xff]  ;;  %v1587_v48 = vld [vmem:[%s13900_s6 + $0x28] sm:$0xff] }
 0x64a   :  { %v11194_v49 = vpack.c.bf16 %v1587_v48, %v1584_v44  ;;  %v10208_v48 = vld [vmem:[%s13898_s4] ss:$0 sm:$0xff] }
 0x64b   :  { %7360 = vmatpush1.bf16.msra.mxu0 %v7359_v60  ;;  %7390 = vmatpush3.bf16.msra.mxu1 %v7389_v63  ;;  %v1579_v60 = vld [vmem:[%s13899_s5 + $0x168] sm:$0xff]  ;;  %v1578_v63 = vld [vmem:[%s13899_s5 + $0x160] sm:$0xff] }
 0x64c   :  { %7362 = vmatprep.subr.bf16.mxu0 %v7361_v5  ;;  %7391 = vmatprep.subr.bf16.mxu1 %v10211_v4  ;;  %v7383_v5 = vpack.c.bf16 %v1579_v60, %v1576_v55  ;;  %v7407_v39 = vpack.c.bf16 %v1581_v10, %v1578_v63  ;;  %v1627_v60 = vld [vmem:[%s13900_s6 + $0x168] sm:$0xff]  ;;  %v1590_v10 = vld [vmem:[%s13900_s6 + $0x40] sm:$0xff] }
 0x64f   :  { %7364 = vmatpush1.bf16.msra.mxu0 %v7363_v14  ;;  %7393 = vmatpush3.bf16.msra.mxu1 %v7392_v19  ;;  %v1588_v14 = vld [vmem:[%s13900_s6 + $0x30] sm:$0xff]  ;;  %v1591_v19 = vld [vmem:[%s13900_s6 + $0x48] sm:$0xff] }
 0x650   :  { %7366 = vmatprep.subr.bf16.mxu0 %v7365_v17  ;;  %7394 = vmatprep.subr.bf16.mxu1 %v10211_v4  ;;  %v11095_v16 = vpack.c.bf16 %v1591_v19, %v1588_v14  ;;  %v1595_v17 = vld [vmem:[%s13900_s6 + $0x68] sm:$0xff]  ;;  %v1608_v14 = vld [vmem:[%s13900_s6 + $0xd0] sm:$0xff] }
 0x651   :  { %v11105_v24 = vpack.c.bf16 %v1598_v22, %v1595_v17  ;;  %v1611_v19 = vld [vmem:[%s13900_s6 + $0xe8] sm:$0xff]  ;;  %v1614_v22 = vld [vmem:[%s13900_s6 + $0x100] sm:$0xff] }
 0x652   :  { %v11253_v17 = vpack.c.bf16 %v1611_v19, %v1608_v14  ;;  %v11263_v35 = vpack.c.bf16 %v1617_v31, %v1614_v22 }
 0x653   :  { %7368 = vmatpush1.bf16.msra.mxu0 %v7367_v43  ;;  %7396 = vmatpush3.bf16.msra.mxu1 %v7395_v46  ;;  %v1601_v43 = vld [vmem:[%s13900_s6 + $0x98] sm:$0xff]  ;;  %v1604_v46 = vld [vmem:[%s13900_s6 + $0xb0] sm:$0xff] }
 0x654   :  { %7370 = vmatprep.subr.bf16.mxu0 %v7369_v54  ;;  %7397 = vmatprep.subr.bf16.mxu1 %v10211_v4  ;;  %v11123_v51 = vpack.c.bf16 %v1604_v46, %v1601_v43  ;;  %v1600_v54 = vld [vmem:[%s13900_s6 + $0x90] sm:$0xff]  ;;  %v1623_v46 = vld [vmem:[%s13900_s6 + $0x148] sm:$0xff] }
 0x655   :  { %v11131_v61 = vpack.c.bf16 %v1603_v56, %v1600_v54  ;;  %v1620_v43 = vld [vmem:[%s13900_s6 + $0x130] sm:$0xff]  ;;  %v1626_v56 = vld [vmem:[%s13900_s6 + $0x160] sm:$0xff] }
 0x656   :  { %v11273_v54 = vpack.c.bf16 %v1623_v46, %v1620_v43  ;;  %v11283_v2 = vpack.c.bf16 %v1629_v0, %v1626_v56 }
 0x657   :  { %7372 = vmatpush1.bf16.msra.mxu0 %v7371_v13  ;;  %7399 = vmatpush3.bf16.msra.mxu1 %v7398_v15  ;;  %v1606_v13 = vld [vmem:[%s13900_s6 + $0xc0] sm:$0xff]  ;;  %v1609_v15 = vld [vmem:[%s13900_s6 + $0xd8] sm:$0xff] }
 0x658   :  { %7374 = vmatprep.subr.bf16.mxu0 %v7373_v25  ;;  %7400 = vmatprep.subr.bf16.mxu1 %v10211_v4  ;;  %v11149_v20 = vpack.c.bf16 %v1609_v15, %v1606_v13  ;;  %v1613_v25 = vld [vmem:[%s13900_s6 + $0xf8] sm:$0xff] }
 0x659   :  { %v11159_v29 = vpack.c.bf16 %v1616_v26, %v1613_v25 }
 0x65b   :  { %7376 = vmatpush1.bf16.msra.mxu0 %v7375_v40  ;;  %7402 = vmatpush3.bf16.msra.mxu1 %v7401_v27  ;;  %v1619_v40 = vld [vmem:[%s13900_s6 + $0x128] sm:$0xff]  ;;  %v1622_v27 = vld [vmem:[%s13900_s6 + $0x140] sm:$0xff] }
 0x65c   :  { %7378 = vmatprep.subr.bf16.mxu0 %v7377_v30  ;;  %7403 = vmatprep.subr.bf16.mxu1 %v10211_v4  ;;  %v11177_v28 = vpack.c.bf16 %v1622_v27, %v1619_v40  ;;  %v1618_v30 = vld [vmem:[%s13900_s6 + $0x120] sm:$0xff] }
 0x65d   :  { %v11185_v53 = vpack.c.bf16 %v1621_v32, %v1618_v30 }
 0x65f   :  { %7380 = vmatpush1.bf16.msra.mxu0 %v7379_v50  ;;  %7405 = vmatpush3.bf16.msra.mxu1 %v7404_v52  ;;  %v1625_v50 = vld [vmem:[%s13900_s6 + $0x158] sm:$0xff]  ;;  %v1628_v52 = vld [vmem:[%s13900_s6 + $0x170] sm:$0xff] }
 0x660   :  { %7382 = vmatprep.subr.bf16.mxu0 %v7381_v45  ;;  %7406 = vmatprep.subr.bf16.mxu1 %v10211_v4  ;;  %v11204_v55 = vpack.c.bf16 %v1628_v52, %v1625_v50  ;;  %v1624_v45 = vld [vmem:[%s13900_s6 + $0x150] sm:$0xff] }
 0x661   :  { %v11212_v63 = vpack.c.bf16 %v1627_v60, %v1624_v45 }
 0x663   :  { %7384 = vmatpush1.bf16.msra.mxu0 %v7383_v5  ;;  %7408 = vmatpush3.bf16.msra.mxu1 %v7407_v39  ;;  %v1593_v5 = vld [vmem:[%s13900_s6 + $0x58] sm:$0xff] }
 0x664   :  { %7441 = vmatprep.subr.bf16.mxu1 %v10211_v4  ;;  %v11222_v39 = vpack.c.bf16 %v1593_v5, %v1590_v10 }
 0x666   :  { %1719 = vmatmul.mubr.f32.vlgmr.msra.gmra.mrb[14].mxu0 %v10655_v6  ;;  %6689 = vmatmul.mubr.f32.vlgmr.msra.gmra.mrb[28].mxu1 %v10655_v6  ;;  %v1583_v6 = vld [vmem:[%s13900_s6 + $0x8] sm:$0xff] }
 0x667   :  { %1724 = vmatprep.mubr.f32.mxu0 %v10210_v3  ;;  %6691 = vmatprep.mubr.msk.f32.mxu1 %vm10212_vm0, %v10210_v3 }
 0x668   :  { %7443 = vmatpush3.bf16.msra.mxu1 %v11194_v49 }
 0x669   :  { %7444 = vmatprep.subr.bf16.mxu1 %v10211_v4 }
 0x66a   :  { %1725 = vmatmul.mubr.f32.gmra.mrb[16].mxu0 %v10699_v58  ;;  %6692 = vmatmul.mubr.f32.gmra.mrb[30].mxu1 %v10699_v58  ;;  %v1586_v58 = vld [vmem:[%s13900_s6 + $0x20] sm:$0xff] }
 0x66b   :  { %1730 = vmatprep.mubr.f32.mxu0 %v10210_v3  ;;  %6694 = vmatprep.mubr.msk.f32.mxu1 %vm10212_vm0, %v10210_v3 }
 0x66c   :  { %7446 = vmatpush3.bf16.msra.mxu1 %v11222_v39 }
 0x66d   :  { %7447 = vmatprep.subr.bf16.mxu1 %v10211_v4 }
 0x66e   :  { %1731 = vmatmul.mubr.f32.gmra.mrb[18].mxu0 %v10743_v38  ;;  %6695 = vmatmul.mubr.f32.gmra.mrb[32].mxu1 %v10743_v38  ;;  %v11069_v38 = vpack.c.bf16 %v1586_v58, %v1583_v6  ;;  %v1596_v6 = vld [vmem:[%s13900_s6 + $0x70] sm:$0xff]  ;;  %v1599_v58 = vld [vmem:[%s13900_s6 + $0x88] sm:$0xff] }
 0x66f   :  { %1736 = vmatprep.mubr.f32.mxu0 %v10210_v3  ;;  %6697 = vmatprep.mubr.msk.f32.mxu1 %vm10212_vm0, %v10210_v3 }
 0x670   :  { %7410 = vmatprep.subr.bf16.mxu0 %v11069_v38 }
 0x672   :  { %1737 = vmatmul.mubr.f32.gmra.mrb[20].mxu0 %v10787_v34  ;;  %6698 = vmatmul.mubr.f32.gmra.mrb[34].mxu1 %v10787_v34  ;;  %v1582_v34 = vld [vmem:[%s13900_s6] sm:$0xff] }
 0x673   :  { %1742 = vmatprep.mubr.f32.mxu0 %v10210_v3  ;;  %6700 = vmatprep.mubr.msk.f32.mxu1 %vm10212_vm0, %v10210_v3 }
 0x676   :  { %1743 = vmatmul.mubr.f32.gmra.mrb[22].mxu0 %v10831_v23  ;;  %6701 = vmatmul.mubr.f32.gmra.mrb[36].mxu1 %v10831_v23  ;;  %v1585_v23 = vld [vmem:[%s13900_s6 + $0x18] sm:$0xff] }
 0x677   :  { %1748 = vmatprep.mubr.f32.mxu0 %v10210_v3  ;;  %6703 = vmatprep.mubr.msk.f32.mxu1 %vm10212_vm0, %v10210_v3  ;;  %v11077_v42 = vpack.c.bf16 %v1585_v23, %v1582_v34  ;;  %v1602_v34 = vld [vmem:[%s13900_s6 + $0xa0] sm:$0xff]  ;;  %v11237_v23 = vpack.c.bf16 %v1599_v58, %v1596_v6 }
 0x678   :  { %v11243_v11 = vpack.c.bf16 %v1605_v7, %v1602_v34 }
 0x679   :  { %7412 = vmatpush1.bf16.msra.mxu0 %v11077_v42  ;;  %7449 = vmatpush3.bf16.msra.mxu1 %v11237_v23 }
 0x67a   :  { %1749 = vmatmul.mubr.f32.gmra.mrb[24].mxu0 %v10901_v47  ;;  %6704 = vmatmul.mubr.f32.gmra.mrb[38].mxu1 %v10901_v47 }
 0x67b   :  { %1754 = vmatprep.mubr.f32.mxu0 %v10210_v3  ;;  %6706 = vmatprep.mubr.msk.f32.mxu1 %vm10212_vm0, %v10210_v3 }
 0x67c   :  { %7414 = vmatprep.subr.bf16.mxu0 %v11087_v12  ;;  %7450 = vmatprep.subr.bf16.mxu1 %v10211_v4 }
 0x67d   :  { %7416 = vmatpush1.bf16.msra.mxu0 %v11095_v16  ;;  %7452 = vmatpush3.bf16.msra.mxu1 %v11243_v11 }
 0x67e   :  { %7418 = vmatprep.subr.bf16.mxu0 %v11105_v24  ;;  %7453 = vmatprep.subr.bf16.mxu1 %v10211_v4 }
 0x681   :  { %7420 = vmatpush1.bf16.msra.mxu0 %v11113_v41  ;;  %7455 = vmatpush3.bf16.msra.mxu1 %v11253_v17 }
 0x682   :  { %7422 = vmatprep.subr.bf16.mxu0 %v11123_v51  ;;  %7456 = vmatprep.subr.bf16.mxu1 %v10211_v4 }
 0x685   :  { %7424 = vmatpush1.bf16.msra.mxu0 %v11131_v61  ;;  %7458 = vmatpush3.bf16.msra.mxu1 %v11263_v35 }
 0x686   :  { %7426 = vmatprep.subr.bf16.mxu0 %v11141_v9  ;;  %7459 = vmatprep.subr.bf16.mxu1 %v10211_v4 }
 0x689   :  { %7428 = vmatpush1.bf16.msra.mxu0 %v11149_v20  ;;  %7461 = vmatpush3.bf16.msra.mxu1 %v11273_v54 }
 0x68a   :  { %7430 = vmatprep.subr.bf16.mxu0 %v11159_v29  ;;  %7462 = vmatprep.subr.bf16.mxu1 %v10211_v4 }
 0x68d   :  { %7432 = vmatpush1.bf16.msra.mxu0 %v11167_v1  ;;  %7464 = vmatpush3.bf16.msra.mxu1 %v11283_v2 }
 0x68e   :  { %7434 = vmatprep.subr.bf16.mxu0 %v11177_v28  ;;  %7497 = vmatprep.subr.bf16.mxu1 %v10211_v4 }
 0x691   :  { %7436 = vmatpush1.bf16.msra.mxu0 %v11185_v53 }
 0x692   :  { %7438 = vmatprep.subr.bf16.mxu0 %v11204_v55 }
 0x695   :  { %7440 = vmatpush1.bf16.msra.mxu0 %v11212_v63 }
 0x696   :  { %7466 = vmatprep.subr.bf16.mxu0 %v11069_v38 }
 0x719   :  { %v1438_v13 = vpop.f32.mrb[12].mxu0  ;;  %v1509_v15 = vpop.f32.mrb[26].mxu1 }
 0x71a   :  { %v9861_v25 = vadd.f32 %v1438_v13, %v10635_v62  ;;  %v1440_v26 = vpop.f32.mrb[13].mxu0  ;;  %v6655_v33 = vpop.f32.mrb[27].mxu1  ;;  %v1527_v50 = vadd.f32 %v10208_v48, %v1509_v15  ;;  %v1630_v13 = vld [vmem:[%s13901_s7] sm:$0x7] }
 0x71b   :  { %v9862_v40 = vadd.f32 %v1440_v26, %v10646_v21  ;;  %v11357_v26 = vrot.slane %v1630_v13, %v10630_v57 }
 0x71c   :  { %v5938_v59 = vmul.f32 -1.442695, %v9861_v25 }
 0x71d   :  { %v5939_v27 = vmul.f32 -1.442695, %v9862_v40 }
 0x71e   :  { %9968 = vpow2.f32 %v5938_v59 }
 0x71f   :  { %9970 = vpow2.f32 %v5939_v27 }
 0x728   :  { %v9969_v30 = vpop.eup %9968 }
 0x729   :  { %v1517_v32 = vadd.f32 1.0, %v9969_v30  ;;  %v9971_v44 = vpop.eup %9970 }
 0x72a   :  { %v1524_v60 = vadd.f32 1.0, %v9971_v44  ;;  %v11361_v44 = vrot.slane %v1630_v13, %v10641_v8 }
 0x72b   :  { %9972 = vrcp.f32 %v1517_v32 }
 0x735   :  { %v9973_v52 = vpop.eup %9972 }
 0x736   :  { %v1528_v45 = vmul.f32 %v9973_v52, %v1527_v50 }
 0x738   :  { %v1529_v62 = vadd.f32 %v1528_v45, %v10643_v18 }
 0x739   :  { %v11294_v10 = vpop.f32.mrb[28].mxu1 }
 0x73a   :  { %9974 = vtanh.f32 %v1529_v62  ;;  %v6690_v21 = vpop.f32.mrb[29].mxu1  ;;  %v11367_v62 = vld [vmem:[%s13902_s8] ss:$0 sm:$0xff] }
 0x73b   :  { %9976 = vrcp.f32 %v1524_v60  ;;  %v11370_v60 = vrot.slane %v1630_v13, %v10617_v37 }
 0x73d   :  { %v11296_v5 = vpop.f32.mrb[30].mxu1 }
 0x73e   :  { %v6693_v6 = vpop.f32.mrb[31].mxu1 }
 0x741   :  { %v11298_v58 = vpop.f32.mrb[32].mxu1 }
 0x742   :  { %v6696_v34 = vpop.f32.mrb[33].mxu1 }
 0x744   :  { %v9975_v7 = vpop.eup %9974 }
 0x745   :  { %v11300_v14 = vpop.f32.mrb[34].mxu1  ;;  %v1531_v19 = vsub.f32 %v10901_v47, %v9975_v7  ;;  %v9977_v22 = vpop.eup %9976 }
 0x746   :  { %v6699_v31 = vpop.f32.mrb[35].mxu1 }
 0x747   :  { %v1532_v18 = vmul.f32 %v9977_v22, %v1531_v19 }
 0x749   :  { %v11303_v43 = vpop.f32.mrb[36].mxu1  ;;  %v11305_v46 = vadd.f32 %v9975_v7, %v1532_v18  ;;  %v1828_v7 = vadd.f32 %v11294_v10, %v11370_v60 }
 0x74a   :  { %v6702_v56 = vpop.f32.mrb[37].mxu1 }
 0x74b   :  { %1755 = vmatmul.mubr.f32.gmra.mrb[26].mxu0 %v11305_v46  ;;  %6707 = vmatmul.mubr.f32.gmra.mrb[40].mxu1 %v11305_v46 }
 0x74c   :  { %1949 = vmatprep.mubr.f32.mxu0 %v10210_v3  ;;  %6741 = vmatprep.mubr.msk.f32.mxu1 %vm10212_vm0, %v10210_v3 }
 0x74d   :  { %v11312_v0 = vpop.f32.mrb[38].mxu1 }
 0x74e   :  { %v6705_v47 = vpop.f32.mrb[39].mxu1 }
 0x74f   :  { %1950 = vmatmul.mubr.f32.vlgmr.msra.gmra.mrb[14].mxu0 %v10210_v3  ;;  %6742 = vmatmul.mubr.f32.vlgmr.msra.gmra.mrb[42].mxu1 %v10210_v3 }
 0x750   :  { %7468 = vmatpush1.bf16.msra.mxu0 %v11077_v42  ;;  %7499 = vmatpush3.bf16.msra.mxu1 %v11194_v49 }
 0x751   :  { %7470 = vmatprep.subr.bf16.mxu0 %v11087_v12  ;;  %7500 = vmatprep.subr.bf16.mxu1 %v10211_v4 }
 0x752   :  { %2114 = vmatprep.mubr.f32.mxu0 %v10210_v3  ;;  %6776 = vmatprep.mubr.msk.f32.mxu1 %vm10212_vm0, %v10210_v3 }
 0x754   :  { %7472 = vmatpush1.bf16.msra.mxu0 %v11095_v16  ;;  %7502 = vmatpush3.bf16.msra.mxu1 %v11222_v39 }
 0x755   :  { %7474 = vmatprep.subr.bf16.mxu0 %v11105_v24  ;;  %7503 = vmatprep.subr.bf16.mxu1 %v10211_v4 }
 0x758   :  { %7476 = vmatpush1.bf16.msra.mxu0 %v11113_v41  ;;  %7505 = vmatpush3.bf16.msra.mxu1 %v11237_v23 }
 0x759   :  { %7478 = vmatprep.subr.bf16.mxu0 %v11123_v51  ;;  %7506 = vmatprep.subr.bf16.mxu1 %v10211_v4 }
 0x75c   :  { %7480 = vmatpush1.bf16.msra.mxu0 %v11131_v61  ;;  %7508 = vmatpush3.bf16.msra.mxu1 %v11243_v11 }
 0x75d   :  { %7482 = vmatprep.subr.bf16.mxu0 %v11141_v9  ;;  %7509 = vmatprep.subr.bf16.mxu1 %v10211_v4 }
 0x760   :  { %7484 = vmatpush1.bf16.msra.mxu0 %v11149_v20  ;;  %7511 = vmatpush3.bf16.msra.mxu1 %v11253_v17 }
 0x761   :  { %7486 = vmatprep.subr.bf16.mxu0 %v11159_v29  ;;  %7512 = vmatprep.subr.bf16.mxu1 %v10211_v4 }
 0x764   :  { %7488 = vmatpush1.bf16.msra.mxu0 %v11167_v1  ;;  %7514 = vmatpush3.bf16.msra.mxu1 %v11263_v35 }
 0x765   :  { %7490 = vmatprep.subr.bf16.mxu0 %v11177_v28  ;;  %7515 = vmatprep.subr.bf16.mxu1 %v10211_v4 }
 0x768   :  { %7492 = vmatpush1.bf16.msra.mxu0 %v11185_v53  ;;  %7517 = vmatpush3.bf16.msra.mxu1 %v11273_v54 }
 0x769   :  { %7494 = vmatprep.subr.bf16.mxu0 %v11204_v55  ;;  %7518 = vmatprep.subr.bf16.mxu1 %v10211_v4 }
 0x76c   :  { %7496 = vmatpush1.bf16.msra.mxu0 %v11212_v63  ;;  %7520 = vmatpush3.bf16.msra.mxu1 %v11283_v2 }
 0x76d   :  { %7522 = vmatprep.subr.bf16.mxu0 %v11069_v38  ;;  %7553 = vmatprep.subr.bf16.mxu1 %v10211_v4 }
 0x81e   :  { %v11354_v15 = vpop.f32.mrb[40].mxu1 }
 0x81f   :  { %v6708_v25 = vpop.f32.mrb[41].mxu1 }
 0x822   :  { %v1951_v33 = vpop.f32.mrb[14].mxu0  ;;  %v2022_v59 = vpop.f32.mrb[42].mxu1 }
 0x823   :  { %v9863_v40 = vadd.f32 %v1951_v33, %v11357_v26  ;;  %v1953_v27 = vpop.f32.mrb[15].mxu0  ;;  %v6743_v30 = vpop.f32.mrb[43].mxu1  ;;  %v2040_v21 = vadd.f32 %v11367_v62, %v2022_v59 }
 0x824   :  { %v9864_v48 = vadd.f32 %v1953_v27, %v11361_v44 }
 0x825   :  { %v5941_v32 = vmul.f32 -1.442695, %v9863_v40 }
 0x826   :  { %v5942_v50 = vmul.f32 -1.442695, %v9864_v48 }
 0x827   :  { %9978 = vpow2.f32 %v5941_v32 }
 0x828   :  { %9980 = vpow2.f32 %v5942_v50 }
 0x831   :  { %v9979_v52 = vpop.eup %9978 }
 0x832   :  { %v2030_v45 = vadd.f32 1.0, %v9979_v52  ;;  %v9981_v6 = vpop.eup %9980 }
 0x833   :  { %v2037_v22 = vadd.f32 1.0, %v9981_v6 }
 0x834   :  { %9982 = vrcp.f32 %v2030_v45 }
 0x83e   :  { %v9983_v34 = vpop.eup %9982 }
 0x83f   :  { %v2041_v19 = vmul.f32 %v9983_v34, %v2040_v21  ;;  %v1833_v34 = vadd.f32 %v11296_v5, %v11370_v60 }
 0x841   :  { %v2042_v31 = vadd.f32 %v2041_v19, %v1828_v7 }
 0x843   :  { %9984 = vtanh.f32 %v2042_v31 }
 0x844   :  { %9986 = vrcp.f32 %v2037_v22 }
 0x84d   :  { %v9985_v18 = vpop.eup %9984 }
 0x84e   :  { %v2044_v56 = vsub.f32 0.0, %v9985_v18  ;;  %v9987_v47 = vpop.eup %9986 }
 0x850   :  { %v2045_v25 = vmul.f32 %v9987_v47, %v2044_v56 }
 0x852   :  { %v11375_v33 = vadd.f32 %v9985_v18, %v2045_v25 }
 0x854   :  { %2115 = vmatmul.mubr.f32.vlgmr.msra.gmra.mrb[16].mxu0 %v11375_v33  ;;  %6777 = vmatmul.mubr.f32.vlgmr.msra.gmra.mrb[44].mxu1 %v11375_v33 }
 0x855   :  { %7524 = vmatpush1.bf16.msra.mxu0 %v11077_v42  ;;  %7555 = vmatpush3.bf16.msra.mxu1 %v11194_v49 }
 0x856   :  { %7526 = vmatprep.subr.bf16.mxu0 %v11087_v12  ;;  %7556 = vmatprep.subr.bf16.mxu1 %v10211_v4 }
 0x857   :  { %2279 = vmatprep.mubr.f32.mxu0 %v10210_v3  ;;  %6811 = vmatprep.mubr.msk.f32.mxu1 %vm10212_vm0, %v10210_v3 }
 0x859   :  { %7528 = vmatpush1.bf16.msra.mxu0 %v11095_v16  ;;  %7558 = vmatpush3.bf16.msra.mxu1 %v11222_v39 }
 0x85a   :  { %7530 = vmatprep.subr.bf16.mxu0 %v11105_v24  ;;  %7559 = vmatprep.subr.bf16.mxu1 %v10211_v4 }
 0x85d   :  { %7532 = vmatpush1.bf16.msra.mxu0 %v11113_v41  ;;  %7561 = vmatpush3.bf16.msra.mxu1 %v11237_v23 }
 0x85e   :  { %7534 = vmatprep.subr.bf16.mxu0 %v11123_v51  ;;  %7562 = vmatprep.subr.bf16.mxu1 %v10211_v4 }
 0x861   :  { %7536 = vmatpush1.bf16.msra.mxu0 %v11131_v61  ;;  %7564 = vmatpush3.bf16.msra.mxu1 %v11243_v11 }
 0x862   :  { %7538 = vmatprep.subr.bf16.mxu0 %v11141_v9  ;;  %7565 = vmatprep.subr.bf16.mxu1 %v10211_v4 }
 0x865   :  { %7540 = vmatpush1.bf16.msra.mxu0 %v11149_v20  ;;  %7567 = vmatpush3.bf16.msra.mxu1 %v11253_v17 }
 0x866   :  { %7542 = vmatprep.subr.bf16.mxu0 %v11159_v29  ;;  %7568 = vmatprep.subr.bf16.mxu1 %v10211_v4 }
 0x869   :  { %7544 = vmatpush1.bf16.msra.mxu0 %v11167_v1  ;;  %7570 = vmatpush3.bf16.msra.mxu1 %v11263_v35 }
 0x86a   :  { %7546 = vmatprep.subr.bf16.mxu0 %v11177_v28  ;;  %7571 = vmatprep.subr.bf16.mxu1 %v10211_v4 }
 0x86d   :  { %7548 = vmatpush1.bf16.msra.mxu0 %v11185_v53  ;;  %7573 = vmatpush3.bf16.msra.mxu1 %v11273_v54 }
 0x86e   :  { %7550 = vmatprep.subr.bf16.mxu0 %v11204_v55  ;;  %7574 = vmatprep.subr.bf16.mxu1 %v10211_v4 }
 0x871   :  { %7552 = vmatpush1.bf16.msra.mxu0 %v11212_v63  ;;  %7576 = vmatpush3.bf16.msra.mxu1 %v11283_v2 }
 0x872   :  { %7578 = vmatprep.subr.bf16.mxu0 %v11069_v38  ;;  %7609 = vmatprep.subr.bf16.mxu1 %v10211_v4 }
 0x927   :  { %v2116_v10 = vpop.f32.mrb[16].mxu0  ;;  %v2187_v13 = vpop.f32.mrb[44].mxu1 }
 0x928   :  { %v9865_v59 = vadd.f32 %v2116_v10, %v11357_v26  ;;  %v2118_v40 = vpop.f32.mrb[17].mxu0  ;;  %v6778_v27 = vpop.f32.mrb[45].mxu1  ;;  %v2205_v21 = vadd.f32 %v11367_v62, %v2187_v13 }
 0x929   :  { %v9866_v32 = vadd.f32 %v2118_v40, %v11361_v44 }
 0x92a   :  { %v5943_v30 = vmul.f32 -1.442695, %v9865_v59 }
 0x92b   :  { %v5944_v48 = vmul.f32 -1.442695, %v9866_v32 }
 0x92c   :  { %9988 = vpow2.f32 %v5943_v30 }
 0x92d   :  { %9990 = vpow2.f32 %v5944_v48 }
 0x936   :  { %v9989_v50 = vpop.eup %9988 }
 0x937   :  { %v2195_v52 = vadd.f32 1.0, %v9989_v50  ;;  %v9991_v45 = vpop.eup %9990 }
 0x938   :  { %v2202_v22 = vadd.f32 1.0, %v9991_v45 }
 0x939   :  { %9992 = vrcp.f32 %v2195_v52 }
 0x943   :  { %v9993_v6 = vpop.eup %9992 }
 0x944   :  { %v2206_v7 = vmul.f32 %v9993_v6, %v2205_v21  ;;  %v1838_v21 = vadd.f32 %v11298_v58, %v11370_v60 }
 0x946   :  { %v2207_v19 = vadd.f32 %v2206_v7, %v1833_v34 }
 0x948   :  { %9994 = vtanh.f32 %v2207_v19 }
 0x949   :  { %9996 = vrcp.f32 %v2202_v22 }
 0x952   :  { %v9995_v31 = vpop.eup %9994 }
 0x953   :  { %v2209_v18 = vsub.f32 %v11375_v33, %v9995_v31  ;;  %v9997_v56 = vpop.eup %9996 }
 0x955   :  { %v2210_v47 = vmul.f32 %v9997_v56, %v2209_v18 }
 0x957   :  { %v11420_v25 = vadd.f32 %v9995_v31, %v2210_v47 }
 0x959   :  { %2280 = vmatmul.mubr.f32.vlgmr.msra.gmra.mrb[18].mxu0 %v11420_v25  ;;  %6812 = vmatmul.mubr.f32.vlgmr.msra.gmra.mrb[46].mxu1 %v11420_v25 }
 0x95a   :  { %7580 = vmatpush1.bf16.msra.mxu0 %v11077_v42  ;;  %7611 = vmatpush3.bf16.msra.mxu1 %v11194_v49 }
 0x95b   :  { %7582 = vmatprep.subr.bf16.mxu0 %v11087_v12  ;;  %7612 = vmatprep.subr.bf16.mxu1 %v10211_v4 }
 0x95c   :  { %2444 = vmatprep.mubr.f32.mxu0 %v10210_v3  ;;  %6846 = vmatprep.mubr.msk.f32.mxu1 %vm10212_vm0, %v10210_v3 }
 0x95e   :  { %7584 = vmatpush1.bf16.msra.mxu0 %v11095_v16  ;;  %7614 = vmatpush3.bf16.msra.mxu1 %v11222_v39 }
 0x95f   :  { %7586 = vmatprep.subr.bf16.mxu0 %v11105_v24  ;;  %7615 = vmatprep.subr.bf16.mxu1 %v10211_v4 }
 0x962   :  { %7588 = vmatpush1.bf16.msra.mxu0 %v11113_v41  ;;  %7617 = vmatpush3.bf16.msra.mxu1 %v11237_v23 }
 0x963   :  { %7590 = vmatprep.subr.bf16.mxu0 %v11123_v51  ;;  %7618 = vmatprep.subr.bf16.mxu1 %v10211_v4 }
 0x966   :  { %7592 = vmatpush1.bf16.msra.mxu0 %v11131_v61  ;;  %7620 = vmatpush3.bf16.msra.mxu1 %v11243_v11 }
 0x967   :  { %7594 = vmatprep.subr.bf16.mxu0 %v11141_v9  ;;  %7621 = vmatprep.subr.bf16.mxu1 %v10211_v4 }
 0x96a   :  { %7596 = vmatpush1.bf16.msra.mxu0 %v11149_v20  ;;  %7623 = vmatpush3.bf16.msra.mxu1 %v11253_v17 }
 0x96b   :  { %7598 = vmatprep.subr.bf16.mxu0 %v11159_v29  ;;  %7624 = vmatprep.subr.bf16.mxu1 %v10211_v4 }
 0x96e   :  { %7600 = vmatpush1.bf16.msra.mxu0 %v11167_v1  ;;  %7626 = vmatpush3.bf16.msra.mxu1 %v11263_v35 }
 0x96f   :  { %7602 = vmatprep.subr.bf16.mxu0 %v11177_v28  ;;  %7627 = vmatprep.subr.bf16.mxu1 %v10211_v4 }
 0x972   :  { %7604 = vmatpush1.bf16.msra.mxu0 %v11185_v53  ;;  %7629 = vmatpush3.bf16.msra.mxu1 %v11273_v54 }
 0x973   :  { %7606 = vmatprep.subr.bf16.mxu0 %v11204_v55  ;;  %7630 = vmatprep.subr.bf16.mxu1 %v10211_v4 }
 0x976   :  { %7608 = vmatpush1.bf16.msra.mxu0 %v11212_v63  ;;  %7632 = vmatpush3.bf16.msra.mxu1 %v11283_v2 }
 0x977   :  { %7634 = vmatprep.subr.bf16.mxu0 %v11069_v38  ;;  %7665 = vmatprep.subr.bf16.mxu1 %v10211_v4 }
 0xa2c   :  { %v2281_v5 = vpop.f32.mrb[18].mxu0  ;;  %v2352_v33 = vpop.f32.mrb[46].mxu1 }
 0xa2d   :  { %v9867_v10 = vadd.f32 %v2281_v5, %v11357_v26  ;;  %v2283_v13 = vpop.f32.mrb[19].mxu0  ;;  %v6813_v59 = vpop.f32.mrb[47].mxu1  ;;  %v2370_v52 = vadd.f32 %v11367_v62, %v2352_v33 }
 0xa2e   :  { %v9868_v27 = vadd.f32 %v2283_v13, %v11361_v44 }
 0xa2f   :  { %v5945_v40 = vmul.f32 -1.442695, %v9867_v10 }
 0xa30   :  { %v5946_v30 = vmul.f32 -1.442695, %v9868_v27 }
 0xa31   :  { %9998 = vpow2.f32 %v5945_v40 }
 0xa32   :  { %10000 = vpow2.f32 %v5946_v30 }
 0xa3b   :  { %v9999_v32 = vpop.eup %9998 }
 0xa3c   :  { %v2360_v48 = vadd.f32 1.0, %v9999_v32  ;;  %v10001_v50 = vpop.eup %10000 }
 0xa3d   :  { %v2367_v7 = vadd.f32 1.0, %v10001_v50  ;;  %v1843_v50 = vadd.f32 %v11300_v14, %v11370_v60 }
 0xa3e   :  { %10002 = vrcp.f32 %v2360_v48 }
 0xa48   :  { %v10003_v45 = vpop.eup %10002 }
 0xa49   :  { %v2371_v6 = vmul.f32 %v10003_v45, %v2370_v52 }
 0xa4b   :  { %v2372_v34 = vadd.f32 %v2371_v6, %v1838_v21 }
 0xa4d   :  { %10004 = vtanh.f32 %v2372_v34 }
 0xa4e   :  { %10006 = vrcp.f32 %v2367_v7 }
 0xa57   :  { %v10005_v19 = vpop.eup %10004 }
 0xa58   :  { %v2374_v22 = vsub.f32 %v11420_v25, %v10005_v19  ;;  %v10007_v31 = vpop.eup %10006 }
 0xa5a   :  { %v2375_v18 = vmul.f32 %v10007_v31, %v2374_v22 }
 0xa5c   :  { %v11465_v56 = vadd.f32 %v10005_v19, %v2375_v18 }
 0xa5e   :  { %2445 = vmatmul.mubr.f32.vlgmr.msra.gmra.mrb[20].mxu0 %v11465_v56  ;;  %6847 = vmatmul.mubr.f32.vlgmr.msra.gmra.mrb[48].mxu1 %v11465_v56 }
 0xa5f   :  { %7636 = vmatpush1.bf16.msra.mxu0 %v11077_v42  ;;  %7667 = vmatpush3.bf16.msra.mxu1 %v11194_v49 }
 0xa60   :  { %7638 = vmatprep.subr.bf16.mxu0 %v11087_v12  ;;  %7668 = vmatprep.subr.bf16.mxu1 %v10211_v4 }
 0xa61   :  { %2609 = vmatprep.mubr.f32.mxu0 %v10210_v3  ;;  %6881 = vmatprep.mubr.msk.f32.mxu1 %vm10212_vm0, %v10210_v3 }
 0xa63   :  { %7640 = vmatpush1.bf16.msra.mxu0 %v11095_v16  ;;  %7670 = vmatpush3.bf16.msra.mxu1 %v11222_v39 }
 0xa64   :  { %7642 = vmatprep.subr.bf16.mxu0 %v11105_v24  ;;  %7671 = vmatprep.subr.bf16.mxu1 %v10211_v4 }
 0xa67   :  { %7644 = vmatpush1.bf16.msra.mxu0 %v11113_v41  ;;  %7673 = vmatpush3.bf16.msra.mxu1 %v11237_v23 }
 0xa68   :  { %7646 = vmatprep.subr.bf16.mxu0 %v11123_v51  ;;  %7674 = vmatprep.subr.bf16.mxu1 %v10211_v4 }
 0xa6b   :  { %7648 = vmatpush1.bf16.msra.mxu0 %v11131_v61  ;;  %7676 = vmatpush3.bf16.msra.mxu1 %v11243_v11 }
 0xa6c   :  { %7650 = vmatprep.subr.bf16.mxu0 %v11141_v9  ;;  %7677 = vmatprep.subr.bf16.mxu1 %v10211_v4 }
 0xa6f   :  { %7652 = vmatpush1.bf16.msra.mxu0 %v11149_v20  ;;  %7679 = vmatpush3.bf16.msra.mxu1 %v11253_v17 }
 0xa70   :  { %7654 = vmatprep.subr.bf16.mxu0 %v11159_v29  ;;  %7680 = vmatprep.subr.bf16.mxu1 %v10211_v4 }
 0xa73   :  { %7656 = vmatpush1.bf16.msra.mxu0 %v11167_v1  ;;  %7682 = vmatpush3.bf16.msra.mxu1 %v11263_v35 }
 0xa74   :  { %7658 = vmatprep.subr.bf16.mxu0 %v11177_v28  ;;  %7683 = vmatprep.subr.bf16.mxu1 %v10211_v4 }
 0xa77   :  { %7660 = vmatpush1.bf16.msra.mxu0 %v11185_v53  ;;  %7685 = vmatpush3.bf16.msra.mxu1 %v11273_v54 }
 0xa78   :  { %7662 = vmatprep.subr.bf16.mxu0 %v11204_v55  ;;  %7686 = vmatprep.subr.bf16.mxu1 %v10211_v4 }
 0xa7b   :  { %7664 = vmatpush1.bf16.msra.mxu0 %v11212_v63  ;;  %7688 = vmatpush3.bf16.msra.mxu1 %v11283_v2 }
 0xa7c   :  { %7690 = vmatprep.subr.bf16.mxu0 %v11069_v38  ;;  %7721 = vmatprep.subr.bf16.mxu1 %v10211_v4 }
 0xb31   :  { %v2446_v58 = vpop.f32.mrb[20].mxu0  ;;  %v2517_v47 = vpop.f32.mrb[48].mxu1 }
 0xb32   :  { %v9869_v25 = vadd.f32 %v2446_v58, %v11357_v26  ;;  %v2448_v5 = vpop.f32.mrb[21].mxu0  ;;  %v6848_v33 = vpop.f32.mrb[49].mxu1  ;;  %v2535_v32 = vadd.f32 %v11367_v62, %v2517_v47 }
 0xb33   :  { %v9870_v13 = vadd.f32 %v2448_v5, %v11361_v44 }
 0xb34   :  { %v5947_v10 = vmul.f32 -1.442695, %v9869_v25 }
 0xb35   :  { %v5948_v59 = vmul.f32 -1.442695, %v9870_v13 }
 0xb36   :  { %10008 = vpow2.f32 %v5947_v10 }
 0xb37   :  { %10010 = vpow2.f32 %v5948_v59 }
 0xb40   :  { %v10009_v40 = vpop.eup %10008 }
 0xb41   :  { %v2525_v27 = vadd.f32 1.0, %v10009_v40  ;;  %v10011_v30 = vpop.eup %10010  ;;  %v1848_v40 = vadd.f32 %v11303_v43, %v11370_v60  ;;  %v3037_v43 = vld [vmem:[%s13903_s9] sm:$0xff] }
 0xb42   :  { %v2532_v21 = vadd.f32 1.0, %v10011_v30 }
 0xb43   :  { %10012 = vrcp.f32 %v2525_v27 }
 0xb4d   :  { %v10013_v48 = vpop.eup %10012 }
 0xb4e   :  { %v2536_v52 = vmul.f32 %v10013_v48, %v2535_v32 }
 0xb50   :  { %v2537_v45 = vadd.f32 %v2536_v52, %v1843_v50 }
 0xb52   :  { %10014 = vtanh.f32 %v2537_v45 }
 0xb53   :  { %10016 = vrcp.f32 %v2532_v21 }
 0xb5c   :  { %v10015_v6 = vpop.eup %10014 }
 0xb5d   :  { %v2539_v34 = vsub.f32 %v11465_v56, %v10015_v6  ;;  %v10017_v7 = vpop.eup %10016 }
 0xb5f   :  { %v2540_v19 = vmul.f32 %v10017_v7, %v2539_v34  ;;  %v3043_v34 = vld [vmem:[%s13903_s9 + $0x30] sm:$0xff]  ;;  %v3046_v7 = vld [vmem:[%s13903_s9 + $0x48] sm:$0xff] }
 0xb61   :  { %v11510_v22 = vadd.f32 %v10015_v6, %v2540_v19 }
 0xb63   :  { %2610 = vmatmul.mubr.f32.vlgmr.msra.gmra.mrb[22].mxu0 %v11510_v22  ;;  %6882 = vmatmul.mubr.f32.vlgmr.msra.gmra.mrb[50].mxu1 %v11510_v22 }
 0xb64   :  { %7692 = vmatpush1.bf16.msra.mxu0 %v11077_v42  ;;  %7723 = vmatpush3.bf16.msra.mxu1 %v11194_v49 }
 0xb65   :  { %7694 = vmatprep.subr.bf16.mxu0 %v11087_v12  ;;  %7724 = vmatprep.subr.bf16.mxu1 %v10211_v4 }
 0xb66   :  { %2774 = vmatprep.mubr.f32.mxu0 %v10210_v3  ;;  %6916 = vmatprep.mubr.msk.f32.mxu1 %vm10212_vm0, %v10210_v3 }
 0xb68   :  { %7696 = vmatpush1.bf16.msra.mxu0 %v11095_v16  ;;  %7726 = vmatpush3.bf16.msra.mxu1 %v11222_v39 }
 0xb69   :  { %7698 = vmatprep.subr.bf16.mxu0 %v11105_v24  ;;  %7727 = vmatprep.subr.bf16.mxu1 %v10211_v4 }
 0xb6c   :  { %7700 = vmatpush1.bf16.msra.mxu0 %v11113_v41  ;;  %7729 = vmatpush3.bf16.msra.mxu1 %v11237_v23 }
 0xb6d   :  { %7702 = vmatprep.subr.bf16.mxu0 %v11123_v51  ;;  %7730 = vmatprep.subr.bf16.mxu1 %v10211_v4 }
 0xb70   :  { %7704 = vmatpush1.bf16.msra.mxu0 %v11131_v61  ;;  %7732 = vmatpush3.bf16.msra.mxu1 %v11243_v11 }
 0xb71   :  { %7706 = vmatprep.subr.bf16.mxu0 %v11141_v9  ;;  %7733 = vmatprep.subr.bf16.mxu1 %v10211_v4 }
 0xb74   :  { %7708 = vmatpush1.bf16.msra.mxu0 %v11149_v20  ;;  %7735 = vmatpush3.bf16.msra.mxu1 %v11253_v17 }
 0xb75   :  { %7710 = vmatprep.subr.bf16.mxu0 %v11159_v29  ;;  %7736 = vmatprep.subr.bf16.mxu1 %v10211_v4 }
 0xb78   :  { %7712 = vmatpush1.bf16.msra.mxu0 %v11167_v1  ;;  %7738 = vmatpush3.bf16.msra.mxu1 %v11263_v35 }
 0xb79   :  { %7714 = vmatprep.subr.bf16.mxu0 %v11177_v28  ;;  %7739 = vmatprep.subr.bf16.mxu1 %v10211_v4 }
 0xb7c   :  { %7716 = vmatpush1.bf16.msra.mxu0 %v11185_v53  ;;  %7741 = vmatpush3.bf16.msra.mxu1 %v11273_v54 }
 0xb7d   :  { %7718 = vmatprep.subr.bf16.mxu0 %v11204_v55  ;;  %7742 = vmatprep.subr.bf16.mxu1 %v10211_v4 }
 0xb80   :  { %7720 = vmatpush1.bf16.msra.mxu0 %v11212_v63  ;;  %7744 = vmatpush3.bf16.msra.mxu1 %v11283_v2 }
 0xb81   :  { %7746 = vmatprep.subr.bf16.mxu0 %v11069_v38  ;;  %7777 = vmatprep.subr.bf16.mxu1 %v10211_v4 }
 0xc36   :  { %v2611_v14 = vpop.f32.mrb[22].mxu0  ;;  %v2682_v31 = vpop.f32.mrb[50].mxu1 }
 0xc37   :  { %v9871_v18 = vadd.f32 %v2611_v14, %v11357_v26  ;;  %v2613_v56 = vpop.f32.mrb[23].mxu0  ;;  %v6883_v58 = vpop.f32.mrb[51].mxu1  ;;  %v2700_v38 = vadd.f32 %v11367_v62, %v2682_v31  ;;  %v3048_v14 = vld [vmem:[%s13903_s9 + $0x58] sm:$0xff] }
 0xc38   :  { %v9872_v25 = vadd.f32 %v2613_v56, %v11361_v44  ;;  %v3052_v31 = vld [vmem:[%s13903_s9 + $0x78] sm:$0xff] }
 0xc39   :  { %v5949_v47 = vmul.f32 -1.442695, %v9871_v18 }
 0xc3a   :  { %v5950_v5 = vmul.f32 -1.442695, %v9872_v25  ;;  %v3049_v25 = vld [vmem:[%s13903_s9 + $0x60] sm:$0xff] }
 0xc3b   :  { %10018 = vpow2.f32 %v5949_v47  ;;  %v3045_v47 = vld [vmem:[%s13903_s9 + $0x40] sm:$0xff] }
 0xc3c   :  { %10020 = vpow2.f32 %v5950_v5 }
 0xc45   :  { %v10019_v33 = vpop.eup %10018 }
 0xc46   :  { %v2690_v10 = vadd.f32 1.0, %v10019_v33  ;;  %v10021_v13 = vpop.eup %10020  ;;  %v11654_v33 = vpack.c.bf16 %v3052_v31, %v3048_v14  ;;  %v3084_v14 = vld [vmem:[%s13903_s9 + $0x178] sm:$0xff]  ;;  %v3077_v31 = vld [vmem:[%s13903_s9 + $0x140] sm:$0xff] }
 0xc47   :  { %v2697_v32 = vadd.f32 1.0, %v10021_v13  ;;  %v3051_v13 = vld [vmem:[%s13903_s9 + $0x70] sm:$0xff] }
 0xc48   :  { %10022 = vrcp.f32 %v2690_v10  ;;  %v3047_v10 = vld [vmem:[%s13903_s9 + $0x50] sm:$0xff] }
 0xc52   :  { %v10023_v59 = vpop.eup %10022 }
 0xc53   :  { %v2701_v27 = vmul.f32 %v10023_v59, %v2700_v38  ;;  %v3054_v38 = vld [vmem:[%s13903_s9 + $0x88] sm:$0xff] }
 0xc54   :  { %v3058_v59 = vld [vmem:[%s13903_s9 + $0xa8] sm:$0xff] }
 0xc55   :  { %v2702_v30 = vadd.f32 %v2701_v27, %v1848_v40  ;;  %v3056_v40 = vld [vmem:[%s13903_s9 + $0x98] sm:$0xff] }
 0xc56   :  { %v3060_v27 = vld [vmem:[%s13903_s9 + $0xb8] sm:$0xff] }
 0xc57   :  { %10024 = vtanh.f32 %v2702_v30  ;;  %v11680_v30 = vpack.c.bf16 %v3049_v25, %v3045_v47  ;;  %v3081_v47 = vld [vmem:[%s13903_s9 + $0x160] sm:$0xff] }
 0xc58   :  { %10026 = vrcp.f32 %v2697_v32  ;;  %v11682_v32 = vpack.c.bf16 %v3051_v13, %v3047_v10  ;;  %v11806_v10 = vpack.c.bf16 %v3081_v47, %v3077_v31  ;;  %v3079_v13 = vld [vmem:[%s13903_s9 + $0x150] sm:$0xff]  ;;  %v3104_v31 = vld [vmem:[%s13903_s9 + $0x218] sm:$0xff] }
 0xc61   :  { %v10025_v48 = vpop.eup %10024 }
 0xc62   :  { %v2704_v50 = vsub.f32 %v11510_v22, %v10025_v48  ;;  %v10027_v52 = vpop.eup %10026  ;;  %v3050_v22 = vld [vmem:[%s13903_s9 + $0x68] sm:$0xff] }
 0xc63   :  { %v11652_v5 = vpack.c.bf16 %v3050_v22, %v3046_v7  ;;  %v3082_v7 = vld [vmem:[%s13903_s9 + $0x168] sm:$0xff] }
 0xc64   :  { %v2705_v45 = vmul.f32 %v10027_v52, %v2704_v50  ;;  %v3057_v50 = vld [vmem:[%s13903_s9 + $0xa0] sm:$0xff]  ;;  %v11692_v52 = vpack.c.bf16 %v3058_v59, %v3054_v38  ;;  %v3083_v38 = vld [vmem:[%s13903_s9 + $0x170] sm:$0xff] }
 0xc65   :  { %v11815_v59 = vpack.c.bf16 %v3083_v38, %v3079_v13  ;;  %v3108_v13 = vld [vmem:[%s13903_s9 + $0x238] sm:$0xff]  ;;  %v3101_v38 = vld [vmem:[%s13903_s9 + $0x200] sm:$0xff] }
 0xc66   :  { %v11555_v21 = vadd.f32 %v10025_v48, %v2705_v45  ;;  %v3053_v48 = vld [vmem:[%s13903_s9 + $0x80] sm:$0xff]  ;;  %v11694_v45 = vpack.c.bf16 %v3060_v27, %v3056_v40  ;;  %v3086_v40 = vld [vmem:[%s13903_s9 + $0x188] sm:$0xff] }
 0xc67   :  { %v3090_v27 = vld [vmem:[%s13903_s9 + $0x1a8] sm:$0xff] }
 0xc68   :  { %2775 = vmatmul.mubr.f32.vlgmr.msra.gmra.mrb[24].mxu0 %v11555_v21  ;;  %6917 = vmatmul.mubr.f32.vlgmr.msra.gmra.mrb[52].mxu1 %v11555_v21 }
 0xc69   :  { %7748 = vmatpush1.bf16.msra.mxu0 %v11077_v42  ;;  %7779 = vmatpush3.bf16.msra.mxu1 %v11194_v49  ;;  %v3042_v42 = vld [vmem:[%s13903_s9 + $0x28] sm:$0xff] }
 0xc6a   :  { %7750 = vmatprep.subr.bf16.mxu0 %v11087_v12  ;;  %7780 = vmatprep.subr.bf16.mxu1 %v10211_v4  ;;  %v3040_v12 = vld [vmem:[%s13903_s9 + $0x18] sm:$0xff] }
 0xc6b   :  { %2939 = vmatprep.mubr.f32.mxu0 %v10210_v3  ;;  %6951 = vmatprep.mubr.msk.f32.mxu1 %vm10212_vm0, %v10210_v3  ;;  %v3038_v3 = vld [vmem:[%s13903_s9 + $0x8] sm:$0xff] }
 0xc6d   :  { %7752 = vmatpush1.bf16.msra.mxu0 %v11095_v16  ;;  %7782 = vmatpush3.bf16.msra.mxu1 %v11222_v39  ;;  %v11601_v16 = vpack.c.bf16 %v3042_v42, %v3038_v3  ;;  %v3059_v3 = vld [vmem:[%s13903_s9 + $0xb0] sm:$0xff]  ;;  %v3062_v42 = vld [vmem:[%s13903_s9 + $0xc8] sm:$0xff] }
 0xc6e   :  { %7754 = vmatprep.subr.bf16.mxu0 %v11105_v24  ;;  %7783 = vmatprep.subr.bf16.mxu1 %v10211_v4 }
 0xc6f   :  { %14093 = vst [vmem:[#allocation3_spill] sm:$0xff] %v11601_v16 }
 0xc71   :  { %7756 = vmatpush1.bf16.msra.mxu0 %v11113_v41  ;;  %7785 = vmatpush3.bf16.msra.mxu1 %v11237_v23  ;;  %v1853_v23 = vadd.f32 %v11312_v0, %v11370_v60  ;;  %v3039_v0 = vld [vmem:[%s13903_s9 + $0x10] sm:$0xff] }
 0xc72   :  { %7758 = vmatprep.subr.bf16.mxu0 %v11123_v51  ;;  %7786 = vmatprep.subr.bf16.mxu1 %v10211_v4  ;;  %v11644_v58 = vpack.c.bf16 %v3043_v34, %v3039_v0  ;;  %v3078_v34 = vld [vmem:[%s13903_s9 + $0x148] sm:$0xff] }
 0xc73   :  { %v11793_v22 = vpack.c.bf16 %v3082_v7, %v3078_v34  ;;  %v3099_v34 = vld [vmem:[%s13903_s9 + $0x1f0] sm:$0xff] }
 0xc75   :  { %7760 = vmatpush1.bf16.msra.mxu0 %v11131_v61  ;;  %7788 = vmatpush3.bf16.msra.mxu1 %v11243_v11 }
 0xc76   :  { %7762 = vmatprep.subr.bf16.mxu0 %v11141_v9  ;;  %7789 = vmatprep.subr.bf16.mxu1 %v10211_v4 }
 0xc79   :  { %7764 = vmatpush1.bf16.msra.mxu0 %v11149_v20  ;;  %7791 = vmatpush3.bf16.msra.mxu1 %v11253_v17 }
 0xc7a   :  { %7766 = vmatprep.subr.bf16.mxu0 %v11159_v29  ;;  %7792 = vmatprep.subr.bf16.mxu1 %v10211_v4 }
 0xc7d   :  { %7768 = vmatpush1.bf16.msra.mxu0 %v11167_v1  ;;  %7794 = vmatpush3.bf16.msra.mxu1 %v11263_v35 }
 0xc7e   :  { %7770 = vmatprep.subr.bf16.mxu0 %v11177_v28  ;;  %7795 = vmatprep.subr.bf16.mxu1 %v10211_v4 }
 0xc81   :  { %7772 = vmatpush1.bf16.msra.mxu0 %v11185_v53  ;;  %7797 = vmatpush3.bf16.msra.mxu1 %v11273_v54 }
 0xc82   :  { %7774 = vmatprep.subr.bf16.mxu0 %v11204_v55  ;;  %7798 = vmatprep.subr.bf16.mxu1 %v10211_v4  ;;  %v3044_v4 = vld [vmem:[%s13903_s9 + $0x38] sm:$0xff] }
 0xc83   :  { %v11606_v24 = vpack.c.bf16 %v3044_v4, %v3040_v12  ;;  %v3066_v12 = vld [vmem:[%s13903_s9 + $0xe8] sm:$0xff]  ;;  %v3064_v4 = vld [vmem:[%s13903_s9 + $0xd8] sm:$0xff] }
 0xc85   :  { %7776 = vmatpush1.bf16.msra.mxu0 %v11212_v63  ;;  %7800 = vmatpush3.bf16.msra.mxu1 %v11283_v2  ;;  %14094 = vst [vmem:[#allocation4_spill] sm:$0xff] %v11606_v24 }
 0xc86   :  { %7802 = vmatprep.subr.bf16.mxu0 %v11601_v16  ;;  %7866 = vmatprep.subr.bf16.mxu1 %v11606_v24 }
 0xd3b   :  { %v2776_v41 = vpop.f32.mrb[24].mxu0  ;;  %v2847_v51 = vpop.f32.mrb[52].mxu1 }
 0xd3c   :  { %v9873_v61 = vadd.f32 %v2776_v41, %v11357_v26  ;;  %v2778_v9 = vpop.f32.mrb[25].mxu0  ;;  %v6918_v20 = vpop.f32.mrb[53].mxu1  ;;  %v2865_v63 = vadd.f32 %v11367_v62, %v2847_v51  ;;  %v3041_v62 = vld [vmem:[%s13903_s9 + $0x20] sm:$0xff]  ;;  %v3068_v41 = vld [vmem:[%s13903_s9 + $0xf8] sm:$0xff]  ;;  %v11716_v51 = vpack.c.bf16 %v3057_v50, %v3053_v48  ;;  %v11829_v50 = vpack.c.bf16 %v3090_v27, %v3086_v40 }
 0xd3d   :  { %v9874_v1 = vadd.f32 %v2778_v9, %v11361_v44  ;;  %v11642_v56 = vpack.c.bf16 %v3041_v62, %v3037_v43  ;;  %v3061_v9 = vld [vmem:[%s13903_s9 + $0xc0] sm:$0xff]  ;;  %v11725_v20 = vpack.c.bf16 %v3066_v12, %v3062_v42  ;;  %v3071_v62 = vld [vmem:[%s13903_s9 + $0x110] sm:$0xff]  ;;  %v3088_v48 = vld [vmem:[%s13903_s9 + $0x198] sm:$0xff]  ;;  %v11912_v27 = vpack.c.bf16 %v3108_v13, %v3104_v31 }
 0xd3e   :  { %v5951_v29 = vmul.f32 -1.442695, %v9873_v61  ;;  %v3089_v42 = vld [vmem:[%s13903_s9 + $0x1a0] sm:$0xff]  ;;  %v3118_v31 = vld [vmem:[%s13903_s9 + $0x288] sm:$0xff] }
 0xd3f   :  { %v5952_v28 = vmul.f32 -1.442695, %v9874_v1  ;;  %v3065_v1 = vld [vmem:[%s13903_s9 + $0xe0] sm:$0xff]  ;;  %v3122_v13 = vld [vmem:[%s13903_s9 + $0x2a8] sm:$0xff] }
 0xd40   :  { %10028 = vpow2.f32 %v5951_v29  ;;  %v11727_v29 = vpack.c.bf16 %v3068_v41, %v3064_v4  ;;  %v3087_v41 = vld [vmem:[%s13903_s9 + $0x190] sm:$0xff]  ;;  %v3105_v40 = vld [vmem:[%s13903_s9 + $0x220] sm:$0xff] }
 0xd41   :  { %10030 = vpow2.f32 %v5952_v28  ;;  %v3063_v28 = vld [vmem:[%s13903_s9 + $0xd0] sm:$0xff] }
 0xd4a   :  { %v10029_v53 = vpop.eup %10028 }
 0xd4b   :  { %v2855_v49 = vadd.f32 1.0, %v10029_v53  ;;  %v10031_v55 = vpop.eup %10030  ;;  %v3067_v53 = vld [vmem:[%s13903_s9 + $0xf0] sm:$0xff] }
 0xd4c   :  { %v2862_v35 = vadd.f32 1.0, %v10031_v55  ;;  %v11742_v55 = vpack.c.bf16 %v3067_v53, %v3063_v28  ;;  %v3094_v28 = vld [vmem:[%s13903_s9 + $0x1c8] sm:$0xff] }
 0xd4d   :  { %10032 = vrcp.f32 %v2855_v49  ;;  %v11740_v49 = vpack.c.bf16 %v3065_v1, %v3061_v9  ;;  %v3091_v9 = vld [vmem:[%s13903_s9 + $0x1b0] sm:$0xff]  ;;  %v3098_v53 = vld [vmem:[%s13903_s9 + $0x1e8] sm:$0xff] }
 0xd4e   :  { %v11851_v1 = vpack.c.bf16 %v3091_v9, %v3087_v41  ;;  %v3110_v41 = vld [vmem:[%s13903_s9 + $0x248] sm:$0xff] }
 0xd4f   :  { %v3114_v9 = vld [vmem:[%s13903_s9 + $0x268] sm:$0xff] }
 0xd57   :  { %v10033_v39 = vpop.eup %10032 }
 0xd58   :  { %v2866_v11 = vmul.f32 %v10033_v39, %v2865_v63  ;;  %v3070_v63 = vld [vmem:[%s13903_s9 + $0x108] sm:$0xff] }
 0xd59   :  { %v3074_v39 = vld [vmem:[%s13903_s9 + $0x128] sm:$0xff] }
 0xd5a   :  { %v2867_v17 = vadd.f32 %v2866_v11, %v1853_v23  ;;  %v3072_v23 = vld [vmem:[%s13903_s9 + $0x118] sm:$0xff]  ;;  %v11757_v11 = vpack.c.bf16 %v3074_v39, %v3070_v63  ;;  %v11865_v39 = vpack.c.bf16 %v3098_v53, %v3094_v28  ;;  %v11937_v53 = vpack.c.bf16 %v3114_v9, %v3110_v41  ;;  %v3121_v41 = vld [vmem:[%s13903_s9 + $0x2a0] sm:$0xff] }
 0xd5b   :  { %v3096_v63 = vld [vmem:[%s13903_s9 + $0x1d8] sm:$0xff] }
 0xd5c   :  { %10034 = vtanh.f32 %v2867_v17  ;;  %v3076_v17 = vld [vmem:[%s13903_s9 + $0x138] sm:$0xff] }
 0xd5d   :  { %10036 = vrcp.f32 %v2862_v35  ;;  %v3069_v35 = vld [vmem:[%s13903_s9 + $0x100] sm:$0xff]  ;;  %v3112_v28 = vld [vmem:[%s13903_s9 + $0x258] sm:$0xff] }
 0xd66   :  { %v10035_v54 = vpop.eup %10034 }
 0xd67   :  { %v2869_v2 = vsub.f32 %v11555_v21, %v10035_v54  ;;  %v10037_v6 = vpop.eup %10036  ;;  %v3055_v21 = vld [vmem:[%s13903_s9 + $0x90] sm:$0xff] }
 0xd68   :  { %v11718_v61 = vpack.c.bf16 %v3059_v3, %v3055_v21  ;;  %v3092_v21 = vld [vmem:[%s13903_s9 + $0x1b8] sm:$0xff]  ;;  %v3085_v3 = vld [vmem:[%s13903_s9 + $0x180] sm:$0xff] }
 0xd69   :  { %v2870_v19 = vmul.f32 %v10037_v6, %v2869_v2  ;;  %v11768_v2 = vpack.c.bf16 %v3076_v17, %v3072_v23  ;;  %v3075_v6 = vld [vmem:[%s13903_s9 + $0x130] sm:$0xff]  ;;  %v11840_v12 = vpack.c.bf16 %v3092_v21, %v3088_v48  ;;  %v11842_v4 = vpack.c.bf16 %v3089_v42, %v3085_v3  ;;  %v3100_v23 = vld [vmem:[%s13903_s9 + $0x1f8] sm:$0xff]  ;;  %v3093_v17 = vld [vmem:[%s13903_s9 + $0x1c0] sm:$0xff] }
 0xd6a   :  { %v11779_v0 = vpack.c.bf16 %v3075_v6, %v3071_v62  ;;  %v3095_v6 = vld [vmem:[%s13903_s9 + $0x1d0] sm:$0xff]  ;;  %v11914_v48 = vpack.c.bf16 %v3105_v40, %v3101_v38  ;;  %v3120_v38 = vld [vmem:[%s13903_s9 + $0x298] sm:$0xff]  ;;  %v11973_v40 = vpack.c.bf16 %v3122_v13, %v3118_v31 }
 0xd6b   :  { %v11640_v18 = vadd.f32 %v10035_v54, %v2870_v19  ;;  %v3073_v54 = vld [vmem:[%s13903_s9 + $0x120] sm:$0xff]  ;;  %v3080_v19 = vld [vmem:[%s13903_s9 + $0x158] sm:$0xff]  ;;  %v11887_v7 = vpack.c.bf16 %v3099_v34, %v3095_v6  ;;  %v3103_v21 = vld [vmem:[%s13903_s9 + $0x210] sm:$0xff] }
 0xd6c   :  { %v11770_v43 = vpack.c.bf16 %v3073_v54, %v3069_v35  ;;  %v11804_v25 = vpack.c.bf16 %v3084_v14, %v3080_v19  ;;  %v3097_v35 = vld [vmem:[%s13903_s9 + $0x1e0] sm:$0xff]  ;;  %v11876_v54 = vpack.c.bf16 %v3100_v23, %v3096_v63  ;;  %v3102_v19 = vld [vmem:[%s13903_s9 + $0x208] sm:$0xff]  ;;  %v3107_v3 = vld [vmem:[%s13903_s9 + $0x230] sm:$0xff]  ;;  %14095 = vst [vmem:[#allocation5_spill] sm:$0xff] %v11973_v40 }
 0xd6d   :  { %2940 = vmatmul.mubr.f32.vlgmr.msra.gmra.mrb[26].mxu0 %v11640_v18  ;;  %6952 = vmatmul.mubr.f32.vlgmr.msra.gmra.mrb[54].mxu1 %v11640_v18  ;;  %v11878_v62 = vpack.c.bf16 %v3097_v35, %v3093_v17  ;;  %v3106_v14 = vld [vmem:[%s13903_s9 + $0x228] sm:$0xff]  ;;  %v11923_v42 = vpack.c.bf16 %v3107_v3, %v3103_v21  ;;  %v3116_v63 = vld [vmem:[%s13903_s9 + $0x278] sm:$0xff]  ;;  %v3109_v23 = vld [vmem:[%s13903_s9 + $0x240] sm:$0xff] }
 0xd6e   :  { %3403 = vmatprep.mubr.f32.mxu0 %v11305_v46  ;;  %3474 = vmatprep.mubr.f32.mxu1 %v11305_v46  ;;  %v11901_v47 = vpack.c.bf16 %v3106_v14, %v3102_v19  ;;  %v3113_v17 = vld [vmem:[%s13903_s9 + $0x260] sm:$0xff]  ;;  %v11948_v35 = vpack.c.bf16 %v3116_v63, %v3112_v28  ;;  %v3111_v34 = vld [vmem:[%s13903_s9 + $0x250] sm:$0xff]  ;;  %v3124_v21 = vld [vmem:[%s13903_s9 + $0x2b8] sm:$0xff] }
 0xd6f   :  { %7804 = vmatpush1.bf16.msra.mxu0 %v11642_v56  ;;  %7868 = vmatpush1.bf16.msra.mxu1 %v11644_v58  ;;  %v11950_v6 = vpack.c.bf16 %v3113_v17, %v3109_v23  ;;  %v3115_v19 = vld [vmem:[%s13903_s9 + $0x270] sm:$0xff]  ;;  %v3117_v3 = vld [vmem:[%s13903_s9 + $0x280] sm:$0xff]  ;;  %v11984_v9 = vpack.c.bf16 %v3124_v21, %v3120_v38  ;;  %v3128_v31 = vld [vmem:[%s13903_s9 + $0x2d8] sm:$0xff] }
 0xd70   :  { %7806 = vmatprep.subr.bf16.mxu0 %v11652_v5  ;;  %7870 = vmatprep.subr.bf16.mxu1 %v11654_v33  ;;  %v11959_v14 = vpack.c.bf16 %v3115_v19, %v3111_v34  ;;  %v11986_v28 = vpack.c.bf16 %v3121_v41, %v3117_v3  ;;  %v3119_v63 = vld [vmem:[%s13903_s9 + $0x290] sm:$0xff]  ;;  %v3126_v34 = vld [vmem:[%s13903_s9 + $0x2c8] sm:$0xff]  ;;  %v3132_v38 = vld [vmem:[%s13903_s9 + $0x2f8] sm:$0xff] }
 0xd71   :  { %14096 = vst [vmem:[#allocation6_spill] sm:$0xff] %v11984_v9  ;;  %v3123_v23 = vld [vmem:[%s13903_s9 + $0x2b0] sm:$0xff]  ;;  %v3130_v19 = vld [vmem:[%s13903_s9 + $0x2e8] sm:$0xff]  ;;  %v3125_v21 = vld [vmem:[%s13903_s9 + $0x2c0] sm:$0xff]  ;;  %v12020_v41 = vpack.c.bf16 %v3132_v38, %v3128_v31 }
 0xd72   :  { %14097 = vst [vmem:[#allocation7_spill] sm:$0xff] %v11986_v28  ;;  %v11995_v17 = vpack.c.bf16 %v3123_v23, %v3119_v63  ;;  %v12009_v13 = vpack.c.bf16 %v3130_v19, %v3126_v34  ;;  %v3129_v3 = vld [vmem:[%s13903_s9 + $0x2e0] sm:$0xff]  ;;  %v3127_v23 = vld [vmem:[%s13903_s9 + $0x2d0] sm:$0xff]  ;;  %v3134_v31 = vld [vmem:[%s13903_s9 + $0x308] sm:$0xff] }
 0xd73   :  { %7808 = vmatpush1.bf16.msra.mxu0 %v11680_v30  ;;  %7872 = vmatpush1.bf16.msra.mxu1 %v11682_v32  ;;  %14100 = vst [vmem:[#allocation10_spill] sm:$0xff] %v12020_v41  ;;  %v12022_v63 = vpack.c.bf16 %v3129_v3, %v3125_v21  ;;  %v3131_v34 = vld [vmem:[%s13903_s9 + $0x2f0] sm:$0xff]  ;;  %v3138_v38 = vld [vmem:[%s13903_s9 + $0x328] sm:$0xff]  ;;  %v3136_v21 = vld [vmem:[%s13903_s9 + $0x318] sm:$0xff] }
 0xd74   :  { %7810 = vmatprep.subr.bf16.mxu0 %v11692_v52  ;;  %7874 = vmatprep.subr.bf16.mxu1 %v11694_v45  ;;  %14098 = vst [vmem:[#allocation8_spill] sm:$0xff] %v11995_v17  ;;  %14099 = vst [vmem:[#allocation9_spill] sm:$0xff] %v12009_v13  ;;  %v12031_v19 = vpack.c.bf16 %v3131_v34, %v3127_v23  ;;  %v12045_v3 = vpack.c.bf16 %v3138_v38, %v3134_v31  ;;  %v3140_v23 = vld [vmem:[%s13903_s9 + $0x338] sm:$0xff]  ;;  %v3133_v34 = vld [vmem:[%s13903_s9 + $0x300] sm:$0xff] }
 0xd75   :  { %14101 = vst [vmem:[#allocation11_spill] sm:$0xff] %v12022_v63  ;;  %v3135_v31 = vld [vmem:[%s13903_s9 + $0x310] sm:$0xff] }
 0xd76   :  { %14102 = vst [vmem:[#allocation12_spill] sm:$0xff] %v12031_v19  ;;  %14103 = vst [vmem:[#allocation13_spill] sm:$0xff] %v12045_v3  ;;  %v3139_v38 = vld [vmem:[%s13903_s9 + $0x330] sm:$0xff] }
 0xd77   :  { %7812 = vmatpush1.bf16.msra.mxu0 %v11716_v51  ;;  %7876 = vmatpush1.bf16.msra.mxu1 %v11718_v61 }
 0xd78   :  { %7814 = vmatprep.subr.bf16.mxu0 %v11725_v20  ;;  %7878 = vmatprep.subr.bf16.mxu1 %v11727_v29 }
 0xd7b   :  { %7816 = vmatpush1.bf16.msra.mxu0 %v11740_v49  ;;  %7880 = vmatpush1.bf16.msra.mxu1 %v11742_v55 }
 0xd7c   :  { %7818 = vmatprep.subr.bf16.mxu0 %v11757_v11  ;;  %7882 = vmatprep.subr.bf16.mxu1 %v11768_v2 }
 0xd7f   :  { %7820 = vmatpush1.bf16.msra.mxu0 %v11770_v43  ;;  %7884 = vmatpush1.bf16.msra.mxu1 %v11779_v0 }
 0xd80   :  { %7822 = vmatprep.subr.bf16.mxu0 %v11793_v22  ;;  %7886 = vmatprep.subr.bf16.mxu1 %v11804_v25 }
 0xd83   :  { %7824 = vmatpush1.bf16.msra.mxu0 %v11806_v10  ;;  %7888 = vmatpush1.bf16.msra.mxu1 %v11815_v59 }
 0xd84   :  { %7826 = vmatprep.subr.bf16.mxu0 %v11829_v50  ;;  %7890 = vmatprep.subr.bf16.mxu1 %v11840_v12 }
 0xd87   :  { %7828 = vmatpush1.bf16.msra.mxu0 %v11842_v4  ;;  %7892 = vmatpush1.bf16.msra.mxu1 %v11851_v1 }
 0xd88   :  { %7830 = vmatprep.subr.bf16.mxu0 %v11865_v39  ;;  %7894 = vmatprep.subr.bf16.mxu1 %v11876_v54 }
 0xd8b   :  { %7832 = vmatpush1.bf16.msra.mxu0 %v11878_v62  ;;  %7896 = vmatpush1.bf16.msra.mxu1 %v11887_v7 }
 0xd8c   :  { %7834 = vmatprep.subr.bf16.mxu0 %v11901_v47  ;;  %7898 = vmatprep.subr.bf16.mxu1 %v11912_v27 }
 0xd8f   :  { %7836 = vmatpush1.bf16.msra.mxu0 %v11914_v48  ;;  %7900 = vmatpush1.bf16.msra.mxu1 %v11923_v42 }
 0xd90   :  { %7838 = vmatprep.subr.bf16.mxu0 %v11937_v53  ;;  %7902 = vmatprep.subr.bf16.mxu1 %v11948_v35 }
 0xd93   :  { %7840 = vmatpush1.bf16.msra.mxu0 %v11950_v6  ;;  %7904 = vmatpush1.bf16.msra.mxu1 %v11959_v14 }
 0xd94   :  { %7842 = vmatprep.subr.bf16.mxu0 %v11973_v40  ;;  %7906 = vmatprep.subr.bf16.mxu1 %v11984_v9  ;;  %v3161_v40 = vld [vmem:[%s13903_s9 + $0x3e0] sm:$0xff] }
 0xd97   :  { %7844 = vmatpush1.bf16.msra.mxu0 %v11986_v28  ;;  %7908 = vmatpush1.bf16.msra.mxu1 %v11995_v17  ;;  %v12070_v17 = vpack.c.bf16 %v3139_v38, %v3135_v31  ;;  %v3141_v38 = vld [vmem:[%s13903_s9 + $0x340] sm:$0xff]  ;;  %v3143_v28 = vld [vmem:[%s13903_s9 + $0x350] sm:$0xff] }
 0xd98   :  { %7846 = vmatprep.subr.bf16.mxu0 %v12009_v13  ;;  %7910 = vmatprep.subr.bf16.mxu1 %v12020_v41  ;;  %v12056_v41 = vpack.c.bf16 %v3140_v23, %v3136_v21  ;;  %v3144_v21 = vld [vmem:[%s13903_s9 + $0x358] sm:$0xff] }
 0xd99   :  { %14106 = vst [vmem:[#allocation16_spill] sm:$0xff] %v12070_v17  ;;  %v3148_v23 = vld [vmem:[%s13903_s9 + $0x378] sm:$0xff] }
 0xd9a   :  { %14104 = vst [vmem:[#allocation14_spill] sm:$0xff] %v12056_v41  ;;  %v12085_v31 = vpack.c.bf16 %v3148_v23, %v3144_v21  ;;  %v3154_v21 = vld [vmem:[%s13903_s9 + $0x3a8] sm:$0xff] }
 0xd9b   :  { %7848 = vmatpush1.bf16.msra.mxu0 %v12022_v63  ;;  %7912 = vmatpush1.bf16.msra.mxu1 %v12031_v19  ;;  %v3137_v63 = vld [vmem:[%s13903_s9 + $0x320] sm:$0xff]  ;;  %v3142_v19 = vld [vmem:[%s13903_s9 + $0x348] sm:$0xff] }
 0xd9c   :  { %v12058_v13 = vpack.c.bf16 %v3137_v63, %v3133_v34  ;;  %7850 = vmatprep.subr.bf16.mxu0 %v12045_v3  ;;  %v3146_v63 = vld [vmem:[%s13903_s9 + $0x368] sm:$0xff]  ;;  %7914 = vmatprep.subr.bf16.mxu1 %v12056_v41  ;;  %14108 = vst [vmem:[#allocation18_spill] sm:$0xff] %v12085_v31  ;;  %v3145_v3 = vld [vmem:[%s13903_s9 + $0x360] sm:$0xff] }
 0xd9d   :  { %v12083_v34 = vpack.c.bf16 %v3146_v63, %v3142_v19  ;;  %v12097_v41 = vpack.c.bf16 %v3145_v3, %v3141_v38  ;;  %v3147_v19 = vld [vmem:[%s13903_s9 + $0x370] sm:$0xff]  ;;  %v3150_v63 = vld [vmem:[%s13903_s9 + $0x388] sm:$0xff]  ;;  %v3152_v38 = vld [vmem:[%s13903_s9 + $0x398] sm:$0xff] }
 0xd9e   :  { %14105 = vst [vmem:[#allocation15_spill] sm:$0xff] %v12058_v13  ;;  %v12110_v23 = vpack.c.bf16 %v3147_v19, %v3143_v28  ;;  %v12112_v3 = vpack.c.bf16 %v3154_v21, %v3150_v63  ;;  %v3153_v28 = vld [vmem:[%s13903_s9 + $0x3a0] sm:$0xff]  ;;  %v3151_v19 = vld [vmem:[%s13903_s9 + $0x390] sm:$0xff] }
 0xd9f   :  { %7852 = vmatpush1.bf16.msra.mxu0 %v12058_v13  ;;  %14107 = vst [vmem:[#allocation17_spill] sm:$0xff] %v12083_v34  ;;  %7916 = vmatpush1.bf16.msra.mxu1 %v12070_v17  ;;  %14109 = vst [vmem:[#allocation19_spill] sm:$0xff] %v12097_v41  ;;  %v3156_v17 = vld [vmem:[%s13903_s9 + $0x3b8] sm:$0xff]  ;;  %v3149_v13 = vld [vmem:[%s13903_s9 + $0x380] sm:$0xff] }
 0xda0   :  { %7854 = vmatprep.subr.bf16.mxu0 %v12083_v34  ;;  %7918 = vmatprep.subr.bf16.mxu1 %v12085_v31  ;;  %14110 = vst [vmem:[#allocation20_spill] sm:$0xff] %v12110_v23  ;;  %14111 = vst [vmem:[#allocation21_spill] sm:$0xff] %v12112_v3  ;;  %v12123_v9 = vpack.c.bf16 %v3156_v17, %v3152_v38  ;;  %v3155_v63 = vld [vmem:[%s13903_s9 + $0x3b0] sm:$0xff]  ;;  %v12135_v21 = vpack.c.bf16 %v3153_v28, %v3149_v13  ;;  %v3158_v17 = vld [vmem:[%s13903_s9 + $0x3c8] sm:$0xff] }
 0xda1   :  { %v3162_v38 = vld [vmem:[%s13903_s9 + $0x3e8] sm:$0xff]  ;;  %v3160_v31 = vld [vmem:[%s13903_s9 + $0x3d8] sm:$0xff]  ;;  %v12148_v34 = vpack.c.bf16 %v3155_v63, %v3151_v19  ;;  %v3159_v19 = vld [vmem:[%s13903_s9 + $0x3d0] sm:$0xff] }
 0xda2   :  { %14112 = vst [vmem:[#allocation22_spill] sm:$0xff] %v12123_v9  ;;  %14113 = vst [vmem:[#allocation23_spill] sm:$0xff] %v12135_v21  ;;  %v12150_v13 = vpack.c.bf16 %v3162_v38, %v3158_v17  ;;  %v3164_v28 = vld [vmem:[%s13903_s9 + $0x3f8] sm:$0xff]  ;;  %v3163_v63 = vld [vmem:[%s13903_s9 + $0x3f0] sm:$0xff] }
 0xda3   :  { %7856 = vmatpush1.bf16.msra.mxu0 %v12097_v41  ;;  %7920 = vmatpush1.bf16.msra.mxu1 %v12110_v23  ;;  %14114 = vst [vmem:[#allocation24_spill] sm:$0xff] %v12148_v34  ;;  %v3157_v41 = vld [vmem:[%s13903_s9 + $0x3c0] sm:$0xff]  ;;  %v12162_v23 = vpack.c.bf16 %v3164_v28, %v3160_v31  ;;  %v12175_v38 = vpack.c.bf16 %v3163_v63, %v3159_v19  ;;  %v5956_v31 = vld [vmem:[%s13903_s9 + $0x408] sm:$0xff]  ;;  %v5962_v19 = vld [vmem:[%s13903_s9 + $0x438] sm:$0xff] }
 0xda4   :  { %7858 = vmatprep.subr.bf16.mxu0 %v12112_v3  ;;  %14115 = vst [vmem:[#allocation25_spill] sm:$0xff] %v12150_v13  ;;  %7922 = vmatprep.subr.bf16.mxu1 %v12123_v9  ;;  %v12171_v17 = vpack.c.bf16 %v3161_v40, %v3157_v41  ;;  %v5960_v40 = vld [vmem:[%s13903_s9 + $0x428] sm:$0xff]  ;;  %v5958_v41 = vld [vmem:[%s13903_s9 + $0x418] sm:$0xff] }
 0xda5   :  { %14116 = vst [vmem:[#allocation26_spill] sm:$0xff] %v12162_v23  ;;  %14118 = vst [vmem:[#allocation28_spill] sm:$0xff] %v12175_v38  ;;  %v12189_v28 = vpack.c.bf16 %v5960_v40, %v5956_v31  ;;  %v12194_v63 = vpack.c.bf16 %v5962_v19, %v5958_v41  ;;  %v10209_v19 = vld [vmem:[%s13902_s8] ss:$0 sm:$0xff] }
 0xda6   :  { %14117 = vst [vmem:[#allocation27_spill] sm:$0xff] %v12171_v17 }
 0xda7   :  { %7860 = vmatpush1.bf16.msra.mxu0 %v12135_v21  ;;  %7924 = vmatpush1.bf16.msra.mxu1 %v12148_v34  ;;  %14119 = vst [vmem:[#allocation29_spill] sm:$0xff] %v12189_v28  ;;  %14120 = vst [vmem:[#allocation30_spill] sm:$0xff] %v12194_v63 }
 0xda8   :  { %7862 = vmatprep.subr.bf16.mxu0 %v12150_v13  ;;  %7926 = vmatprep.subr.bf16.mxu1 %v12162_v23 }
 0xdab   :  { %7864 = vmatpush1.bf16.msra.mxu0 %v12171_v17  ;;  %7928 = vmatpush1.bf16.msra.mxu1 %v12175_v38 }
 0xdac   :  { %7930 = vmatprep.subr.bf16.mxu0 %v12189_v28  ;;  %7994 = vmatprep.subr.bf16.mxu1 %v12194_v63 }
 0xe40   :  { %v2941_v38 = vpop.f32.mrb[26].mxu0  ;;  %v3012_v17 = vpop.f32.mrb[54].mxu1 }
 0xe41   :  { %v9875_v23 = vadd.f32 %v2941_v38, %v11357_v26  ;;  %v2943_v13 = vpop.f32.mrb[27].mxu0  ;;  %v6953_v34 = vpop.f32.mrb[55].mxu1  ;;  %v3030_v63 = vadd.f32 %v10209_v19, %v3012_v17  ;;  %v1858_v26 = vadd.f32 %v11354_v15, %v11370_v60  ;;  %v5957_v15 = vld [vmem:[%s13903_s9 + $0x410] sm:$0xff] }
 0xe42   :  { %v9876_v31 = vadd.f32 %v2943_v13, %v11361_v44  ;;  %v5959_v13 = vld [vmem:[%s13903_s9 + $0x420] sm:$0xff]  ;;  %v5961_v60 = vld [vmem:[%s13903_s9 + $0x430] sm:$0xff] }
 0xe43   :  { %v5953_v21 = vmul.f32 -1.442695, %v9875_v23  ;;  %v12234_v19 = vpack.c.bf16 %v5961_v60, %v5957_v15  ;;  %v5978_v15 = vld [vmem:[%s13903_s9 + $0x4b8] sm:$0xff] }
 0xe44   :  { %v5954_v40 = vmul.f32 -1.442695, %v9876_v31  ;;  %v5970_v31 = vld [vmem:[%s13903_s9 + $0x478] sm:$0xff] }
 0xe45   :  { %10038 = vpow2.f32 %v5953_v21  ;;  %14121 = vst [vmem:[#allocation31_spill] sm:$0xff] %v12234_v19 }
 0xe46   :  { %10040 = vpow2.f32 %v5954_v40 }
 0xe4f   :  { %v10039_v9 = vpop.eup %10038 }
 0xe50   :  { %v3020_v3 = vadd.f32 1.0, %v10039_v9  ;;  %v10041_v41 = vpop.eup %10040 }
 0xe51   :  { %v3027_v21 = vadd.f32 1.0, %v10041_v41 }
 0xe52   :  { %10042 = vrcp.f32 %v3020_v3  ;;  %v5955_v3 = vld [vmem:[%s13903_s9 + $0x400] sm:$0xff] }
 0xe53   :  { %v12232_v41 = vpack.c.bf16 %v5959_v13, %v5955_v3  ;;  %v5972_v3 = vld [vmem:[%s13903_s9 + $0x488] sm:$0xff] }
 0xe54   :  { %v5976_v13 = vld [vmem:[%s13903_s9 + $0x4a8] sm:$0xff] }
 0xe5c   :  { %v10043_v28 = vpop.eup %10042 }
 0xe5d   :  { %v3031_v34 = vmul.f32 %v10043_v28, %v3030_v63  ;;  %v5968_v28 = vld [vmem:[%s13903_s9 + $0x468] sm:$0xff]  ;;  %v5966_v63 = vld [vmem:[%s13903_s9 + $0x458] sm:$0xff] }
 0xe5f   :  { %v3032_v23 = vadd.f32 %v3031_v34, %v1858_v26  ;;  %v5963_v26 = vld [vmem:[%s13903_s9 + $0x440] sm:$0xff] }
 0xe60   :  { %v5967_v34 = vld [vmem:[%s13903_s9 + $0x460] sm:$0xff] }
 0xe61   :  { %10044 = vtanh.f32 %v3032_v23  ;;  %v12270_v60 = vpack.c.bf16 %v5967_v34, %v5963_v26  ;;  %v5973_v26 = vld [vmem:[%s13903_s9 + $0x490] sm:$0xff] }
 0xe62   :  { %10046 = vrcp.f32 %v3027_v21  ;;  %v12244_v21 = vpack.c.bf16 %v5970_v31, %v5966_v63  ;;  %v12282_v63 = vpack.c.bf16 %v5976_v13, %v5972_v3  ;;  %v5977_v34 = vld [vmem:[%s13903_s9 + $0x4b0] sm:$0xff]  ;;  %v5982_v3 = vld [vmem:[%s13903_s9 + $0x4d8] sm:$0xff] }
 0xe63   :  { %14124 = vst [vmem:[#allocation34_spill] sm:$0xff] %v12270_v60  ;;  %v5986_v13 = vld [vmem:[%s13903_s9 + $0x4f8] sm:$0xff] }
 0xe64   :  { %14123 = vst [vmem:[#allocation33_spill] sm:$0xff] %v12244_v21  ;;  %14126 = vst [vmem:[#allocation36_spill] sm:$0xff] %v12282_v63 }
 0xe6b   :  { %v10045_v44 = vpop.eup %10044 }
 0xe6c   :  { %v3034_v9 = vsub.f32 %v11640_v18, %v10045_v44  ;;  %v10047_v17 = vpop.eup %10046  ;;  %v5964_v18 = vld [vmem:[%s13903_s9 + $0x448] sm:$0xff] }
 0xe6d   :  { %v12242_v23 = vpack.c.bf16 %v5968_v28, %v5964_v18  ;;  %v5975_v28 = vld [vmem:[%s13903_s9 + $0x4a0] sm:$0xff] }
 0xe6e   :  { %v3035_v38 = vmul.f32 %v10047_v17, %v3034_v9  ;;  %v5969_v9 = vld [vmem:[%s13903_s9 + $0x470] sm:$0xff]  ;;  %v5974_v17 = vld [vmem:[%s13903_s9 + $0x498] sm:$0xff] }
 0xe6f   :  { %14122 = vst [vmem:[#allocation32_spill] sm:$0xff] %v12242_v23  ;;  %v12284_v31 = vpack.c.bf16 %v5978_v15, %v5974_v17  ;;  %v12308_v15 = vpack.c.bf16 %v5977_v34, %v5973_v26 }
 0xe70   :  { %v12230_v40 = vadd.f32 %v10045_v44, %v3035_v38  ;;  %v5965_v44 = vld [vmem:[%s13903_s9 + $0x450] sm:$0xff]  ;;  %v5971_v38 = vld [vmem:[%s13903_s9 + $0x480] sm:$0xff] }
 0xe71   :  { %v12272_v18 = vpack.c.bf16 %v5969_v9, %v5965_v44  ;;  %14127 = vst [vmem:[#allocation37_spill] sm:$0xff] %v12284_v31  ;;  %v5980_v44 = vld [vmem:[%s13903_s9 + $0x4c8] sm:$0xff]  ;;  %v12306_v17 = vpack.c.bf16 %v5975_v28, %v5971_v38  ;;  %14129 = vst [vmem:[#allocation39_spill] sm:$0xff] %v12308_v15  ;;  %v5981_v38 = vld [vmem:[%s13903_s9 + $0x4d0] sm:$0xff] }
 0xe72   :  { %3404 = vmatmul.mubr.f32.vlgmr.msra.gmra.mrb[28].mxu0 %v12230_v40  ;;  %3475 = vmatmul.mubr.f32.vlgmr.msra.gmra.mrb[56].mxu1 %v12230_v40  ;;  %v5984_v9 = vld [vmem:[%s13903_s9 + $0x4e8] sm:$0xff]  ;;  %v5985_v28 = vld [vmem:[%s13903_s9 + $0x4f0] sm:$0xff] }
 0xe73   :  { %3563 = vmatprep.mubr.f32.mxu0 %v12230_v40  ;;  %3634 = vmatprep.mubr.f32.mxu1 %v12230_v40  ;;  %14125 = vst [vmem:[#allocation35_spill] sm:$0xff] %v12272_v18  ;;  %14128 = vst [vmem:[#allocation38_spill] sm:$0xff] %v12306_v17  ;;  %v12332_v34 = vpack.c.bf16 %v5985_v28, %v5981_v38  ;;  %v5991_v38 = vld [vmem:[%s13903_s9 + $0x520] sm:$0xff] }
 0xe74   :  { %7932 = vmatpush1.bf16.msra.mxu0 %v12232_v41  ;;  %7996 = vmatpush1.bf16.msra.mxu1 %v12234_v19  ;;  %v12317_v19 = vpack.c.bf16 %v5986_v13, %v5982_v3  ;;  %v5994_v3 = vld [vmem:[%s13903_s9 + $0x538] sm:$0xff]  ;;  %v5987_v13 = vld [vmem:[%s13903_s9 + $0x500] sm:$0xff] }
 0xe75   :  { %7934 = vmatprep.subr.bf16.mxu0 %v12242_v23  ;;  %7998 = vmatprep.subr.bf16.mxu1 %v12244_v21  ;;  %v5979_v21 = vld [vmem:[%s13903_s9 + $0x4c0] sm:$0xff]  ;;  %v12315_v23 = vpack.c.bf16 %v5984_v9, %v5980_v44  ;;  %14133 = vst [vmem:[#allocation43_spill] sm:$0xff] %v12332_v34  ;;  %v5988_v44 = vld [vmem:[%s13903_s9 + $0x508] sm:$0xff] }
 0xe76   :  { %14131 = vst [vmem:[#allocation41_spill] sm:$0xff] %v12317_v19  ;;  %v5992_v9 = vld [vmem:[%s13903_s9 + $0x528] sm:$0xff] }
 0xe77   :  { %14130 = vst [vmem:[#allocation40_spill] sm:$0xff] %v12315_v23 }
 0xe78   :  { %7936 = vmatpush1.bf16.msra.mxu0 %v12270_v60  ;;  %8000 = vmatpush1.bf16.msra.mxu1 %v12272_v18  ;;  %v5983_v18 = vld [vmem:[%s13903_s9 + $0x4e0] sm:$0xff] }
 0xe79   :  { %7938 = vmatprep.subr.bf16.mxu0 %v12282_v63  ;;  %8002 = vmatprep.subr.bf16.mxu1 %v12284_v31  ;;  %v12330_v26 = vpack.c.bf16 %v5983_v18, %v5979_v21  ;;  %v5990_v21 = vld [vmem:[%s13903_s9 + $0x518] sm:$0xff]  ;;  %v12347_v18 = vpack.c.bf16 %v5992_v9, %v5988_v44  ;;  %v5989_v44 = vld [vmem:[%s13903_s9 + $0x510] sm:$0xff] }
 0xe7a   :  { %v12358_v28 = vpack.c.bf16 %v5994_v3, %v5990_v21  ;;  %v5993_v9 = vld [vmem:[%s13903_s9 + $0x530] sm:$0xff]  ;;  %v5996_v21 = vld [vmem:[%s13903_s9 + $0x548] sm:$0xff] }
 0xe7b   :  { %14132 = vst [vmem:[#allocation42_spill] sm:$0xff] %v12330_v26  ;;  %14134 = vst [vmem:[#allocation44_spill] sm:$0xff] %v12347_v18  ;;  %v6000_v3 = vld [vmem:[%s13903_s9 + $0x568] sm:$0xff] }
 0xe7c   :  { %7940 = vmatpush1.bf16.msra.mxu0 %v12306_v17  ;;  %8004 = vmatpush1.bf16.msra.mxu1 %v12308_v15  ;;  %14135 = vst [vmem:[#allocation45_spill] sm:$0xff] %v12358_v28  ;;  %v6079_v17 = vld [vmem:[%s13903_s9 + $0x7e0] sm:$0xff] }
 0xe7d   :  { %7942 = vmatprep.subr.bf16.mxu0 %v12315_v23  ;;  %8006 = vmatprep.subr.bf16.mxu1 %v12317_v19  ;;  %v6061_v23 = vld [vmem:[%s13903_s9 + $0x750] sm:$0xff] }
 0xe80   :  { %7944 = vmatpush1.bf16.msra.mxu0 %v12330_v26  ;;  %8008 = vmatpush1.bf16.msra.mxu1 %v12332_v34  ;;  %v12360_v34 = vpack.c.bf16 %v5991_v38, %v5987_v13  ;;  %v12369_v26 = vpack.c.bf16 %v5993_v9, %v5989_v44  ;;  %v5998_v13 = vld [vmem:[%s13903_s9 + $0x558] sm:$0xff]  ;;  %v12383_v38 = vpack.c.bf16 %v6000_v3, %v5996_v21  ;;  %v5995_v9 = vld [vmem:[%s13903_s9 + $0x540] sm:$0xff]  ;;  %v5997_v21 = vld [vmem:[%s13903_s9 + $0x550] sm:$0xff] }
 0xe81   :  { %7946 = vmatprep.subr.bf16.mxu0 %v12347_v18  ;;  %8010 = vmatprep.subr.bf16.mxu1 %v12358_v28  ;;  %v6002_v44 = vld [vmem:[%s13903_s9 + $0x578] sm:$0xff]  ;;  %v6001_v3 = vld [vmem:[%s13903_s9 + $0x570] sm:$0xff] }
 0xe82   :  { %14136 = vst [vmem:[#allocation46_spill] sm:$0xff] %v12360_v34  ;;  %14137 = vst [vmem:[#allocation47_spill] sm:$0xff] %v12369_v26  ;;  %v12394_v28 = vpack.c.bf16 %v6002_v44, %v5998_v13  ;;  %v6008_v13 = vld [vmem:[%s13903_s9 + $0x5a8] sm:$0xff]  ;;  %v6006_v44 = vld [vmem:[%s13903_s9 + $0x598] sm:$0xff] }
 0xe83   :  { %14138 = vst [vmem:[#allocation48_spill] sm:$0xff] %v12383_v38 }
 0xe84   :  { %7948 = vmatpush1.bf16.msra.mxu0 %v12360_v34  ;;  %8012 = vmatpush1.bf16.msra.mxu1 %v12369_v26  ;;  %v5999_v34 = vld [vmem:[%s13903_s9 + $0x560] sm:$0xff]  ;;  %14139 = vst [vmem:[#allocation49_spill] sm:$0xff] %v12394_v28  ;;  %v12405_v26 = vpack.c.bf16 %v6001_v3, %v5997_v21  ;;  %v6010_v21 = vld [vmem:[%s13903_s9 + $0x5b8] sm:$0xff] }
 0xe85   :  { %v12396_v18 = vpack.c.bf16 %v5999_v34, %v5995_v9  ;;  %7950 = vmatprep.subr.bf16.mxu0 %v12383_v38  ;;  %8014 = vmatprep.subr.bf16.mxu1 %v12394_v28  ;;  %v6004_v34 = vld [vmem:[%s13903_s9 + $0x588] sm:$0xff]  ;;  %v6003_v3 = vld [vmem:[%s13903_s9 + $0x580] sm:$0xff]  ;;  %v12430_v28 = vpack.c.bf16 %v6010_v21, %v6006_v44  ;;  %v6014_v21 = vld [vmem:[%s13903_s9 + $0x5d8] sm:$0xff] }
 0xe86   :  { %14141 = vst [vmem:[#allocation51_spill] sm:$0xff] %v12405_v26  ;;  %v12419_v9 = vpack.c.bf16 %v6008_v13, %v6004_v34  ;;  %v6005_v34 = vld [vmem:[%s13903_s9 + $0x590] sm:$0xff]  ;;  %v6016_v44 = vld [vmem:[%s13903_s9 + $0x5e8] sm:$0xff] }
 0xe87   :  { %14140 = vst [vmem:[#allocation50_spill] sm:$0xff] %v12396_v18  ;;  %14143 = vst [vmem:[#allocation53_spill] sm:$0xff] %v12430_v28  ;;  %v6009_v13 = vld [vmem:[%s13903_s9 + $0x5b0] sm:$0xff] }
 0xe88   :  { %7952 = vmatpush1.bf16.msra.mxu0 %v12396_v18  ;;  %8016 = vmatpush1.bf16.msra.mxu1 %v12405_v26  ;;  %14142 = vst [vmem:[#allocation52_spill] sm:$0xff] %v12419_v9  ;;  %v6007_v18 = vld [vmem:[%s13903_s9 + $0x5a0] sm:$0xff]  ;;  %v12441_v26 = vpack.c.bf16 %v6009_v13, %v6005_v34  ;;  %v6018_v34 = vld [vmem:[%s13903_s9 + $0x5f8] sm:$0xff] }
 0xe89   :  { %v12432_v38 = vpack.c.bf16 %v6007_v18, %v6003_v3  ;;  %7954 = vmatprep.subr.bf16.mxu0 %v12419_v9  ;;  %8018 = vmatprep.subr.bf16.mxu1 %v12430_v28  ;;  %v6012_v18 = vld [vmem:[%s13903_s9 + $0x5c8] sm:$0xff]  ;;  %v6011_v13 = vld [vmem:[%s13903_s9 + $0x5c0] sm:$0xff]  ;;  %v12466_v28 = vpack.c.bf16 %v6018_v34, %v6014_v21  ;;  %v6022_v34 = vld [vmem:[%s13903_s9 + $0x618] sm:$0xff] }
 0xe8a   :  { %14145 = vst [vmem:[#allocation55_spill] sm:$0xff] %v12441_v26  ;;  %v12455_v3 = vpack.c.bf16 %v6016_v44, %v6012_v18  ;;  %v6013_v18 = vld [vmem:[%s13903_s9 + $0x5d0] sm:$0xff]  ;;  %v6024_v21 = vld [vmem:[%s13903_s9 + $0x628] sm:$0xff] }
 0xe8b   :  { %14144 = vst [vmem:[#allocation54_spill] sm:$0xff] %v12432_v38  ;;  %14147 = vst [vmem:[#allocation57_spill] sm:$0xff] %v12466_v28  ;;  %v6017_v44 = vld [vmem:[%s13903_s9 + $0x5f0] sm:$0xff] }
 0xe8c   :  { %7956 = vmatpush1.bf16.msra.mxu0 %v12432_v38  ;;  %8020 = vmatpush1.bf16.msra.mxu1 %v12441_v26  ;;  %14146 = vst [vmem:[#allocation56_spill] sm:$0xff] %v12455_v3  ;;  %v6015_v38 = vld [vmem:[%s13903_s9 + $0x5e0] sm:$0xff]  ;;  %v12477_v26 = vpack.c.bf16 %v6017_v44, %v6013_v18  ;;  %v6026_v18 = vld [vmem:[%s13903_s9 + $0x638] sm:$0xff] }
 0xe8d   :  { %v12468_v9 = vpack.c.bf16 %v6015_v38, %v6011_v13  ;;  %7958 = vmatprep.subr.bf16.mxu0 %v12455_v3  ;;  %8022 = vmatprep.subr.bf16.mxu1 %v12466_v28  ;;  %v6020_v38 = vld [vmem:[%s13903_s9 + $0x608] sm:$0xff]  ;;  %v6019_v44 = vld [vmem:[%s13903_s9 + $0x600] sm:$0xff]  ;;  %v12502_v28 = vpack.c.bf16 %v6026_v18, %v6022_v34  ;;  %v6030_v18 = vld [vmem:[%s13903_s9 + $0x658] sm:$0xff] }
 0xe8e   :  { %14149 = vst [vmem:[#allocation59_spill] sm:$0xff] %v12477_v26  ;;  %v12491_v13 = vpack.c.bf16 %v6024_v21, %v6020_v38  ;;  %v6021_v38 = vld [vmem:[%s13903_s9 + $0x610] sm:$0xff]  ;;  %v6032_v34 = vld [vmem:[%s13903_s9 + $0x668] sm:$0xff] }
 0xe8f   :  { %14148 = vst [vmem:[#allocation58_spill] sm:$0xff] %v12468_v9  ;;  %14151 = vst [vmem:[#allocation61_spill] sm:$0xff] %v12502_v28  ;;  %v6025_v21 = vld [vmem:[%s13903_s9 + $0x630] sm:$0xff] }
 0xe90   :  { %7960 = vmatpush1.bf16.msra.mxu0 %v12468_v9  ;;  %8024 = vmatpush1.bf16.msra.mxu1 %v12477_v26  ;;  %14150 = vst [vmem:[#allocation60_spill] sm:$0xff] %v12491_v13  ;;  %v6023_v9 = vld [vmem:[%s13903_s9 + $0x620] sm:$0xff]  ;;  %v12513_v26 = vpack.c.bf16 %v6025_v21, %v6021_v38  ;;  %v6034_v38 = vld [vmem:[%s13903_s9 + $0x678] sm:$0xff] }
 0xe91   :  { %v12504_v3 = vpack.c.bf16 %v6023_v9, %v6019_v44  ;;  %7962 = vmatprep.subr.bf16.mxu0 %v12491_v13  ;;  %8026 = vmatprep.subr.bf16.mxu1 %v12502_v28  ;;  %v6028_v9 = vld [vmem:[%s13903_s9 + $0x648] sm:$0xff]  ;;  %v6027_v21 = vld [vmem:[%s13903_s9 + $0x640] sm:$0xff]  ;;  %v12538_v28 = vpack.c.bf16 %v6034_v38, %v6030_v18  ;;  %v6038_v38 = vld [vmem:[%s13903_s9 + $0x698] sm:$0xff] }
 0xe92   :  { %14153 = vst [vmem:[#allocation63_spill] sm:$0xff] %v12513_v26  ;;  %v12527_v44 = vpack.c.bf16 %v6032_v34, %v6028_v9  ;;  %v6029_v9 = vld [vmem:[%s13903_s9 + $0x650] sm:$0xff]  ;;  %v6040_v18 = vld [vmem:[%s13903_s9 + $0x6a8] sm:$0xff] }
 0xe93   :  { %14152 = vst [vmem:[#allocation62_spill] sm:$0xff] %v12504_v3  ;;  %14155 = vst [vmem:[#allocation65_spill] sm:$0xff] %v12538_v28  ;;  %v6033_v34 = vld [vmem:[%s13903_s9 + $0x670] sm:$0xff] }
 0xe94   :  { %7964 = vmatpush1.bf16.msra.mxu0 %v12504_v3  ;;  %8028 = vmatpush1.bf16.msra.mxu1 %v12513_v26  ;;  %14154 = vst [vmem:[#allocation64_spill] sm:$0xff] %v12527_v44  ;;  %v6031_v3 = vld [vmem:[%s13903_s9 + $0x660] sm:$0xff]  ;;  %v12549_v26 = vpack.c.bf16 %v6033_v34, %v6029_v9  ;;  %v6042_v9 = vld [vmem:[%s13903_s9 + $0x6b8] sm:$0xff] }
 0xe95   :  { %v12540_v13 = vpack.c.bf16 %v6031_v3, %v6027_v21  ;;  %7966 = vmatprep.subr.bf16.mxu0 %v12527_v44  ;;  %8030 = vmatprep.subr.bf16.mxu1 %v12538_v28  ;;  %v6036_v3 = vld [vmem:[%s13903_s9 + $0x688] sm:$0xff]  ;;  %v6035_v34 = vld [vmem:[%s13903_s9 + $0x680] sm:$0xff]  ;;  %v12574_v28 = vpack.c.bf16 %v6042_v9, %v6038_v38  ;;  %v6046_v9 = vld [vmem:[%s13903_s9 + $0x6d8] sm:$0xff] }
 0xe96   :  { %14157 = vst [vmem:[#allocation67_spill] sm:$0xff] %v12549_v26  ;;  %v12563_v21 = vpack.c.bf16 %v6040_v18, %v6036_v3  ;;  %v6037_v3 = vld [vmem:[%s13903_s9 + $0x690] sm:$0xff]  ;;  %v6048_v38 = vld [vmem:[%s13903_s9 + $0x6e8] sm:$0xff] }
 0xe97   :  { %14156 = vst [vmem:[#allocation66_spill] sm:$0xff] %v12540_v13  ;;  %14159 = vst [vmem:[#allocation69_spill] sm:$0xff] %v12574_v28  ;;  %v6041_v18 = vld [vmem:[%s13903_s9 + $0x6b0] sm:$0xff] }
 0xe98   :  { %7968 = vmatpush1.bf16.msra.mxu0 %v12540_v13  ;;  %8032 = vmatpush1.bf16.msra.mxu1 %v12549_v26  ;;  %14158 = vst [vmem:[#allocation68_spill] sm:$0xff] %v12563_v21  ;;  %v6039_v13 = vld [vmem:[%s13903_s9 + $0x6a0] sm:$0xff]  ;;  %v12585_v26 = vpack.c.bf16 %v6041_v18, %v6037_v3  ;;  %v6050_v3 = vld [vmem:[%s13903_s9 + $0x6f8] sm:$0xff] }
 0xe99   :  { %v12576_v44 = vpack.c.bf16 %v6039_v13, %v6035_v34  ;;  %7970 = vmatprep.subr.bf16.mxu0 %v12563_v21  ;;  %8034 = vmatprep.subr.bf16.mxu1 %v12574_v28  ;;  %v6044_v13 = vld [vmem:[%s13903_s9 + $0x6c8] sm:$0xff]  ;;  %v6043_v18 = vld [vmem:[%s13903_s9 + $0x6c0] sm:$0xff]  ;;  %v12610_v28 = vpack.c.bf16 %v6050_v3, %v6046_v9  ;;  %v6054_v3 = vld [vmem:[%s13903_s9 + $0x718] sm:$0xff] }
 0xe9a   :  { %14161 = vst [vmem:[#allocation71_spill] sm:$0xff] %v12585_v26  ;;  %v12599_v34 = vpack.c.bf16 %v6048_v38, %v6044_v13  ;;  %v6045_v13 = vld [vmem:[%s13903_s9 + $0x6d0] sm:$0xff]  ;;  %v6056_v9 = vld [vmem:[%s13903_s9 + $0x728] sm:$0xff] }
 0xe9b   :  { %14160 = vst [vmem:[#allocation70_spill] sm:$0xff] %v12576_v44  ;;  %14163 = vst [vmem:[#allocation73_spill] sm:$0xff] %v12610_v28  ;;  %v6049_v38 = vld [vmem:[%s13903_s9 + $0x6f0] sm:$0xff] }
 0xe9c   :  { %7972 = vmatpush1.bf16.msra.mxu0 %v12576_v44  ;;  %8036 = vmatpush1.bf16.msra.mxu1 %v12585_v26  ;;  %14162 = vst [vmem:[#allocation72_spill] sm:$0xff] %v12599_v34  ;;  %v6047_v44 = vld [vmem:[%s13903_s9 + $0x6e0] sm:$0xff]  ;;  %v12621_v26 = vpack.c.bf16 %v6049_v38, %v6045_v13  ;;  %v6058_v13 = vld [vmem:[%s13903_s9 + $0x738] sm:$0xff] }
 0xe9d   :  { %v12612_v21 = vpack.c.bf16 %v6047_v44, %v6043_v18  ;;  %7974 = vmatprep.subr.bf16.mxu0 %v12599_v34  ;;  %8038 = vmatprep.subr.bf16.mxu1 %v12610_v28  ;;  %v6052_v44 = vld [vmem:[%s13903_s9 + $0x708] sm:$0xff]  ;;  %v6051_v38 = vld [vmem:[%s13903_s9 + $0x700] sm:$0xff]  ;;  %v12646_v28 = vpack.c.bf16 %v6058_v13, %v6054_v3  ;;  %v6062_v3 = vld [vmem:[%s13903_s9 + $0x758] sm:$0xff] }
 0xe9e   :  { %14165 = vst [vmem:[#allocation75_spill] sm:$0xff] %v12621_v26  ;;  %v12635_v18 = vpack.c.bf16 %v6056_v9, %v6052_v44  ;;  %v6053_v44 = vld [vmem:[%s13903_s9 + $0x710] sm:$0xff]  ;;  %v6066_v13 = vld [vmem:[%s13903_s9 + $0x778] sm:$0xff] }
 0xe9f   :  { %14164 = vst [vmem:[#allocation74_spill] sm:$0xff] %v12612_v21  ;;  %14167 = vst [vmem:[#allocation77_spill] sm:$0xff] %v12646_v28  ;;  %v6057_v9 = vld [vmem:[%s13903_s9 + $0x730] sm:$0xff] }
 0xea0   :  { %7976 = vmatpush1.bf16.msra.mxu0 %v12612_v21  ;;  %8040 = vmatpush1.bf16.msra.mxu1 %v12621_v26  ;;  %14166 = vst [vmem:[#allocation76_spill] sm:$0xff] %v12635_v18  ;;  %v6055_v21 = vld [vmem:[%s13903_s9 + $0x720] sm:$0xff]  ;;  %v6060_v26 = vld [vmem:[%s13903_s9 + $0x748] sm:$0xff]  ;;  %v12660_v19 = vpack.c.bf16 %v6057_v9, %v6053_v44  ;;  %v12675_v44 = vpack.c.bf16 %v6066_v13, %v6062_v3 }
 0xea1   :  { %v12648_v34 = vpack.c.bf16 %v6055_v21, %v6051_v38  ;;  %7978 = vmatprep.subr.bf16.mxu0 %v12635_v18  ;;  %v6064_v21 = vld [vmem:[%s13903_s9 + $0x768] sm:$0xff]  ;;  %8042 = vmatprep.subr.bf16.mxu1 %v12646_v28  ;;  %v6059_v9 = vld [vmem:[%s13903_s9 + $0x740] sm:$0xff] }
 0xea2   :  { %14169 = vst [vmem:[#allocation79_spill] sm:$0xff] %v12660_v19  ;;  %v12673_v38 = vpack.c.bf16 %v6064_v21, %v6060_v26  ;;  %14171 = vst [vmem:[#allocation81_spill] sm:$0xff] %v12675_v44  ;;  %v6063_v18 = vld [vmem:[%s13903_s9 + $0x760] sm:$0xff]  ;;  %v6065_v26 = vld [vmem:[%s13903_s9 + $0x770] sm:$0xff] }
 0xea3   :  { %14168 = vst [vmem:[#allocation78_spill] sm:$0xff] %v12648_v34  ;;  %v12687_v28 = vpack.c.bf16 %v6063_v18, %v6059_v9  ;;  %v6068_v21 = vld [vmem:[%s13903_s9 + $0x788] sm:$0xff]  ;;  %v12700_v13 = vpack.c.bf16 %v6065_v26, %v6061_v23  ;;  %v6070_v9 = vld [vmem:[%s13903_s9 + $0x798] sm:$0xff]  ;;  %v6071_v23 = vld [vmem:[%s13903_s9 + $0x7a0] sm:$0xff] }
 0xea4   :  { %7980 = vmatpush1.bf16.msra.mxu0 %v12648_v34  ;;  %14170 = vst [vmem:[#allocation80_spill] sm:$0xff] %v12673_v38  ;;  %8044 = vmatpush1.bf16.msra.mxu1 %v12660_v19  ;;  %v6072_v3 = vld [vmem:[%s13903_s9 + $0x7a8] sm:$0xff]  ;;  %v6074_v19 = vld [vmem:[%s13903_s9 + $0x7b8] sm:$0xff]  ;;  %v6067_v34 = vld [vmem:[%s13903_s9 + $0x780] sm:$0xff] }
 0xea5   :  { %14172 = vst [vmem:[#allocation82_spill] sm:$0xff] %v12687_v28  ;;  %7982 = vmatprep.subr.bf16.mxu0 %v12673_v38  ;;  %8046 = vmatprep.subr.bf16.mxu1 %v12675_v44  ;;  %14173 = vst [vmem:[#allocation83_spill] sm:$0xff] %v12700_v13  ;;  %v12702_v18 = vpack.c.bf16 %v6072_v3, %v6068_v21  ;;  %v12713_v15 = vpack.c.bf16 %v6074_v19, %v6070_v9  ;;  %v6069_v26 = vld [vmem:[%s13903_s9 + $0x790] sm:$0xff]  ;;  %v6076_v19 = vld [vmem:[%s13903_s9 + $0x7c8] sm:$0xff] }
 0xea6   :  { %v6073_v21 = vld [vmem:[%s13903_s9 + $0x7b0] sm:$0xff]  ;;  %v12725_v3 = vpack.c.bf16 %v6071_v23, %v6067_v34  ;;  %v6080_v9 = vld [vmem:[%s13903_s9 + $0x7e8] sm:$0xff]  ;;  %v6078_v44 = vld [vmem:[%s13903_s9 + $0x7d8] sm:$0xff] }
 0xea7   :  { %14174 = vst [vmem:[#allocation84_spill] sm:$0xff] %v12702_v18  ;;  %14175 = vst [vmem:[#allocation85_spill] sm:$0xff] %v12713_v15  ;;  %v12738_v38 = vpack.c.bf16 %v6073_v21, %v6069_v26  ;;  %v12740_v34 = vpack.c.bf16 %v6080_v9, %v6076_v19  ;;  %v6082_v23 = vld [vmem:[%s13903_s9 + $0x7f8] sm:$0xff]  ;;  %v6077_v26 = vld [vmem:[%s13903_s9 + $0x7d0] sm:$0xff] }
 0xea8   :  { %7984 = vmatpush1.bf16.msra.mxu0 %v12687_v28  ;;  %14176 = vst [vmem:[#allocation86_spill] sm:$0xff] %v12725_v3  ;;  %8048 = vmatpush1.bf16.msra.mxu1 %v12700_v13  ;;  %v6075_v28 = vld [vmem:[%s13903_s9 + $0x7c0] sm:$0xff]  ;;  %v12752_v13 = vpack.c.bf16 %v6082_v23, %v6078_v44  ;;  %v6081_v21 = vld [vmem:[%s13903_s9 + $0x7f0] sm:$0xff] }
 0xea9   :  { %7986 = vmatprep.subr.bf16.mxu0 %v12702_v18  ;;  %14177 = vst [vmem:[#allocation87_spill] sm:$0xff] %v12738_v38  ;;  %14178 = vst [vmem:[#allocation88_spill] sm:$0xff] %v12740_v34  ;;  %8050 = vmatprep.subr.bf16.mxu1 %v12713_v15  ;;  %v12761_v19 = vpack.c.bf16 %v6079_v17, %v6075_v28  ;;  %v12765_v9 = vpack.c.bf16 %v6081_v21, %v6077_v26  ;;  %v3294_v17 = vld [vmem:[%s13904_s10] sm:$0xf] }
 0xeaa   :  { %14179 = vst [vmem:[#allocation89_spill] sm:$0xff] %v12752_v13  ;;  %v12776_v28 = vrot.slane %v3294_v17, %v10630_v57 }
 0xeab   :  { %14180 = vst [vmem:[#allocation90_spill] sm:$0xff] %v12761_v19  ;;  %14181 = vst [vmem:[#allocation91_spill] sm:$0xff] %v12765_v9 }
 0xeac   :  { %7988 = vmatpush1.bf16.msra.mxu0 %v12725_v3  ;;  %8052 = vmatpush1.bf16.msra.mxu1 %v12738_v38  ;;  %14182 = vst [vmem:[#allocation92_spill] sm:$0xff] %v12776_v28  ;;  %v14082_v3 = vsub.s32 3, %v10614_v36 }
 0xead   :  { %7990 = vmatprep.subr.bf16.mxu0 %v12740_v34  ;;  %8054 = vmatprep.subr.bf16.mxu1 %v12752_v13 }
 0xeae   :  { %v12786_v15 = vrot.slane %v3294_v17, %v14082_v3 }
 0xeb0   :  { %7992 = vmatpush1.bf16.msra.mxu0 %v12761_v19  ;;  %8056 = vmatpush1.bf16.msra.mxu1 %v12765_v9  ;;  %v12780_v9 = vrot.slane %v3294_v17, %v10641_v8 }
 0xeb1   :  { %8058 = vmatprep.subr.bf16.mxu0 %v11601_v16  ;;  %8122 = vmatprep.subr.bf16.mxu1 %v11606_v24 }
 0xeb2   :  { %14183 = vst [vmem:[#allocation93_spill] sm:$0xff] %v12780_v9 }
 0xf45   :  { %v3405_v44 = vpop.f32.mrb[28].mxu0  ;;  %v3476_v23 = vpop.f32.mrb[56].mxu1 }
 0xf46   :  { %v3406_v26 = vadd.f32 %v3405_v44, %v12776_v28  ;;  %v3407_v21 = vpop.f32.mrb[29].mxu0  ;;  %v3478_v13 = vpop.f32.mrb[57].mxu1  ;;  %v12789_v44 = vrot.slane %v3294_v17, %v10617_v37  ;;  %v14189_v17 = vld [vmem:[#allocation10_spill] sm:$0xff] }
 0xf47   :  { %v3408_v24 = vadd.f32 %v3407_v21, %v12780_v9 }
 0xf48   :  { %v6084_v19 = vmul.f32 -1.442695, %v3406_v26  ;;  %v3479_v26 = vadd.f32 %v3478_v13, %v12786_v15  ;;  %v3477_v21 = vadd.f32 %v3476_v23, %v12789_v44  ;;  %v14185_v13 = vld [vmem:[#allocation6_spill] sm:$0xff]  ;;  %v14191_v23 = vld [vmem:[#allocation12_spill] sm:$0xff] }
 0xf49   :  { %v6085_v16 = vmul.f32 -1.442695, %v3408_v24 }
 0xf4a   :  { %10048 = vpow2.f32 %v6084_v19 }
 0xf4b   :  { %10050 = vpow2.f32 %v6085_v16 }
 0xf54   :  { %v10049_v34 = vpop.eup %10048 }
 0xf55   :  { %v3484_v38 = vadd.f32 1.0, %v10049_v34  ;;  %v10051_v19 = vpop.eup %10050 }
 0xf56   :  { %v3490_v9 = vadd.f32 1.0, %v10051_v19  ;;  %v14192_v19 = vld [vmem:[#allocation13_spill] sm:$0xff] }
 0xf57   :  { %10052 = vrcp.f32 %v3484_v38 }
 0xf61   :  { %v10053_v28 = vpop.eup %10052 }
 0xf62   :  { %v3493_v24 = vmul.f32 %v10053_v28, %v3479_v26  ;;  %v14190_v28 = vld [vmem:[#allocation11_spill] sm:$0xff]  ;;  %v14193_v26 = vld [vmem:[#allocation14_spill] sm:$0xff] }
 0xf64   :  { %v3494_v34 = vadd.f32 %v3493_v24, %v3477_v21  ;;  %v14194_v21 = vld [vmem:[#allocation15_spill] sm:$0xff]  ;;  %v14195_v24 = vld [vmem:[#allocation16_spill] sm:$0xff] }
 0xf66   :  { %10054 = vtanh.f32 %v3494_v34  ;;  %v14196_v34 = vld [vmem:[#allocation17_spill] sm:$0xff] }
 0xf67   :  { %10056 = vrcp.f32 %v3490_v9  ;;  %v14188_v9 = vld [vmem:[#allocation9_spill] sm:$0xff] }
 0xf70   :  { %v10055_v16 = vpop.eup %10054 }
 0xf71   :  { %v3496_v38 = vsub.f32 %v11305_v46, %v10055_v16  ;;  %v10057_v18 = vpop.eup %10056  ;;  %v14184_v46 = vld [vmem:[#allocation5_spill] sm:$0xff] }
 0xf73   :  { %v3497_v3 = vmul.f32 %v10057_v18, %v3496_v38  ;;  %v14186_v18 = vld [vmem:[#allocation7_spill] sm:$0xff] }
 0xf74   :  { %v14198_v38 = vld [vmem:[#allocation19_spill] sm:$0xff] }
 0xf75   :  { %v12794_v31 = vadd.f32 %v10055_v16, %v3497_v3  ;;  %v14187_v3 = vld [vmem:[#allocation8_spill] sm:$0xff]  ;;  %v14197_v16 = vld [vmem:[#allocation18_spill] sm:$0xff] }
 0xf77   :  { %3564 = vmatmul.mubr.f32.vlgmr.msra.gmra.mrb[30].mxu0 %v12794_v31  ;;  %3635 = vmatmul.mubr.f32.vlgmr.msra.gmra.mrb[58].mxu1 %v12794_v31 }
 0xf78   :  { %3723 = vmatprep.mubr.f32.mxu0 %v12794_v31  ;;  %3794 = vmatprep.mubr.f32.mxu1 %v12794_v31 }
 0xf79   :  { %8060 = vmatpush1.bf16.msra.mxu0 %v11642_v56  ;;  %8124 = vmatpush1.bf16.msra.mxu1 %v11644_v58 }
 0xf7a   :  { %8062 = vmatprep.subr.bf16.mxu0 %v11652_v5  ;;  %8126 = vmatprep.subr.bf16.mxu1 %v11654_v33 }
 0xf7d   :  { %8064 = vmatpush1.bf16.msra.mxu0 %v11680_v30  ;;  %8128 = vmatpush1.bf16.msra.mxu1 %v11682_v32 }
 0xf7e   :  { %8066 = vmatprep.subr.bf16.mxu0 %v11692_v52  ;;  %8130 = vmatprep.subr.bf16.mxu1 %v11694_v45 }
 0xf81   :  { %8068 = vmatpush1.bf16.msra.mxu0 %v11716_v51  ;;  %8132 = vmatpush1.bf16.msra.mxu1 %v11718_v61 }
 0xf82   :  { %8070 = vmatprep.subr.bf16.mxu0 %v11725_v20  ;;  %8134 = vmatprep.subr.bf16.mxu1 %v11727_v29 }
 0xf85   :  { %8072 = vmatpush1.bf16.msra.mxu0 %v11740_v49  ;;  %8136 = vmatpush1.bf16.msra.mxu1 %v11742_v55 }
 0xf86   :  { %8074 = vmatprep.subr.bf16.mxu0 %v11757_v11  ;;  %8138 = vmatprep.subr.bf16.mxu1 %v11768_v2 }
 0xf89   :  { %8076 = vmatpush1.bf16.msra.mxu0 %v11770_v43  ;;  %8140 = vmatpush1.bf16.msra.mxu1 %v11779_v0 }
 0xf8a   :  { %8078 = vmatprep.subr.bf16.mxu0 %v11793_v22  ;;  %8142 = vmatprep.subr.bf16.mxu1 %v11804_v25 }
 0xf8d   :  { %8080 = vmatpush1.bf16.msra.mxu0 %v11806_v10  ;;  %8144 = vmatpush1.bf16.msra.mxu1 %v11815_v59 }
 0xf8e   :  { %8082 = vmatprep.subr.bf16.mxu0 %v11829_v50  ;;  %8146 = vmatprep.subr.bf16.mxu1 %v11840_v12 }
 0xf91   :  { %8084 = vmatpush1.bf16.msra.mxu0 %v11842_v4  ;;  %8148 = vmatpush1.bf16.msra.mxu1 %v11851_v1 }
 0xf92   :  { %8086 = vmatprep.subr.bf16.mxu0 %v11865_v39  ;;  %8150 = vmatprep.subr.bf16.mxu1 %v11876_v54 }
 0xf95   :  { %8088 = vmatpush1.bf16.msra.mxu0 %v11878_v62  ;;  %8152 = vmatpush1.bf16.msra.mxu1 %v11887_v7 }
 0xf96   :  { %8090 = vmatprep.subr.bf16.mxu0 %v11901_v47  ;;  %8154 = vmatprep.subr.bf16.mxu1 %v11912_v27 }
 0xf99   :  { %8092 = vmatpush1.bf16.msra.mxu0 %v11914_v48  ;;  %8156 = vmatpush1.bf16.msra.mxu1 %v11923_v42 }
 0xf9a   :  { %8094 = vmatprep.subr.bf16.mxu0 %v11937_v53  ;;  %8158 = vmatprep.subr.bf16.mxu1 %v11948_v35 }
 0xf9d   :  { %8096 = vmatpush1.bf16.msra.mxu0 %v11950_v6  ;;  %8160 = vmatpush1.bf16.msra.mxu1 %v11959_v14 }
 0xf9e   :  { %8098 = vmatprep.subr.bf16.mxu0 %v14184_v46  ;;  %8162 = vmatprep.subr.bf16.mxu1 %v14185_v13 }
 0xfa1   :  { %8100 = vmatpush1.bf16.msra.mxu0 %v14186_v18  ;;  %8164 = vmatpush1.bf16.msra.mxu1 %v14187_v3 }
 0xfa2   :  { %8102 = vmatprep.subr.bf16.mxu0 %v14188_v9  ;;  %8166 = vmatprep.subr.bf16.mxu1 %v14189_v17  ;;  %v14199_v9 = vld [vmem:[#allocation20_spill] sm:$0xff]  ;;  %v14200_v17 = vld [vmem:[#allocation21_spill] sm:$0xff] }
 0xfa5   :  { %8104 = vmatpush1.bf16.msra.mxu0 %v14190_v28  ;;  %8168 = vmatpush1.bf16.msra.mxu1 %v14191_v23  ;;  %v14201_v28 = vld [vmem:[#allocation22_spill] sm:$0xff]  ;;  %v14202_v23 = vld [vmem:[#allocation23_spill] sm:$0xff] }
 0xfa6   :  { %8106 = vmatprep.subr.bf16.mxu0 %v14192_v19  ;;  %8170 = vmatprep.subr.bf16.mxu1 %v14193_v26  ;;  %v14203_v19 = vld [vmem:[#allocation24_spill] sm:$0xff]  ;;  %v14204_v26 = vld [vmem:[#allocation25_spill] sm:$0xff] }
 0xfa9   :  { %8108 = vmatpush1.bf16.msra.mxu0 %v14194_v21  ;;  %8172 = vmatpush1.bf16.msra.mxu1 %v14195_v24  ;;  %v14205_v21 = vld [vmem:[#allocation26_spill] sm:$0xff]  ;;  %v14206_v24 = vld [vmem:[#allocation27_spill] sm:$0xff] }
 0xfaa   :  { %8110 = vmatprep.subr.bf16.mxu0 %v14196_v34  ;;  %8174 = vmatprep.subr.bf16.mxu1 %v14197_v16  ;;  %v14207_v34 = vld [vmem:[#allocation28_spill] sm:$0xff]  ;;  %v14208_v16 = vld [vmem:[#allocation29_spill] sm:$0xff] }
 0xfad   :  { %8112 = vmatpush1.bf16.msra.mxu0 %v14198_v38  ;;  %8176 = vmatpush1.bf16.msra.mxu1 %v14199_v9  ;;  %v14209_v38 = vld [vmem:[#allocation30_spill] sm:$0xff] }
 0xfae   :  { %8114 = vmatprep.subr.bf16.mxu0 %v14200_v17  ;;  %8178 = vmatprep.subr.bf16.mxu1 %v14201_v28  ;;  %v6083_v28 = vld [vmem:[%s13904_s10 + $0x4] sm:$0xf] }
 0xfb1   :  { %8116 = vmatpush1.bf16.msra.mxu0 %v14202_v23  ;;  %8180 = vmatpush1.bf16.msra.mxu1 %v14203_v19  ;;  %v12868_v23 = vrot.slane %v6083_v28, %v10630_v57  ;;  %v14212_v57 = vsub.s32 3, %v10614_v36 }
 0xfb2   :  { %8118 = vmatprep.subr.bf16.mxu0 %v14204_v26  ;;  %8182 = vmatprep.subr.bf16.mxu1 %v14205_v21 }
 0xfb3   :  { %14210 = vst [vmem:[#allocation94_spill] sm:$0xff] %v12868_v23  ;;  %v12877_v13 = vrot.slane %v6083_v28, %v14212_v57 }
 0xfb5   :  { %8120 = vmatpush1.bf16.msra.mxu0 %v14206_v24  ;;  %8184 = vmatpush1.bf16.msra.mxu1 %v14207_v34  ;;  %v12872_v34 = vrot.slane %v6083_v28, %v10641_v8 }
 0xfb6   :  { %8186 = vmatprep.subr.bf16.mxu0 %v14208_v16  ;;  %8250 = vmatprep.subr.bf16.mxu1 %v14209_v38 }
 0xfb7   :  { %14211 = vst [vmem:[#allocation95_spill] sm:$0xff] %v12872_v34 }
0x104a   :  { %v3565_v19 = vpop.f32.mrb[30].mxu0  ;;  %v3636_v17 = vpop.f32.mrb[58].mxu1 }
0x104b   :  { %v3566_v26 = vadd.f32 %v3565_v19, %v12868_v23  ;;  %v3567_v21 = vpop.f32.mrb[31].mxu0  ;;  %v3638_v9 = vpop.f32.mrb[59].mxu1  ;;  %v12880_v19 = vrot.slane %v6083_v28, %v10617_v37  ;;  %v14213_v37 = vld [vmem:[#allocation31_spill] sm:$0xff]  ;;  %v14218_v28 = vld [vmem:[#allocation38_spill] sm:$0xff] }
0x104c   :  { %v3568_v38 = vadd.f32 %v3567_v21, %v12872_v34 }
0x104d   :  { %v6086_v24 = vmul.f32 -1.442695, %v3566_v26  ;;  %v3639_v26 = vadd.f32 %v3638_v9, %v12877_v13  ;;  %v3637_v8 = vadd.f32 %v3636_v17, %v12880_v19  ;;  %v14216_v9 = vld [vmem:[#allocation35_spill] sm:$0xff]  ;;  %v14217_v17 = vld [vmem:[#allocation37_spill] sm:$0xff] }
0x104e   :  { %v6087_v16 = vmul.f32 -1.442695, %v3568_v38 }
0x104f   :  { %10058 = vpow2.f32 %v6086_v24 }
0x1050   :  { %10060 = vpow2.f32 %v6087_v16 }
0x1059   :  { %v10059_v3 = vpop.eup %10058 }
0x105a   :  { %v3644_v18 = vadd.f32 1.0, %v10059_v3  ;;  %v10061_v23 = vpop.eup %10060 }
0x105b   :  { %v3650_v21 = vadd.f32 1.0, %v10061_v23  ;;  %v14219_v23 = vld [vmem:[#allocation39_spill] sm:$0xff] }
0x105c   :  { %10062 = vrcp.f32 %v3644_v18 }
0x1066   :  { %v10063_v24 = vpop.eup %10062 }
0x1067   :  { %v3653_v46 = vmul.f32 %v10063_v24, %v3639_v26  ;;  %v14220_v26 = vld [vmem:[#allocation40_spill] sm:$0xff]  ;;  %v14221_v24 = vld [vmem:[#allocation41_spill] sm:$0xff] }
0x1069   :  { %v3654_v38 = vadd.f32 %v3653_v46, %v3637_v8  ;;  %v14215_v46 = vld [vmem:[#allocation33_spill] sm:$0xff]  ;;  %v14222_v8 = vld [vmem:[#allocation42_spill] sm:$0xff] }
0x106b   :  { %10064 = vtanh.f32 %v3654_v38  ;;  %v14224_v38 = vld [vmem:[#allocation44_spill] sm:$0xff] }
0x106c   :  { %10066 = vrcp.f32 %v3650_v21  ;;  %v14223_v21 = vld [vmem:[#allocation43_spill] sm:$0xff] }
0x1075   :  { %v10065_v3 = vpop.eup %10064 }
0x1076   :  { %v3656_v18 = vsub.f32 %v12230_v40, %v10065_v3  ;;  %v10067_v36 = vpop.eup %10066  ;;  %v14214_v40 = vld [vmem:[#allocation32_spill] sm:$0xff] }
0x1078   :  { %v3657_v16 = vmul.f32 %v10067_v36, %v3656_v18  ;;  %v14226_v18 = vld [vmem:[#allocation46_spill] sm:$0xff]  ;;  %v14227_v36 = vld [vmem:[#allocation47_spill] sm:$0xff] }
0x107a   :  { %v12885_v57 = vadd.f32 %v10065_v3, %v3657_v16  ;;  %v14225_v3 = vld [vmem:[#allocation45_spill] sm:$0xff]  ;;  %v14228_v16 = vld [vmem:[#allocation48_spill] sm:$0xff] }
0x107c   :  { %5899 = vst [vmem:[%s13905_s11] sm:$0xff] %v12885_v57  ;;  %3724 = vmatmul.mubr.f32.vlgmr.msra.gmra.mrb[32].mxu0 %v12885_v57  ;;  %3795 = vmatmul.mubr.f32.vlgmr.msra.gmra.mrb[60].mxu1 %v12885_v57 }
0x107d   :  { %3883 = vmatprep.mubr.f32.mxu0 %v12885_v57  ;;  %3954 = vmatprep.mubr.f32.mxu1 %v12885_v57 }
0x107e   :  { %8188 = vmatpush1.bf16.msra.mxu0 %v12232_v41  ;;  %8252 = vmatpush1.bf16.msra.mxu1 %v14213_v37 }
0x107f   :  { %8190 = vmatprep.subr.bf16.mxu0 %v14214_v40  ;;  %8254 = vmatprep.subr.bf16.mxu1 %v14215_v46 }
0x1082   :  { %8192 = vmatpush1.bf16.msra.mxu0 %v12270_v60  ;;  %8256 = vmatpush1.bf16.msra.mxu1 %v14216_v9 }
0x1083   :  { %8194 = vmatprep.subr.bf16.mxu0 %v12282_v63  ;;  %8258 = vmatprep.subr.bf16.mxu1 %v14217_v17  ;;  %v14274_v17 = vld [vmem:[#allocation92_spill] sm:$0xff] }
0x1086   :  { %8196 = vmatpush1.bf16.msra.mxu0 %v14218_v28  ;;  %8260 = vmatpush1.bf16.msra.mxu1 %v14219_v23  ;;  %v14229_v28 = vld [vmem:[#allocation49_spill] sm:$0xff]  ;;  %v14230_v23 = vld [vmem:[#allocation50_spill] sm:$0xff] }
0x1087   :  { %8198 = vmatprep.subr.bf16.mxu0 %v14220_v26  ;;  %8262 = vmatprep.subr.bf16.mxu1 %v14221_v24  ;;  %v14231_v26 = vld [vmem:[#allocation51_spill] sm:$0xff]  ;;  %v14232_v24 = vld [vmem:[#allocation52_spill] sm:$0xff] }
0x108a   :  { %8200 = vmatpush1.bf16.msra.mxu0 %v14222_v8  ;;  %8264 = vmatpush1.bf16.msra.mxu1 %v14223_v21  ;;  %v14233_v8 = vld [vmem:[#allocation53_spill] sm:$0xff]  ;;  %v14234_v21 = vld [vmem:[#allocation54_spill] sm:$0xff] }
0x108b   :  { %8202 = vmatprep.subr.bf16.mxu0 %v14224_v38  ;;  %8266 = vmatprep.subr.bf16.mxu1 %v14225_v3  ;;  %v14235_v38 = vld [vmem:[#allocation55_spill] sm:$0xff]  ;;  %v14236_v3 = vld [vmem:[#allocation56_spill] sm:$0xff] }
0x108e   :  { %8204 = vmatpush1.bf16.msra.mxu0 %v14226_v18  ;;  %8268 = vmatpush1.bf16.msra.mxu1 %v14227_v36  ;;  %v14237_v18 = vld [vmem:[#allocation57_spill] sm:$0xff]  ;;  %v14238_v36 = vld [vmem:[#allocation58_spill] sm:$0xff] }
0x108f   :  { %8206 = vmatprep.subr.bf16.mxu0 %v14228_v16  ;;  %8270 = vmatprep.subr.bf16.mxu1 %v14229_v28  ;;  %v14239_v16 = vld [vmem:[#allocation59_spill] sm:$0xff]  ;;  %v14240_v28 = vld [vmem:[#allocation60_spill] sm:$0xff] }
0x1092   :  { %8208 = vmatpush1.bf16.msra.mxu0 %v14230_v23  ;;  %8272 = vmatpush1.bf16.msra.mxu1 %v14231_v26  ;;  %v14241_v23 = vld [vmem:[#allocation61_spill] sm:$0xff]  ;;  %v14242_v26 = vld [vmem:[#allocation62_spill] sm:$0xff] }
0x1093   :  { %8210 = vmatprep.subr.bf16.mxu0 %v14232_v24  ;;  %8274 = vmatprep.subr.bf16.mxu1 %v14233_v8  ;;  %v14243_v24 = vld [vmem:[#allocation63_spill] sm:$0xff]  ;;  %v14244_v8 = vld [vmem:[#allocation64_spill] sm:$0xff] }
0x1096   :  { %8212 = vmatpush1.bf16.msra.mxu0 %v14234_v21  ;;  %8276 = vmatpush1.bf16.msra.mxu1 %v14235_v38  ;;  %v14245_v21 = vld [vmem:[#allocation65_spill] sm:$0xff]  ;;  %v14246_v38 = vld [vmem:[#allocation66_spill] sm:$0xff] }
0x1097   :  { %8214 = vmatprep.subr.bf16.mxu0 %v14236_v3  ;;  %8278 = vmatprep.subr.bf16.mxu1 %v14237_v18  ;;  %v14247_v3 = vld [vmem:[#allocation67_spill] sm:$0xff]  ;;  %v14248_v18 = vld [vmem:[#allocation68_spill] sm:$0xff] }
0x109a   :  { %8216 = vmatpush1.bf16.msra.mxu0 %v14238_v36  ;;  %8280 = vmatpush1.bf16.msra.mxu1 %v14239_v16  ;;  %v14249_v36 = vld [vmem:[#allocation69_spill] sm:$0xff]  ;;  %v14250_v16 = vld [vmem:[#allocation70_spill] sm:$0xff] }
0x109b   :  { %8218 = vmatprep.subr.bf16.mxu0 %v14240_v28  ;;  %8282 = vmatprep.subr.bf16.mxu1 %v14241_v23  ;;  %v14251_v28 = vld [vmem:[#allocation71_spill] sm:$0xff]  ;;  %v14252_v23 = vld [vmem:[#allocation72_spill] sm:$0xff] }
0x109e   :  { %8220 = vmatpush1.bf16.msra.mxu0 %v14242_v26  ;;  %8284 = vmatpush1.bf16.msra.mxu1 %v14243_v24  ;;  %v14253_v26 = vld [vmem:[#allocation73_spill] sm:$0xff]  ;;  %v14254_v24 = vld [vmem:[#allocation74_spill] sm:$0xff] }
0x109f   :  { %8222 = vmatprep.subr.bf16.mxu0 %v14244_v8  ;;  %8286 = vmatprep.subr.bf16.mxu1 %v14245_v21  ;;  %v14255_v8 = vld [vmem:[#allocation75_spill] sm:$0xff]  ;;  %v14256_v21 = vld [vmem:[#allocation76_spill] sm:$0xff] }
0x10a2   :  { %8224 = vmatpush1.bf16.msra.mxu0 %v14246_v38  ;;  %8288 = vmatpush1.bf16.msra.mxu1 %v14247_v3  ;;  %v14257_v38 = vld [vmem:[#allocation77_spill] sm:$0xff]  ;;  %v14258_v3 = vld [vmem:[#allocation78_spill] sm:$0xff] }
0x10a3   :  { %8226 = vmatprep.subr.bf16.mxu0 %v14248_v18  ;;  %8290 = vmatprep.subr.bf16.mxu1 %v14249_v36  ;;  %v14259_v18 = vld [vmem:[#allocation79_spill] sm:$0xff]  ;;  %v14260_v36 = vld [vmem:[#allocation80_spill] sm:$0xff] }
0x10a6   :  { %8228 = vmatpush1.bf16.msra.mxu0 %v14250_v16  ;;  %8292 = vmatpush1.bf16.msra.mxu1 %v14251_v28  ;;  %v14261_v16 = vld [vmem:[#allocation81_spill] sm:$0xff]  ;;  %v14262_v28 = vld [vmem:[#allocation82_spill] sm:$0xff] }
0x10a7   :  { %8230 = vmatprep.subr.bf16.mxu0 %v14252_v23  ;;  %8294 = vmatprep.subr.bf16.mxu1 %v14253_v26  ;;  %v14263_v23 = vld [vmem:[#allocation83_spill] sm:$0xff]  ;;  %v14264_v26 = vld [vmem:[#allocation84_spill] sm:$0xff] }
0x10aa   :  { %8232 = vmatpush1.bf16.msra.mxu0 %v14254_v24  ;;  %8296 = vmatpush1.bf16.msra.mxu1 %v14255_v8  ;;  %v14265_v24 = vld [vmem:[#allocation85_spill] sm:$0xff]  ;;  %v14266_v8 = vld [vmem:[#allocation86_spill] sm:$0xff] }
0x10ab   :  { %8234 = vmatprep.subr.bf16.mxu0 %v14256_v21  ;;  %8298 = vmatprep.subr.bf16.mxu1 %v14257_v38  ;;  %v14267_v21 = vld [vmem:[#allocation87_spill] sm:$0xff]  ;;  %v14268_v38 = vld [vmem:[#allocation88_spill] sm:$0xff] }
0x10ae   :  { %8236 = vmatpush1.bf16.msra.mxu0 %v14258_v3  ;;  %8300 = vmatpush1.bf16.msra.mxu1 %v14259_v18  ;;  %v14269_v3 = vld [vmem:[#allocation89_spill] sm:$0xff]  ;;  %v14270_v18 = vld [vmem:[#allocation90_spill] sm:$0xff] }
0x10af   :  { %8238 = vmatprep.subr.bf16.mxu0 %v14260_v36  ;;  %8302 = vmatprep.subr.bf16.mxu1 %v14261_v16  ;;  %v14271_v36 = vld [vmem:[#allocation91_spill] sm:$0xff] }
0x10b0   :  { %v14272_v16 = vld [vmem:[#allocation3_spill] sm:$0xff] }
0x10b2   :  { %8240 = vmatpush1.bf16.msra.mxu0 %v14262_v28  ;;  %8304 = vmatpush1.bf16.msra.mxu1 %v14263_v23  ;;  %v14273_v28 = vld [vmem:[#allocation4_spill] sm:$0xff] }
0x10b3   :  { %8242 = vmatprep.subr.bf16.mxu0 %v14264_v26  ;;  %8306 = vmatprep.subr.bf16.mxu1 %v14265_v24 }
0x10b6   :  { %8244 = vmatpush1.bf16.msra.mxu0 %v14266_v8  ;;  %8308 = vmatpush1.bf16.msra.mxu1 %v14267_v21  ;;  %v14275_v21 = vld [vmem:[#allocation93_spill] sm:$0xff] }
0x10b7   :  { %8246 = vmatprep.subr.bf16.mxu0 %v14268_v38  ;;  %8310 = vmatprep.subr.bf16.mxu1 %v14269_v3 }
0x10ba   :  { %8248 = vmatpush1.bf16.msra.mxu0 %v14270_v18  ;;  %8312 = vmatpush1.bf16.msra.mxu1 %v14271_v36 }
0x10bb   :  { %8314 = vmatprep.subr.bf16.mxu0 %v14272_v16  ;;  %8378 = vmatprep.subr.bf16.mxu1 %v14273_v28 }
0x114f   :  { %v3725_v23 = vpop.f32.mrb[32].mxu0  ;;  %v3796_v26 = vpop.f32.mrb[60].mxu1 }
0x1150   :  { %v3726_v24 = vadd.f32 %v3725_v23, %v14274_v17  ;;  %v3727_v63 = vpop.f32.mrb[33].mxu0  ;;  %v3798_v8 = vpop.f32.mrb[61].mxu1  ;;  %v3797_v28 = vadd.f32 %v3796_v26, %v12789_v44  ;;  %v14282_v26 = vld [vmem:[#allocation11_spill] sm:$0xff] }
0x1151   :  { %v3728_v38 = vadd.f32 %v3727_v63, %v14275_v21  ;;  %v3799_v16 = vadd.f32 %v3798_v8, %v12786_v15  ;;  %v14283_v8 = vld [vmem:[#allocation12_spill] sm:$0xff] }
0x1152   :  { %v6088_v9 = vmul.f32 -1.442695, %v3726_v24 }
0x1153   :  { %v6089_v60 = vmul.f32 -1.442695, %v3728_v38 }
0x1154   :  { %10068 = vpow2.f32 %v6088_v9 }
0x1155   :  { %10070 = vpow2.f32 %v6089_v60  ;;  %v14276_v60 = vld [vmem:[#allocation5_spill] sm:$0xff] }
0x115e   :  { %v10069_v3 = vpop.eup %10068 }
0x115f   :  { %v3804_v46 = vadd.f32 1.0, %v10069_v3  ;;  %v10071_v36 = vpop.eup %10070  ;;  %v14284_v3 = vld [vmem:[#allocation13_spill] sm:$0xff] }
0x1160   :  { %v3810_v37 = vadd.f32 1.0, %v10071_v36  ;;  %v14286_v36 = vld [vmem:[#allocation15_spill] sm:$0xff] }
0x1161   :  { %10072 = vrcp.f32 %v3804_v46  ;;  %v14280_v46 = vld [vmem:[#allocation9_spill] sm:$0xff] }
0x116b   :  { %v10073_v18 = vpop.eup %10072 }
0x116c   :  { %v3813_v40 = vmul.f32 %v10073_v18, %v3799_v16  ;;  %v14285_v18 = vld [vmem:[#allocation14_spill] sm:$0xff]  ;;  %v14287_v16 = vld [vmem:[#allocation16_spill] sm:$0xff] }
0x116e   :  { %v3814_v23 = vadd.f32 %v3813_v40, %v3797_v28  ;;  %v14279_v40 = vld [vmem:[#allocation8_spill] sm:$0xff]  ;;  %v14281_v28 = vld [vmem:[#allocation10_spill] sm:$0xff] }
0x1170   :  { %10074 = vtanh.f32 %v3814_v23  ;;  %v14288_v23 = vld [vmem:[#allocation17_spill] sm:$0xff] }
0x1171   :  { %10076 = vrcp.f32 %v3810_v37  ;;  %v14278_v37 = vld [vmem:[#allocation7_spill] sm:$0xff] }
0x117a   :  { %v10075_v24 = vpop.eup %10074 }
0x117b   :  { %v3816_v9 = vsub.f32 %v12794_v31, %v10075_v24  ;;  %v10077_v63 = vpop.eup %10076  ;;  %v14277_v31 = vld [vmem:[#allocation6_spill] sm:$0xff] }
0x117d   :  { %v3817_v38 = vmul.f32 %v10077_v63, %v3816_v9  ;;  %v14290_v9 = vld [vmem:[#allocation19_spill] sm:$0xff]  ;;  %v14291_v63 = vld [vmem:[#allocation20_spill] sm:$0xff] }
0x117f   :  { %v12964_v21 = vadd.f32 %v10075_v24, %v3817_v38  ;;  %v14289_v24 = vld [vmem:[#allocation18_spill] sm:$0xff]  ;;  %v14292_v38 = vld [vmem:[#allocation21_spill] sm:$0xff] }
0x1181   :  { %3884 = vmatmul.mubr.f32.vlgmr.msra.gmra.mrb[34].mxu0 %v12964_v21  ;;  %3955 = vmatmul.mubr.f32.vlgmr.msra.gmra.mrb[62].mxu1 %v12964_v21 }
0x1182   :  { %4043 = vmatprep.mubr.f32.mxu0 %v12964_v21  ;;  %4114 = vmatprep.mubr.f32.mxu1 %v12964_v21 }
0x1183   :  { %8316 = vmatpush1.bf16.msra.mxu0 %v11642_v56  ;;  %8380 = vmatpush1.bf16.msra.mxu1 %v11644_v58 }
0x1184   :  { %8318 = vmatprep.subr.bf16.mxu0 %v11652_v5  ;;  %8382 = vmatprep.subr.bf16.mxu1 %v11654_v33 }
0x1187   :  { %8320 = vmatpush1.bf16.msra.mxu0 %v11680_v30  ;;  %8384 = vmatpush1.bf16.msra.mxu1 %v11682_v32 }
0x1188   :  { %8322 = vmatprep.subr.bf16.mxu0 %v11692_v52  ;;  %8386 = vmatprep.subr.bf16.mxu1 %v11694_v45 }
0x118b   :  { %8324 = vmatpush1.bf16.msra.mxu0 %v11716_v51  ;;  %8388 = vmatpush1.bf16.msra.mxu1 %v11718_v61 }
0x118c   :  { %8326 = vmatprep.subr.bf16.mxu0 %v11725_v20  ;;  %8390 = vmatprep.subr.bf16.mxu1 %v11727_v29 }
0x118f   :  { %8328 = vmatpush1.bf16.msra.mxu0 %v11740_v49  ;;  %8392 = vmatpush1.bf16.msra.mxu1 %v11742_v55 }
0x1190   :  { %8330 = vmatprep.subr.bf16.mxu0 %v11757_v11  ;;  %8394 = vmatprep.subr.bf16.mxu1 %v11768_v2 }
0x1193   :  { %8332 = vmatpush1.bf16.msra.mxu0 %v11770_v43  ;;  %8396 = vmatpush1.bf16.msra.mxu1 %v11779_v0 }
0x1194   :  { %8334 = vmatprep.subr.bf16.mxu0 %v11793_v22  ;;  %8398 = vmatprep.subr.bf16.mxu1 %v11804_v25 }
0x1197   :  { %8336 = vmatpush1.bf16.msra.mxu0 %v11806_v10  ;;  %8400 = vmatpush1.bf16.msra.mxu1 %v11815_v59 }
0x1198   :  { %8338 = vmatprep.subr.bf16.mxu0 %v11829_v50  ;;  %8402 = vmatprep.subr.bf16.mxu1 %v11840_v12 }
0x119b   :  { %8340 = vmatpush1.bf16.msra.mxu0 %v11842_v4  ;;  %8404 = vmatpush1.bf16.msra.mxu1 %v11851_v1 }
0x119c   :  { %8342 = vmatprep.subr.bf16.mxu0 %v11865_v39  ;;  %8406 = vmatprep.subr.bf16.mxu1 %v11876_v54 }
0x119f   :  { %8344 = vmatpush1.bf16.msra.mxu0 %v11878_v62  ;;  %8408 = vmatpush1.bf16.msra.mxu1 %v11887_v7 }
0x11a0   :  { %8346 = vmatprep.subr.bf16.mxu0 %v11901_v47  ;;  %8410 = vmatprep.subr.bf16.mxu1 %v11912_v27 }
0x11a3   :  { %8348 = vmatpush1.bf16.msra.mxu0 %v11914_v48  ;;  %8412 = vmatpush1.bf16.msra.mxu1 %v11923_v42 }
0x11a4   :  { %8350 = vmatprep.subr.bf16.mxu0 %v11937_v53  ;;  %8414 = vmatprep.subr.bf16.mxu1 %v11948_v35 }
0x11a7   :  { %8352 = vmatpush1.bf16.msra.mxu0 %v11950_v6  ;;  %8416 = vmatpush1.bf16.msra.mxu1 %v11959_v14 }
0x11a8   :  { %8354 = vmatprep.subr.bf16.mxu0 %v14276_v60  ;;  %8418 = vmatprep.subr.bf16.mxu1 %v14277_v31 }
0x11ab   :  { %8356 = vmatpush1.bf16.msra.mxu0 %v14278_v37  ;;  %8420 = vmatpush1.bf16.msra.mxu1 %v14279_v40 }
0x11ac   :  { %8358 = vmatprep.subr.bf16.mxu0 %v14280_v46  ;;  %8422 = vmatprep.subr.bf16.mxu1 %v14281_v28  ;;  %v14302_v28 = vld [vmem:[#allocation94_spill] sm:$0xff] }
0x11af   :  { %8360 = vmatpush1.bf16.msra.mxu0 %v14282_v26  ;;  %8424 = vmatpush1.bf16.msra.mxu1 %v14283_v8  ;;  %v14293_v26 = vld [vmem:[#allocation22_spill] sm:$0xff]  ;;  %v14294_v8 = vld [vmem:[#allocation23_spill] sm:$0xff] }
0x11b0   :  { %8362 = vmatprep.subr.bf16.mxu0 %v14284_v3  ;;  %8426 = vmatprep.subr.bf16.mxu1 %v14285_v18  ;;  %v14295_v3 = vld [vmem:[#allocation24_spill] sm:$0xff]  ;;  %v14296_v18 = vld [vmem:[#allocation25_spill] sm:$0xff] }
0x11b3   :  { %8364 = vmatpush1.bf16.msra.mxu0 %v14286_v36  ;;  %8428 = vmatpush1.bf16.msra.mxu1 %v14287_v16  ;;  %v14297_v36 = vld [vmem:[#allocation26_spill] sm:$0xff]  ;;  %v14298_v16 = vld [vmem:[#allocation27_spill] sm:$0xff] }
0x11b4   :  { %8366 = vmatprep.subr.bf16.mxu0 %v14288_v23  ;;  %8430 = vmatprep.subr.bf16.mxu1 %v14289_v24  ;;  %v14299_v23 = vld [vmem:[#allocation28_spill] sm:$0xff]  ;;  %v14300_v24 = vld [vmem:[#allocation29_spill] sm:$0xff] }
0x11b7   :  { %8368 = vmatpush1.bf16.msra.mxu0 %v14290_v9  ;;  %8432 = vmatpush1.bf16.msra.mxu1 %v14291_v63  ;;  %v14301_v9 = vld [vmem:[#allocation30_spill] sm:$0xff] }
0x11b8   :  { %8370 = vmatprep.subr.bf16.mxu0 %v14292_v38  ;;  %8434 = vmatprep.subr.bf16.mxu1 %v14293_v26 }
0x11bb   :  { %8372 = vmatpush1.bf16.msra.mxu0 %v14294_v8  ;;  %8436 = vmatpush1.bf16.msra.mxu1 %v14295_v3 }
0x11bc   :  { %8374 = vmatprep.subr.bf16.mxu0 %v14296_v18  ;;  %8438 = vmatprep.subr.bf16.mxu1 %v14297_v36 }
0x11bf   :  { %8376 = vmatpush1.bf16.msra.mxu0 %v14298_v16  ;;  %8440 = vmatpush1.bf16.msra.mxu1 %v14299_v23 }
0x11c0   :  { %8442 = vmatprep.subr.bf16.mxu0 %v14300_v24  ;;  %8506 = vmatprep.subr.bf16.mxu1 %v14301_v9 }
0x1254   :  { %v3885_v63 = vpop.f32.mrb[34].mxu0  ;;  %v3956_v38 = vpop.f32.mrb[62].mxu1 }
0x1255   :  { %v3886_v26 = vadd.f32 %v3885_v63, %v14302_v28  ;;  %v3887_v46 = vpop.f32.mrb[35].mxu0  ;;  %v3958_v8 = vpop.f32.mrb[63].mxu1  ;;  %v3957_v9 = vadd.f32 %v3956_v38, %v12880_v19  ;;  %v14314_v38 = vld [vmem:[#allocation42_spill] sm:$0xff] }
0x1256   :  { %v3888_v18 = vadd.f32 %v3887_v46, %v12872_v34  ;;  %v3959_v24 = vadd.f32 %v3958_v8, %v12877_v13  ;;  %v14307_v8 = vld [vmem:[#allocation35_spill] sm:$0xff] }
0x1257   :  { %v6090_v40 = vmul.f32 -1.442695, %v3886_v26 }
0x1258   :  { %v6091_v3 = vmul.f32 -1.442695, %v3888_v18 }
0x1259   :  { %10078 = vpow2.f32 %v6090_v40 }
0x125a   :  { %10080 = vpow2.f32 %v6091_v3  ;;  %v14308_v3 = vld [vmem:[#allocation36_spill] sm:$0xff] }
0x1263   :  { %v10079_v36 = vpop.eup %10078 }
0x1264   :  { %v3964_v37 = vadd.f32 1.0, %v10079_v36  ;;  %v10081_v23 = vpop.eup %10080  ;;  %v14309_v36 = vld [vmem:[#allocation37_spill] sm:$0xff] }
0x1265   :  { %v3970_v60 = vadd.f32 1.0, %v10081_v23  ;;  %v14311_v23 = vld [vmem:[#allocation39_spill] sm:$0xff] }
0x1266   :  { %10082 = vrcp.f32 %v3964_v37  ;;  %v14306_v37 = vld [vmem:[#allocation34_spill] sm:$0xff] }
0x1270   :  { %v10083_v16 = vpop.eup %10082 }
0x1271   :  { %v3973_v31 = vmul.f32 %v10083_v16, %v3959_v24  ;;  %v14310_v16 = vld [vmem:[#allocation38_spill] sm:$0xff]  ;;  %v14312_v24 = vld [vmem:[#allocation40_spill] sm:$0xff] }
0x1273   :  { %v3974_v63 = vadd.f32 %v3973_v31, %v3957_v9  ;;  %v14305_v31 = vld [vmem:[#allocation33_spill] sm:$0xff] }
0x1274   :  { %v14313_v9 = vld [vmem:[#allocation41_spill] sm:$0xff] }
0x1275   :  { %10084 = vtanh.f32 %v3974_v63  ;;  %v14315_v63 = vld [vmem:[#allocation43_spill] sm:$0xff] }
0x1276   :  { %10086 = vrcp.f32 %v3970_v60  ;;  %v14304_v60 = vld [vmem:[#allocation32_spill] sm:$0xff] }
0x127f   :  { %v10085_v26 = vpop.eup %10084 }
0x1280   :  { %v3976_v40 = vsub.f32 %v12885_v57, %v10085_v26  ;;  %v10087_v46 = vpop.eup %10086  ;;  %v14303_v57 = vld [vmem:[#allocation31_spill] sm:$0xff] }
0x1282   :  { %v3977_v18 = vmul.f32 %v10087_v46, %v3976_v40  ;;  %v14317_v40 = vld [vmem:[#allocation45_spill] sm:$0xff]  ;;  %v14318_v46 = vld [vmem:[#allocation46_spill] sm:$0xff] }
0x1284   :  { %v13039_v34 = vadd.f32 %v10085_v26, %v3977_v18  ;;  %v14316_v26 = vld [vmem:[#allocation44_spill] sm:$0xff]  ;;  %v14319_v18 = vld [vmem:[#allocation47_spill] sm:$0xff] }
0x1286   :  { %5900 = vst [vmem:[%s13905_s11 + $0x8] sm:$0xff] %v13039_v34  ;;  %4044 = vmatmul.mubr.f32.vlgmr.msra.gmra.mrb[36].mxu0 %v13039_v34  ;;  %4115 = vmatmul.mubr.f32.vlgmr.msra.gmra.mrb[64].mxu1 %v13039_v34 }
0x1287   :  { %4203 = vmatprep.mubr.f32.mxu0 %v13039_v34  ;;  %4274 = vmatprep.mubr.f32.mxu1 %v13039_v34 }
0x1288   :  { %8444 = vmatpush1.bf16.msra.mxu0 %v12232_v41  ;;  %8508 = vmatpush1.bf16.msra.mxu1 %v14303_v57 }
0x1289   :  { %8446 = vmatprep.subr.bf16.mxu0 %v14304_v60  ;;  %8510 = vmatprep.subr.bf16.mxu1 %v14305_v31 }
0x128c   :  { %8448 = vmatpush1.bf16.msra.mxu0 %v14306_v37  ;;  %8512 = vmatpush1.bf16.msra.mxu1 %v14307_v8 }
0x128d   :  { %8450 = vmatprep.subr.bf16.mxu0 %v14308_v3  ;;  %8514 = vmatprep.subr.bf16.mxu1 %v14309_v36  ;;  %v14320_v36 = vld [vmem:[#allocation48_spill] sm:$0xff] }
0x1290   :  { %8452 = vmatpush1.bf16.msra.mxu0 %v14310_v16  ;;  %8516 = vmatpush1.bf16.msra.mxu1 %v14311_v23  ;;  %v14321_v16 = vld [vmem:[#allocation49_spill] sm:$0xff]  ;;  %v14322_v23 = vld [vmem:[#allocation50_spill] sm:$0xff] }
0x1291   :  { %8454 = vmatprep.subr.bf16.mxu0 %v14312_v24  ;;  %8518 = vmatprep.subr.bf16.mxu1 %v14313_v9  ;;  %v14323_v24 = vld [vmem:[#allocation51_spill] sm:$0xff]  ;;  %v14324_v9 = vld [vmem:[#allocation52_spill] sm:$0xff] }
0x1294   :  { %8456 = vmatpush1.bf16.msra.mxu0 %v14314_v38  ;;  %8520 = vmatpush1.bf16.msra.mxu1 %v14315_v63  ;;  %v14325_v38 = vld [vmem:[#allocation53_spill] sm:$0xff]  ;;  %v14326_v63 = vld [vmem:[#allocation54_spill] sm:$0xff] }
0x1295   :  { %8458 = vmatprep.subr.bf16.mxu0 %v14316_v26  ;;  %8522 = vmatprep.subr.bf16.mxu1 %v14317_v40  ;;  %v14327_v26 = vld [vmem:[#allocation55_spill] sm:$0xff]  ;;  %v14328_v40 = vld [vmem:[#allocation56_spill] sm:$0xff] }
0x1298   :  { %8460 = vmatpush1.bf16.msra.mxu0 %v14318_v46  ;;  %8524 = vmatpush1.bf16.msra.mxu1 %v14319_v18  ;;  %v14329_v46 = vld [vmem:[#allocation57_spill] sm:$0xff]  ;;  %v14330_v18 = vld [vmem:[#allocation58_spill] sm:$0xff] }
0x1299   :  { %8462 = vmatprep.subr.bf16.mxu0 %v14320_v36  ;;  %8526 = vmatprep.subr.bf16.mxu1 %v14321_v16  ;;  %v14331_v36 = vld [vmem:[#allocation59_spill] sm:$0xff]  ;;  %v14332_v16 = vld [vmem:[#allocation60_spill] sm:$0xff] }
0x129c   :  { %8464 = vmatpush1.bf16.msra.mxu0 %v14322_v23  ;;  %8528 = vmatpush1.bf16.msra.mxu1 %v14323_v24  ;;  %v14333_v23 = vld [vmem:[#allocation61_spill] sm:$0xff]  ;;  %v14334_v24 = vld [vmem:[#allocation62_spill] sm:$0xff] }
0x129d   :  { %8466 = vmatprep.subr.bf16.mxu0 %v14324_v9  ;;  %8530 = vmatprep.subr.bf16.mxu1 %v14325_v38  ;;  %v14335_v9 = vld [vmem:[#allocation63_spill] sm:$0xff]  ;;  %v14336_v38 = vld [vmem:[#allocation64_spill] sm:$0xff] }
0x12a0   :  { %8468 = vmatpush1.bf16.msra.mxu0 %v14326_v63  ;;  %8532 = vmatpush1.bf16.msra.mxu1 %v14327_v26  ;;  %v14337_v63 = vld [vmem:[#allocation65_spill] sm:$0xff]  ;;  %v14338_v26 = vld [vmem:[#allocation66_spill] sm:$0xff] }
0x12a1   :  { %8470 = vmatprep.subr.bf16.mxu0 %v14328_v40  ;;  %8534 = vmatprep.subr.bf16.mxu1 %v14329_v46  ;;  %v14339_v40 = vld [vmem:[#allocation67_spill] sm:$0xff]  ;;  %v14340_v46 = vld [vmem:[#allocation68_spill] sm:$0xff] }
0x12a4   :  { %8472 = vmatpush1.bf16.msra.mxu0 %v14330_v18  ;;  %8536 = vmatpush1.bf16.msra.mxu1 %v14331_v36  ;;  %v14341_v18 = vld [vmem:[#allocation69_spill] sm:$0xff]  ;;  %v14342_v36 = vld [vmem:[#allocation70_spill] sm:$0xff] }
0x12a5   :  { %8474 = vmatprep.subr.bf16.mxu0 %v14332_v16  ;;  %8538 = vmatprep.subr.bf16.mxu1 %v14333_v23  ;;  %v14343_v16 = vld [vmem:[#allocation71_spill] sm:$0xff]  ;;  %v14344_v23 = vld [vmem:[#allocation72_spill] sm:$0xff] }
0x12a8   :  { %8476 = vmatpush1.bf16.msra.mxu0 %v14334_v24  ;;  %8540 = vmatpush1.bf16.msra.mxu1 %v14335_v9  ;;  %v14345_v24 = vld [vmem:[#allocation73_spill] sm:$0xff]  ;;  %v14346_v9 = vld [vmem:[#allocation74_spill] sm:$0xff] }
0x12a9   :  { %8478 = vmatprep.subr.bf16.mxu0 %v14336_v38  ;;  %8542 = vmatprep.subr.bf16.mxu1 %v14337_v63  ;;  %v14347_v38 = vld [vmem:[#allocation75_spill] sm:$0xff]  ;;  %v14348_v63 = vld [vmem:[#allocation76_spill] sm:$0xff] }
0x12ac   :  { %8480 = vmatpush1.bf16.msra.mxu0 %v14338_v26  ;;  %8544 = vmatpush1.bf16.msra.mxu1 %v14339_v40  ;;  %v14349_v26 = vld [vmem:[#allocation77_spill] sm:$0xff]  ;;  %v14350_v40 = vld [vmem:[#allocation78_spill] sm:$0xff] }
0x12ad   :  { %8482 = vmatprep.subr.bf16.mxu0 %v14340_v46  ;;  %8546 = vmatprep.subr.bf16.mxu1 %v14341_v18  ;;  %v14351_v46 = vld [vmem:[#allocation79_spill] sm:$0xff]  ;;  %v14352_v18 = vld [vmem:[#allocation80_spill] sm:$0xff] }
0x12b0   :  { %8484 = vmatpush1.bf16.msra.mxu0 %v14342_v36  ;;  %8548 = vmatpush1.bf16.msra.mxu1 %v14343_v16  ;;  %v14353_v36 = vld [vmem:[#allocation81_spill] sm:$0xff]  ;;  %v14354_v16 = vld [vmem:[#allocation82_spill] sm:$0xff] }
0x12b1   :  { %8486 = vmatprep.subr.bf16.mxu0 %v14344_v23  ;;  %8550 = vmatprep.subr.bf16.mxu1 %v14345_v24  ;;  %v14355_v23 = vld [vmem:[#allocation83_spill] sm:$0xff]  ;;  %v14356_v24 = vld [vmem:[#allocation84_spill] sm:$0xff] }
0x12b4   :  { %8488 = vmatpush1.bf16.msra.mxu0 %v14346_v9  ;;  %8552 = vmatpush1.bf16.msra.mxu1 %v14347_v38  ;;  %v14357_v9 = vld [vmem:[#allocation85_spill] sm:$0xff]  ;;  %v14358_v38 = vld [vmem:[#allocation86_spill] sm:$0xff] }
0x12b5   :  { %8490 = vmatprep.subr.bf16.mxu0 %v14348_v63  ;;  %8554 = vmatprep.subr.bf16.mxu1 %v14349_v26  ;;  %v14359_v63 = vld [vmem:[#allocation87_spill] sm:$0xff]  ;;  %v14360_v26 = vld [vmem:[#allocation88_spill] sm:$0xff] }
0x12b8   :  { %8492 = vmatpush1.bf16.msra.mxu0 %v14350_v40  ;;  %8556 = vmatpush1.bf16.msra.mxu1 %v14351_v46  ;;  %v14361_v40 = vld [vmem:[#allocation89_spill] sm:$0xff]  ;;  %v14362_v46 = vld [vmem:[#allocation90_spill] sm:$0xff] }
0x12b9   :  { %8494 = vmatprep.subr.bf16.mxu0 %v14352_v18  ;;  %8558 = vmatprep.subr.bf16.mxu1 %v14353_v36  ;;  %v14363_v18 = vld [vmem:[#allocation91_spill] sm:$0xff] }
0x12ba   :  { %v14364_v36 = vld [vmem:[#allocation3_spill] sm:$0xff] }
0x12bc   :  { %8496 = vmatpush1.bf16.msra.mxu0 %v14354_v16  ;;  %8560 = vmatpush1.bf16.msra.mxu1 %v14355_v23  ;;  %v14365_v16 = vld [vmem:[#allocation4_spill] sm:$0xff] }
0x12bd   :  { %8498 = vmatprep.subr.bf16.mxu0 %v14356_v24  ;;  %8562 = vmatprep.subr.bf16.mxu1 %v14357_v9 }
0x12c0   :  { %8500 = vmatpush1.bf16.msra.mxu0 %v14358_v38  ;;  %8564 = vmatpush1.bf16.msra.mxu1 %v14359_v63  ;;  %v14366_v63 = vld [vmem:[#allocation93_spill] sm:$0xff] }
0x12c1   :  { %8502 = vmatprep.subr.bf16.mxu0 %v14360_v26  ;;  %8566 = vmatprep.subr.bf16.mxu1 %v14361_v40 }
0x12c4   :  { %8504 = vmatpush1.bf16.msra.mxu0 %v14362_v46  ;;  %8568 = vmatpush1.bf16.msra.mxu1 %v14363_v18 }
0x12c5   :  { %8570 = vmatprep.subr.bf16.mxu0 %v14364_v36  ;;  %8634 = vmatprep.subr.bf16.mxu1 %v14365_v16 }
0x1359   :  { %v4045_v23 = vpop.f32.mrb[36].mxu0  ;;  %v4116_v24 = vpop.f32.mrb[64].mxu1 }
0x135a   :  { %v4046_v9 = vadd.f32 %v4045_v23, %v14274_v17  ;;  %v4047_v3 = vpop.f32.mrb[37].mxu0  ;;  %v4118_v38 = vpop.f32.mrb[65].mxu1  ;;  %v4117_v16 = vadd.f32 %v4116_v24, %v12789_v44  ;;  %v14374_v24 = vld [vmem:[#allocation12_spill] sm:$0xff] }
0x135b   :  { %v4048_v26 = vadd.f32 %v4047_v3, %v14366_v63  ;;  %v4119_v36 = vadd.f32 %v4118_v38, %v12786_v15  ;;  %v14375_v38 = vld [vmem:[#allocation13_spill] sm:$0xff] }
0x135c   :  { %v6092_v8 = vmul.f32 -1.442695, %v4046_v9 }
0x135d   :  { %v6093_v37 = vmul.f32 -1.442695, %v4048_v26 }
0x135e   :  { %10088 = vpow2.f32 %v6092_v8 }
0x135f   :  { %10090 = vpow2.f32 %v6093_v37  ;;  %v14371_v37 = vld [vmem:[#allocation9_spill] sm:$0xff] }
0x1368   :  { %v10089_v40 = vpop.eup %10088 }
0x1369   :  { %v4124_v31 = vadd.f32 1.0, %v10089_v40  ;;  %v10091_v18 = vpop.eup %10090  ;;  %v14376_v40 = vld [vmem:[#allocation14_spill] sm:$0xff] }
0x136a   :  { %v4130_v57 = vadd.f32 1.0, %v10091_v18  ;;  %v14378_v18 = vld [vmem:[#allocation16_spill] sm:$0xff] }
0x136b   :  { %10092 = vrcp.f32 %v4124_v31  ;;  %v14370_v31 = vld [vmem:[#allocation8_spill] sm:$0xff] }
0x1375   :  { %v10093_v46 = vpop.eup %10092 }
0x1376   :  { %v4133_v60 = vmul.f32 %v10093_v46, %v4119_v36  ;;  %v14372_v36 = vld [vmem:[#allocation10_spill] sm:$0xff]  ;;  %v14377_v46 = vld [vmem:[#allocation15_spill] sm:$0xff] }
0x1378   :  { %v4134_v23 = vadd.f32 %v4133_v60, %v4117_v16  ;;  %v14369_v60 = vld [vmem:[#allocation7_spill] sm:$0xff] }
0x1379   :  { %v14373_v16 = vld [vmem:[#allocation11_spill] sm:$0xff] }
0x137a   :  { %10094 = vtanh.f32 %v4134_v23  ;;  %v14379_v23 = vld [vmem:[#allocation17_spill] sm:$0xff] }
0x137b   :  { %10096 = vrcp.f32 %v4130_v57  ;;  %v14368_v57 = vld [vmem:[#allocation6_spill] sm:$0xff] }
0x1384   :  { %v10095_v9 = vpop.eup %10094 }
0x1385   :  { %v4136_v8 = vsub.f32 %v12964_v21, %v10095_v9  ;;  %v10097_v3 = vpop.eup %10096  ;;  %v14367_v21 = vld [vmem:[#allocation5_spill] sm:$0xff] }
0x1387   :  { %v4137_v26 = vmul.f32 %v10097_v3, %v4136_v8  ;;  %v14381_v8 = vld [vmem:[#allocation19_spill] sm:$0xff]  ;;  %v14382_v3 = vld [vmem:[#allocation20_spill] sm:$0xff] }
0x1389   :  { %v13118_v63 = vadd.f32 %v10095_v9, %v4137_v26  ;;  %v14380_v9 = vld [vmem:[#allocation18_spill] sm:$0xff]  ;;  %v14383_v26 = vld [vmem:[#allocation21_spill] sm:$0xff] }
0x138b   :  { %4204 = vmatmul.mubr.f32.vlgmr.msra.gmra.mrb[38].mxu0 %v13118_v63  ;;  %4275 = vmatmul.mubr.f32.vlgmr.msra.gmra.mrb[66].mxu1 %v13118_v63 }
0x138c   :  { %4363 = vmatprep.mubr.f32.mxu0 %v13118_v63  ;;  %4434 = vmatprep.mubr.f32.mxu1 %v13118_v63 }
0x138d   :  { %8572 = vmatpush1.bf16.msra.mxu0 %v11642_v56  ;;  %8636 = vmatpush1.bf16.msra.mxu1 %v11644_v58 }
0x138e   :  { %8574 = vmatprep.subr.bf16.mxu0 %v11652_v5  ;;  %8638 = vmatprep.subr.bf16.mxu1 %v11654_v33 }
0x1391   :  { %8576 = vmatpush1.bf16.msra.mxu0 %v11680_v30  ;;  %8640 = vmatpush1.bf16.msra.mxu1 %v11682_v32 }
0x1392   :  { %8578 = vmatprep.subr.bf16.mxu0 %v11692_v52  ;;  %8642 = vmatprep.subr.bf16.mxu1 %v11694_v45 }
0x1395   :  { %8580 = vmatpush1.bf16.msra.mxu0 %v11716_v51  ;;  %8644 = vmatpush1.bf16.msra.mxu1 %v11718_v61 }
0x1396   :  { %8582 = vmatprep.subr.bf16.mxu0 %v11725_v20  ;;  %8646 = vmatprep.subr.bf16.mxu1 %v11727_v29 }
0x1399   :  { %8584 = vmatpush1.bf16.msra.mxu0 %v11740_v49  ;;  %8648 = vmatpush1.bf16.msra.mxu1 %v11742_v55 }
0x139a   :  { %8586 = vmatprep.subr.bf16.mxu0 %v11757_v11  ;;  %8650 = vmatprep.subr.bf16.mxu1 %v11768_v2 }
0x139d   :  { %8588 = vmatpush1.bf16.msra.mxu0 %v11770_v43  ;;  %8652 = vmatpush1.bf16.msra.mxu1 %v11779_v0 }
0x139e   :  { %8590 = vmatprep.subr.bf16.mxu0 %v11793_v22  ;;  %8654 = vmatprep.subr.bf16.mxu1 %v11804_v25 }
0x13a1   :  { %8592 = vmatpush1.bf16.msra.mxu0 %v11806_v10  ;;  %8656 = vmatpush1.bf16.msra.mxu1 %v11815_v59 }
0x13a2   :  { %8594 = vmatprep.subr.bf16.mxu0 %v11829_v50  ;;  %8658 = vmatprep.subr.bf16.mxu1 %v11840_v12 }
0x13a5   :  { %8596 = vmatpush1.bf16.msra.mxu0 %v11842_v4  ;;  %8660 = vmatpush1.bf16.msra.mxu1 %v11851_v1 }
0x13a6   :  { %8598 = vmatprep.subr.bf16.mxu0 %v11865_v39  ;;  %8662 = vmatprep.subr.bf16.mxu1 %v11876_v54 }
0x13a9   :  { %8600 = vmatpush1.bf16.msra.mxu0 %v11878_v62  ;;  %8664 = vmatpush1.bf16.msra.mxu1 %v11887_v7 }
0x13aa   :  { %8602 = vmatprep.subr.bf16.mxu0 %v11901_v47  ;;  %8666 = vmatprep.subr.bf16.mxu1 %v11912_v27 }
0x13ad   :  { %8604 = vmatpush1.bf16.msra.mxu0 %v11914_v48  ;;  %8668 = vmatpush1.bf16.msra.mxu1 %v11923_v42 }
0x13ae   :  { %8606 = vmatprep.subr.bf16.mxu0 %v11937_v53  ;;  %8670 = vmatprep.subr.bf16.mxu1 %v11948_v35 }
0x13b1   :  { %8608 = vmatpush1.bf16.msra.mxu0 %v11950_v6  ;;  %8672 = vmatpush1.bf16.msra.mxu1 %v11959_v14 }
0x13b2   :  { %8610 = vmatprep.subr.bf16.mxu0 %v14367_v21  ;;  %8674 = vmatprep.subr.bf16.mxu1 %v14368_v57 }
0x13b5   :  { %8612 = vmatpush1.bf16.msra.mxu0 %v14369_v60  ;;  %8676 = vmatpush1.bf16.msra.mxu1 %v14370_v31 }
0x13b6   :  { %8614 = vmatprep.subr.bf16.mxu0 %v14371_v37  ;;  %8678 = vmatprep.subr.bf16.mxu1 %v14372_v36 }
0x13b9   :  { %8616 = vmatpush1.bf16.msra.mxu0 %v14373_v16  ;;  %8680 = vmatpush1.bf16.msra.mxu1 %v14374_v24  ;;  %v14384_v16 = vld [vmem:[#allocation22_spill] sm:$0xff]  ;;  %v14385_v24 = vld [vmem:[#allocation23_spill] sm:$0xff] }
0x13ba   :  { %8618 = vmatprep.subr.bf16.mxu0 %v14375_v38  ;;  %8682 = vmatprep.subr.bf16.mxu1 %v14376_v40  ;;  %v14386_v38 = vld [vmem:[#allocation24_spill] sm:$0xff]  ;;  %v14387_v40 = vld [vmem:[#allocation25_spill] sm:$0xff] }
0x13bd   :  { %8620 = vmatpush1.bf16.msra.mxu0 %v14377_v46  ;;  %8684 = vmatpush1.bf16.msra.mxu1 %v14378_v18  ;;  %v14388_v46 = vld [vmem:[#allocation26_spill] sm:$0xff]  ;;  %v14389_v18 = vld [vmem:[#allocation27_spill] sm:$0xff] }
0x13be   :  { %8622 = vmatprep.subr.bf16.mxu0 %v14379_v23  ;;  %8686 = vmatprep.subr.bf16.mxu1 %v14380_v9  ;;  %v14390_v23 = vld [vmem:[#allocation28_spill] sm:$0xff]  ;;  %v14391_v9 = vld [vmem:[#allocation29_spill] sm:$0xff] }
0x13c1   :  { %8624 = vmatpush1.bf16.msra.mxu0 %v14381_v8  ;;  %8688 = vmatpush1.bf16.msra.mxu1 %v14382_v3  ;;  %v14392_v8 = vld [vmem:[#allocation30_spill] sm:$0xff] }
0x13c2   :  { %8626 = vmatprep.subr.bf16.mxu0 %v14383_v26  ;;  %8690 = vmatprep.subr.bf16.mxu1 %v14384_v16 }
0x13c5   :  { %8628 = vmatpush1.bf16.msra.mxu0 %v14385_v24  ;;  %8692 = vmatpush1.bf16.msra.mxu1 %v14386_v38  ;;  %v14393_v38 = vld [vmem:[#allocation95_spill] sm:$0xff] }
0x13c6   :  { %8630 = vmatprep.subr.bf16.mxu0 %v14387_v40  ;;  %8694 = vmatprep.subr.bf16.mxu1 %v14388_v46 }
0x13c9   :  { %8632 = vmatpush1.bf16.msra.mxu0 %v14389_v18  ;;  %8696 = vmatpush1.bf16.msra.mxu1 %v14390_v23 }
0x13ca   :  { %8698 = vmatprep.subr.bf16.mxu0 %v14391_v9  ;;  %8762 = vmatprep.subr.bf16.mxu1 %v14392_v8 }
0x145e   :  { %v4205_v3 = vpop.f32.mrb[38].mxu0  ;;  %v4276_v26 = vpop.f32.mrb[66].mxu1 }
0x145f   :  { %v4206_v16 = vadd.f32 %v4205_v3, %v14302_v28  ;;  %v4207_v36 = vpop.f32.mrb[39].mxu0  ;;  %v4278_v24 = vpop.f32.mrb[67].mxu1  ;;  %v4277_v8 = vadd.f32 %v4276_v26, %v12880_v19  ;;  %v14405_v26 = vld [vmem:[#allocation42_spill] sm:$0xff] }
0x1460   :  { %v4208_v40 = vadd.f32 %v4207_v36, %v14393_v38  ;;  %v4279_v9 = vadd.f32 %v4278_v24, %v12877_v13  ;;  %v14399_v24 = vld [vmem:[#allocation36_spill] sm:$0xff] }
0x1461   :  { %v6094_v37 = vmul.f32 -1.442695, %v4206_v16 }
0x1462   :  { %v6095_v31 = vmul.f32 -1.442695, %v4208_v40 }
0x1463   :  { %10098 = vpow2.f32 %v6094_v37 }
0x1464   :  { %10100 = vpow2.f32 %v6095_v31  ;;  %v14398_v31 = vld [vmem:[#allocation35_spill] sm:$0xff] }
0x146d   :  { %v10099_v46 = vpop.eup %10098 }
0x146e   :  { %v4284_v60 = vadd.f32 1.0, %v10099_v46  ;;  %v10101_v23 = vpop.eup %10100  ;;  %v14400_v46 = vld [vmem:[#allocation37_spill] sm:$0xff] }
0x146f   :  { %v4290_v21 = vadd.f32 1.0, %v10101_v23  ;;  %v14402_v23 = vld [vmem:[#allocation39_spill] sm:$0xff] }
0x1470   :  { %10102 = vrcp.f32 %v4284_v60  ;;  %v14397_v60 = vld [vmem:[#allocation34_spill] sm:$0xff] }
0x147a   :  { %v10103_v18 = vpop.eup %10102 }
0x147b   :  { %v4293_v57 = vmul.f32 %v10103_v18, %v4279_v9  ;;  %v14401_v18 = vld [vmem:[#allocation38_spill] sm:$0xff]  ;;  %v14403_v9 = vld [vmem:[#allocation40_spill] sm:$0xff] }
0x147d   :  { %v4294_v3 = vadd.f32 %v4293_v57, %v4277_v8  ;;  %v14396_v57 = vld [vmem:[#allocation33_spill] sm:$0xff] }
0x147e   :  { %v14404_v8 = vld [vmem:[#allocation41_spill] sm:$0xff] }
0x147f   :  { %10104 = vtanh.f32 %v4294_v3  ;;  %v14406_v3 = vld [vmem:[#allocation43_spill] sm:$0xff] }
0x1480   :  { %10106 = vrcp.f32 %v4290_v21  ;;  %v14395_v21 = vld [vmem:[#allocation32_spill] sm:$0xff] }
0x1489   :  { %v10105_v16 = vpop.eup %10104 }
0x148a   :  { %v4296_v37 = vsub.f32 %v13039_v34, %v10105_v16  ;;  %v10107_v36 = vpop.eup %10106  ;;  %v14394_v34 = vld [vmem:[#allocation31_spill] sm:$0xff] }
0x148c   :  { %v4297_v40 = vmul.f32 %v10107_v36, %v4296_v37  ;;  %v14408_v37 = vld [vmem:[#allocation45_spill] sm:$0xff]  ;;  %v14409_v36 = vld [vmem:[#allocation46_spill] sm:$0xff] }
0x148e   :  { %v13193_v38 = vadd.f32 %v10105_v16, %v4297_v40  ;;  %v14407_v16 = vld [vmem:[#allocation44_spill] sm:$0xff]  ;;  %v14410_v40 = vld [vmem:[#allocation47_spill] sm:$0xff] }
0x1490   :  { %5901 = vst [vmem:[%s13905_s11 + $0x10] sm:$0xff] %v13193_v38  ;;  %4364 = vmatmul.mubr.f32.vlgmr.msra.gmra.mrb[40].mxu0 %v13193_v38  ;;  %4435 = vmatmul.mubr.f32.vlgmr.msra.gmra.mrb[68].mxu1 %v13193_v38 }
0x1491   :  { %4523 = vmatprep.mubr.f32.mxu0 %v13193_v38  ;;  %4594 = vmatprep.mubr.f32.mxu1 %v13193_v38 }
0x1492   :  { %8700 = vmatpush1.bf16.msra.mxu0 %v12232_v41  ;;  %8764 = vmatpush1.bf16.msra.mxu1 %v14394_v34 }
0x1493   :  { %8702 = vmatprep.subr.bf16.mxu0 %v14395_v21  ;;  %8766 = vmatprep.subr.bf16.mxu1 %v14396_v57 }
0x1496   :  { %8704 = vmatpush1.bf16.msra.mxu0 %v14397_v60  ;;  %8768 = vmatpush1.bf16.msra.mxu1 %v14398_v31 }
0x1497   :  { %8706 = vmatprep.subr.bf16.mxu0 %v14399_v24  ;;  %8770 = vmatprep.subr.bf16.mxu1 %v14400_v46  ;;  %v14411_v46 = vld [vmem:[#allocation48_spill] sm:$0xff] }
0x149a   :  { %8708 = vmatpush1.bf16.msra.mxu0 %v14401_v18  ;;  %8772 = vmatpush1.bf16.msra.mxu1 %v14402_v23  ;;  %v14412_v18 = vld [vmem:[#allocation49_spill] sm:$0xff]  ;;  %v14413_v23 = vld [vmem:[#allocation50_spill] sm:$0xff] }
0x149b   :  { %8710 = vmatprep.subr.bf16.mxu0 %v14403_v9  ;;  %8774 = vmatprep.subr.bf16.mxu1 %v14404_v8  ;;  %v14414_v9 = vld [vmem:[#allocation51_spill] sm:$0xff]  ;;  %v14415_v8 = vld [vmem:[#allocation52_spill] sm:$0xff] }
0x149e   :  { %8712 = vmatpush1.bf16.msra.mxu0 %v14405_v26  ;;  %8776 = vmatpush1.bf16.msra.mxu1 %v14406_v3  ;;  %v14416_v26 = vld [vmem:[#allocation53_spill] sm:$0xff]  ;;  %v14417_v3 = vld [vmem:[#allocation54_spill] sm:$0xff] }
0x149f   :  { %8714 = vmatprep.subr.bf16.mxu0 %v14407_v16  ;;  %8778 = vmatprep.subr.bf16.mxu1 %v14408_v37  ;;  %v14418_v16 = vld [vmem:[#allocation55_spill] sm:$0xff]  ;;  %v14419_v37 = vld [vmem:[#allocation56_spill] sm:$0xff] }
0x14a2   :  { %8716 = vmatpush1.bf16.msra.mxu0 %v14409_v36  ;;  %8780 = vmatpush1.bf16.msra.mxu1 %v14410_v40  ;;  %v14420_v36 = vld [vmem:[#allocation57_spill] sm:$0xff]  ;;  %v14421_v40 = vld [vmem:[#allocation58_spill] sm:$0xff] }
0x14a3   :  { %8718 = vmatprep.subr.bf16.mxu0 %v14411_v46  ;;  %8782 = vmatprep.subr.bf16.mxu1 %v14412_v18  ;;  %v14422_v46 = vld [vmem:[#allocation59_spill] sm:$0xff]  ;;  %v14423_v18 = vld [vmem:[#allocation60_spill] sm:$0xff] }
0x14a6   :  { %8720 = vmatpush1.bf16.msra.mxu0 %v14413_v23  ;;  %8784 = vmatpush1.bf16.msra.mxu1 %v14414_v9  ;;  %v14424_v23 = vld [vmem:[#allocation61_spill] sm:$0xff]  ;;  %v14425_v9 = vld [vmem:[#allocation62_spill] sm:$0xff] }
0x14a7   :  { %8722 = vmatprep.subr.bf16.mxu0 %v14415_v8  ;;  %8786 = vmatprep.subr.bf16.mxu1 %v14416_v26  ;;  %v14426_v8 = vld [vmem:[#allocation63_spill] sm:$0xff]  ;;  %v14427_v26 = vld [vmem:[#allocation64_spill] sm:$0xff] }
0x14aa   :  { %8724 = vmatpush1.bf16.msra.mxu0 %v14417_v3  ;;  %8788 = vmatpush1.bf16.msra.mxu1 %v14418_v16  ;;  %v14428_v3 = vld [vmem:[#allocation65_spill] sm:$0xff]  ;;  %v14429_v16 = vld [vmem:[#allocation66_spill] sm:$0xff] }
0x14ab   :  { %8726 = vmatprep.subr.bf16.mxu0 %v14419_v37  ;;  %8790 = vmatprep.subr.bf16.mxu1 %v14420_v36  ;;  %v14430_v37 = vld [vmem:[#allocation67_spill] sm:$0xff]  ;;  %v14431_v36 = vld [vmem:[#allocation68_spill] sm:$0xff] }
0x14ae   :  { %8728 = vmatpush1.bf16.msra.mxu0 %v14421_v40  ;;  %8792 = vmatpush1.bf16.msra.mxu1 %v14422_v46  ;;  %v14432_v40 = vld [vmem:[#allocation69_spill] sm:$0xff]  ;;  %v14433_v46 = vld [vmem:[#allocation70_spill] sm:$0xff] }
0x14af   :  { %8730 = vmatprep.subr.bf16.mxu0 %v14423_v18  ;;  %8794 = vmatprep.subr.bf16.mxu1 %v14424_v23  ;;  %v14434_v18 = vld [vmem:[#allocation71_spill] sm:$0xff]  ;;  %v14435_v23 = vld [vmem:[#allocation72_spill] sm:$0xff] }
0x14b2   :  { %8732 = vmatpush1.bf16.msra.mxu0 %v14425_v9  ;;  %8796 = vmatpush1.bf16.msra.mxu1 %v14426_v8  ;;  %v14436_v9 = vld [vmem:[#allocation73_spill] sm:$0xff]  ;;  %v14437_v8 = vld [vmem:[#allocation74_spill] sm:$0xff] }
0x14b3   :  { %8734 = vmatprep.subr.bf16.mxu0 %v14427_v26  ;;  %8798 = vmatprep.subr.bf16.mxu1 %v14428_v3  ;;  %v14438_v26 = vld [vmem:[#allocation75_spill] sm:$0xff]  ;;  %v14439_v3 = vld [vmem:[#allocation76_spill] sm:$0xff] }
0x14b6   :  { %8736 = vmatpush1.bf16.msra.mxu0 %v14429_v16  ;;  %8800 = vmatpush1.bf16.msra.mxu1 %v14430_v37  ;;  %v14440_v16 = vld [vmem:[#allocation77_spill] sm:$0xff]  ;;  %v14441_v37 = vld [vmem:[#allocation78_spill] sm:$0xff] }
0x14b7   :  { %8738 = vmatprep.subr.bf16.mxu0 %v14431_v36  ;;  %8802 = vmatprep.subr.bf16.mxu1 %v14432_v40  ;;  %v14442_v36 = vld [vmem:[#allocation79_spill] sm:$0xff]  ;;  %v14443_v40 = vld [vmem:[#allocation80_spill] sm:$0xff] }
0x14ba   :  { %8740 = vmatpush1.bf16.msra.mxu0 %v14433_v46  ;;  %8804 = vmatpush1.bf16.msra.mxu1 %v14434_v18  ;;  %v14444_v46 = vld [vmem:[#allocation81_spill] sm:$0xff]  ;;  %v14445_v18 = vld [vmem:[#allocation82_spill] sm:$0xff] }
0x14bb   :  { %8742 = vmatprep.subr.bf16.mxu0 %v14435_v23  ;;  %8806 = vmatprep.subr.bf16.mxu1 %v14436_v9  ;;  %v14446_v23 = vld [vmem:[#allocation83_spill] sm:$0xff]  ;;  %v14447_v9 = vld [vmem:[#allocation84_spill] sm:$0xff] }
0x14be   :  { %8744 = vmatpush1.bf16.msra.mxu0 %v14437_v8  ;;  %8808 = vmatpush1.bf16.msra.mxu1 %v14438_v26  ;;  %v14448_v8 = vld [vmem:[#allocation85_spill] sm:$0xff]  ;;  %v14449_v26 = vld [vmem:[#allocation86_spill] sm:$0xff] }
0x14bf   :  { %8746 = vmatprep.subr.bf16.mxu0 %v14439_v3  ;;  %8810 = vmatprep.subr.bf16.mxu1 %v14440_v16  ;;  %v14450_v3 = vld [vmem:[#allocation87_spill] sm:$0xff]  ;;  %v14451_v16 = vld [vmem:[#allocation88_spill] sm:$0xff] }
0x14c2   :  { %8748 = vmatpush1.bf16.msra.mxu0 %v14441_v37  ;;  %8812 = vmatpush1.bf16.msra.mxu1 %v14442_v36  ;;  %v14452_v37 = vld [vmem:[#allocation89_spill] sm:$0xff]  ;;  %v14453_v36 = vld [vmem:[#allocation90_spill] sm:$0xff] }
0x14c3   :  { %8750 = vmatprep.subr.bf16.mxu0 %v14443_v40  ;;  %8814 = vmatprep.subr.bf16.mxu1 %v14444_v46  ;;  %v14454_v40 = vld [vmem:[#allocation91_spill] sm:$0xff] }
0x14c4   :  { %v14455_v46 = vld [vmem:[#allocation3_spill] sm:$0xff] }
0x14c6   :  { %8752 = vmatpush1.bf16.msra.mxu0 %v14445_v18  ;;  %8816 = vmatpush1.bf16.msra.mxu1 %v14446_v23  ;;  %v14456_v18 = vld [vmem:[#allocation4_spill] sm:$0xff] }
0x14c7   :  { %8754 = vmatprep.subr.bf16.mxu0 %v14447_v9  ;;  %8818 = vmatprep.subr.bf16.mxu1 %v14448_v8 }
0x14ca   :  { %8756 = vmatpush1.bf16.msra.mxu0 %v14449_v26  ;;  %8820 = vmatpush1.bf16.msra.mxu1 %v14450_v3  ;;  %v14457_v3 = vld [vmem:[#allocation93_spill] sm:$0xff] }
0x14cb   :  { %8758 = vmatprep.subr.bf16.mxu0 %v14451_v16  ;;  %8822 = vmatprep.subr.bf16.mxu1 %v14452_v37 }
0x14ce   :  { %8760 = vmatpush1.bf16.msra.mxu0 %v14453_v36  ;;  %8824 = vmatpush1.bf16.msra.mxu1 %v14454_v40 }
0x14cf   :  { %8826 = vmatprep.subr.bf16.mxu0 %v14455_v46  ;;  %8890 = vmatprep.subr.bf16.mxu1 %v14456_v18 }
0x1563   :  { %v4365_v23 = vpop.f32.mrb[40].mxu0  ;;  %v4436_v9 = vpop.f32.mrb[68].mxu1 }
0x1564   :  { %v4366_v8 = vadd.f32 %v4365_v23, %v14274_v17  ;;  %v4367_v24 = vpop.f32.mrb[41].mxu0  ;;  %v4438_v26 = vpop.f32.mrb[69].mxu1  ;;  %v4437_v18 = vadd.f32 %v4436_v9, %v12789_v44  ;;  %v14465_v9 = vld [vmem:[#allocation12_spill] sm:$0xff] }
0x1565   :  { %v4368_v16 = vadd.f32 %v4367_v24, %v14457_v3  ;;  %v4439_v46 = vadd.f32 %v4438_v26, %v12786_v15  ;;  %v14466_v26 = vld [vmem:[#allocation13_spill] sm:$0xff] }
0x1566   :  { %v6096_v31 = vmul.f32 -1.442695, %v4366_v8 }
0x1567   :  { %v6097_v60 = vmul.f32 -1.442695, %v4368_v16 }
0x1568   :  { %10108 = vpow2.f32 %v6096_v31 }
0x1569   :  { %10110 = vpow2.f32 %v6097_v60  ;;  %v14462_v60 = vld [vmem:[#allocation9_spill] sm:$0xff] }
0x1572   :  { %v10109_v37 = vpop.eup %10108 }
0x1573   :  { %v4444_v57 = vadd.f32 1.0, %v10109_v37  ;;  %v10111_v40 = vpop.eup %10110  ;;  %v14467_v37 = vld [vmem:[#allocation14_spill] sm:$0xff] }
0x1574   :  { %v4450_v34 = vadd.f32 1.0, %v10111_v40  ;;  %v14469_v40 = vld [vmem:[#allocation16_spill] sm:$0xff] }
0x1575   :  { %10112 = vrcp.f32 %v4444_v57  ;;  %v14461_v57 = vld [vmem:[#allocation8_spill] sm:$0xff] }
0x157f   :  { %v10113_v36 = vpop.eup %10112 }
0x1580   :  { %v4453_v21 = vmul.f32 %v10113_v36, %v4439_v46  ;;  %v14463_v46 = vld [vmem:[#allocation10_spill] sm:$0xff]  ;;  %v14468_v36 = vld [vmem:[#allocation15_spill] sm:$0xff] }
0x1582   :  { %v4454_v23 = vadd.f32 %v4453_v21, %v4437_v18  ;;  %v14460_v21 = vld [vmem:[#allocation7_spill] sm:$0xff] }
0x1583   :  { %v14464_v18 = vld [vmem:[#allocation11_spill] sm:$0xff] }
0x1584   :  { %10114 = vtanh.f32 %v4454_v23  ;;  %v14470_v23 = vld [vmem:[#allocation17_spill] sm:$0xff] }
0x1585   :  { %10116 = vrcp.f32 %v4450_v34  ;;  %v14459_v34 = vld [vmem:[#allocation6_spill] sm:$0xff] }
0x158e   :  { %v10115_v8 = vpop.eup %10114 }
0x158f   :  { %v4456_v31 = vsub.f32 %v13118_v63, %v10115_v8  ;;  %v10117_v24 = vpop.eup %10116  ;;  %v14458_v63 = vld [vmem:[#allocation5_spill] sm:$0xff] }
0x1591   :  { %v4457_v16 = vmul.f32 %v10117_v24, %v4456_v31  ;;  %v14472_v31 = vld [vmem:[#allocation19_spill] sm:$0xff]  ;;  %v14473_v24 = vld [vmem:[#allocation20_spill] sm:$0xff] }
0x1593   :  { %v13272_v3 = vadd.f32 %v10115_v8, %v4457_v16  ;;  %v14471_v8 = vld [vmem:[#allocation18_spill] sm:$0xff]  ;;  %v14474_v16 = vld [vmem:[#allocation21_spill] sm:$0xff] }
0x1595   :  { %4524 = vmatmul.mubr.f32.vlgmr.msra.gmra.mrb[42].mxu0 %v13272_v3  ;;  %4595 = vmatmul.mubr.f32.vlgmr.msra.gmra.mrb[70].mxu1 %v13272_v3 }
0x1596   :  { %4683 = vmatprep.mubr.f32.mxu0 %v13272_v3  ;;  %4754 = vmatprep.mubr.f32.mxu1 %v13272_v3 }
0x1597   :  { %8828 = vmatpush1.bf16.msra.mxu0 %v11642_v56  ;;  %8892 = vmatpush1.bf16.msra.mxu1 %v11644_v58 }
0x1598   :  { %8830 = vmatprep.subr.bf16.mxu0 %v11652_v5  ;;  %8894 = vmatprep.subr.bf16.mxu1 %v11654_v33 }
0x159b   :  { %8832 = vmatpush1.bf16.msra.mxu0 %v11680_v30  ;;  %8896 = vmatpush1.bf16.msra.mxu1 %v11682_v32 }
0x159c   :  { %8834 = vmatprep.subr.bf16.mxu0 %v11692_v52  ;;  %8898 = vmatprep.subr.bf16.mxu1 %v11694_v45 }
0x159f   :  { %8836 = vmatpush1.bf16.msra.mxu0 %v11716_v51  ;;  %8900 = vmatpush1.bf16.msra.mxu1 %v11718_v61 }
0x15a0   :  { %8838 = vmatprep.subr.bf16.mxu0 %v11725_v20  ;;  %8902 = vmatprep.subr.bf16.mxu1 %v11727_v29 }
0x15a3   :  { %8840 = vmatpush1.bf16.msra.mxu0 %v11740_v49  ;;  %8904 = vmatpush1.bf16.msra.mxu1 %v11742_v55 }
0x15a4   :  { %8842 = vmatprep.subr.bf16.mxu0 %v11757_v11  ;;  %8906 = vmatprep.subr.bf16.mxu1 %v11768_v2 }
0x15a7   :  { %8844 = vmatpush1.bf16.msra.mxu0 %v11770_v43  ;;  %8908 = vmatpush1.bf16.msra.mxu1 %v11779_v0 }
0x15a8   :  { %8846 = vmatprep.subr.bf16.mxu0 %v11793_v22  ;;  %8910 = vmatprep.subr.bf16.mxu1 %v11804_v25 }
0x15ab   :  { %8848 = vmatpush1.bf16.msra.mxu0 %v11806_v10  ;;  %8912 = vmatpush1.bf16.msra.mxu1 %v11815_v59 }
0x15ac   :  { %8850 = vmatprep.subr.bf16.mxu0 %v11829_v50  ;;  %8914 = vmatprep.subr.bf16.mxu1 %v11840_v12 }
0x15af   :  { %8852 = vmatpush1.bf16.msra.mxu0 %v11842_v4  ;;  %8916 = vmatpush1.bf16.msra.mxu1 %v11851_v1 }
0x15b0   :  { %8854 = vmatprep.subr.bf16.mxu0 %v11865_v39  ;;  %8918 = vmatprep.subr.bf16.mxu1 %v11876_v54 }
0x15b3   :  { %8856 = vmatpush1.bf16.msra.mxu0 %v11878_v62  ;;  %8920 = vmatpush1.bf16.msra.mxu1 %v11887_v7 }
0x15b4   :  { %8858 = vmatprep.subr.bf16.mxu0 %v11901_v47  ;;  %8922 = vmatprep.subr.bf16.mxu1 %v11912_v27 }
0x15b7   :  { %8860 = vmatpush1.bf16.msra.mxu0 %v11914_v48  ;;  %8924 = vmatpush1.bf16.msra.mxu1 %v11923_v42 }
0x15b8   :  { %8862 = vmatprep.subr.bf16.mxu0 %v11937_v53  ;;  %8926 = vmatprep.subr.bf16.mxu1 %v11948_v35 }
0x15bb   :  { %8864 = vmatpush1.bf16.msra.mxu0 %v11950_v6  ;;  %8928 = vmatpush1.bf16.msra.mxu1 %v11959_v14 }
0x15bc   :  { %8866 = vmatprep.subr.bf16.mxu0 %v14458_v63  ;;  %8930 = vmatprep.subr.bf16.mxu1 %v14459_v34 }
0x15bf   :  { %8868 = vmatpush1.bf16.msra.mxu0 %v14460_v21  ;;  %8932 = vmatpush1.bf16.msra.mxu1 %v14461_v57 }
0x15c0   :  { %8870 = vmatprep.subr.bf16.mxu0 %v14462_v60  ;;  %8934 = vmatprep.subr.bf16.mxu1 %v14463_v46 }
0x15c3   :  { %8872 = vmatpush1.bf16.msra.mxu0 %v14464_v18  ;;  %8936 = vmatpush1.bf16.msra.mxu1 %v14465_v9  ;;  %v14475_v18 = vld [vmem:[#allocation22_spill] sm:$0xff]  ;;  %v14476_v9 = vld [vmem:[#allocation23_spill] sm:$0xff] }
0x15c4   :  { %8874 = vmatprep.subr.bf16.mxu0 %v14466_v26  ;;  %8938 = vmatprep.subr.bf16.mxu1 %v14467_v37  ;;  %v14477_v26 = vld [vmem:[#allocation24_spill] sm:$0xff]  ;;  %v14478_v37 = vld [vmem:[#allocation25_spill] sm:$0xff] }
0x15c7   :  { %8876 = vmatpush1.bf16.msra.mxu0 %v14468_v36  ;;  %8940 = vmatpush1.bf16.msra.mxu1 %v14469_v40  ;;  %v14479_v36 = vld [vmem:[#allocation26_spill] sm:$0xff]  ;;  %v14480_v40 = vld [vmem:[#allocation27_spill] sm:$0xff] }
0x15c8   :  { %8878 = vmatprep.subr.bf16.mxu0 %v14470_v23  ;;  %8942 = vmatprep.subr.bf16.mxu1 %v14471_v8  ;;  %v14481_v23 = vld [vmem:[#allocation28_spill] sm:$0xff]  ;;  %v14482_v8 = vld [vmem:[#allocation29_spill] sm:$0xff] }
0x15cb   :  { %8880 = vmatpush1.bf16.msra.mxu0 %v14472_v31  ;;  %8944 = vmatpush1.bf16.msra.mxu1 %v14473_v24  ;;  %v14483_v31 = vld [vmem:[#allocation30_spill] sm:$0xff] }
0x15cc   :  { %8882 = vmatprep.subr.bf16.mxu0 %v14474_v16  ;;  %8946 = vmatprep.subr.bf16.mxu1 %v14475_v18 }
0x15cf   :  { %8884 = vmatpush1.bf16.msra.mxu0 %v14476_v9  ;;  %8948 = vmatpush1.bf16.msra.mxu1 %v14477_v26  ;;  %v14484_v26 = vld [vmem:[#allocation95_spill] sm:$0xff] }
0x15d0   :  { %8886 = vmatprep.subr.bf16.mxu0 %v14478_v37  ;;  %8950 = vmatprep.subr.bf16.mxu1 %v14479_v36 }
0x15d3   :  { %8888 = vmatpush1.bf16.msra.mxu0 %v14480_v40  ;;  %8952 = vmatpush1.bf16.msra.mxu1 %v14481_v23 }
0x15d4   :  { %8954 = vmatprep.subr.bf16.mxu0 %v14482_v8  ;;  %9018 = vmatprep.subr.bf16.mxu1 %v14483_v31 }
0x1668   :  { %v4525_v24 = vpop.f32.mrb[42].mxu0  ;;  %v4596_v16 = vpop.f32.mrb[70].mxu1 }
0x1669   :  { %v4526_v18 = vadd.f32 %v4525_v24, %v14302_v28  ;;  %v4527_v46 = vpop.f32.mrb[43].mxu0  ;;  %v4598_v9 = vpop.f32.mrb[71].mxu1  ;;  %v4597_v31 = vadd.f32 %v4596_v16, %v12880_v19  ;;  %v14496_v16 = vld [vmem:[#allocation42_spill] sm:$0xff] }
0x166a   :  { %v4528_v37 = vadd.f32 %v4527_v46, %v14484_v26  ;;  %v4599_v8 = vadd.f32 %v4598_v9, %v12877_v13  ;;  %v14490_v9 = vld [vmem:[#allocation36_spill] sm:$0xff] }
0x166b   :  { %v6098_v60 = vmul.f32 -1.442695, %v4526_v18 }
0x166c   :  { %v6099_v57 = vmul.f32 -1.442695, %v4528_v37 }
0x166d   :  { %10118 = vpow2.f32 %v6098_v60 }
0x166e   :  { %10120 = vpow2.f32 %v6099_v57  ;;  %v14489_v57 = vld [vmem:[#allocation35_spill] sm:$0xff] }
0x1677   :  { %v10119_v36 = vpop.eup %10118 }
0x1678   :  { %v4604_v21 = vadd.f32 1.0, %v10119_v36  ;;  %v10121_v23 = vpop.eup %10120  ;;  %v14491_v36 = vld [vmem:[#allocation37_spill] sm:$0xff] }
0x1679   :  { %v4610_v63 = vadd.f32 1.0, %v10121_v23  ;;  %v14493_v23 = vld [vmem:[#allocation39_spill] sm:$0xff] }
0x167a   :  { %10122 = vrcp.f32 %v4604_v21  ;;  %v14488_v21 = vld [vmem:[#allocation34_spill] sm:$0xff] }
0x1684   :  { %v10123_v40 = vpop.eup %10122 }
0x1685   :  { %v4613_v34 = vmul.f32 %v10123_v40, %v4599_v8  ;;  %v14492_v40 = vld [vmem:[#allocation38_spill] sm:$0xff]  ;;  %v14494_v8 = vld [vmem:[#allocation40_spill] sm:$0xff] }
0x1687   :  { %v4614_v24 = vadd.f32 %v4613_v34, %v4597_v31  ;;  %v14487_v34 = vld [vmem:[#allocation33_spill] sm:$0xff] }
0x1688   :  { %v14495_v31 = vld [vmem:[#allocation41_spill] sm:$0xff] }
0x1689   :  { %10124 = vtanh.f32 %v4614_v24  ;;  %v14497_v24 = vld [vmem:[#allocation43_spill] sm:$0xff] }
0x168a   :  { %10126 = vrcp.f32 %v4610_v63  ;;  %v14486_v63 = vld [vmem:[#allocation32_spill] sm:$0xff] }
0x1693   :  { %v10125_v18 = vpop.eup %10124 }
0x1694   :  { %v4616_v60 = vsub.f32 %v13193_v38, %v10125_v18  ;;  %v10127_v46 = vpop.eup %10126  ;;  %v14485_v38 = vld [vmem:[#allocation31_spill] sm:$0xff] }
0x1696   :  { %v4617_v37 = vmul.f32 %v10127_v46, %v4616_v60  ;;  %v14499_v60 = vld [vmem:[#allocation45_spill] sm:$0xff]  ;;  %v14500_v46 = vld [vmem:[#allocation46_spill] sm:$0xff] }
0x1698   :  { %v13347_v26 = vadd.f32 %v10125_v18, %v4617_v37  ;;  %v14498_v18 = vld [vmem:[#allocation44_spill] sm:$0xff]  ;;  %v14501_v37 = vld [vmem:[#allocation47_spill] sm:$0xff] }
0x169a   :  { %5902 = vst [vmem:[%s13905_s11 + $0x18] sm:$0xff] %v13347_v26  ;;  %4684 = vmatmul.mubr.f32.vlgmr.msra.gmra.mrb[44].mxu0 %v13347_v26  ;;  %4755 = vmatmul.mubr.f32.vlgmr.msra.gmra.mrb[72].mxu1 %v13347_v26 }
0x169b   :  { %4843 = vmatprep.mubr.f32.mxu0 %v13347_v26  ;;  %4914 = vmatprep.mubr.f32.mxu1 %v13347_v26 }
0x169c   :  { %8956 = vmatpush1.bf16.msra.mxu0 %v12232_v41  ;;  %9020 = vmatpush1.bf16.msra.mxu1 %v14485_v38 }
0x169d   :  { %8958 = vmatprep.subr.bf16.mxu0 %v14486_v63  ;;  %9022 = vmatprep.subr.bf16.mxu1 %v14487_v34 }
0x16a0   :  { %8960 = vmatpush1.bf16.msra.mxu0 %v14488_v21  ;;  %9024 = vmatpush1.bf16.msra.mxu1 %v14489_v57 }
0x16a1   :  { %8962 = vmatprep.subr.bf16.mxu0 %v14490_v9  ;;  %9026 = vmatprep.subr.bf16.mxu1 %v14491_v36  ;;  %v14502_v36 = vld [vmem:[#allocation48_spill] sm:$0xff] }
0x16a4   :  { %8964 = vmatpush1.bf16.msra.mxu0 %v14492_v40  ;;  %9028 = vmatpush1.bf16.msra.mxu1 %v14493_v23  ;;  %v14503_v40 = vld [vmem:[#allocation49_spill] sm:$0xff]  ;;  %v14504_v23 = vld [vmem:[#allocation50_spill] sm:$0xff] }
0x16a5   :  { %8966 = vmatprep.subr.bf16.mxu0 %v14494_v8  ;;  %9030 = vmatprep.subr.bf16.mxu1 %v14495_v31  ;;  %v14505_v8 = vld [vmem:[#allocation51_spill] sm:$0xff]  ;;  %v14506_v31 = vld [vmem:[#allocation52_spill] sm:$0xff] }
0x16a8   :  { %8968 = vmatpush1.bf16.msra.mxu0 %v14496_v16  ;;  %9032 = vmatpush1.bf16.msra.mxu1 %v14497_v24  ;;  %v14507_v16 = vld [vmem:[#allocation53_spill] sm:$0xff]  ;;  %v14508_v24 = vld [vmem:[#allocation54_spill] sm:$0xff] }
0x16a9   :  { %8970 = vmatprep.subr.bf16.mxu0 %v14498_v18  ;;  %9034 = vmatprep.subr.bf16.mxu1 %v14499_v60  ;;  %v14509_v18 = vld [vmem:[#allocation55_spill] sm:$0xff]  ;;  %v14510_v60 = vld [vmem:[#allocation56_spill] sm:$0xff] }
0x16ac   :  { %8972 = vmatpush1.bf16.msra.mxu0 %v14500_v46  ;;  %9036 = vmatpush1.bf16.msra.mxu1 %v14501_v37  ;;  %v14511_v46 = vld [vmem:[#allocation57_spill] sm:$0xff]  ;;  %v14512_v37 = vld [vmem:[#allocation58_spill] sm:$0xff] }
0x16ad   :  { %8974 = vmatprep.subr.bf16.mxu0 %v14502_v36  ;;  %9038 = vmatprep.subr.bf16.mxu1 %v14503_v40  ;;  %v14513_v36 = vld [vmem:[#allocation59_spill] sm:$0xff]  ;;  %v14514_v40 = vld [vmem:[#allocation60_spill] sm:$0xff] }
0x16b0   :  { %8976 = vmatpush1.bf16.msra.mxu0 %v14504_v23  ;;  %9040 = vmatpush1.bf16.msra.mxu1 %v14505_v8  ;;  %v14515_v23 = vld [vmem:[#allocation61_spill] sm:$0xff]  ;;  %v14516_v8 = vld [vmem:[#allocation62_spill] sm:$0xff] }
0x16b1   :  { %8978 = vmatprep.subr.bf16.mxu0 %v14506_v31  ;;  %9042 = vmatprep.subr.bf16.mxu1 %v14507_v16  ;;  %v14517_v31 = vld [vmem:[#allocation63_spill] sm:$0xff]  ;;  %v14518_v16 = vld [vmem:[#allocation64_spill] sm:$0xff] }
0x16b4   :  { %8980 = vmatpush1.bf16.msra.mxu0 %v14508_v24  ;;  %9044 = vmatpush1.bf16.msra.mxu1 %v14509_v18  ;;  %v14519_v24 = vld [vmem:[#allocation65_spill] sm:$0xff]  ;;  %v14520_v18 = vld [vmem:[#allocation66_spill] sm:$0xff] }
0x16b5   :  { %8982 = vmatprep.subr.bf16.mxu0 %v14510_v60  ;;  %9046 = vmatprep.subr.bf16.mxu1 %v14511_v46  ;;  %v14521_v60 = vld [vmem:[#allocation67_spill] sm:$0xff]  ;;  %v14522_v46 = vld [vmem:[#allocation68_spill] sm:$0xff] }
0x16b8   :  { %8984 = vmatpush1.bf16.msra.mxu0 %v14512_v37  ;;  %9048 = vmatpush1.bf16.msra.mxu1 %v14513_v36  ;;  %v14523_v37 = vld [vmem:[#allocation69_spill] sm:$0xff]  ;;  %v14524_v36 = vld [vmem:[#allocation70_spill] sm:$0xff] }
0x16b9   :  { %8986 = vmatprep.subr.bf16.mxu0 %v14514_v40  ;;  %9050 = vmatprep.subr.bf16.mxu1 %v14515_v23  ;;  %v14525_v40 = vld [vmem:[#allocation71_spill] sm:$0xff]  ;;  %v14526_v23 = vld [vmem:[#allocation72_spill] sm:$0xff] }
0x16bc   :  { %8988 = vmatpush1.bf16.msra.mxu0 %v14516_v8  ;;  %9052 = vmatpush1.bf16.msra.mxu1 %v14517_v31  ;;  %v14527_v8 = vld [vmem:[#allocation73_spill] sm:$0xff]  ;;  %v14528_v31 = vld [vmem:[#allocation74_spill] sm:$0xff] }
0x16bd   :  { %8990 = vmatprep.subr.bf16.mxu0 %v14518_v16  ;;  %9054 = vmatprep.subr.bf16.mxu1 %v14519_v24  ;;  %v14529_v16 = vld [vmem:[#allocation75_spill] sm:$0xff]  ;;  %v14530_v24 = vld [vmem:[#allocation76_spill] sm:$0xff] }
0x16c0   :  { %8992 = vmatpush1.bf16.msra.mxu0 %v14520_v18  ;;  %9056 = vmatpush1.bf16.msra.mxu1 %v14521_v60  ;;  %v14531_v18 = vld [vmem:[#allocation77_spill] sm:$0xff]  ;;  %v14532_v60 = vld [vmem:[#allocation78_spill] sm:$0xff] }
0x16c1   :  { %8994 = vmatprep.subr.bf16.mxu0 %v14522_v46  ;;  %9058 = vmatprep.subr.bf16.mxu1 %v14523_v37  ;;  %v14533_v46 = vld [vmem:[#allocation79_spill] sm:$0xff]  ;;  %v14534_v37 = vld [vmem:[#allocation80_spill] sm:$0xff] }
0x16c4   :  { %8996 = vmatpush1.bf16.msra.mxu0 %v14524_v36  ;;  %9060 = vmatpush1.bf16.msra.mxu1 %v14525_v40  ;;  %v14535_v36 = vld [vmem:[#allocation81_spill] sm:$0xff]  ;;  %v14536_v40 = vld [vmem:[#allocation82_spill] sm:$0xff] }
0x16c5   :  { %8998 = vmatprep.subr.bf16.mxu0 %v14526_v23  ;;  %9062 = vmatprep.subr.bf16.mxu1 %v14527_v8  ;;  %v14537_v23 = vld [vmem:[#allocation83_spill] sm:$0xff]  ;;  %v14538_v8 = vld [vmem:[#allocation84_spill] sm:$0xff] }
0x16c8   :  { %9000 = vmatpush1.bf16.msra.mxu0 %v14528_v31  ;;  %9064 = vmatpush1.bf16.msra.mxu1 %v14529_v16  ;;  %v14539_v31 = vld [vmem:[#allocation85_spill] sm:$0xff]  ;;  %v14540_v16 = vld [vmem:[#allocation86_spill] sm:$0xff] }
0x16c9   :  { %9002 = vmatprep.subr.bf16.mxu0 %v14530_v24  ;;  %9066 = vmatprep.subr.bf16.mxu1 %v14531_v18  ;;  %v14541_v24 = vld [vmem:[#allocation87_spill] sm:$0xff]  ;;  %v14542_v18 = vld [vmem:[#allocation88_spill] sm:$0xff] }
0x16cc   :  { %9004 = vmatpush1.bf16.msra.mxu0 %v14532_v60  ;;  %9068 = vmatpush1.bf16.msra.mxu1 %v14533_v46  ;;  %v14543_v60 = vld [vmem:[#allocation89_spill] sm:$0xff]  ;;  %v14544_v46 = vld [vmem:[#allocation90_spill] sm:$0xff] }
0x16cd   :  { %9006 = vmatprep.subr.bf16.mxu0 %v14534_v37  ;;  %9070 = vmatprep.subr.bf16.mxu1 %v14535_v36  ;;  %v14545_v37 = vld [vmem:[#allocation91_spill] sm:$0xff] }
0x16ce   :  { %v14546_v36 = vld [vmem:[#allocation3_spill] sm:$0xff] }
0x16d0   :  { %9008 = vmatpush1.bf16.msra.mxu0 %v14536_v40  ;;  %9072 = vmatpush1.bf16.msra.mxu1 %v14537_v23  ;;  %v14547_v40 = vld [vmem:[#allocation4_spill] sm:$0xff] }
0x16d1   :  { %9010 = vmatprep.subr.bf16.mxu0 %v14538_v8  ;;  %9074 = vmatprep.subr.bf16.mxu1 %v14539_v31 }
0x16d4   :  { %9012 = vmatpush1.bf16.msra.mxu0 %v14540_v16  ;;  %9076 = vmatpush1.bf16.msra.mxu1 %v14541_v24  ;;  %v14548_v24 = vld [vmem:[#allocation93_spill] sm:$0xff] }
0x16d5   :  { %9014 = vmatprep.subr.bf16.mxu0 %v14542_v18  ;;  %9078 = vmatprep.subr.bf16.mxu1 %v14543_v60 }
0x16d8   :  { %9016 = vmatpush1.bf16.msra.mxu0 %v14544_v46  ;;  %9080 = vmatpush1.bf16.msra.mxu1 %v14545_v37 }
0x16d9   :  { %9082 = vmatprep.subr.bf16.mxu0 %v14546_v36  ;;  %9146 = vmatprep.subr.bf16.mxu1 %v14547_v40 }
0x176d   :  { %v4685_v23 = vpop.f32.mrb[44].mxu0  ;;  %v4756_v8 = vpop.f32.mrb[72].mxu1 }
0x176e   :  { %v4686_v31 = vadd.f32 %v4685_v23, %v14274_v17  ;;  %v4687_v9 = vpop.f32.mrb[45].mxu0  ;;  %v4758_v16 = vpop.f32.mrb[73].mxu1  ;;  %v4757_v40 = vadd.f32 %v4756_v8, %v12789_v44  ;;  %v14556_v8 = vld [vmem:[#allocation12_spill] sm:$0xff] }
0x176f   :  { %v4688_v18 = vadd.f32 %v4687_v9, %v14548_v24  ;;  %v4759_v36 = vadd.f32 %v4758_v16, %v12786_v15  ;;  %v14557_v16 = vld [vmem:[#allocation13_spill] sm:$0xff] }
0x1770   :  { %v6100_v57 = vmul.f32 -1.442695, %v4686_v31 }
0x1771   :  { %v6101_v21 = vmul.f32 -1.442695, %v4688_v18 }
0x1772   :  { %10128 = vpow2.f32 %v6100_v57 }
0x1773   :  { %10130 = vpow2.f32 %v6101_v21  ;;  %v14553_v21 = vld [vmem:[#allocation9_spill] sm:$0xff] }
0x177c   :  { %v10129_v60 = vpop.eup %10128 }
0x177d   :  { %v4764_v34 = vadd.f32 1.0, %v10129_v60  ;;  %v10131_v37 = vpop.eup %10130  ;;  %v14558_v60 = vld [vmem:[#allocation14_spill] sm:$0xff] }
0x177e   :  { %v4770_v38 = vadd.f32 1.0, %v10131_v37  ;;  %v14560_v37 = vld [vmem:[#allocation16_spill] sm:$0xff] }
0x177f   :  { %10132 = vrcp.f32 %v4764_v34  ;;  %v14552_v34 = vld [vmem:[#allocation8_spill] sm:$0xff] }
0x1789   :  { %v10133_v46 = vpop.eup %10132 }
0x178a   :  { %v4773_v63 = vmul.f32 %v10133_v46, %v4759_v36  ;;  %v14554_v36 = vld [vmem:[#allocation10_spill] sm:$0xff]  ;;  %v14559_v46 = vld [vmem:[#allocation15_spill] sm:$0xff] }
0x178c   :  { %v4774_v23 = vadd.f32 %v4773_v63, %v4757_v40  ;;  %v14551_v63 = vld [vmem:[#allocation7_spill] sm:$0xff] }
0x178d   :  { %v14555_v40 = vld [vmem:[#allocation11_spill] sm:$0xff] }
0x178e   :  { %10134 = vtanh.f32 %v4774_v23  ;;  %v14561_v23 = vld [vmem:[#allocation17_spill] sm:$0xff] }
0x178f   :  { %10136 = vrcp.f32 %v4770_v38  ;;  %v14550_v38 = vld [vmem:[#allocation6_spill] sm:$0xff] }
0x1798   :  { %v10135_v31 = vpop.eup %10134 }
0x1799   :  { %v4776_v57 = vsub.f32 %v13272_v3, %v10135_v31  ;;  %v10137_v9 = vpop.eup %10136  ;;  %v14549_v3 = vld [vmem:[#allocation5_spill] sm:$0xff] }
0x179b   :  { %v4777_v18 = vmul.f32 %v10137_v9, %v4776_v57  ;;  %v14563_v57 = vld [vmem:[#allocation19_spill] sm:$0xff]  ;;  %v14564_v9 = vld [vmem:[#allocation20_spill] sm:$0xff] }
0x179d   :  { %v13426_v24 = vadd.f32 %v10135_v31, %v4777_v18  ;;  %v14562_v31 = vld [vmem:[#allocation18_spill] sm:$0xff]  ;;  %v14565_v18 = vld [vmem:[#allocation21_spill] sm:$0xff] }
0x179f   :  { %4844 = vmatmul.mubr.f32.vlgmr.msra.gmra.mrb[46].mxu0 %v13426_v24  ;;  %4915 = vmatmul.mubr.f32.vlgmr.msra.gmra.mrb[74].mxu1 %v13426_v24 }
0x17a0   :  { %5003 = vmatprep.mubr.f32.mxu0 %v13426_v24  ;;  %5074 = vmatprep.mubr.f32.mxu1 %v13426_v24 }
0x17a1   :  { %9084 = vmatpush1.bf16.msra.mxu0 %v11642_v56  ;;  %9148 = vmatpush1.bf16.msra.mxu1 %v11644_v58 }
0x17a2   :  { %9086 = vmatprep.subr.bf16.mxu0 %v11652_v5  ;;  %9150 = vmatprep.subr.bf16.mxu1 %v11654_v33 }
0x17a5   :  { %9088 = vmatpush1.bf16.msra.mxu0 %v11680_v30  ;;  %9152 = vmatpush1.bf16.msra.mxu1 %v11682_v32 }
0x17a6   :  { %9090 = vmatprep.subr.bf16.mxu0 %v11692_v52  ;;  %9154 = vmatprep.subr.bf16.mxu1 %v11694_v45 }
0x17a9   :  { %9092 = vmatpush1.bf16.msra.mxu0 %v11716_v51  ;;  %9156 = vmatpush1.bf16.msra.mxu1 %v11718_v61 }
0x17aa   :  { %9094 = vmatprep.subr.bf16.mxu0 %v11725_v20  ;;  %9158 = vmatprep.subr.bf16.mxu1 %v11727_v29 }
0x17ad   :  { %9096 = vmatpush1.bf16.msra.mxu0 %v11740_v49  ;;  %9160 = vmatpush1.bf16.msra.mxu1 %v11742_v55 }
0x17ae   :  { %9098 = vmatprep.subr.bf16.mxu0 %v11757_v11  ;;  %9162 = vmatprep.subr.bf16.mxu1 %v11768_v2 }
0x17b1   :  { %9100 = vmatpush1.bf16.msra.mxu0 %v11770_v43  ;;  %9164 = vmatpush1.bf16.msra.mxu1 %v11779_v0 }
0x17b2   :  { %9102 = vmatprep.subr.bf16.mxu0 %v11793_v22  ;;  %9166 = vmatprep.subr.bf16.mxu1 %v11804_v25 }
0x17b5   :  { %9104 = vmatpush1.bf16.msra.mxu0 %v11806_v10  ;;  %9168 = vmatpush1.bf16.msra.mxu1 %v11815_v59 }
0x17b6   :  { %9106 = vmatprep.subr.bf16.mxu0 %v11829_v50  ;;  %9170 = vmatprep.subr.bf16.mxu1 %v11840_v12 }
0x17b9   :  { %9108 = vmatpush1.bf16.msra.mxu0 %v11842_v4  ;;  %9172 = vmatpush1.bf16.msra.mxu1 %v11851_v1 }
0x17ba   :  { %9110 = vmatprep.subr.bf16.mxu0 %v11865_v39  ;;  %9174 = vmatprep.subr.bf16.mxu1 %v11876_v54 }
0x17bd   :  { %9112 = vmatpush1.bf16.msra.mxu0 %v11878_v62  ;;  %9176 = vmatpush1.bf16.msra.mxu1 %v11887_v7 }
0x17be   :  { %9114 = vmatprep.subr.bf16.mxu0 %v11901_v47  ;;  %9178 = vmatprep.subr.bf16.mxu1 %v11912_v27 }
0x17c1   :  { %9116 = vmatpush1.bf16.msra.mxu0 %v11914_v48  ;;  %9180 = vmatpush1.bf16.msra.mxu1 %v11923_v42 }
0x17c2   :  { %9118 = vmatprep.subr.bf16.mxu0 %v11937_v53  ;;  %9182 = vmatprep.subr.bf16.mxu1 %v11948_v35 }
0x17c5   :  { %9120 = vmatpush1.bf16.msra.mxu0 %v11950_v6  ;;  %9184 = vmatpush1.bf16.msra.mxu1 %v11959_v14 }
0x17c6   :  { %9122 = vmatprep.subr.bf16.mxu0 %v14549_v3  ;;  %9186 = vmatprep.subr.bf16.mxu1 %v14550_v38 }
0x17c9   :  { %9124 = vmatpush1.bf16.msra.mxu0 %v14551_v63  ;;  %9188 = vmatpush1.bf16.msra.mxu1 %v14552_v34 }
0x17ca   :  { %9126 = vmatprep.subr.bf16.mxu0 %v14553_v21  ;;  %9190 = vmatprep.subr.bf16.mxu1 %v14554_v36 }
0x17cd   :  { %9128 = vmatpush1.bf16.msra.mxu0 %v14555_v40  ;;  %9192 = vmatpush1.bf16.msra.mxu1 %v14556_v8  ;;  %v14566_v40 = vld [vmem:[#allocation22_spill] sm:$0xff]  ;;  %v14567_v8 = vld [vmem:[#allocation23_spill] sm:$0xff] }
0x17ce   :  { %9130 = vmatprep.subr.bf16.mxu0 %v14557_v16  ;;  %9194 = vmatprep.subr.bf16.mxu1 %v14558_v60  ;;  %v14568_v16 = vld [vmem:[#allocation24_spill] sm:$0xff]  ;;  %v14569_v60 = vld [vmem:[#allocation25_spill] sm:$0xff] }
0x17d1   :  { %9132 = vmatpush1.bf16.msra.mxu0 %v14559_v46  ;;  %9196 = vmatpush1.bf16.msra.mxu1 %v14560_v37  ;;  %v14570_v46 = vld [vmem:[#allocation26_spill] sm:$0xff]  ;;  %v14571_v37 = vld [vmem:[#allocation27_spill] sm:$0xff] }
0x17d2   :  { %9134 = vmatprep.subr.bf16.mxu0 %v14561_v23  ;;  %9198 = vmatprep.subr.bf16.mxu1 %v14562_v31  ;;  %v14572_v23 = vld [vmem:[#allocation28_spill] sm:$0xff]  ;;  %v14573_v31 = vld [vmem:[#allocation29_spill] sm:$0xff] }
0x17d5   :  { %9136 = vmatpush1.bf16.msra.mxu0 %v14563_v57  ;;  %9200 = vmatpush1.bf16.msra.mxu1 %v14564_v9  ;;  %v14574_v57 = vld [vmem:[#allocation30_spill] sm:$0xff] }
0x17d6   :  { %9138 = vmatprep.subr.bf16.mxu0 %v14565_v18  ;;  %9202 = vmatprep.subr.bf16.mxu1 %v14566_v40 }
0x17d9   :  { %9140 = vmatpush1.bf16.msra.mxu0 %v14567_v8  ;;  %9204 = vmatpush1.bf16.msra.mxu1 %v14568_v16  ;;  %v14575_v16 = vld [vmem:[#allocation95_spill] sm:$0xff] }
0x17da   :  { %9142 = vmatprep.subr.bf16.mxu0 %v14569_v60  ;;  %9206 = vmatprep.subr.bf16.mxu1 %v14570_v46 }
0x17dd   :  { %9144 = vmatpush1.bf16.msra.mxu0 %v14571_v37  ;;  %9208 = vmatpush1.bf16.msra.mxu1 %v14572_v23 }
0x17de   :  { %9210 = vmatprep.subr.bf16.mxu0 %v14573_v31  ;;  %9274 = vmatprep.subr.bf16.mxu1 %v14574_v57 }
0x1872   :  { %v4845_v9 = vpop.f32.mrb[46].mxu0  ;;  %v4916_v18 = vpop.f32.mrb[74].mxu1 }
0x1873   :  { %v4846_v40 = vadd.f32 %v4845_v9, %v14302_v28  ;;  %v4847_v36 = vpop.f32.mrb[47].mxu0  ;;  %v4918_v8 = vpop.f32.mrb[75].mxu1  ;;  %v4917_v57 = vadd.f32 %v4916_v18, %v12880_v19  ;;  %v14587_v18 = vld [vmem:[#allocation42_spill] sm:$0xff] }
0x1874   :  { %v4848_v60 = vadd.f32 %v4847_v36, %v14575_v16  ;;  %v4919_v31 = vadd.f32 %v4918_v8, %v12877_v13  ;;  %v14581_v8 = vld [vmem:[#allocation36_spill] sm:$0xff] }
0x1875   :  { %v6102_v21 = vmul.f32 -1.442695, %v4846_v40 }
0x1876   :  { %v6103_v34 = vmul.f32 -1.442695, %v4848_v60 }
0x1877   :  { %10138 = vpow2.f32 %v6102_v21 }
0x1878   :  { %10140 = vpow2.f32 %v6103_v34  ;;  %v14580_v34 = vld [vmem:[#allocation35_spill] sm:$0xff] }
0x1881   :  { %v10139_v46 = vpop.eup %10138 }
0x1882   :  { %v4924_v63 = vadd.f32 1.0, %v10139_v46  ;;  %v10141_v23 = vpop.eup %10140  ;;  %v14582_v46 = vld [vmem:[#allocation37_spill] sm:$0xff] }
0x1883   :  { %v4930_v3 = vadd.f32 1.0, %v10141_v23  ;;  %v14584_v23 = vld [vmem:[#allocation39_spill] sm:$0xff] }
0x1884   :  { %10142 = vrcp.f32 %v4924_v63  ;;  %v14579_v63 = vld [vmem:[#allocation34_spill] sm:$0xff] }
0x188e   :  { %v10143_v37 = vpop.eup %10142 }
0x188f   :  { %v4933_v38 = vmul.f32 %v10143_v37, %v4919_v31  ;;  %v14583_v37 = vld [vmem:[#allocation38_spill] sm:$0xff]  ;;  %v14585_v31 = vld [vmem:[#allocation40_spill] sm:$0xff] }
0x1891   :  { %v4934_v9 = vadd.f32 %v4933_v38, %v4917_v57  ;;  %v14578_v38 = vld [vmem:[#allocation33_spill] sm:$0xff] }
0x1892   :  { %v14586_v57 = vld [vmem:[#allocation41_spill] sm:$0xff] }
0x1893   :  { %10144 = vtanh.f32 %v4934_v9  ;;  %v14588_v9 = vld [vmem:[#allocation43_spill] sm:$0xff] }
0x1894   :  { %10146 = vrcp.f32 %v4930_v3  ;;  %v14577_v3 = vld [vmem:[#allocation32_spill] sm:$0xff] }
0x189d   :  { %v10145_v40 = vpop.eup %10144 }
0x189e   :  { %v4936_v21 = vsub.f32 %v13347_v26, %v10145_v40  ;;  %v10147_v36 = vpop.eup %10146  ;;  %v14576_v26 = vld [vmem:[#allocation31_spill] sm:$0xff] }
0x18a0   :  { %v4937_v60 = vmul.f32 %v10147_v36, %v4936_v21  ;;  %v14590_v21 = vld [vmem:[#allocation45_spill] sm:$0xff]  ;;  %v14591_v36 = vld [vmem:[#allocation46_spill] sm:$0xff] }
0x18a2   :  { %v13501_v16 = vadd.f32 %v10145_v40, %v4937_v60  ;;  %v14589_v40 = vld [vmem:[#allocation44_spill] sm:$0xff]  ;;  %v14592_v60 = vld [vmem:[#allocation47_spill] sm:$0xff] }
0x18a4   :  { %5903 = vst [vmem:[%s13905_s11 + $0x20] sm:$0xff] %v13501_v16  ;;  %5004 = vmatmul.mubr.f32.vlgmr.msra.gmra.mrb[48].mxu0 %v13501_v16  ;;  %5075 = vmatmul.mubr.f32.vlgmr.msra.gmra.mrb[76].mxu1 %v13501_v16 }
0x18a5   :  { %5163 = vmatprep.mubr.f32.mxu0 %v13501_v16  ;;  %5234 = vmatprep.mubr.f32.mxu1 %v13501_v16 }
0x18a6   :  { %9212 = vmatpush1.bf16.msra.mxu0 %v12232_v41  ;;  %9276 = vmatpush1.bf16.msra.mxu1 %v14576_v26 }
0x18a7   :  { %9214 = vmatprep.subr.bf16.mxu0 %v14577_v3  ;;  %9278 = vmatprep.subr.bf16.mxu1 %v14578_v38 }
0x18aa   :  { %9216 = vmatpush1.bf16.msra.mxu0 %v14579_v63  ;;  %9280 = vmatpush1.bf16.msra.mxu1 %v14580_v34 }
0x18ab   :  { %9218 = vmatprep.subr.bf16.mxu0 %v14581_v8  ;;  %9282 = vmatprep.subr.bf16.mxu1 %v14582_v46  ;;  %v14593_v46 = vld [vmem:[#allocation48_spill] sm:$0xff] }
0x18ae   :  { %9220 = vmatpush1.bf16.msra.mxu0 %v14583_v37  ;;  %9284 = vmatpush1.bf16.msra.mxu1 %v14584_v23  ;;  %v14594_v37 = vld [vmem:[#allocation49_spill] sm:$0xff]  ;;  %v14595_v23 = vld [vmem:[#allocation50_spill] sm:$0xff] }
0x18af   :  { %9222 = vmatprep.subr.bf16.mxu0 %v14585_v31  ;;  %9286 = vmatprep.subr.bf16.mxu1 %v14586_v57  ;;  %v14596_v31 = vld [vmem:[#allocation51_spill] sm:$0xff]  ;;  %v14597_v57 = vld [vmem:[#allocation52_spill] sm:$0xff] }
0x18b2   :  { %9224 = vmatpush1.bf16.msra.mxu0 %v14587_v18  ;;  %9288 = vmatpush1.bf16.msra.mxu1 %v14588_v9  ;;  %v14598_v18 = vld [vmem:[#allocation53_spill] sm:$0xff]  ;;  %v14599_v9 = vld [vmem:[#allocation54_spill] sm:$0xff] }
0x18b3   :  { %9226 = vmatprep.subr.bf16.mxu0 %v14589_v40  ;;  %9290 = vmatprep.subr.bf16.mxu1 %v14590_v21  ;;  %v14600_v40 = vld [vmem:[#allocation55_spill] sm:$0xff]  ;;  %v14601_v21 = vld [vmem:[#allocation56_spill] sm:$0xff] }
0x18b6   :  { %9228 = vmatpush1.bf16.msra.mxu0 %v14591_v36  ;;  %9292 = vmatpush1.bf16.msra.mxu1 %v14592_v60  ;;  %v14602_v36 = vld [vmem:[#allocation57_spill] sm:$0xff]  ;;  %v14603_v60 = vld [vmem:[#allocation58_spill] sm:$0xff] }
0x18b7   :  { %9230 = vmatprep.subr.bf16.mxu0 %v14593_v46  ;;  %9294 = vmatprep.subr.bf16.mxu1 %v14594_v37  ;;  %v14604_v46 = vld [vmem:[#allocation59_spill] sm:$0xff]  ;;  %v14605_v37 = vld [vmem:[#allocation60_spill] sm:$0xff] }
0x18ba   :  { %9232 = vmatpush1.bf16.msra.mxu0 %v14595_v23  ;;  %9296 = vmatpush1.bf16.msra.mxu1 %v14596_v31  ;;  %v14606_v23 = vld [vmem:[#allocation61_spill] sm:$0xff]  ;;  %v14607_v31 = vld [vmem:[#allocation62_spill] sm:$0xff] }
0x18bb   :  { %9234 = vmatprep.subr.bf16.mxu0 %v14597_v57  ;;  %9298 = vmatprep.subr.bf16.mxu1 %v14598_v18  ;;  %v14608_v57 = vld [vmem:[#allocation63_spill] sm:$0xff]  ;;  %v14609_v18 = vld [vmem:[#allocation64_spill] sm:$0xff] }
0x18be   :  { %9236 = vmatpush1.bf16.msra.mxu0 %v14599_v9  ;;  %9300 = vmatpush1.bf16.msra.mxu1 %v14600_v40  ;;  %v14610_v9 = vld [vmem:[#allocation65_spill] sm:$0xff]  ;;  %v14611_v40 = vld [vmem:[#allocation66_spill] sm:$0xff] }
0x18bf   :  { %9238 = vmatprep.subr.bf16.mxu0 %v14601_v21  ;;  %9302 = vmatprep.subr.bf16.mxu1 %v14602_v36  ;;  %v14612_v21 = vld [vmem:[#allocation67_spill] sm:$0xff]  ;;  %v14613_v36 = vld [vmem:[#allocation68_spill] sm:$0xff] }
0x18c2   :  { %9240 = vmatpush1.bf16.msra.mxu0 %v14603_v60  ;;  %9304 = vmatpush1.bf16.msra.mxu1 %v14604_v46  ;;  %v14614_v60 = vld [vmem:[#allocation69_spill] sm:$0xff]  ;;  %v14615_v46 = vld [vmem:[#allocation70_spill] sm:$0xff] }
0x18c3   :  { %9242 = vmatprep.subr.bf16.mxu0 %v14605_v37  ;;  %9306 = vmatprep.subr.bf16.mxu1 %v14606_v23  ;;  %v14616_v37 = vld [vmem:[#allocation71_spill] sm:$0xff]  ;;  %v14617_v23 = vld [vmem:[#allocation72_spill] sm:$0xff] }
0x18c6   :  { %9244 = vmatpush1.bf16.msra.mxu0 %v14607_v31  ;;  %9308 = vmatpush1.bf16.msra.mxu1 %v14608_v57  ;;  %v14618_v31 = vld [vmem:[#allocation73_spill] sm:$0xff]  ;;  %v14619_v57 = vld [vmem:[#allocation74_spill] sm:$0xff] }
0x18c7   :  { %9246 = vmatprep.subr.bf16.mxu0 %v14609_v18  ;;  %9310 = vmatprep.subr.bf16.mxu1 %v14610_v9  ;;  %v14620_v18 = vld [vmem:[#allocation75_spill] sm:$0xff]  ;;  %v14621_v9 = vld [vmem:[#allocation76_spill] sm:$0xff] }
0x18ca   :  { %9248 = vmatpush1.bf16.msra.mxu0 %v14611_v40  ;;  %9312 = vmatpush1.bf16.msra.mxu1 %v14612_v21  ;;  %v14622_v40 = vld [vmem:[#allocation77_spill] sm:$0xff]  ;;  %v14623_v21 = vld [vmem:[#allocation78_spill] sm:$0xff] }
0x18cb   :  { %9250 = vmatprep.subr.bf16.mxu0 %v14613_v36  ;;  %9314 = vmatprep.subr.bf16.mxu1 %v14614_v60  ;;  %v14624_v36 = vld [vmem:[#allocation79_spill] sm:$0xff]  ;;  %v14625_v60 = vld [vmem:[#allocation80_spill] sm:$0xff] }
0x18ce   :  { %9252 = vmatpush1.bf16.msra.mxu0 %v14615_v46  ;;  %9316 = vmatpush1.bf16.msra.mxu1 %v14616_v37  ;;  %v14626_v46 = vld [vmem:[#allocation81_spill] sm:$0xff]  ;;  %v14627_v37 = vld [vmem:[#allocation82_spill] sm:$0xff] }
0x18cf   :  { %9254 = vmatprep.subr.bf16.mxu0 %v14617_v23  ;;  %9318 = vmatprep.subr.bf16.mxu1 %v14618_v31  ;;  %v14628_v23 = vld [vmem:[#allocation83_spill] sm:$0xff]  ;;  %v14629_v31 = vld [vmem:[#allocation84_spill] sm:$0xff] }
0x18d2   :  { %9256 = vmatpush1.bf16.msra.mxu0 %v14619_v57  ;;  %9320 = vmatpush1.bf16.msra.mxu1 %v14620_v18  ;;  %v14630_v57 = vld [vmem:[#allocation85_spill] sm:$0xff]  ;;  %v14631_v18 = vld [vmem:[#allocation86_spill] sm:$0xff] }
0x18d3   :  { %9258 = vmatprep.subr.bf16.mxu0 %v14621_v9  ;;  %9322 = vmatprep.subr.bf16.mxu1 %v14622_v40  ;;  %v14632_v9 = vld [vmem:[#allocation87_spill] sm:$0xff]  ;;  %v14633_v40 = vld [vmem:[#allocation88_spill] sm:$0xff] }
0x18d6   :  { %9260 = vmatpush1.bf16.msra.mxu0 %v14623_v21  ;;  %9324 = vmatpush1.bf16.msra.mxu1 %v14624_v36  ;;  %v14634_v21 = vld [vmem:[#allocation89_spill] sm:$0xff]  ;;  %v14635_v36 = vld [vmem:[#allocation90_spill] sm:$0xff] }
0x18d7   :  { %9262 = vmatprep.subr.bf16.mxu0 %v14625_v60  ;;  %9326 = vmatprep.subr.bf16.mxu1 %v14626_v46  ;;  %v14636_v60 = vld [vmem:[#allocation91_spill] sm:$0xff] }
0x18d8   :  { %v14637_v46 = vld [vmem:[#allocation3_spill] sm:$0xff] }
0x18da   :  { %9264 = vmatpush1.bf16.msra.mxu0 %v14627_v37  ;;  %9328 = vmatpush1.bf16.msra.mxu1 %v14628_v23  ;;  %v14638_v37 = vld [vmem:[#allocation4_spill] sm:$0xff] }
0x18db   :  { %9266 = vmatprep.subr.bf16.mxu0 %v14629_v31  ;;  %9330 = vmatprep.subr.bf16.mxu1 %v14630_v57 }
0x18de   :  { %9268 = vmatpush1.bf16.msra.mxu0 %v14631_v18  ;;  %9332 = vmatpush1.bf16.msra.mxu1 %v14632_v9  ;;  %v14639_v9 = vld [vmem:[#allocation93_spill] sm:$0xff] }
0x18df   :  { %9270 = vmatprep.subr.bf16.mxu0 %v14633_v40  ;;  %9334 = vmatprep.subr.bf16.mxu1 %v14634_v21 }
0x18e2   :  { %9272 = vmatpush1.bf16.msra.mxu0 %v14635_v36  ;;  %9336 = vmatpush1.bf16.msra.mxu1 %v14636_v60 }
0x18e3   :  { %9338 = vmatprep.subr.bf16.mxu0 %v14637_v46  ;;  %9402 = vmatprep.subr.bf16.mxu1 %v14638_v37 }
0x1977   :  { %v5005_v23 = vpop.f32.mrb[48].mxu0  ;;  %v5076_v31 = vpop.f32.mrb[76].mxu1 }
0x1978   :  { %v5006_v57 = vadd.f32 %v5005_v23, %v14274_v17  ;;  %v5007_v8 = vpop.f32.mrb[49].mxu0  ;;  %v5078_v18 = vpop.f32.mrb[77].mxu1  ;;  %v5077_v37 = vadd.f32 %v5076_v31, %v12789_v44  ;;  %v14647_v31 = vld [vmem:[#allocation12_spill] sm:$0xff] }
0x1979   :  { %v5008_v40 = vadd.f32 %v5007_v8, %v14639_v9  ;;  %v5079_v46 = vadd.f32 %v5078_v18, %v12786_v15  ;;  %v14648_v18 = vld [vmem:[#allocation13_spill] sm:$0xff] }
0x197a   :  { %v6104_v34 = vmul.f32 -1.442695, %v5006_v57 }
0x197b   :  { %v6105_v63 = vmul.f32 -1.442695, %v5008_v40 }
0x197c   :  { %10148 = vpow2.f32 %v6104_v34 }
0x197d   :  { %10150 = vpow2.f32 %v6105_v63  ;;  %v14644_v63 = vld [vmem:[#allocation9_spill] sm:$0xff] }
0x1986   :  { %v10149_v21 = vpop.eup %10148 }
0x1987   :  { %v5084_v38 = vadd.f32 1.0, %v10149_v21  ;;  %v10151_v60 = vpop.eup %10150  ;;  %v14649_v21 = vld [vmem:[#allocation14_spill] sm:$0xff] }
0x1988   :  { %v5090_v26 = vadd.f32 1.0, %v10151_v60  ;;  %v14651_v60 = vld [vmem:[#allocation16_spill] sm:$0xff] }
0x1989   :  { %10152 = vrcp.f32 %v5084_v38  ;;  %v14643_v38 = vld [vmem:[#allocation8_spill] sm:$0xff] }
0x1993   :  { %v10153_v36 = vpop.eup %10152 }
0x1994   :  { %v5093_v3 = vmul.f32 %v10153_v36, %v5079_v46  ;;  %v14645_v46 = vld [vmem:[#allocation10_spill] sm:$0xff]  ;;  %v14650_v36 = vld [vmem:[#allocation15_spill] sm:$0xff] }
0x1996   :  { %v5094_v23 = vadd.f32 %v5093_v3, %v5077_v37  ;;  %v14642_v3 = vld [vmem:[#allocation7_spill] sm:$0xff] }
0x1997   :  { %v14646_v37 = vld [vmem:[#allocation11_spill] sm:$0xff] }
0x1998   :  { %10154 = vtanh.f32 %v5094_v23  ;;  %v14652_v23 = vld [vmem:[#allocation17_spill] sm:$0xff] }
0x1999   :  { %10156 = vrcp.f32 %v5090_v26  ;;  %v14641_v26 = vld [vmem:[#allocation6_spill] sm:$0xff] }
0x19a2   :  { %v10155_v57 = vpop.eup %10154 }
0x19a3   :  { %v5096_v34 = vsub.f32 %v13426_v24, %v10155_v57  ;;  %v10157_v8 = vpop.eup %10156  ;;  %v14640_v24 = vld [vmem:[#allocation5_spill] sm:$0xff] }
0x19a5   :  { %v5097_v40 = vmul.f32 %v10157_v8, %v5096_v34  ;;  %v14654_v34 = vld [vmem:[#allocation19_spill] sm:$0xff]  ;;  %v14655_v8 = vld [vmem:[#allocation20_spill] sm:$0xff] }
0x19a7   :  { %v13580_v9 = vadd.f32 %v10155_v57, %v5097_v40  ;;  %v14653_v57 = vld [vmem:[#allocation18_spill] sm:$0xff]  ;;  %v14656_v40 = vld [vmem:[#allocation21_spill] sm:$0xff] }
0x19a9   :  { %5164 = vmatmul.mubr.f32.vlgmr.msra.gmra.mrb[50].mxu0 %v13580_v9  ;;  %5235 = vmatmul.mubr.f32.vlgmr.msra.gmra.mrb[78].mxu1 %v13580_v9 }
0x19aa   :  { %5323 = vmatprep.mubr.f32.mxu0 %v13580_v9  ;;  %5394 = vmatprep.mubr.f32.mxu1 %v13580_v9 }
0x19ab   :  { %9340 = vmatpush1.bf16.msra.mxu0 %v11642_v56  ;;  %9404 = vmatpush1.bf16.msra.mxu1 %v11644_v58 }
0x19ac   :  { %9342 = vmatprep.subr.bf16.mxu0 %v11652_v5  ;;  %9406 = vmatprep.subr.bf16.mxu1 %v11654_v33 }
0x19af   :  { %9344 = vmatpush1.bf16.msra.mxu0 %v11680_v30  ;;  %9408 = vmatpush1.bf16.msra.mxu1 %v11682_v32 }
0x19b0   :  { %9346 = vmatprep.subr.bf16.mxu0 %v11692_v52  ;;  %9410 = vmatprep.subr.bf16.mxu1 %v11694_v45 }
0x19b3   :  { %9348 = vmatpush1.bf16.msra.mxu0 %v11716_v51  ;;  %9412 = vmatpush1.bf16.msra.mxu1 %v11718_v61 }
0x19b4   :  { %9350 = vmatprep.subr.bf16.mxu0 %v11725_v20  ;;  %9414 = vmatprep.subr.bf16.mxu1 %v11727_v29 }
0x19b7   :  { %9352 = vmatpush1.bf16.msra.mxu0 %v11740_v49  ;;  %9416 = vmatpush1.bf16.msra.mxu1 %v11742_v55 }
0x19b8   :  { %9354 = vmatprep.subr.bf16.mxu0 %v11757_v11  ;;  %9418 = vmatprep.subr.bf16.mxu1 %v11768_v2 }
0x19bb   :  { %9356 = vmatpush1.bf16.msra.mxu0 %v11770_v43  ;;  %9420 = vmatpush1.bf16.msra.mxu1 %v11779_v0 }
0x19bc   :  { %9358 = vmatprep.subr.bf16.mxu0 %v11793_v22  ;;  %9422 = vmatprep.subr.bf16.mxu1 %v11804_v25 }
0x19bf   :  { %9360 = vmatpush1.bf16.msra.mxu0 %v11806_v10  ;;  %9424 = vmatpush1.bf16.msra.mxu1 %v11815_v59 }
0x19c0   :  { %9362 = vmatprep.subr.bf16.mxu0 %v11829_v50  ;;  %9426 = vmatprep.subr.bf16.mxu1 %v11840_v12 }
0x19c3   :  { %9364 = vmatpush1.bf16.msra.mxu0 %v11842_v4  ;;  %9428 = vmatpush1.bf16.msra.mxu1 %v11851_v1 }
0x19c4   :  { %9366 = vmatprep.subr.bf16.mxu0 %v11865_v39  ;;  %9430 = vmatprep.subr.bf16.mxu1 %v11876_v54 }
0x19c7   :  { %9368 = vmatpush1.bf16.msra.mxu0 %v11878_v62  ;;  %9432 = vmatpush1.bf16.msra.mxu1 %v11887_v7 }
0x19c8   :  { %9370 = vmatprep.subr.bf16.mxu0 %v11901_v47  ;;  %9434 = vmatprep.subr.bf16.mxu1 %v11912_v27 }
0x19cb   :  { %9372 = vmatpush1.bf16.msra.mxu0 %v11914_v48  ;;  %9436 = vmatpush1.bf16.msra.mxu1 %v11923_v42 }
0x19cc   :  { %9374 = vmatprep.subr.bf16.mxu0 %v11937_v53  ;;  %9438 = vmatprep.subr.bf16.mxu1 %v11948_v35 }
0x19cf   :  { %9376 = vmatpush1.bf16.msra.mxu0 %v11950_v6  ;;  %9440 = vmatpush1.bf16.msra.mxu1 %v11959_v14 }
0x19d0   :  { %9378 = vmatprep.subr.bf16.mxu0 %v14640_v24  ;;  %9442 = vmatprep.subr.bf16.mxu1 %v14641_v26 }
0x19d3   :  { %9380 = vmatpush1.bf16.msra.mxu0 %v14642_v3  ;;  %9444 = vmatpush1.bf16.msra.mxu1 %v14643_v38 }
0x19d4   :  { %9382 = vmatprep.subr.bf16.mxu0 %v14644_v63  ;;  %9446 = vmatprep.subr.bf16.mxu1 %v14645_v46 }
0x19d7   :  { %9384 = vmatpush1.bf16.msra.mxu0 %v14646_v37  ;;  %9448 = vmatpush1.bf16.msra.mxu1 %v14647_v31  ;;  %v14657_v37 = vld [vmem:[#allocation22_spill] sm:$0xff]  ;;  %v14658_v31 = vld [vmem:[#allocation23_spill] sm:$0xff] }
0x19d8   :  { %9386 = vmatprep.subr.bf16.mxu0 %v14648_v18  ;;  %9450 = vmatprep.subr.bf16.mxu1 %v14649_v21  ;;  %v14659_v18 = vld [vmem:[#allocation24_spill] sm:$0xff]  ;;  %v14660_v21 = vld [vmem:[#allocation25_spill] sm:$0xff] }
0x19db   :  { %9388 = vmatpush1.bf16.msra.mxu0 %v14650_v36  ;;  %9452 = vmatpush1.bf16.msra.mxu1 %v14651_v60  ;;  %v14661_v36 = vld [vmem:[#allocation26_spill] sm:$0xff]  ;;  %v14662_v60 = vld [vmem:[#allocation27_spill] sm:$0xff] }
0x19dc   :  { %9390 = vmatprep.subr.bf16.mxu0 %v14652_v23  ;;  %9454 = vmatprep.subr.bf16.mxu1 %v14653_v57  ;;  %v14663_v23 = vld [vmem:[#allocation28_spill] sm:$0xff]  ;;  %v14664_v57 = vld [vmem:[#allocation29_spill] sm:$0xff] }
0x19df   :  { %9392 = vmatpush1.bf16.msra.mxu0 %v14654_v34  ;;  %9456 = vmatpush1.bf16.msra.mxu1 %v14655_v8  ;;  %v14665_v34 = vld [vmem:[#allocation30_spill] sm:$0xff] }
0x19e0   :  { %9394 = vmatprep.subr.bf16.mxu0 %v14656_v40  ;;  %9458 = vmatprep.subr.bf16.mxu1 %v14657_v37 }
0x19e3   :  { %9396 = vmatpush1.bf16.msra.mxu0 %v14658_v31  ;;  %9460 = vmatpush1.bf16.msra.mxu1 %v14659_v18  ;;  %v14666_v18 = vld [vmem:[#allocation95_spill] sm:$0xff] }
0x19e4   :  { %9398 = vmatprep.subr.bf16.mxu0 %v14660_v21  ;;  %9462 = vmatprep.subr.bf16.mxu1 %v14661_v36 }
0x19e7   :  { %9400 = vmatpush1.bf16.msra.mxu0 %v14662_v60  ;;  %9464 = vmatpush1.bf16.msra.mxu1 %v14663_v23 }
0x19e8   :  { %9466 = vmatprep.subr.bf16.mxu0 %v14664_v57  ;;  %9530 = vmatprep.subr.bf16.mxu1 %v14665_v34 }
0x1a7c   :  { %v5165_v8 = vpop.f32.mrb[50].mxu0  ;;  %v5236_v40 = vpop.f32.mrb[78].mxu1 }
0x1a7d   :  { %v5166_v37 = vadd.f32 %v5165_v8, %v14302_v28  ;;  %v5167_v46 = vpop.f32.mrb[51].mxu0  ;;  %v5238_v31 = vpop.f32.mrb[79].mxu1  ;;  %v5237_v34 = vadd.f32 %v5236_v40, %v12880_v19  ;;  %v14678_v40 = vld [vmem:[#allocation42_spill] sm:$0xff] }
0x1a7e   :  { %v5168_v21 = vadd.f32 %v5167_v46, %v14666_v18  ;;  %v5239_v57 = vadd.f32 %v5238_v31, %v12877_v13  ;;  %v14672_v31 = vld [vmem:[#allocation36_spill] sm:$0xff] }
0x1a7f   :  { %v6106_v63 = vmul.f32 -1.442695, %v5166_v37 }
0x1a80   :  { %v6107_v38 = vmul.f32 -1.442695, %v5168_v21 }
0x1a81   :  { %10158 = vpow2.f32 %v6106_v63 }
0x1a82   :  { %10160 = vpow2.f32 %v6107_v38  ;;  %v14671_v38 = vld [vmem:[#allocation35_spill] sm:$0xff] }
0x1a8b   :  { %v10159_v36 = vpop.eup %10158 }
0x1a8c   :  { %v5244_v3 = vadd.f32 1.0, %v10159_v36  ;;  %v10161_v23 = vpop.eup %10160  ;;  %v14673_v36 = vld [vmem:[#allocation37_spill] sm:$0xff] }
0x1a8d   :  { %v5250_v24 = vadd.f32 1.0, %v10161_v23  ;;  %v14675_v23 = vld [vmem:[#allocation39_spill] sm:$0xff] }
0x1a8e   :  { %10162 = vrcp.f32 %v5244_v3  ;;  %v14670_v3 = vld [vmem:[#allocation34_spill] sm:$0xff] }
0x1a98   :  { %v10163_v60 = vpop.eup %10162 }
0x1a99   :  { %v5253_v26 = vmul.f32 %v10163_v60, %v5239_v57  ;;  %v14674_v60 = vld [vmem:[#allocation38_spill] sm:$0xff]  ;;  %v14676_v57 = vld [vmem:[#allocation40_spill] sm:$0xff] }
0x1a9b   :  { %v5254_v8 = vadd.f32 %v5253_v26, %v5237_v34  ;;  %v14669_v26 = vld [vmem:[#allocation33_spill] sm:$0xff] }
0x1a9c   :  { %v14677_v34 = vld [vmem:[#allocation41_spill] sm:$0xff] }
0x1a9d   :  { %10164 = vtanh.f32 %v5254_v8  ;;  %v14679_v8 = vld [vmem:[#allocation43_spill] sm:$0xff] }
0x1a9e   :  { %10166 = vrcp.f32 %v5250_v24  ;;  %v14668_v24 = vld [vmem:[#allocation32_spill] sm:$0xff] }
0x1aa7   :  { %v10165_v37 = vpop.eup %10164 }
0x1aa8   :  { %v5256_v63 = vsub.f32 %v13501_v16, %v10165_v37  ;;  %v10167_v46 = vpop.eup %10166  ;;  %v14667_v16 = vld [vmem:[#allocation31_spill] sm:$0xff] }
0x1aaa   :  { %v5257_v21 = vmul.f32 %v10167_v46, %v5256_v63  ;;  %v14681_v63 = vld [vmem:[#allocation45_spill] sm:$0xff]  ;;  %v14682_v46 = vld [vmem:[#allocation46_spill] sm:$0xff] }
0x1aac   :  { %v13655_v18 = vadd.f32 %v10165_v37, %v5257_v21  ;;  %v14680_v37 = vld [vmem:[#allocation44_spill] sm:$0xff]  ;;  %v14683_v21 = vld [vmem:[#allocation47_spill] sm:$0xff] }
0x1aae   :  { %5904 = vst [vmem:[%s13905_s11 + $0x28] sm:$0xff] %v13655_v18  ;;  %5324 = vmatmul.mubr.f32.vlgmr.msra.gmra.mrb[52].mxu0 %v13655_v18  ;;  %5395 = vmatmul.mubr.f32.vlgmr.msra.gmra.mrb[80].mxu1 %v13655_v18 }
0x1aaf   :  { %5483 = vmatprep.mubr.f32.mxu0 %v13655_v18  ;;  %5554 = vmatprep.mubr.f32.mxu1 %v13655_v18 }
0x1ab0   :  { %9468 = vmatpush1.bf16.msra.mxu0 %v12232_v41  ;;  %9532 = vmatpush1.bf16.msra.mxu1 %v14667_v16 }
0x1ab1   :  { %9470 = vmatprep.subr.bf16.mxu0 %v14668_v24  ;;  %9534 = vmatprep.subr.bf16.mxu1 %v14669_v26 }
0x1ab4   :  { %9472 = vmatpush1.bf16.msra.mxu0 %v14670_v3  ;;  %9536 = vmatpush1.bf16.msra.mxu1 %v14671_v38 }
0x1ab5   :  { %9474 = vmatprep.subr.bf16.mxu0 %v14672_v31  ;;  %9538 = vmatprep.subr.bf16.mxu1 %v14673_v36  ;;  %v14684_v36 = vld [vmem:[#allocation48_spill] sm:$0xff] }
0x1ab8   :  { %9476 = vmatpush1.bf16.msra.mxu0 %v14674_v60  ;;  %9540 = vmatpush1.bf16.msra.mxu1 %v14675_v23  ;;  %v14685_v60 = vld [vmem:[#allocation49_spill] sm:$0xff]  ;;  %v14686_v23 = vld [vmem:[#allocation50_spill] sm:$0xff] }
0x1ab9   :  { %9478 = vmatprep.subr.bf16.mxu0 %v14676_v57  ;;  %9542 = vmatprep.subr.bf16.mxu1 %v14677_v34  ;;  %v14687_v57 = vld [vmem:[#allocation51_spill] sm:$0xff]  ;;  %v14688_v34 = vld [vmem:[#allocation52_spill] sm:$0xff] }
0x1abc   :  { %9480 = vmatpush1.bf16.msra.mxu0 %v14678_v40  ;;  %9544 = vmatpush1.bf16.msra.mxu1 %v14679_v8  ;;  %v14689_v40 = vld [vmem:[#allocation53_spill] sm:$0xff]  ;;  %v14690_v8 = vld [vmem:[#allocation54_spill] sm:$0xff] }
0x1abd   :  { %9482 = vmatprep.subr.bf16.mxu0 %v14680_v37  ;;  %9546 = vmatprep.subr.bf16.mxu1 %v14681_v63  ;;  %v14691_v37 = vld [vmem:[#allocation55_spill] sm:$0xff]  ;;  %v14692_v63 = vld [vmem:[#allocation56_spill] sm:$0xff] }
0x1ac0   :  { %9484 = vmatpush1.bf16.msra.mxu0 %v14682_v46  ;;  %9548 = vmatpush1.bf16.msra.mxu1 %v14683_v21  ;;  %v14693_v46 = vld [vmem:[#allocation57_spill] sm:$0xff]  ;;  %v14694_v21 = vld [vmem:[#allocation58_spill] sm:$0xff] }
0x1ac1   :  { %9486 = vmatprep.subr.bf16.mxu0 %v14684_v36  ;;  %9550 = vmatprep.subr.bf16.mxu1 %v14685_v60  ;;  %v14695_v36 = vld [vmem:[#allocation59_spill] sm:$0xff]  ;;  %v14696_v60 = vld [vmem:[#allocation60_spill] sm:$0xff] }
0x1ac4   :  { %9488 = vmatpush1.bf16.msra.mxu0 %v14686_v23  ;;  %9552 = vmatpush1.bf16.msra.mxu1 %v14687_v57  ;;  %v14697_v23 = vld [vmem:[#allocation61_spill] sm:$0xff]  ;;  %v14698_v57 = vld [vmem:[#allocation62_spill] sm:$0xff] }
0x1ac5   :  { %9490 = vmatprep.subr.bf16.mxu0 %v14688_v34  ;;  %9554 = vmatprep.subr.bf16.mxu1 %v14689_v40  ;;  %v14699_v34 = vld [vmem:[#allocation63_spill] sm:$0xff]  ;;  %v14700_v40 = vld [vmem:[#allocation64_spill] sm:$0xff] }
0x1ac8   :  { %9492 = vmatpush1.bf16.msra.mxu0 %v14690_v8  ;;  %9556 = vmatpush1.bf16.msra.mxu1 %v14691_v37  ;;  %v14701_v8 = vld [vmem:[#allocation65_spill] sm:$0xff]  ;;  %v14702_v37 = vld [vmem:[#allocation66_spill] sm:$0xff] }
0x1ac9   :  { %9494 = vmatprep.subr.bf16.mxu0 %v14692_v63  ;;  %9558 = vmatprep.subr.bf16.mxu1 %v14693_v46  ;;  %v14703_v63 = vld [vmem:[#allocation67_spill] sm:$0xff]  ;;  %v14704_v46 = vld [vmem:[#allocation68_spill] sm:$0xff] }
0x1acc   :  { %9496 = vmatpush1.bf16.msra.mxu0 %v14694_v21  ;;  %9560 = vmatpush1.bf16.msra.mxu1 %v14695_v36  ;;  %v14705_v21 = vld [vmem:[#allocation69_spill] sm:$0xff]  ;;  %v14706_v36 = vld [vmem:[#allocation70_spill] sm:$0xff] }
0x1acd   :  { %9498 = vmatprep.subr.bf16.mxu0 %v14696_v60  ;;  %9562 = vmatprep.subr.bf16.mxu1 %v14697_v23  ;;  %v14707_v60 = vld [vmem:[#allocation71_spill] sm:$0xff]  ;;  %v14708_v23 = vld [vmem:[#allocation72_spill] sm:$0xff] }
0x1ad0   :  { %9500 = vmatpush1.bf16.msra.mxu0 %v14698_v57  ;;  %9564 = vmatpush1.bf16.msra.mxu1 %v14699_v34  ;;  %v14709_v57 = vld [vmem:[#allocation73_spill] sm:$0xff]  ;;  %v14710_v34 = vld [vmem:[#allocation74_spill] sm:$0xff] }
0x1ad1   :  { %9502 = vmatprep.subr.bf16.mxu0 %v14700_v40  ;;  %9566 = vmatprep.subr.bf16.mxu1 %v14701_v8  ;;  %v14711_v40 = vld [vmem:[#allocation75_spill] sm:$0xff]  ;;  %v14712_v8 = vld [vmem:[#allocation76_spill] sm:$0xff] }
0x1ad4   :  { %9504 = vmatpush1.bf16.msra.mxu0 %v14702_v37  ;;  %9568 = vmatpush1.bf16.msra.mxu1 %v14703_v63  ;;  %v14713_v37 = vld [vmem:[#allocation77_spill] sm:$0xff]  ;;  %v14714_v63 = vld [vmem:[#allocation78_spill] sm:$0xff] }
0x1ad5   :  { %9506 = vmatprep.subr.bf16.mxu0 %v14704_v46  ;;  %9570 = vmatprep.subr.bf16.mxu1 %v14705_v21  ;;  %v14715_v46 = vld [vmem:[#allocation79_spill] sm:$0xff]  ;;  %v14716_v21 = vld [vmem:[#allocation80_spill] sm:$0xff] }
0x1ad8   :  { %9508 = vmatpush1.bf16.msra.mxu0 %v14706_v36  ;;  %9572 = vmatpush1.bf16.msra.mxu1 %v14707_v60  ;;  %v14717_v36 = vld [vmem:[#allocation81_spill] sm:$0xff]  ;;  %v14718_v60 = vld [vmem:[#allocation82_spill] sm:$0xff] }
0x1ad9   :  { %9510 = vmatprep.subr.bf16.mxu0 %v14708_v23  ;;  %9574 = vmatprep.subr.bf16.mxu1 %v14709_v57  ;;  %v14719_v23 = vld [vmem:[#allocation83_spill] sm:$0xff]  ;;  %v14720_v57 = vld [vmem:[#allocation84_spill] sm:$0xff] }
0x1adc   :  { %9512 = vmatpush1.bf16.msra.mxu0 %v14710_v34  ;;  %9576 = vmatpush1.bf16.msra.mxu1 %v14711_v40  ;;  %v14721_v34 = vld [vmem:[#allocation85_spill] sm:$0xff]  ;;  %v14722_v40 = vld [vmem:[#allocation86_spill] sm:$0xff] }
0x1add   :  { %9514 = vmatprep.subr.bf16.mxu0 %v14712_v8  ;;  %9578 = vmatprep.subr.bf16.mxu1 %v14713_v37  ;;  %v14723_v8 = vld [vmem:[#allocation87_spill] sm:$0xff]  ;;  %v14724_v37 = vld [vmem:[#allocation88_spill] sm:$0xff] }
0x1ae0   :  { %9516 = vmatpush1.bf16.msra.mxu0 %v14714_v63  ;;  %9580 = vmatpush1.bf16.msra.mxu1 %v14715_v46  ;;  %v14725_v63 = vld [vmem:[#allocation89_spill] sm:$0xff]  ;;  %v14726_v46 = vld [vmem:[#allocation90_spill] sm:$0xff] }
0x1ae1   :  { %9518 = vmatprep.subr.bf16.mxu0 %v14716_v21  ;;  %9582 = vmatprep.subr.bf16.mxu1 %v14717_v36  ;;  %v14727_v21 = vld [vmem:[#allocation91_spill] sm:$0xff] }
0x1ae2   :  { %v14728_v36 = vld [vmem:[#allocation3_spill] sm:$0xff] }
0x1ae4   :  { %9520 = vmatpush1.bf16.msra.mxu0 %v14718_v60  ;;  %9584 = vmatpush1.bf16.msra.mxu1 %v14719_v23  ;;  %v14729_v60 = vld [vmem:[#allocation4_spill] sm:$0xff] }
0x1ae5   :  { %9522 = vmatprep.subr.bf16.mxu0 %v14720_v57  ;;  %9586 = vmatprep.subr.bf16.mxu1 %v14721_v34 }
0x1ae8   :  { %9524 = vmatpush1.bf16.msra.mxu0 %v14722_v40  ;;  %9588 = vmatpush1.bf16.msra.mxu1 %v14723_v8  ;;  %v14730_v8 = vld [vmem:[#allocation93_spill] sm:$0xff] }
0x1ae9   :  { %9526 = vmatprep.subr.bf16.mxu0 %v14724_v37  ;;  %9590 = vmatprep.subr.bf16.mxu1 %v14725_v63 }
0x1aec   :  { %9528 = vmatpush1.bf16.msra.mxu0 %v14726_v46  ;;  %9592 = vmatpush1.bf16.msra.mxu1 %v14727_v21 }
0x1aed   :  { %9594 = vmatprep.subr.bf16.mxu0 %v14728_v36  ;;  %9658 = vmatprep.subr.bf16.mxu1 %v14729_v60 }
0x1b81   :  { %v5325_v23 = vpop.f32.mrb[52].mxu0  ;;  %v5396_v57 = vpop.f32.mrb[80].mxu1 }
0x1b82   :  { %v5326_v34 = vadd.f32 %v5325_v23, %v14274_v17  ;;  %v5327_v31 = vpop.f32.mrb[53].mxu0  ;;  %v5398_v40 = vpop.f32.mrb[81].mxu1  ;;  %v5397_v60 = vadd.f32 %v5396_v57, %v12789_v44 }
0x1b83   :  { %v5328_v37 = vadd.f32 %v5327_v31, %v14730_v8  ;;  %v5399_v36 = vadd.f32 %v5398_v40, %v12786_v15 }
0x1b84   :  { %v6108_v38 = vmul.f32 -1.442695, %v5326_v34 }
0x1b85   :  { %v6109_v3 = vmul.f32 -1.442695, %v5328_v37 }
0x1b86   :  { %10168 = vpow2.f32 %v6108_v38 }
0x1b87   :  { %10170 = vpow2.f32 %v6109_v3 }
0x1b90   :  { %v10169_v63 = vpop.eup %10168 }
0x1b91   :  { %v5404_v26 = vadd.f32 1.0, %v10169_v63  ;;  %v10171_v21 = vpop.eup %10170 }
0x1b92   :  { %v5410_v16 = vadd.f32 1.0, %v10171_v21 }
0x1b93   :  { %10172 = vrcp.f32 %v5404_v26 }
0x1b9d   :  { %v10173_v46 = vpop.eup %10172 }
0x1b9e   :  { %v5413_v24 = vmul.f32 %v10173_v46, %v5399_v36 }
0x1ba0   :  { %v5414_v23 = vadd.f32 %v5413_v24, %v5397_v60  ;;  %v14759_v60 = vld [vmem:[#allocation32_spill] sm:$0xff] }
0x1ba2   :  { %10174 = vtanh.f32 %v5414_v23  ;;  %v14760_v23 = vld [vmem:[#allocation33_spill] sm:$0xff] }
0x1ba3   :  { %10176 = vrcp.f32 %v5410_v16 }
0x1bac   :  { %v10175_v34 = vpop.eup %10174 }
0x1bad   :  { %v5416_v38 = vsub.f32 %v13580_v9, %v10175_v34  ;;  %v10177_v31 = vpop.eup %10176 }
0x1baf   :  { %v5417_v37 = vmul.f32 %v10177_v31, %v5416_v38  ;;  %v14762_v38 = vld [vmem:[#allocation35_spill] sm:$0xff]  ;;  %v14763_v31 = vld [vmem:[#allocation36_spill] sm:$0xff] }
0x1bb1   :  { %v13734_v8 = vadd.f32 %v10175_v34, %v5417_v37  ;;  %v14761_v34 = vld [vmem:[#allocation34_spill] sm:$0xff]  ;;  %v14764_v37 = vld [vmem:[#allocation37_spill] sm:$0xff] }
0x1bb3   :  { %5484 = vmatmul.mubr.f32.vlgmr.msra.gmra.mrb[54].mxu0 %v13734_v8  ;;  %5555 = vmatmul.mubr.f32.vlgmr.msra.gmra.mrb[82].mxu1 %v13734_v8 }
0x1bb4   :  { %5643 = vmatprep.mubr.f32.mxu0 %v13734_v8  ;;  %5714 = vmatprep.mubr.f32.mxu1 %v13734_v8 }
0x1bb5   :  { %9596 = vmatpush1.bf16.msra.mxu0 %v11642_v56  ;;  %9660 = vmatpush1.bf16.msra.mxu1 %v11644_v58  ;;  %v14731_v56 = vld [vmem:[#allocation5_spill] sm:$0xff]  ;;  %v14732_v58 = vld [vmem:[#allocation6_spill] sm:$0xff] }
0x1bb6   :  { %9598 = vmatprep.subr.bf16.mxu0 %v11652_v5  ;;  %9662 = vmatprep.subr.bf16.mxu1 %v11654_v33  ;;  %v14733_v5 = vld [vmem:[#allocation7_spill] sm:$0xff]  ;;  %v14734_v33 = vld [vmem:[#allocation8_spill] sm:$0xff] }
0x1bb9   :  { %9600 = vmatpush1.bf16.msra.mxu0 %v11680_v30  ;;  %9664 = vmatpush1.bf16.msra.mxu1 %v11682_v32  ;;  %v14735_v30 = vld [vmem:[#allocation9_spill] sm:$0xff]  ;;  %v14736_v32 = vld [vmem:[#allocation10_spill] sm:$0xff] }
0x1bba   :  { %9602 = vmatprep.subr.bf16.mxu0 %v11692_v52  ;;  %9666 = vmatprep.subr.bf16.mxu1 %v11694_v45  ;;  %v14737_v52 = vld [vmem:[#allocation11_spill] sm:$0xff]  ;;  %v14738_v45 = vld [vmem:[#allocation12_spill] sm:$0xff] }
0x1bbd   :  { %9604 = vmatpush1.bf16.msra.mxu0 %v11716_v51  ;;  %9668 = vmatpush1.bf16.msra.mxu1 %v11718_v61  ;;  %v14739_v51 = vld [vmem:[#allocation13_spill] sm:$0xff]  ;;  %v14740_v61 = vld [vmem:[#allocation14_spill] sm:$0xff] }
0x1bbe   :  { %9606 = vmatprep.subr.bf16.mxu0 %v11725_v20  ;;  %9670 = vmatprep.subr.bf16.mxu1 %v11727_v29  ;;  %v14741_v20 = vld [vmem:[#allocation15_spill] sm:$0xff]  ;;  %v14742_v29 = vld [vmem:[#allocation16_spill] sm:$0xff] }
0x1bc1   :  { %9608 = vmatpush1.bf16.msra.mxu0 %v11740_v49  ;;  %9672 = vmatpush1.bf16.msra.mxu1 %v11742_v55  ;;  %v14743_v49 = vld [vmem:[#allocation17_spill] sm:$0xff]  ;;  %v14744_v55 = vld [vmem:[#allocation18_spill] sm:$0xff] }
0x1bc2   :  { %9610 = vmatprep.subr.bf16.mxu0 %v11757_v11  ;;  %9674 = vmatprep.subr.bf16.mxu1 %v11768_v2  ;;  %v14745_v11 = vld [vmem:[#allocation19_spill] sm:$0xff]  ;;  %v14746_v2 = vld [vmem:[#allocation20_spill] sm:$0xff] }
0x1bc5   :  { %9612 = vmatpush1.bf16.msra.mxu0 %v11770_v43  ;;  %9676 = vmatpush1.bf16.msra.mxu1 %v11779_v0  ;;  %v14747_v43 = vld [vmem:[#allocation21_spill] sm:$0xff]  ;;  %v14748_v0 = vld [vmem:[#allocation22_spill] sm:$0xff] }
0x1bc6   :  { %9614 = vmatprep.subr.bf16.mxu0 %v11793_v22  ;;  %9678 = vmatprep.subr.bf16.mxu1 %v11804_v25  ;;  %v14749_v22 = vld [vmem:[#allocation23_spill] sm:$0xff]  ;;  %v14750_v25 = vld [vmem:[#allocation24_spill] sm:$0xff] }
0x1bc9   :  { %9616 = vmatpush1.bf16.msra.mxu0 %v11806_v10  ;;  %9680 = vmatpush1.bf16.msra.mxu1 %v11815_v59  ;;  %v14751_v10 = vld [vmem:[#allocation25_spill] sm:$0xff]  ;;  %v14752_v59 = vld [vmem:[#allocation26_spill] sm:$0xff] }
0x1bca   :  { %9618 = vmatprep.subr.bf16.mxu0 %v11829_v50  ;;  %9682 = vmatprep.subr.bf16.mxu1 %v11840_v12  ;;  %v14753_v50 = vld [vmem:[#allocation27_spill] sm:$0xff]  ;;  %v14754_v12 = vld [vmem:[#allocation28_spill] sm:$0xff] }
0x1bcd   :  { %9620 = vmatpush1.bf16.msra.mxu0 %v11842_v4  ;;  %9684 = vmatpush1.bf16.msra.mxu1 %v11851_v1  ;;  %v14755_v4 = vld [vmem:[#allocation29_spill] sm:$0xff]  ;;  %v14756_v1 = vld [vmem:[#allocation30_spill] sm:$0xff] }
0x1bce   :  { %9622 = vmatprep.subr.bf16.mxu0 %v11865_v39  ;;  %9686 = vmatprep.subr.bf16.mxu1 %v11876_v54 }
0x1bd1   :  { %9624 = vmatpush1.bf16.msra.mxu0 %v11878_v62  ;;  %9688 = vmatpush1.bf16.msra.mxu1 %v11887_v7 }
0x1bd2   :  { %9626 = vmatprep.subr.bf16.mxu0 %v11901_v47  ;;  %9690 = vmatprep.subr.bf16.mxu1 %v11912_v27 }
0x1bd5   :  { %9628 = vmatpush1.bf16.msra.mxu0 %v11914_v48  ;;  %9692 = vmatpush1.bf16.msra.mxu1 %v11923_v42  ;;  %v14757_v48 = vld [vmem:[#allocation95_spill] sm:$0xff] }
0x1bd6   :  { %9630 = vmatprep.subr.bf16.mxu0 %v11937_v53  ;;  %9694 = vmatprep.subr.bf16.mxu1 %v11948_v35 }
0x1bd9   :  { %9632 = vmatpush1.bf16.msra.mxu0 %v11950_v6  ;;  %9696 = vmatpush1.bf16.msra.mxu1 %v11959_v14 }
0x1bda   :  { %9634 = vmatprep.subr.bf16.mxu0 %v14731_v56  ;;  %9698 = vmatprep.subr.bf16.mxu1 %v14732_v58  ;;  %v14765_v56 = vld [vmem:[#allocation38_spill] sm:$0xff]  ;;  %v14766_v58 = vld [vmem:[#allocation39_spill] sm:$0xff] }
0x1bdd   :  { %9636 = vmatpush1.bf16.msra.mxu0 %v14733_v5  ;;  %9700 = vmatpush1.bf16.msra.mxu1 %v14734_v33  ;;  %v14767_v5 = vld [vmem:[#allocation40_spill] sm:$0xff]  ;;  %v14769_v33 = vld [vmem:[#allocation42_spill] sm:$0xff] }
0x1bde   :  { %9638 = vmatprep.subr.bf16.mxu0 %v14735_v30  ;;  %9702 = vmatprep.subr.bf16.mxu1 %v14736_v32  ;;  %v14770_v30 = vld [vmem:[#allocation43_spill] sm:$0xff]  ;;  %v14771_v32 = vld [vmem:[#allocation44_spill] sm:$0xff] }
0x1be1   :  { %9640 = vmatpush1.bf16.msra.mxu0 %v14737_v52  ;;  %9704 = vmatpush1.bf16.msra.mxu1 %v14738_v45  ;;  %v14772_v52 = vld [vmem:[#allocation45_spill] sm:$0xff]  ;;  %v14773_v45 = vld [vmem:[#allocation46_spill] sm:$0xff] }
0x1be2   :  { %9642 = vmatprep.subr.bf16.mxu0 %v14739_v51  ;;  %9706 = vmatprep.subr.bf16.mxu1 %v14740_v61  ;;  %v14774_v51 = vld [vmem:[#allocation47_spill] sm:$0xff]  ;;  %v14775_v61 = vld [vmem:[#allocation48_spill] sm:$0xff] }
0x1be5   :  { %9644 = vmatpush1.bf16.msra.mxu0 %v14741_v20  ;;  %9708 = vmatpush1.bf16.msra.mxu1 %v14742_v29  ;;  %v14776_v20 = vld [vmem:[#allocation49_spill] sm:$0xff]  ;;  %v14777_v29 = vld [vmem:[#allocation50_spill] sm:$0xff] }
0x1be6   :  { %9646 = vmatprep.subr.bf16.mxu0 %v14743_v49  ;;  %9710 = vmatprep.subr.bf16.mxu1 %v14744_v55  ;;  %v14778_v49 = vld [vmem:[#allocation51_spill] sm:$0xff]  ;;  %v14779_v55 = vld [vmem:[#allocation52_spill] sm:$0xff] }
0x1be9   :  { %9648 = vmatpush1.bf16.msra.mxu0 %v14745_v11  ;;  %9712 = vmatpush1.bf16.msra.mxu1 %v14746_v2  ;;  %v14780_v11 = vld [vmem:[#allocation53_spill] sm:$0xff]  ;;  %v14781_v2 = vld [vmem:[#allocation54_spill] sm:$0xff] }
0x1bea   :  { %9650 = vmatprep.subr.bf16.mxu0 %v14747_v43  ;;  %9714 = vmatprep.subr.bf16.mxu1 %v14748_v0  ;;  %v14782_v43 = vld [vmem:[#allocation55_spill] sm:$0xff]  ;;  %v14783_v0 = vld [vmem:[#allocation56_spill] sm:$0xff] }
0x1bed   :  { %9652 = vmatpush1.bf16.msra.mxu0 %v14749_v22  ;;  %9716 = vmatpush1.bf16.msra.mxu1 %v14750_v25  ;;  %v14784_v22 = vld [vmem:[#allocation57_spill] sm:$0xff]  ;;  %v14785_v25 = vld [vmem:[#allocation58_spill] sm:$0xff] }
0x1bee   :  { %9654 = vmatprep.subr.bf16.mxu0 %v14751_v10  ;;  %9718 = vmatprep.subr.bf16.mxu1 %v14752_v59  ;;  %v14786_v10 = vld [vmem:[#allocation59_spill] sm:$0xff]  ;;  %v14787_v59 = vld [vmem:[#allocation60_spill] sm:$0xff] }
0x1bf1   :  { %9656 = vmatpush1.bf16.msra.mxu0 %v14753_v50  ;;  %9720 = vmatpush1.bf16.msra.mxu1 %v14754_v12  ;;  %v14788_v50 = vld [vmem:[#allocation61_spill] sm:$0xff]  ;;  %v14789_v12 = vld [vmem:[#allocation62_spill] sm:$0xff] }
0x1bf2   :  { %9722 = vmatprep.subr.bf16.mxu0 %v14755_v4  ;;  %9786 = vmatprep.subr.bf16.mxu1 %v14756_v1  ;;  %v14790_v4 = vld [vmem:[#allocation63_spill] sm:$0xff]  ;;  %v14791_v1 = vld [vmem:[#allocation64_spill] sm:$0xff] }
0x1c86   :  { %v5485_v39 = vpop.f32.mrb[54].mxu0  ;;  %v5556_v54 = vpop.f32.mrb[82].mxu1 }
0x1c87   :  { %v5486_v62 = vadd.f32 %v5485_v39, %v14302_v28  ;;  %v5487_v7 = vpop.f32.mrb[55].mxu0  ;;  %v5558_v47 = vpop.f32.mrb[83].mxu1  ;;  %v5557_v24 = vadd.f32 %v5556_v54, %v12880_v19  ;;  %v14792_v39 = vld [vmem:[#allocation65_spill] sm:$0xff]  ;;  %v14793_v54 = vld [vmem:[#allocation66_spill] sm:$0xff] }
0x1c88   :  { %v5488_v42 = vadd.f32 %v5487_v7, %v14757_v48  ;;  %v5559_v9 = vadd.f32 %v5558_v47, %v12877_v13  ;;  %v14795_v7 = vld [vmem:[#allocation68_spill] sm:$0xff]  ;;  %v14796_v47 = vld [vmem:[#allocation69_spill] sm:$0xff] }
0x1c89   :  { %v6110_v27 = vmul.f32 -1.442695, %v5486_v62  ;;  %v14794_v62 = vld [vmem:[#allocation67_spill] sm:$0xff] }
0x1c8a   :  { %v6111_v53 = vmul.f32 -1.442695, %v5488_v42  ;;  %v14798_v42 = vld [vmem:[#allocation71_spill] sm:$0xff] }
0x1c8b   :  { %10178 = vpow2.f32 %v6110_v27  ;;  %v14797_v27 = vld [vmem:[#allocation70_spill] sm:$0xff] }
0x1c8c   :  { %10180 = vpow2.f32 %v6111_v53  ;;  %v14799_v53 = vld [vmem:[#allocation72_spill] sm:$0xff] }
0x1c95   :  { %v10179_v35 = vpop.eup %10178 }
0x1c96   :  { %v5564_v6 = vadd.f32 1.0, %v10179_v35  ;;  %v10181_v14 = vpop.eup %10180  ;;  %v14800_v35 = vld [vmem:[#allocation73_spill] sm:$0xff] }
0x1c97   :  { %v5570_v3 = vadd.f32 1.0, %v10181_v14  ;;  %v14802_v14 = vld [vmem:[#allocation75_spill] sm:$0xff] }
0x1c98   :  { %10182 = vrcp.f32 %v5564_v6  ;;  %v14801_v6 = vld [vmem:[#allocation74_spill] sm:$0xff] }
0x1ca2   :  { %v10183_v16 = vpop.eup %10182 }
0x1ca3   :  { %v5573_v26 = vmul.f32 %v10183_v16, %v5559_v9  ;;  %v14803_v9 = vld [vmem:[#allocation76_spill] sm:$0xff]  ;;  %v14804_v16 = vld [vmem:[#allocation77_spill] sm:$0xff] }
0x1ca5   :  { %v5574_v57 = vadd.f32 %v5573_v26, %v5557_v24  ;;  %v14805_v24 = vld [vmem:[#allocation78_spill] sm:$0xff]  ;;  %v14806_v26 = vld [vmem:[#allocation79_spill] sm:$0xff] }
0x1ca7   :  { %10184 = vtanh.f32 %v5574_v57  ;;  %v14808_v57 = vld [vmem:[#allocation81_spill] sm:$0xff] }
0x1ca8   :  { %10186 = vrcp.f32 %v5570_v3  ;;  %v14807_v3 = vld [vmem:[#allocation80_spill] sm:$0xff] }
0x1cb1   :  { %v10185_v40 = vpop.eup %10184 }
0x1cb2   :  { %v5576_v63 = vsub.f32 %v13655_v18, %v10185_v40  ;;  %v10187_v46 = vpop.eup %10186  ;;  %v14758_v18 = vld [vmem:[#allocation31_spill] sm:$0xff] }
0x1cb4   :  { %v5577_v21 = vmul.f32 %v10187_v46, %v5576_v63  ;;  %v14810_v63 = vld [vmem:[#allocation83_spill] sm:$0xff]  ;;  %v14811_v46 = vld [vmem:[#allocation84_spill] sm:$0xff] }
0x1cb6   :  { %v13809_v36 = vadd.f32 %v10185_v40, %v5577_v21  ;;  %v14809_v40 = vld [vmem:[#allocation82_spill] sm:$0xff]  ;;  %v14812_v21 = vld [vmem:[#allocation85_spill] sm:$0xff] }
0x1cb8   :  { %5905 = vst [vmem:[%s13905_s11 + $0x30] sm:$0xff] %v13809_v36  ;;  %5644 = vmatmul.mubr.f32.vlgmr.msra.gmra.mrb[56].mxu0 %v13809_v36  ;;  %5715 = vmatmul.mubr.f32.vlgmr.msra.gmra.mrb[84].mxu1 %v13809_v36 }
0x1cb9   :  { %5803 = vmatprep.mubr.f32.mxu0 %v13809_v36  ;;  %5874 = vmatprep.mubr.f32.mxu1 %v13809_v36 }
0x1cba   :  { %9724 = vmatpush1.bf16.msra.mxu0 %v12232_v41  ;;  %9788 = vmatpush1.bf16.msra.mxu1 %v14758_v18  ;;  %v14768_v41 = vld [vmem:[#allocation41_spill] sm:$0xff]  ;;  %v14813_v18 = vld [vmem:[#allocation86_spill] sm:$0xff] }
0x1cbb   :  { %9726 = vmatprep.subr.bf16.mxu0 %v14759_v60  ;;  %9790 = vmatprep.subr.bf16.mxu1 %v14760_v23  ;;  %v14814_v60 = vld [vmem:[#allocation87_spill] sm:$0xff]  ;;  %v14815_v23 = vld [vmem:[#allocation88_spill] sm:$0xff] }
0x1cbe   :  { %9728 = vmatpush1.bf16.msra.mxu0 %v14761_v34  ;;  %9792 = vmatpush1.bf16.msra.mxu1 %v14762_v38  ;;  %v14816_v34 = vld [vmem:[#allocation89_spill] sm:$0xff]  ;;  %v14817_v38 = vld [vmem:[#allocation90_spill] sm:$0xff] }
0x1cbf   :  { %9730 = vmatprep.subr.bf16.mxu0 %v14763_v31  ;;  %9794 = vmatprep.subr.bf16.mxu1 %v14764_v37  ;;  %v14818_v31 = vld [vmem:[#allocation91_spill] sm:$0xff] }
0x1cc2   :  { %9732 = vmatpush1.bf16.msra.mxu0 %v14765_v56  ;;  %9796 = vmatpush1.bf16.msra.mxu1 %v14766_v58 }
0x1cc3   :  { %9734 = vmatprep.subr.bf16.mxu0 %v14767_v5  ;;  %9798 = vmatprep.subr.bf16.mxu1 %v14768_v41 }
0x1cc6   :  { %9736 = vmatpush1.bf16.msra.mxu0 %v14769_v33  ;;  %9800 = vmatpush1.bf16.msra.mxu1 %v14770_v30  ;;  %v14819_v30 = vld [vmem:[#allocation93_spill] sm:$0xff] }
0x1cc7   :  { %9738 = vmatprep.subr.bf16.mxu0 %v14771_v32  ;;  %9802 = vmatprep.subr.bf16.mxu1 %v14772_v52 }
0x1cca   :  { %9740 = vmatpush1.bf16.msra.mxu0 %v14773_v45  ;;  %9804 = vmatpush1.bf16.msra.mxu1 %v14774_v51 }
0x1ccb   :  { %9742 = vmatprep.subr.bf16.mxu0 %v14775_v61  ;;  %9806 = vmatprep.subr.bf16.mxu1 %v14776_v20 }
0x1cce   :  { %9744 = vmatpush1.bf16.msra.mxu0 %v14777_v29  ;;  %9808 = vmatpush1.bf16.msra.mxu1 %v14778_v49 }
0x1ccf   :  { %9746 = vmatprep.subr.bf16.mxu0 %v14779_v55  ;;  %9810 = vmatprep.subr.bf16.mxu1 %v14780_v11 }
0x1cd2   :  { %9748 = vmatpush1.bf16.msra.mxu0 %v14781_v2  ;;  %9812 = vmatpush1.bf16.msra.mxu1 %v14782_v43 }
0x1cd3   :  { %9750 = vmatprep.subr.bf16.mxu0 %v14783_v0  ;;  %9814 = vmatprep.subr.bf16.mxu1 %v14784_v22 }
0x1cd6   :  { %9752 = vmatpush1.bf16.msra.mxu0 %v14785_v25  ;;  %9816 = vmatpush1.bf16.msra.mxu1 %v14786_v10 }
0x1cd7   :  { %9754 = vmatprep.subr.bf16.mxu0 %v14787_v59  ;;  %9818 = vmatprep.subr.bf16.mxu1 %v14788_v50 }
0x1cda   :  { %9756 = vmatpush1.bf16.msra.mxu0 %v14789_v12  ;;  %9820 = vmatpush1.bf16.msra.mxu1 %v14790_v4 }
0x1cdb   :  { %9758 = vmatprep.subr.bf16.mxu0 %v14791_v1  ;;  %9822 = vmatprep.subr.bf16.mxu1 %v14792_v39 }
0x1cde   :  { %9760 = vmatpush1.bf16.msra.mxu0 %v14793_v54  ;;  %9824 = vmatpush1.bf16.msra.mxu1 %v14794_v62 }
0x1cdf   :  { %9762 = vmatprep.subr.bf16.mxu0 %v14795_v7  ;;  %9826 = vmatprep.subr.bf16.mxu1 %v14796_v47 }
0x1ce2   :  { %9764 = vmatpush1.bf16.msra.mxu0 %v14797_v27  ;;  %9828 = vmatpush1.bf16.msra.mxu1 %v14798_v42 }
0x1ce3   :  { %9766 = vmatprep.subr.bf16.mxu0 %v14799_v53  ;;  %9830 = vmatprep.subr.bf16.mxu1 %v14800_v35 }
0x1ce6   :  { %9768 = vmatpush1.bf16.msra.mxu0 %v14801_v6  ;;  %9832 = vmatpush1.bf16.msra.mxu1 %v14802_v14 }
0x1ce7   :  { %9770 = vmatprep.subr.bf16.mxu0 %v14803_v9  ;;  %9834 = vmatprep.subr.bf16.mxu1 %v14804_v16 }
0x1cea   :  { %9772 = vmatpush1.bf16.msra.mxu0 %v14805_v24  ;;  %9836 = vmatpush1.bf16.msra.mxu1 %v14806_v26 }
0x1ceb   :  { %9774 = vmatprep.subr.bf16.mxu0 %v14807_v3  ;;  %9838 = vmatprep.subr.bf16.mxu1 %v14808_v57 }
0x1cee   :  { %9776 = vmatpush1.bf16.msra.mxu0 %v14809_v40  ;;  %9840 = vmatpush1.bf16.msra.mxu1 %v14810_v63 }
0x1cef   :  { %9778 = vmatprep.subr.bf16.mxu0 %v14811_v46  ;;  %9842 = vmatprep.subr.bf16.mxu1 %v14812_v21 }
0x1cf2   :  { %9780 = vmatpush1.bf16.msra.mxu0 %v14813_v18  ;;  %9844 = vmatpush1.bf16.msra.mxu1 %v14814_v60 }
0x1cf3   :  { %9782 = vmatprep.subr.bf16.mxu0 %v14815_v23  ;;  %9846 = vmatprep.subr.bf16.mxu1 %v14816_v34 }
0x1cf6   :  { %9784 = vmatpush1.bf16.msra.mxu0 %v14817_v38  ;;  %9848 = vmatpush1.bf16.msra.mxu1 %v14818_v31 }
0x1d8b   :  { %v5645_v37 = vpop.f32.mrb[56].mxu0  ;;  %v5716_v56 = vpop.f32.mrb[84].mxu1 }
0x1d8c   :  { %v5646_v58 = vadd.f32 %v5645_v37, %v14274_v17  ;;  %v5647_v5 = vpop.f32.mrb[57].mxu0  ;;  %v5718_v41 = vpop.f32.mrb[85].mxu1  ;;  %v5717_v49 = vadd.f32 %v5716_v56, %v12789_v44 }
0x1d8d   :  { %v5648_v32 = vadd.f32 %v5647_v5, %v14819_v30  ;;  %v5719_v20 = vadd.f32 %v5718_v41, %v12786_v15 }
0x1d8e   :  { %v6112_v33 = vmul.f32 -1.442695, %v5646_v58 }
0x1d8f   :  { %v6113_v52 = vmul.f32 -1.442695, %v5648_v32 }
0x1d90   :  { %10188 = vpow2.f32 %v6112_v33 }
0x1d91   :  { %10190 = vpow2.f32 %v6113_v52 }
0x1d9a   :  { %v10189_v45 = vpop.eup %10188 }
0x1d9b   :  { %v5724_v51 = vadd.f32 1.0, %v10189_v45  ;;  %v10191_v61 = vpop.eup %10190 }
0x1d9c   :  { %v5730_v11 = vadd.f32 1.0, %v10191_v61 }
0x1d9d   :  { %10192 = vrcp.f32 %v5724_v51 }
0x1da7   :  { %v10193_v29 = vpop.eup %10192 }
0x1da8   :  { %v5733_v55 = vmul.f32 %v10193_v29, %v5719_v20 }
0x1daa   :  { %v5734_v17 = vadd.f32 %v5733_v55, %v5717_v49 }
0x1dac   :  { %10194 = vtanh.f32 %v5734_v17 }
0x1dad   :  { %10196 = vrcp.f32 %v5730_v11 }
0x1db6   :  { %v10195_v2 = vpop.eup %10194 }
0x1db7   :  { %v5736_v43 = vsub.f32 %v13734_v8, %v10195_v2  ;;  %v10197_v0 = vpop.eup %10196 }
0x1db9   :  { %v5737_v22 = vmul.f32 %v10197_v0, %v5736_v43 }
0x1dbb   :  { %v5738_v25 = vadd.f32 %v10195_v2, %v5737_v22 }
0x1dbd   :  { %5804 = vmatmul.mubr.f32.vlgmr.msra.gmra.mrb[58].mxu0 %v5738_v25  ;;  %5875 = vmatmul.mubr.f32.vlgmr.msra.gmra.mrb[86].mxu1 %v5738_v25 }
0x1e90   :  { %v5805_v10 = vpop.f32.mrb[58].mxu0  ;;  %v5876_v59 = vpop.f32.mrb[86].mxu1 }
0x1e91   :  { %v5806_v15 = vadd.f32 %v5805_v10, %v14302_v28  ;;  %v5807_v50 = vpop.f32.mrb[59].mxu0  ;;  %v5878_v12 = vpop.f32.mrb[87].mxu1  ;;  %v5877_v47 = vadd.f32 %v5876_v59, %v12880_v19 }
0x1e92   :  { %v5808_v4 = vadd.f32 %v5807_v50, %v14757_v48  ;;  %v5879_v62 = vadd.f32 %v5878_v12, %v12877_v13 }
0x1e93   :  { %v6114_v44 = vmul.f32 -1.442695, %v5806_v15 }
0x1e94   :  { %v6115_v1 = vmul.f32 -1.442695, %v5808_v4 }
0x1e95   :  { %10198 = vpow2.f32 %v6114_v44 }
0x1e96   :  { %10200 = vpow2.f32 %v6115_v1 }
0x1e9f   :  { %v10199_v39 = vpop.eup %10198 }
0x1ea0   :  { %v5884_v54 = vadd.f32 1.0, %v10199_v39  ;;  %v10201_v8 = vpop.eup %10200 }
0x1ea1   :  { %v5890_v42 = vadd.f32 1.0, %v10201_v8 }
0x1ea2   :  { %10202 = vrcp.f32 %v5884_v54 }
0x1eac   :  { %v10203_v7 = vpop.eup %10202 }
0x1ead   :  { %v5893_v27 = vmul.f32 %v10203_v7, %v5879_v62 }
0x1eaf   :  { %v5894_v28 = vadd.f32 %v5893_v27, %v5877_v47 }
0x1eb1   :  { %10204 = vtanh.f32 %v5894_v28 }
0x1eb2   :  { %10206 = vrcp.f32 %v5890_v42 }
0x1ebb   :  { %v10205_v53 = vpop.eup %10204 }
0x1ebc   :  { %v5896_v35 = vsub.f32 %v13809_v36, %v10205_v53  ;;  %v10207_v48 = vpop.eup %10206 }
0x1ebe   :  { %v5897_v6 = vmul.f32 %v10207_v48, %v5896_v35 }
0x1ec0   :  { %v5898_v14 = vadd.f32 %v10205_v53, %v5897_v6 }
0x1ec2   :  { %5906 = vst [vmem:[%s13905_s11 + $0x38] sm:$0xff] %v5898_v14 }

</bundles_post_ra>
